<compile_context>
chip_gen: v7x
topology: tpu7x:2x2x1
jax: 0.10.0
libtpu: 0.0.40
codegen_flags: <defaults>
</compile_context>

<pallas_src>
import math
import functools

import jax
import jax.numpy as jnp
from jax import lax
from jax.experimental import pallas as pl
from jax.experimental.pallas import tpu as pltpu

_LN_EPS = 1e-5


# --------------------------------------------------------------------------------------
# In-kernel math helpers (pure jnp, traced inside the Pallas kernels)
# --------------------------------------------------------------------------------------

def _ln(x, g, b, eps):
    mean = jnp.mean(x, axis=-1, keepdims=True)
    xc = x - mean
    var = jnp.mean(xc * xc, axis=-1, keepdims=True)
    return xc * lax.rsqrt(var + eps) * g + b


def _erf(x):
    # Abramowitz & Stegun 7.1.26 rational approximation, |err| < 1.5e-7 (~f32 eps).
    # TODO(synk): lax.erf has no guaranteed Mosaic lowering; exact-erf GELU is matched to
    # f32-level accuracy with this in-kernel approximation instead.
    p = 0.3275911
    a1, a2, a3, a4, a5 = 0.254829592, -0.284496736, 1.421413741, -1.453152027, 1.061405429
    ax = jnp.abs(x)
    t = 1.0 / (1.0 + p * ax)
    poly = ((((a5 * t + a4) * t + a3) * t + a2) * t + a1) * t
    y = 1.0 - poly * jnp.exp(-ax * ax)
    return jnp.where(x >= 0, y, -y)


def _gelu(x):
    return 0.5 * x * (1.0 + _erf(x * (1.0 / math.sqrt(2.0))))


def _softmax_lastdim(s):
    s = s - jnp.max(s, axis=-1, keepdims=True)
    p = jnp.exp(s)
    return p * pl.reciprocal(jnp.sum(p, axis=-1, keepdims=True), approx=True)


def _mhsa_proj(h_q, h_kv, wq_or_qslab, k_slab, v_slab, wproj, num_heads, scale):
    """Per-head softmax(QK^T)V folded directly into the output projection.

    h_q : (Nq, C) query-side rows   (already projected:  q_slab = wq_or_qslab)
    Returns (Nq, C) = concat_h(o_h) @ wproj  ==  sum_h o_h @ wproj[h*hd:(h+1)*hd].
    """
    Nq, C = wq_or_qslab.shape
    hd = C // num_heads
    out = jnp.zeros((Nq, C), jnp.float32)
    for hh in range(num_heads):
        lo = hh * hd
        q = wq_or_qslab[:, lo:lo + hd]
        k = k_slab[:, lo:lo + hd]
        v = v_slab[:, lo:lo + hd]
        s = lax.dot_general(q, k, (((1,), (1,)), ((), ())),
                            preferred_element_type=jnp.float32) * scale
        p = _softmax_lastdim(s)
        o_h = jnp.dot(p, v, preferred_element_type=jnp.float32)
        out = out + jnp.dot(o_h, wproj[lo:lo + hd, :],
                            preferred_element_type=jnp.float32)
    return out


# --------------------------------------------------------------------------------------
# Fused kernels
# --------------------------------------------------------------------------------------

def _vit_blocks_kernel(x_ref, n1g_ref, n1b_ref, wqkv_ref, wproj_ref, bproj_ref,
                       n2g_ref, n2b_ref, w1_ref, b1_ref, w2_ref, b2_ref,
                       o_ref, *, depth, num_heads, scale, eps):
    """A whole stack of same-shaped timm ViT Blocks for one batch element, all in VMEM."""
    x = x_ref[0]                                   # (N, C)
    N, C = x.shape
    hd = C // num_heads

    for d in range(depth):                         # static block loop (stacked weights)
        # ---- attention: norm1 -> qkv -> per-head softmax(QK^T)V -> proj -> +residual ----
        h = _ln(x, n1g_ref[d], n1b_ref[d], eps)
        qkv = jnp.dot(h, wqkv_ref[d], preferred_element_type=jnp.float32)   # (N, 3C)
        wproj = wproj_ref[d]                                                # (C, C)
        attn_proj = jnp.zeros((N, C), jnp.float32)
        for hh in range(num_heads):                # static head loop (lane slices, width hd)
            lo = hh * hd
            q = qkv[:, lo:lo + hd]
            k = qkv[:, C + lo:C + lo + hd]
            v = qkv[:, 2 * C + lo:2 * C + lo + hd]
            s = lax.dot_general(q, k, (((1,), (1,)), ((), ())),
                                preferred_element_type=jnp.float32) * scale  # (N, N)
            p = _softmax_lastdim(s)
            o_h = jnp.dot(p, v, preferred_element_type=jnp.float32)          # (N, hd)
            # concat_h(o_h) @ Wproj == sum_h o_h @ Wproj[h*hd:(h+1)*hd]
            attn_proj = attn_proj + jnp.dot(o_h, wproj[lo:lo + hd, :],
                                            preferred_element_type=jnp.float32)
        x = x + attn_proj + bproj_ref[d]

        # ---- MLP: norm2 -> fc1 -> GELU -> fc2 -> +residual ----
        h = _ln(x, n2g_ref[d], n2b_ref[d], eps)
        h = jnp.dot(h, w1_ref[d], preferred_element_type=jnp.float32) + b1_ref[d]
        h = _gelu(h)
        x = x + jnp.dot(h, w2_ref[d], preferred_element_type=jnp.float32) + b2_ref[d]

    o_ref[0] = x


def _fusion_path_kernel(xi_ref, xj_ref,
                        pg_ref, pb_ref, pw_ref, pbias_ref,
                        fn1g_ref, fn1b_ref, fwq_ref, fwk_ref, fwv_ref, fwp_ref, fbp_ref,
                        rg_ref, rb_ref, rw_ref, rbias_ref,
                        o_ref, *, num_heads, scale, eps, fusion_depth):
    """Full cross-branch fusion path for one batch element:

       proj_cls (LN->GELU->Linear)  ->  CrossAttentionBlock stack (has_mlp=False)
       ->  revert_proj (LN->GELU->Linear)  ->  [reverted_cls ; xi[1:]]
    """
    xi = xi_ref[0]                                  # (Ni, Ci)  branch-i slab (residual side)
    xj = xj_ref[0]                                  # (Nj, Cj)  branch-j slab (token side)
    Ni, Ci = xi.shape
    Nj, Cj = xj.shape
    hd = Cj // num_heads

    # projs[i]: LN -> GELU -> Linear(Ci -> Cj) on branch-i cls token
    pc = _ln(xi[0:1], pg_ref[...], pb_ref[...], eps)
    pc = _gelu(pc)
    pc = jnp.dot(pc, pw_ref[...], preferred_element_type=jnp.float32) + pbias_ref[...]  # (1, Cj)

    # tmp = [proj_cls ; xj[1:]] : row-0 replace via select (no sublane concat / relayout)
    row_j = lax.broadcasted_iota(jnp.int32, (Nj, Cj), 0)
    tmp = jnp.where(row_j == 0, pc, xj)

    # fusion[i]: stack of CrossAttentionBlocks (after the first, tmp only carries the cls row)
    for f in range(fusion_depth):                   # static loop (stacked weights)
        h = _ln(tmp, fn1g_ref[f], fn1b_ref[f], eps)
        q = jnp.dot(h[0:1], fwq_ref[f], preferred_element_type=jnp.float32)   # (1, Cj)
        k = jnp.dot(h, fwk_ref[f], preferred_element_type=jnp.float32)        # (N, Cj)
        v = jnp.dot(h, fwv_ref[f], preferred_element_type=jnp.float32)        # (N, Cj)
        out = _mhsa_proj(None, None, q, k, v, fwp_ref[f], num_heads, scale)   # (1, Cj)
        tmp = tmp[0:1] + out + fbp_ref[f]

    # revert_projs[i]: LN -> GELU -> Linear(Cj -> Ci)
    rc = _ln(tmp[0:1], rg_ref[...], rb_ref[...], eps)
    rc = _gelu(rc)
    rc = jnp.dot(rc, rw_ref[...], preferred_element_type=jnp.float32) + rbias_ref[...]  # (1, Ci)

    # out = [reverted_cls ; xi[1:]]
    row_i = lax.broadcasted_iota(jnp.int32, (Ni, Ci), 0)
    o_ref[0] = jnp.where(row_i == 0, rc, xi)


def _ln_act_linear_kernel(x_ref, g_ref, bln_ref, w_ref, b_ref, o_ref, *, eps, act):
    """Fused LayerNorm (+ optional GELU) + Linear on a (M, Cin) slab."""
    h = _ln(x_ref[...], g_ref[...], bln_ref[...], eps)
    if act:
        h = _gelu(h)
    o_ref[...] = jnp.dot(h, w_ref[...], preferred_element_type=jnp.float32) + b_ref[...]


def _linear_kernel(x_ref, w_ref, b_ref, o_ref):
    o_ref[...] = jnp.dot(x_ref[...], w_ref[...],
                         preferred_element_type=jnp.float32) + b_ref[...]


# --------------------------------------------------------------------------------------
# pallas_call wrappers
# --------------------------------------------------------------------------------------

def _full_spec(arr):
    # whole-array-resident block (index_map constant -> DMA'd once, kept across grid steps)
    return pl.BlockSpec(arr.shape, lambda b, _nd=arr.ndim: (0,) * _nd)


def pallas_vit_blocks(x, blocks, num_heads, eps=_LN_EPS):
    """Run a list of same-shaped ViT Block params as one fused pallas_call."""
    B, N, C = x.shape
    depth = len(blocks)
    hd = C // num_heads
    hidden = blocks[0]['fc1']['w'].shape[1]

    def stack(f):
        return jnp.stack([f(bp) for bp in blocks])

    args = [
        x,
        stack(lambda bp: bp['norm1']['g'].reshape(1, C)),
        stack(lambda bp: bp['norm1']['b'].reshape(1, C)),
        stack(lambda bp: bp['qkv']['w']),                         # qkv_bias=False -> no bias
        stack(lambda bp: bp['proj']['w']),
        stack(lambda bp: bp['proj']['b'].reshape(1, C)),
        stack(lambda bp: bp['norm2']['g'].reshape(1, C)),
        stack(lambda bp: bp['norm2']['b'].reshape(1, C)),
        stack(lambda bp: bp['fc1']['w']),
        stack(lambda bp: bp['fc1']['b'].reshape(1, hidden)),
        stack(lambda bp: bp['fc2']['w']),
        stack(lambda bp: bp['fc2']['b'].reshape(1, C)),
    ]
    in_specs = ([pl.BlockSpec((1, N, C), lambda b: (b, 0, 0))]
                + [_full_spec(a) for a in args[1:]])
    return pl.pallas_call(
        functools.partial(_vit_blocks_kernel, depth=depth, num_heads=num_heads,
                          scale=hd ** -0.5, eps=eps),
        grid=(B,),
        in_specs=in_specs,
        out_specs=pl.BlockSpec((1, N, C), lambda b: (b, 0, 0)),
        out_shape=jax.ShapeDtypeStruct((B, N, C), jnp.float32),
        compiler_params=pltpu.CompilerParams(dimension_semantics=("parallel",)),
    )(*args)


def pallas_fusion_path(xi, xj, proj_p, fusion_list, revert_p, num_heads_j, eps=_LN_EPS):
    """proj_cls -> cross-attention stack -> revert_proj -> reassembled branch-i slab."""
    B, Ni, Ci = xi.shape
    _, Nj, Cj = xj.shape
    hd = Cj // num_heads_j
    fdepth = len(fusion_list)

    def stack(f):
        return jnp.stack([f(fp) for fp in fusion_list])

    args = [
        xi, xj,
        proj_p['ln']['g'].reshape(1, Ci), proj_p['ln']['b'].reshape(1, Ci),
        proj_p['fc']['w'], proj_p['fc']['b'].reshape(1, Cj),
        stack(lambda fp: fp['norm1']['g'].reshape(1, Cj)),
        stack(lambda fp: fp['norm1']['b'].reshape(1, Cj)),
        stack(lambda fp: fp['wq']['w']),                          # qkv_bias=False -> no biases
        stack(lambda fp: fp['wk']['w']),
        stack(lambda fp: fp['wv']['w']),
        stack(lambda fp: fp['proj']['w']),
        stack(lambda fp: fp['proj']['b'].reshape(1, Cj)),
        revert_p['ln']['g'].reshape(1, Cj), revert_p['ln']['b'].reshape(1, Cj),
        revert_p['fc']['w'], revert_p['fc']['b'].reshape(1, Ci),
    ]
    in_specs = ([pl.BlockSpec((1, Ni, Ci), lambda b: (b, 0, 0)),
                 pl.BlockSpec((1, Nj, Cj), lambda b: (b, 0, 0))]
                + [_full_spec(a) for a in args[2:]])
    return pl.pallas_call(
        functools.partial(_fusion_path_kernel, num_heads=num_heads_j,
                          scale=hd ** -0.5, eps=eps, fusion_depth=fdepth),
        grid=(B,),
        in_specs=in_specs,
        out_specs=pl.BlockSpec((1, Ni, Ci), lambda b: (b, 0, 0)),
        out_shape=jax.ShapeDtypeStruct((B, Ni, Ci), jnp.float32),
        compiler_params=pltpu.CompilerParams(dimension_semantics=("parallel",)),
    )(xi, xj, *args[2:])


def pallas_ln_linear(x2d, ln_p, lin_p, act=False, eps=_LN_EPS):
    M, Cin = x2d.shape
    Cout = lin_p['w'].shape[1]
    return pl.pallas_call(
        functools.partial(_ln_act_linear_kernel, eps=eps, act=act),
        out_shape=jax.ShapeDtypeStruct((M, Cout), jnp.float32),
    )(x2d, ln_p['g'].reshape(1, Cin), ln_p['b'].reshape(1, Cin),
      lin_p['w'], lin_p['b'].reshape(1, Cout))


def pallas_linear2d(x2d, w, b, row_tile=256):
    M, K = x2d.shape
    N = w.shape[1]
    b2 = b.reshape(1, N)
    if M <= row_tile or M % row_tile != 0:
        # whole-slab resident (patch-embed slabs here are tiny: M <= 32)
        return pl.pallas_call(
            _linear_kernel,
            out_shape=jax.ShapeDtypeStruct((M, N), jnp.float32),
        )(x2d, w, b2)
    # row-tiled, weight-resident path for large M (bounds VMEM, shards rows across TCs)
    return pl.pallas_call(
        _linear_kernel,
        grid=(M // row_tile,),
        in_specs=[pl.BlockSpec((row_tile, K), lambda i: (i, 0)),
                  pl.BlockSpec((K, N), lambda i: (0, 0)),
                  pl.BlockSpec((1, N), lambda i: (0, 0))],
        out_specs=pl.BlockSpec((row_tile, N), lambda i: (i, 0)),
        out_shape=jax.ShapeDtypeStruct((M, N), jnp.float32),
        compiler_params=pltpu.CompilerParams(dimension_semantics=("parallel",)),
    )(x2d, w, b2)


# --------------------------------------------------------------------------------------
# Model (PatchEmbed, MultiScaleBlock, VisionTransformer) — thin JAX glue around the kernels
# --------------------------------------------------------------------------------------

def patch_embed(x_nchw, p, patch):
    # Conv2d(kernel=stride=patch) == patchify + matmul
    B, C, H, W = x_nchw.shape
    Hp, Wp = H // patch, W // patch
    xp = x_nchw.reshape(B, C, Hp, patch, Wp, patch)
    xp = xp.transpose(0, 2, 4, 1, 3, 5)                        # (B, Hp, Wp, C, ph, pw)
    xp = xp.reshape(B * Hp * Wp, C * patch * patch)
    y = pallas_linear2d(xp, p['w'], p['b'])
    return y.reshape(B, Hp * Wp, -1)


def multiscale_block(xs, p, num_heads):
    nb = len(xs)
    # per-branch ViT Block stack: one fused pallas_call per branch
    outs_b = [pallas_vit_blocks(xs[d], p['blocks'][d], num_heads[d]) for d in range(nb)]
    # per-branch cross fusion path: one fused pallas_call per branch
    outs = []
    for i in range(nb):
        j = (i + 1) % nb
        outs.append(pallas_fusion_path(outs_b[i], outs_b[j],
                                       p['projs'][i], p['fusion'][i], p['revert'][i],
                                       num_heads[j]))
    return outs


def vision_transformer(x, params, cfg):
    B = x.shape[0]
    nb = cfg['num_branches']
    xs = []
    for i in range(nb):
        # TODO(synk): F.interpolate(mode='bicubic') branch not implemented in Pallas;
        # config uses H == img_size[i] for all branches so the reference skips it too.
        tmp = patch_embed(x, params['patch_embed'][i], cfg['patch_size'][i])
        cls = jnp.broadcast_to(params['cls_token'][i], (B, 1, cfg['embed_dim'][i]))
        tmp = jnp.concatenate([cls, tmp], axis=1)
        tmp = tmp + params['pos_embed'][i]                      # pos_drop(p=0) -> identity
        xs.append(tmp)

    list_xs = []
    for blk_p in params['blocks']:
        xs = multiscale_block(xs, blk_p, cfg['num_heads'])
        list_xs.append(xs)

    # reference forward uses exactly 3 scales; LayerNorm is per-token so norm(x)[:,0]==norm(x[:,0])
    outs = []
    for s in range(len(cfg['depth'])):
        logits = []
        for i in range(nb):
            logits.append(pallas_ln_linear(list_xs[s][i][:, 0],
                                           params['norm'][i], params['head'][i], act=False))
        outs.append(jnp.mean(jnp.stack(logits, axis=0), axis=0))
    return jnp.concatenate(outs, axis=1)


# --------------------------------------------------------------------------------------
# Deterministic parameter construction
# --------------------------------------------------------------------------------------

def make_params(key, cfg):
    ks = iter(jax.random.split(key, 4096))

    def nk():
        return next(ks)

    def trunc_normal(shape, std=0.02):
        return std * jax.random.truncated_normal(nk(), -2.0, 2.0, shape, jnp.float32)

    def lin(i, o, bias=True):
        # stored as (in, out) == torch weight.T ; bias zero-init (matches _init_weights)
        p = {'w': trunc_normal((i, o))}
        if bias:
            p['b'] = jnp.zeros((o,), jnp.float32)
        return p

    def ln(d):
        return {'g': jnp.ones((d,), jnp.float32), 'b': jnp.zeros((d,), jnp.float32)}

    nb, ed, nh, mr = cfg['num_branches'], cfg['embed_dim'], cfg['num_heads'], cfg['mlp_ratio']
    num_patches = [s // p * (s // p) for s, p in zip(cfg['img_size'], cfg['patch_size'])]

    params = {}
    params['patch_embed'] = [lin(cfg['in_chans'] * cfg['patch_size'][i] ** 2, ed[i])
                             for i in range(nb)]
    params['pos_embed'] = [trunc_normal((1, 1 + num_patches[i], ed[i])) for i in range(nb)]
    params['cls_token'] = [trunc_normal((1, 1, ed[i])) for i in range(nb)]

    def vit_block_params(d):
        dim, hidden = ed[d], int(ed[d] * mr[d])
        return {'norm1': ln(dim), 'qkv': lin(dim, 3 * dim, bias=False),
                'proj': lin(dim, dim),
                'norm2': ln(dim), 'fc1': lin(dim, hidden), 'fc2': lin(hidden, dim)}

    def cross_block_params(dim):
        return {'norm1': ln(dim), 'wq': lin(dim, dim, bias=False),
                'wk': lin(dim, dim, bias=False), 'wv': lin(dim, dim, bias=False),
                'proj': lin(dim, dim)}

    params['blocks'] = []
    for block_cfg in cfg['depth']:
        msp = {'blocks': [], 'projs': [], 'fusion': [], 'revert': []}
        for d in range(nb):
            msp['blocks'].append([vit_block_params(d) for _ in range(block_cfg[d])])
        for d in range(nb):
            d_ = (d + 1) % nb
            msp['projs'].append({'ln': ln(ed[d]), 'fc': lin(ed[d], ed[d_])})
            msp['fusion'].append([cross_block_params(ed[d_])
                                  for _ in range(max(block_cfg[-1], 1))])
            msp['revert'].append({'ln': ln(ed[d_]), 'fc': lin(ed[d_], ed[d])})
        params['blocks'].append(msp)

    params['norm'] = [ln(ed[i]) for i in range(nb)]
    params['head'] = [lin(ed[i], cfg['num_classes']) for i in range(nb)]
    return params


# --------------------------------------------------------------------------------------
# Main
# --------------------------------------------------------------------------------------

if __name__ == "__main__":
    # small but structurally faithful configuration (2 branches, 3 MultiScaleBlocks)
    cfg = dict(
        img_size=(16, 16),          # per-branch image size
        patch_size=(4, 8),          # per-branch patch size -> 16 and 4 patches
        in_chans=4,
        num_classes=10,
        embed_dim=(32, 64),
        depth=([1, 2, 1], [1, 2, 1], [1, 2, 1]),   # 3 MultiScaleBlocks (forward needs 3)
        num_heads=(4, 8),
        mlp_ratio=(2.0, 2.0, 4.0),
        num_branches=2,
    )

    key = jax.random.PRNGKey(0)
    k_param, k_input = jax.random.split(key)
    params = make_params(k_param, cfg)

    x = jax.random.normal(k_input, (2, cfg['in_chans'], 16, 16), dtype=jnp.float32)

    fwd = jax.jit(lambda inp: vision_transformer(inp, params, cfg))
    out = fwd(x)
    out = jax.block_until_ready(out)

    assert out.shape == (2, 3 * cfg['num_classes']), out.shape
    assert bool(jnp.all(jnp.isfinite(out)))
    print("KERNEL_OK")
</pallas_src>

<mosaic_0001>
module attributes {stable_mosaic.version = 11 : i64} {
  func.func @_linear_kernel(%arg0: memref<32x64xf32, #tpu.memory_space<vmem>>, %arg1: memref<64x32xf32, #tpu.memory_space<vmem>>, %arg2: memref<1x32xf32, #tpu.memory_space<vmem>>, %arg3: memref<32x32xf32, #tpu.memory_space<vmem>>) attributes {dimension_semantics = [], scalar_prefetch = 0 : i64, scratch_operands = 0 : i64, tpu.core_type = #tpu.core_type<tc>} {
    %c0 = arith.constant 0 : index
    %c0_0 = arith.constant 0 : index
    %0 = vector.load %arg0[%c0, %c0_0] : memref<32x64xf32, #tpu.memory_space<vmem>>, vector<32x64xf32>
    %c0_1 = arith.constant 0 : index
    %c0_2 = arith.constant 0 : index
    %1 = vector.load %arg1[%c0_1, %c0_2] : memref<64x32xf32, #tpu.memory_space<vmem>>, vector<64x32xf32>
    %cst = arith.constant dense<0.000000e+00> : vector<32x32xf32>
    %2 = tpu.matmul %0, %1, %cst {dimension_numbers = #tpu.dot_dimension_numbers<[1], [0], [0], [1], [0, 0, 1, 1], [], []>} : vector<32x64xf32>, vector<64x32xf32>, vector<32x32xf32> -> vector<32x32xf32>
    %c0_3 = arith.constant 0 : index
    %c0_4 = arith.constant 0 : index
    %3 = vector.load %arg2[%c0_3, %c0_4] : memref<1x32xf32, #tpu.memory_space<vmem>>, vector<1x32xf32>
    %4 = vector.broadcast %3 : vector<1x32xf32> to vector<32x32xf32>
    %5 = arith.addf %2, %4 : vector<32x32xf32>
    %c0_5 = arith.constant 0 : index
    %c0_6 = arith.constant 0 : index
    %6 = vector.load %arg3[%c0_5, %c0_6] : memref<32x32xf32, #tpu.memory_space<vmem>>, vector<32x32xf32>
    tpu.vector_store %arg3[%c0_5, %c0_6], %5 {strides = array<i32>} : memref<32x32xf32, #tpu.memory_space<vmem>>, vector<32x32xf32>,
    return
  }
}

module attributes {stable_mosaic.version = 11 : i64} {
  func.func @_vit_blocks_kernel(%arg0: i32, %arg1: memref<1x17x32xf32, #tpu.memory_space<vmem>>, %arg2: memref<1x1x32xf32, #tpu.memory_space<vmem>>, %arg3: memref<1x1x32xf32, #tpu.memory_space<vmem>>, %arg4: memref<1x32x96xf32, #tpu.memory_space<vmem>>, %arg5: memref<1x32x32xf32, #tpu.memory_space<vmem>>, %arg6: memref<1x1x32xf32, #tpu.memory_space<vmem>>, %arg7: memref<1x1x32xf32, #tpu.memory_space<vmem>>, %arg8: memref<1x1x32xf32, #tpu.memory_space<vmem>>, %arg9: memref<1x32x64xf32, #tpu.memory_space<vmem>>, %arg10: memref<1x1x64xf32, #tpu.memory_space<vmem>>, %arg11: memref<1x64x32xf32, #tpu.memory_space<vmem>>, %arg12: memref<1x1x32xf32, #tpu.memory_space<vmem>>, %arg13: memref<1x17x32xf32, #tpu.memory_space<vmem>>) attributes {dimension_semantics = [#tpu.dimension_semantics<parallel>], iteration_bounds = array<i64: 2>, scalar_prefetch = 0 : i64, scratch_operands = 0 : i64, tpu.core_type = #tpu.core_type<tc>, window_params = [{transform_indices = @transform_0, window_bounds = array<i64: 1, 17, 32>}, {pipeline_mode = #tpu.pipeline_mode<synchronous>, transform_indices = @transform_1, window_bounds = array<i64: 1, 1, 32>}, {pipeline_mode = #tpu.pipeline_mode<synchronous>, transform_indices = @transform_2, window_bounds = array<i64: 1, 1, 32>}, {pipeline_mode = #tpu.pipeline_mode<synchronous>, transform_indices = @transform_3, window_bounds = array<i64: 1, 32, 96>}, {pipeline_mode = #tpu.pipeline_mode<synchronous>, transform_indices = @transform_4, window_bounds = array<i64: 1, 32, 32>}, {pipeline_mode = #tpu.pipeline_mode<synchronous>, transform_indices = @transform_5, window_bounds = array<i64: 1, 1, 32>}, {pipeline_mode = #tpu.pipeline_mode<synchronous>, transform_indices = @transform_6, window_bounds = array<i64: 1, 1, 32>}, {pipeline_mode = #tpu.pipeline_mode<synchronous>, transform_indices = @transform_7, window_bounds = array<i64: 1, 1, 32>}, {pipeline_mode = #tpu.pipeline_mode<synchronous>, transform_indices = @transform_8, window_bounds = array<i64: 1, 32, 64>}, {pipeline_mode = #tpu.pipeline_mode<synchronous>, transform_indices = @transform_9, window_bounds = array<i64: 1, 1, 64>}, {pipeline_mode = #tpu.pipeline_mode<synchronous>, transform_indices = @transform_10, window_bounds = array<i64: 1, 64, 32>}, {pipeline_mode = #tpu.pipeline_mode<synchronous>, transform_indices = @transform_11, window_bounds = array<i64: 1, 1, 32>}, {transform_indices = @transform_12, window_bounds = array<i64: 1, 17, 32>}]} {
    %c0 = arith.constant 0 : index
    %c0_0 = arith.constant 0 : index
    %c0_1 = arith.constant 0 : index
    %0 = vector.load %arg1[%c0, %c0_0, %c0_1] : memref<1x17x32xf32, #tpu.memory_space<vmem>>, vector<1x17x32xf32>
    %1 = vector.shape_cast %0 : vector<1x17x32xf32> to vector<17x32xf32>
    %c0_2 = arith.constant 0 : index
    %c0_3 = arith.constant 0 : index
    %c0_4 = arith.constant 0 : index
    %2 = vector.load %arg2[%c0_2, %c0_3, %c0_4] : memref<1x1x32xf32, #tpu.memory_space<vmem>>, vector<1x1x32xf32>
    %3 = vector.shape_cast %2 : vector<1x1x32xf32> to vector<1x32xf32>
    %c0_5 = arith.constant 0 : index
    %c0_6 = arith.constant 0 : index
    %c0_7 = arith.constant 0 : index
    %4 = vector.load %arg3[%c0_5, %c0_6, %c0_7] : memref<1x1x32xf32, #tpu.memory_space<vmem>>, vector<1x1x32xf32>
    %5 = vector.shape_cast %4 : vector<1x1x32xf32> to vector<1x32xf32>
    %cst = arith.constant dense<0.000000e+00> : vector<17xf32>
    %6 = vector.multi_reduction <add>, %1, %cst [1] : vector<17x32xf32> to vector<17xf32>
    %7 = vector.shape_cast %6 : vector<17xf32> to vector<17x1xf32>
    %cst_8 = arith.constant 3.200000e+01 : f32
    %8 = vector.broadcast %cst_8 : f32 to vector<17x1xf32>
    %9 = arith.divf %7, %8 : vector<17x1xf32>
    %10 = vector.broadcast %9 : vector<17x1xf32> to vector<17x32xf32>
    %11 = arith.subf %1, %10 : vector<17x32xf32>
    %12 = arith.mulf %11, %11 : vector<17x32xf32>
    %cst_9 = arith.constant dense<0.000000e+00> : vector<17xf32>
    %13 = vector.multi_reduction <add>, %12, %cst_9 [1] : vector<17x32xf32> to vector<17xf32>
    %14 = vector.shape_cast %13 : vector<17xf32> to vector<17x1xf32>
    %cst_10 = arith.constant 3.200000e+01 : f32
    %15 = vector.broadcast %cst_10 : f32 to vector<17x1xf32>
    %16 = arith.divf %14, %15 : vector<17x1xf32>
    %cst_11 = arith.constant 9.99999974E-6 : f32
    %17 = vector.broadcast %cst_11 : f32 to vector<17x1xf32>
    %18 = arith.addf %16, %17 : vector<17x1xf32>
    %19 = math.rsqrt %18 : vector<17x1xf32>
    %20 = vector.broadcast %19 : vector<17x1xf32> to vector<17x32xf32>
    %21 = arith.mulf %11, %20 : vector<17x32xf32>
    %22 = vector.broadcast %3 : vector<1x32xf32> to vector<17x32xf32>
    %23 = arith.mulf %21, %22 : vector<17x32xf32>
    %24 = vector.broadcast %5 : vector<1x32xf32> to vector<17x32xf32>
    %25 = arith.addf %23, %24 : vector<17x32xf32>
    %c0_12 = arith.constant 0 : index
    %c0_13 = arith.constant 0 : index
    %c0_14 = arith.constant 0 : index
    %26 = vector.load %arg4[%c0_12, %c0_13, %c0_14] : memref<1x32x96xf32, #tpu.memory_space<vmem>>, vector<1x32x96xf32>
    %27 = vector.shape_cast %26 : vector<1x32x96xf32> to vector<32x96xf32>
    %cst_15 = arith.constant dense<0.000000e+00> : vector<17x96xf32>
    %28 = tpu.matmul %25, %27, %cst_15 {dimension_numbers = #tpu.dot_dimension_numbers<[1], [0], [0], [1], [0, 0, 1, 1], [], []>} : vector<17x32xf32>, vector<32x96xf32>, vector<17x96xf32> -> vector<17x96xf32>
    %c0_16 = arith.constant 0 : index
    %c0_17 = arith.constant 0 : index
    %c0_18 = arith.constant 0 : index
    %29 = vector.load %arg5[%c0_16, %c0_17, %c0_18] : memref<1x32x32xf32, #tpu.memory_space<vmem>>, vector<1x32x32xf32>
    %30 = vector.shape_cast %29 : vector<1x32x32xf32> to vector<32x32xf32>
    %cst_19 = arith.constant 0.000000e+00 : f32
    %31 = vector.broadcast %cst_19 : f32 to vector<17x32xf32>
    %32 = vector.extract_strided_slice %28 {offsets = [0, 0], sizes = [17, 8], strides = [1, 1]} : vector<17x96xf32> to vector<17x8xf32>
    %33 = vector.extract_strided_slice %28 {offsets = [0, 32], sizes = [17, 8], strides = [1, 1]} : vector<17x96xf32> to vector<17x8xf32>
    %34 = vector.extract_strided_slice %28 {offsets = [0, 64], sizes = [17, 8], strides = [1, 1]} : vector<17x96xf32> to vector<17x8xf32>
    %cst_20 = arith.constant dense<0.000000e+00> : vector<17x17xf32>
    %35 = tpu.matmul %32, %33, %cst_20 {dimension_numbers = #tpu.dot_dimension_numbers<[1], [1], [0], [0], [0, 0, 1, 0], [], []>} : vector<17x8xf32>, vector<17x8xf32>, vector<17x17xf32> -> vector<17x17xf32>
    %cst_21 = arith.constant 0.353553385 : f32
    %36 = vector.broadcast %cst_21 : f32 to vector<17x17xf32>
    %37 = arith.mulf %35, %36 : vector<17x17xf32>
    %cst_22 = arith.constant dense<0xFF800000> : vector<17xf32>
    %38 = vector.multi_reduction <maximumf>, %37, %cst_22 [1] : vector<17x17xf32> to vector<17xf32>
    %39 = vector.shape_cast %38 : vector<17xf32> to vector<17x1xf32>
    %40 = vector.broadcast %39 : vector<17x1xf32> to vector<17x17xf32>
    %41 = arith.subf %37, %40 : vector<17x17xf32>
    %42 = math.exp %41 : vector<17x17xf32>
    %cst_23 = arith.constant dense<0.000000e+00> : vector<17xf32>
    %43 = vector.multi_reduction <add>, %42, %cst_23 [1] : vector<17x17xf32> to vector<17xf32>
    %44 = vector.shape_cast %43 : vector<17xf32> to vector<17x1xf32>
    %45 = tpu.reciprocal %44 {approx = true} : vector<17x1xf32> -> vector<17x1xf32>
    %46 = vector.broadcast %45 : vector<17x1xf32> to vector<17x17xf32>
    %47 = arith.mulf %42, %46 : vector<17x17xf32>
    %cst_24 = arith.constant dense<0.000000e+00> : vector<17x8xf32>
    %48 = tpu.matmul %47, %34, %cst_24 {dimension_numbers = #tpu.dot_dimension_numbers<[1], [0], [0], [1], [0, 0, 1, 1], [], []>} : vector<17x17xf32>, vector<17x8xf32>, vector<17x8xf32> -> vector<17x8xf32>
    %49 = vector.extract_strided_slice %30 {offsets = [0, 0], sizes = [8, 32], strides = [1, 1]} : vector<32x32xf32> to vector<8x32xf32>
    %cst_25 = arith.constant dense<0.000000e+00> : vector<17x32xf32>
    %50 = tpu.matmul %48, %49, %cst_25 {dimension_numbers = #tpu.dot_dimension_numbers<[1], [0], [0], [1], [0, 0, 1, 1], [], []>} : vector<17x8xf32>, vector<8x32xf32>, vector<17x32xf32> -> vector<17x32xf32>
    %51 = arith.addf %31, %50 : vector<17x32xf32>
    %52 = vector.extract_strided_slice %28 {offsets = [0, 8], sizes = [17, 8], strides = [1, 1]} : vector<17x96xf32> to vector<17x8xf32>
    %53 = vector.extract_strided_slice %28 {offsets = [0, 40], sizes = [17, 8], strides = [1, 1]} : vector<17x96xf32> to vector<17x8xf32>
    %54 = vector.extract_strided_slice %28 {offsets = [0, 72], sizes = [17, 8], strides = [1, 1]} : vector<17x96xf32> to vector<17x8xf32>
    %cst_26 = arith.constant dense<0.000000e+00> : vector<17x17xf32>
    %55 = tpu.matmul %52, %53, %cst_26 {dimension_numbers = #tpu.dot_dimension_numbers<[1], [1], [0], [0], [0, 0, 1, 0], [], []>} : vector<17x8xf32>, vector<17x8xf32>, vector<17x17xf32> -> vector<17x17xf32>
    %cst_27 = arith.constant 0.353553385 : f32
    %56 = vector.broadcast %cst_27 : f32 to vector<17x17xf32>
    %57 = arith.mulf %55, %56 : vector<17x17xf32>
    %cst_28 = arith.constant dense<0xFF800000> : vector<17xf32>
    %58 = vector.multi_reduction <maximumf>, %57, %cst_28 [1] : vector<17x17xf32> to vector<17xf32>
    %59 = vector.shape_cast %58 : vector<17xf32> to vector<17x1xf32>
    %60 = vector.broadcast %59 : vector<17x1xf32> to vector<17x17xf32>
    %61 = arith.subf %57, %60 : vector<17x17xf32>
    %62 = math.exp %61 : vector<17x17xf32>
    %cst_29 = arith.constant dense<0.000000e+00> : vector<17xf32>
    %63 = vector.multi_reduction <add>, %62, %cst_29 [1] : vector<17x17xf32> to vector<17xf32>
    %64 = vector.shape_cast %63 : vector<17xf32> to vector<17x1xf32>
    %65 = tpu.reciprocal %64 {approx = true} : vector<17x1xf32> -> vector<17x1xf32>
    %66 = vector.broadcast %65 : vector<17x1xf32> to vector<17x17xf32>
    %67 = arith.mulf %62, %66 : vector<17x17xf32>
    %cst_30 = arith.constant dense<0.000000e+00> : vector<17x8xf32>
    %68 = tpu.matmul %67, %54, %cst_30 {dimension_numbers = #tpu.dot_dimension_numbers<[1], [0], [0], [1], [0, 0, 1, 1], [], []>} : vector<17x17xf32>, vector<17x8xf32>, vector<17x8xf32> -> vector<17x8xf32>
    %69 = vector.extract_strided_slice %30 {offsets = [8, 0], sizes = [8, 32], strides = [1, 1]} : vector<32x32xf32> to vector<8x32xf32>
    %cst_31 = arith.constant dense<0.000000e+00> : vector<17x32xf32>
    %70 = tpu.matmul %68, %69, %cst_31 {dimension_numbers = #tpu.dot_dimension_numbers<[1], [0], [0], [1], [0, 0, 1, 1], [], []>} : vector<17x8xf32>, vector<8x32xf32>, vector<17x32xf32> -> vector<17x32xf32>
    %71 = arith.addf %51, %70 : vector<17x32xf32>
    %72 = vector.extract_strided_slice %28 {offsets = [0, 16], sizes = [17, 8], strides = [1, 1]} : vector<17x96xf32> to vector<17x8xf32>
    %73 = vector.extract_strided_slice %28 {offsets = [0, 48], sizes = [17, 8], strides = [1, 1]} : vector<17x96xf32> to vector<17x8xf32>
    %74 = vector.extract_strided_slice %28 {offsets = [0, 80], sizes = [17, 8], strides = [1, 1]} : vector<17x96xf32> to vector<17x8xf32>
    %cst_32 = arith.constant dense<0.000000e+00> : vector<17x17xf32>
    %75 = tpu.matmul %72, %73, %cst_32 {dimension_numbers = #tpu.dot_dimension_numbers<[1], [1], [0], [0], [0, 0, 1, 0], [], []>} : vector<17x8xf32>, vector<17x8xf32>, vector<17x17xf32> -> vector<17x17xf32>
    %cst_33 = arith.constant 0.353553385 : f32
    %76 = vector.broadcast %cst_33 : f32 to vector<17x17xf32>
    %77 = arith.mulf %75, %76 : vector<17x17xf32>
    %cst_34 = arith.constant dense<0xFF800000> : vector<17xf32>
    %78 = vector.multi_reduction <maximumf>, %77, %cst_34 [1] : vector<17x17xf32> to vector<17xf32>
    %79 = vector.shape_cast %78 : vector<17xf32> to vector<17x1xf32>
    %80 = vector.broadcast %79 : vector<17x1xf32> to vector<17x17xf32>
    %81 = arith.subf %77, %80 : vector<17x17xf32>
    %82 = math.exp %81 : vector<17x17xf32>
    %cst_35 = arith.constant dense<0.000000e+00> : vector<17xf32>
    %83 = vector.multi_reduction <add>, %82, %cst_35 [1] : vector<17x17xf32> to vector<17xf32>
    %84 = vector.shape_cast %83 : vector<17xf32> to vector<17x1xf32>
    %85 = tpu.reciprocal %84 {approx = true} : vector<17x1xf32> -> vector<17x1xf32>
    %86 = vector.broadcast %85 : vector<17x1xf32> to vector<17x17xf32>
    %87 = arith.mulf %82, %86 : vector<17x17xf32>
    %cst_36 = arith.constant dense<0.000000e+00> : vector<17x8xf32>
    %88 = tpu.matmul %87, %74, %cst_36 {dimension_numbers = #tpu.dot_dimension_numbers<[1], [0], [0], [1], [0, 0, 1, 1], [], []>} : vector<17x17xf32>, vector<17x8xf32>, vector<17x8xf32> -> vector<17x8xf32>
    %89 = vector.extract_strided_slice %30 {offsets = [16, 0], sizes = [8, 32], strides = [1, 1]} : vector<32x32xf32> to vector<8x32xf32>
    %cst_37 = arith.constant dense<0.000000e+00> : vector<17x32xf32>
    %90 = tpu.matmul %88, %89, %cst_37 {dimension_numbers = #tpu.dot_dimension_numbers<[1], [0], [0], [1], [0, 0, 1, 1], [], []>} : vector<17x8xf32>, vector<8x32xf32>, vector<17x32xf32> -> vector<17x32xf32>
    %91 = arith.addf %71, %90 : vector<17x32xf32>
    %92 = vector.extract_strided_slice %28 {offsets = [0, 24], sizes = [17, 8], strides = [1, 1]} : vector<17x96xf32> to vector<17x8xf32>
    %93 = vector.extract_strided_slice %28 {offsets = [0, 56], sizes = [17, 8], strides = [1, 1]} : vector<17x96xf32> to vector<17x8xf32>
    %94 = vector.extract_strided_slice %28 {offsets = [0, 88], sizes = [17, 8], strides = [1, 1]} : vector<17x96xf32> to vector<17x8xf32>
    %cst_38 = arith.constant dense<0.000000e+00> : vector<17x17xf32>
    %95 = tpu.matmul %92, %93, %cst_38 {dimension_numbers = #tpu.dot_dimension_numbers<[1], [1], [0], [0], [0, 0, 1, 0], [], []>} : vector<17x8xf32>, vector<17x8xf32>, vector<17x17xf32> -> vector<17x17xf32>
    %cst_39 = arith.constant 0.353553385 : f32
    %96 = vector.broadcast %cst_39 : f32 to vector<17x17xf32>
    %97 = arith.mulf %95, %96 : vector<17x17xf32>
    %cst_40 = arith.constant dense<0xFF800000> : vector<17xf32>
    %98 = vector.multi_reduction <maximumf>, %97, %cst_40 [1] : vector<17x17xf32> to vector<17xf32>
    %99 = vector.shape_cast %98 : vector<17xf32> to vector<17x1xf32>
    %100 = vector.broadcast %99 : vector<17x1xf32> to vector<17x17xf32>
    %101 = arith.subf %97, %100 : vector<17x17xf32>
    %102 = math.exp %101 : vector<17x17xf32>
    %cst_41 = arith.constant dense<0.000000e+00> : vector<17xf32>
    %103 = vector.multi_reduction <add>, %102, %cst_41 [1] : vector<17x17xf32> to vector<17xf32>
    %104 = vector.shape_cast %103 : vector<17xf32> to vector<17x1xf32>
    %105 = tpu.reciprocal %104 {approx = true} : vector<17x1xf32> -> vector<17x1xf32>
    %106 = vector.broadcast %105 : vector<17x1xf32> to vector<17x17xf32>
    %107 = arith.mulf %102, %106 : vector<17x17xf32>
    %cst_42 = arith.constant dense<0.000000e+00> : vector<17x8xf32>
    %108 = tpu.matmul %107, %94, %cst_42 {dimension_numbers = #tpu.dot_dimension_numbers<[1], [0], [0], [1], [0, 0, 1, 1], [], []>} : vector<17x17xf32>, vector<17x8xf32>, vector<17x8xf32> -> vector<17x8xf32>
    %109 = vector.extract_strided_slice %30 {offsets = [24, 0], sizes = [8, 32], strides = [1, 1]} : vector<32x32xf32> to vector<8x32xf32>
    %cst_43 = arith.constant dense<0.000000e+00> : vector<17x32xf32>
    %110 = tpu.matmul %108, %109, %cst_43 {dimension_numbers = #tpu.dot_dimension_numbers<[1], [0], [0], [1], [0, 0, 1, 1], [], []>} : vector<17x8xf32>, vector<8x32xf32>, vector<17x32xf32> -> vector<17x32xf32>
    %111 = arith.addf %91, %110 : vector<17x32xf32>
    %112 = arith.addf %1, %111 : vector<17x32xf32>
    %c0_44 = arith.constant 0 : index
    %c0_45 = arith.constant 0 : index
    %c0_46 = arith.constant 0 : index
    %113 = vector.load %arg6[%c0_44, %c0_45, %c0_46] : memref<1x1x32xf32, #tpu.memory_space<vmem>>, vector<1x1x32xf32>
    %114 = vector.shape_cast %113 : vector<1x1x32xf32> to vector<1x32xf32>
    %115 = vector.broadcast %114 : vector<1x32xf32> to vector<17x32xf32>
    %116 = arith.addf %112, %115 : vector<17x32xf32>
    %c0_47 = arith.constant 0 : index
    %c0_48 = arith.constant 0 : index
    %c0_49 = arith.constant 0 : index
    %117 = vector.load %arg7[%c0_47, %c0_48, %c0_49] : memref<1x1x32xf32, #tpu.memory_space<vmem>>, vector<1x1x32xf32>
    %118 = vector.shape_cast %117 : vector<1x1x32xf32> to vector<1x32xf32>
    %c0_50 = arith.constant 0 : index
    %c0_51 = arith.constant 0 : index
    %c0_52 = arith.constant 0 : index
    %119 = vector.load %arg8[%c0_50, %c0_51, %c0_52] : memref<1x1x32xf32, #tpu.memory_space<vmem>>, vector<1x1x32xf32>
    %120 = vector.shape_cast %119 : vector<1x1x32xf32> to vector<1x32xf32>
    %cst_53 = arith.constant dense<0.000000e+00> : vector<17xf32>
    %121 = vector.multi_reduction <add>, %116, %cst_53 [1] : vector<17x32xf32> to vector<17xf32>
    %122 = vector.shape_cast %121 : vector<17xf32> to vector<17x1xf32>
    %cst_54 = arith.constant 3.200000e+01 : f32
    %123 = vector.broadcast %cst_54 : f32 to vector<17x1xf32>
    %124 = arith.divf %122, %123 : vector<17x1xf32>
    %125 = vector.broadcast %124 : vector<17x1xf32> to vector<17x32xf32>
    %126 = arith.subf %116, %125 : vector<17x32xf32>
    %127 = arith.mulf %126, %126 : vector<17x32xf32>
    %cst_55 = arith.constant dense<0.000000e+00> : vector<17xf32>
    %128 = vector.multi_reduction <add>, %127, %cst_55 [1] : vector<17x32xf32> to vector<17xf32>
    %129 = vector.shape_cast %128 : vector<17xf32> to vector<17x1xf32>
    %cst_56 = arith.constant 3.200000e+01 : f32
    %130 = vector.broadcast %cst_56 : f32 to vector<17x1xf32>
    %131 = arith.divf %129, %130 : vector<17x1xf32>
    %cst_57 = arith.constant 9.99999974E-6 : f32
    %132 = vector.broadcast %cst_57 : f32 to vector<17x1xf32>
    %133 = arith.addf %131, %132 : vector<17x1xf32>
    %134 = math.rsqrt %133 : vector<17x1xf32>
    %135 = vector.broadcast %134 : vector<17x1xf32> to vector<17x32xf32>
    %136 = arith.mulf %126, %135 : vector<17x32xf32>
    %137 = vector.broadcast %118 : vector<1x32xf32> to vector<17x32xf32>
    %138 = arith.mulf %136, %137 : vector<17x32xf32>
    %139 = vector.broadcast %120 : vector<1x32xf32> to vector<17x32xf32>
    %140 = arith.addf %138, %139 : vector<17x32xf32>
    %c0_58 = arith.constant 0 : index
    %c0_59 = arith.constant 0 : index
    %c0_60 = arith.constant 0 : index
    %141 = vector.load %arg9[%c0_58, %c0_59, %c0_60] : memref<1x32x64xf32, #tpu.memory_space<vmem>>, vector<1x32x64xf32>
    %142 = vector.shape_cast %141 : vector<1x32x64xf32> to vector<32x64xf32>
    %cst_61 = arith.constant dense<0.000000e+00> : vector<17x64xf32>
    %143 = tpu.matmul %140, %142, %cst_61 {dimension_numbers = #tpu.dot_dimension_numbers<[1], [0], [0], [1], [0, 0, 1, 1], [], []>} : vector<17x32xf32>, vector<32x64xf32>, vector<17x64xf32> -> vector<17x64xf32>
    %c0_62 = arith.constant 0 : index
    %c0_63 = arith.constant 0 : index
    %c0_64 = arith.constant 0 : index
    %144 = vector.load %arg10[%c0_62, %c0_63, %c0_64] : memref<1x1x64xf32, #tpu.memory_space<vmem>>, vector<1x1x64xf32>
    %145 = vector.shape_cast %144 : vector<1x1x64xf32> to vector<1x64xf32>
    %146 = vector.broadcast %145 : vector<1x64xf32> to vector<17x64xf32>
    %147 = arith.addf %143, %146 : vector<17x64xf32>
    %cst_65 = arith.constant 5.000000e-01 : f32
    %148 = vector.broadcast %cst_65 : f32 to vector<17x64xf32>
    %149 = arith.mulf %148, %147 : vector<17x64xf32>
    %cst_66 = arith.constant 0.707106769 : f32
    %150 = vector.broadcast %cst_66 : f32 to vector<17x64xf32>
    %151 = arith.mulf %147, %150 : vector<17x64xf32>
    %152 = math.absf %151 : vector<17x64xf32>
    %cst_67 = arith.constant 0.327591091 : f32
    %153 = vector.broadcast %cst_67 : f32 to vector<17x64xf32>
    %154 = arith.mulf %153, %152 : vector<17x64xf32>
    %cst_68 = arith.constant 1.000000e+00 : f32
    %155 = vector.broadcast %cst_68 : f32 to vector<17x64xf32>
    %156 = arith.addf %155, %154 : vector<17x64xf32>
    %cst_69 = arith.constant 1.000000e+00 : f32
    %157 = vector.broadcast %cst_69 : f32 to vector<17x64xf32>
    %158 = arith.divf %157, %156 : vector<17x64xf32>
    %cst_70 = arith.constant 1.06140542 : f32
    %159 = vector.broadcast %cst_70 : f32 to vector<17x64xf32>
    %160 = arith.mulf %159, %158 : vector<17x64xf32>
    %cst_71 = arith.constant -1.45315206 : f32
    %161 = vector.broadcast %cst_71 : f32 to vector<17x64xf32>
    %162 = arith.addf %160, %161 : vector<17x64xf32>
    %163 = arith.mulf %162, %158 : vector<17x64xf32>
    %cst_72 = arith.constant 1.42141378 : f32
    %164 = vector.broadcast %cst_72 : f32 to vector<17x64xf32>
    %165 = arith.addf %163, %164 : vector<17x64xf32>
    %166 = arith.mulf %165, %158 : vector<17x64xf32>
    %cst_73 = arith.constant -0.284496725 : f32
    %167 = vector.broadcast %cst_73 : f32 to vector<17x64xf32>
    %168 = arith.addf %166, %167 : vector<17x64xf32>
    %169 = arith.mulf %168, %158 : vector<17x64xf32>
    %cst_74 = arith.constant 0.254829586 : f32
    %170 = vector.broadcast %cst_74 : f32 to vector<17x64xf32>
    %171 = arith.addf %169, %170 : vector<17x64xf32>
    %172 = arith.mulf %171, %158 : vector<17x64xf32>
    %cst_75 = arith.constant 0.000000e+00 : f32
    %173 = vector.broadcast %cst_75 : f32 to vector<17x64xf32>
    %174 = arith.subf %173, %152 : vector<17x64xf32>
    %175 = arith.mulf %174, %152 : vector<17x64xf32>
    %176 = math.exp %175 : vector<17x64xf32>
    %177 = arith.mulf %172, %176 : vector<17x64xf32>
    %cst_76 = arith.constant 1.000000e+00 : f32
    %178 = vector.broadcast %cst_76 : f32 to vector<17x64xf32>
    %179 = arith.subf %178, %177 : vector<17x64xf32>
    %cst_77 = arith.constant 0.000000e+00 : f32
    %180 = vector.broadcast %cst_77 : f32 to vector<17x64xf32>
    %181 = arith.cmpf oge, %151, %180 : vector<17x64xf32>
    %cst_78 = arith.constant 0.000000e+00 : f32
    %182 = vector.broadcast %cst_78 : f32 to vector<17x64xf32>
    %183 = arith.subf %182, %179 : vector<17x64xf32>
    %184 = arith.select %181, %179, %183 : vector<17x64xi1>, vector<17x64xf32>
    %cst_79 = arith.constant 1.000000e+00 : f32
    %185 = vector.broadcast %cst_79 : f32 to vector<17x64xf32>
    %186 = arith.addf %185, %184 : vector<17x64xf32>
    %187 = arith.mulf %149, %186 : vector<17x64xf32>
    %c0_80 = arith.constant 0 : index
    %c0_81 = arith.constant 0 : index
    %c0_82 = arith.constant 0 : index
    %188 = vector.load %arg11[%c0_80, %c0_81, %c0_82] : memref<1x64x32xf32, #tpu.memory_space<vmem>>, vector<1x64x32xf32>
    %189 = vector.shape_cast %188 : vector<1x64x32xf32> to vector<64x32xf32>
    %cst_83 = arith.constant dense<0.000000e+00> : vector<17x32xf32>
    %190 = tpu.matmul %187, %189, %cst_83 {dimension_numbers = #tpu.dot_dimension_numbers<[1], [0], [0], [1], [0, 0, 1, 1], [], []>} : vector<17x64xf32>, vector<64x32xf32>, vector<17x32xf32> -> vector<17x32xf32>
    %191 = arith.addf %116, %190 : vector<17x32xf32>
    %c0_84 = arith.constant 0 : index
    %c0_85 = arith.constant 0 : index
    %c0_86 = arith.constant 0 : index
    %192 = vector.load %arg12[%c0_84, %c0_85, %c0_86] : memref<1x1x32xf32, #tpu.memory_space<vmem>>, vector<1x1x32xf32>
    %193 = vector.shape_cast %192 : vector<1x1x32xf32> to vector<1x32xf32>
    %194 = vector.broadcast %193 : vector<1x32xf32> to vector<17x32xf32>
    %195 = arith.addf %191, %194 : vector<17x32xf32>
    %c0_87 = arith.constant 0 : index
    %c0_88 = arith.constant 0 : index
    %c0_89 = arith.constant 0 : index
    %196 = vector.load %arg13[%c0_87, %c0_88, %c0_89] : memref<1x17x32xf32, #tpu.memory_space<vmem>>, vector<1x17x32xf32>
    %197 = vector.shape_cast %196 : vector<1x17x32xf32> to vector<17x32xf32>
    %198 = vector.shape_cast %195 : vector<17x32xf32> to vector<1x17x32xf32>
    tpu.vector_store %arg13[%c0_87, %c0_88, %c0_89], %198 {strides = array<i32>} : memref<1x17x32xf32, #tpu.memory_space<vmem>>, vector<1x17x32xf32>,
    return
  }
  func.func @transform_0(%arg0: i32) -> (i32, i32, i32) {
    %c0_i32 = arith.constant 0 : i32
    %c0_i32_0 = arith.constant 0 : i32
    %c0_i32_1 = arith.constant 0 : i32
    return %arg0, %c0_i32, %c0_i32_0 : i32, i32, i32
  }
  func.func @transform_1(%arg0: i32) -> (i32, i32, i32) {
    %c0_i32 = arith.constant 0 : i32
    %c0_i32_0 = arith.constant 0 : i32
    %c0_i32_1 = arith.constant 0 : i32
    %c0_i32_2 = arith.constant 0 : i32
    return %c0_i32, %c0_i32_0, %c0_i32_1 : i32, i32, i32
  }
  func.func @transform_2(%arg0: i32) -> (i32, i32, i32) {
    %c0_i32 = arith.constant 0 : i32
    %c0_i32_0 = arith.constant 0 : i32
    %c0_i32_1 = arith.constant 0 : i32
    %c0_i32_2 = arith.constant 0 : i32
    return %c0_i32, %c0_i32_0, %c0_i32_1 : i32, i32, i32
  }
  func.func @transform_3(%arg0: i32) -> (i32, i32, i32) {
    %c0_i32 = arith.constant 0 : i32
    %c0_i32_0 = arith.constant 0 : i32
    %c0_i32_1 = arith.constant 0 : i32
    %c0_i32_2 = arith.constant 0 : i32
    return %c0_i32, %c0_i32_0, %c0_i32_1 : i32, i32, i32
  }
  func.func @transform_4(%arg0: i32) -> (i32, i32, i32) {
    %c0_i32 = arith.constant 0 : i32
    %c0_i32_0 = arith.constant 0 : i32
    %c0_i32_1 = arith.constant 0 : i32
    %c0_i32_2 = arith.constant 0 : i32
    return %c0_i32, %c0_i32_0, %c0_i32_1 : i32, i32, i32
  }
  func.func @transform_5(%arg0: i32) -> (i32, i32, i32) {
    %c0_i32 = arith.constant 0 : i32
    %c0_i32_0 = arith.constant 0 : i32
    %c0_i32_1 = arith.constant 0 : i32
    %c0_i32_2 = arith.constant 0 : i32
    return %c0_i32, %c0_i32_0, %c0_i32_1 : i32, i32, i32
  }
  func.func @transform_6(%arg0: i32) -> (i32, i32, i32) {
    %c0_i32 = arith.constant 0 : i32
    %c0_i32_0 = arith.constant 0 : i32
    %c0_i32_1 = arith.constant 0 : i32
    %c0_i32_2 = arith.constant 0 : i32
    return %c0_i32, %c0_i32_0, %c0_i32_1 : i32, i32, i32
  }
  func.func @transform_7(%arg0: i32) -> (i32, i32, i32) {
    %c0_i32 = arith.constant 0 : i32
    %c0_i32_0 = arith.constant 0 : i32
    %c0_i32_1 = arith.constant 0 : i32
    %c0_i32_2 = arith.constant 0 : i32
    return %c0_i32, %c0_i32_0, %c0_i32_1 : i32, i32, i32
  }
  func.func @transform_8(%arg0: i32) -> (i32, i32, i32) {
    %c0_i32 = arith.constant 0 : i32
    %c0_i32_0 = arith.constant 0 : i32
    %c0_i32_1 = arith.constant 0 : i32
    %c0_i32_2 = arith.constant 0 : i32
    return %c0_i32, %c0_i32_0, %c0_i32_1 : i32, i32, i32
  }
  func.func @transform_9(%arg0: i32) -> (i32, i32, i32) {
    %c0_i32 = arith.constant 0 : i32
    %c0_i32_0 = arith.constant 0 : i32
    %c0_i32_1 = arith.constant 0 : i32
    %c0_i32_2 = arith.constant 0 : i32
    return %c0_i32, %c0_i32_0, %c0_i32_1 : i32, i32, i32
  }
  func.func @transform_10(%arg0: i32) -> (i32, i32, i32) {
    %c0_i32 = arith.constant 0 : i32
    %c0_i32_0 = arith.constant 0 : i32
    %c0_i32_1 = arith.constant 0 : i32
    %c0_i32_2 = arith.constant 0 : i32
    return %c0_i32, %c0_i32_0, %c0_i32_1 : i32, i32, i32
  }
  func.func @transform_11(%arg0: i32) -> (i32, i32, i32) {
    %c0_i32 = arith.constant 0 : i32
    %c0_i32_0 = arith.constant 0 : i32
    %c0_i32_1 = arith.constant 0 : i32
    %c0_i32_2 = arith.constant 0 : i32
    return %c0_i32, %c0_i32_0, %c0_i32_1 : i32, i32, i32
  }
  func.func @transform_12(%arg0: i32) -> (i32, i32, i32) {
    %c0_i32 = arith.constant 0 : i32
    %c0_i32_0 = arith.constant 0 : i32
    %c0_i32_1 = arith.constant 0 : i32
    return %arg0, %c0_i32, %c0_i32_0 : i32, i32, i32
  }
}

module attributes {stable_mosaic.version = 11 : i64} {
  func.func @_linear_kernel(%arg0: memref<8x256xf32, #tpu.memory_space<vmem>>, %arg1: memref<256x64xf32, #tpu.memory_space<vmem>>, %arg2: memref<1x64xf32, #tpu.memory_space<vmem>>, %arg3: memref<8x64xf32, #tpu.memory_space<vmem>>) attributes {dimension_semantics = [], scalar_prefetch = 0 : i64, scratch_operands = 0 : i64, tpu.core_type = #tpu.core_type<tc>} {
    %c0 = arith.constant 0 : index
    %c0_0 = arith.constant 0 : index
    %0 = vector.load %arg0[%c0, %c0_0] : memref<8x256xf32, #tpu.memory_space<vmem>>, vector<8x256xf32>
    %c0_1 = arith.constant 0 : index
    %c0_2 = arith.constant 0 : index
    %1 = vector.load %arg1[%c0_1, %c0_2] : memref<256x64xf32, #tpu.memory_space<vmem>>, vector<256x64xf32>
    %cst = arith.constant dense<0.000000e+00> : vector<8x64xf32>
    %2 = tpu.matmul %0, %1, %cst {dimension_numbers = #tpu.dot_dimension_numbers<[1], [0], [0], [1], [0, 0, 1, 1], [], []>} : vector<8x256xf32>, vector<256x64xf32>, vector<8x64xf32> -> vector<8x64xf32>
    %c0_3 = arith.constant 0 : index
    %c0_4 = arith.constant 0 : index
    %3 = vector.load %arg2[%c0_3, %c0_4] : memref<1x64xf32, #tpu.memory_space<vmem>>, vector<1x64xf32>
    %4 = vector.broadcast %3 : vector<1x64xf32> to vector<8x64xf32>
    %5 = arith.addf %2, %4 : vector<8x64xf32>
    %c0_5 = arith.constant 0 : index
    %c0_6 = arith.constant 0 : index
    %6 = vector.load %arg3[%c0_5, %c0_6] : memref<8x64xf32, #tpu.memory_space<vmem>>, vector<8x64xf32>
    tpu.vector_store %arg3[%c0_5, %c0_6], %5 {strides = array<i32>} : memref<8x64xf32, #tpu.memory_space<vmem>>, vector<8x64xf32>,
    return
  }
}

module attributes {stable_mosaic.version = 11 : i64} {
  func.func @_fusion_path_kernel(%arg0: i32, %arg1: memref<1x17x32xf32, #tpu.memory_space<vmem>>, %arg2: memref<1x5x64xf32, #tpu.memory_space<vmem>>, %arg3: memref<1x32xf32, #tpu.memory_space<vmem>>, %arg4: memref<1x32xf32, #tpu.memory_space<vmem>>, %arg5: memref<32x64xf32, #tpu.memory_space<vmem>>, %arg6: memref<1x64xf32, #tpu.memory_space<vmem>>, %arg7: memref<1x1x64xf32, #tpu.memory_space<vmem>>, %arg8: memref<1x1x64xf32, #tpu.memory_space<vmem>>, %arg9: memref<1x64x64xf32, #tpu.memory_space<vmem>>, %arg10: memref<1x64x64xf32, #tpu.memory_space<vmem>>, %arg11: memref<1x64x64xf32, #tpu.memory_space<vmem>>, %arg12: memref<1x64x64xf32, #tpu.memory_space<vmem>>, %arg13: memref<1x1x64xf32, #tpu.memory_space<vmem>>, %arg14: memref<1x64xf32, #tpu.memory_space<vmem>>, %arg15: memref<1x64xf32, #tpu.memory_space<vmem>>, %arg16: memref<64x32xf32, #tpu.memory_space<vmem>>, %arg17: memref<1x32xf32, #tpu.memory_space<vmem>>, %arg18: memref<1x17x32xf32, #tpu.memory_space<vmem>>) attributes {dimension_semantics = [#tpu.dimension_semantics<parallel>], iteration_bounds = array<i64: 2>, scalar_prefetch = 0 : i64, scratch_operands = 0 : i64, tpu.core_type = #tpu.core_type<tc>, window_params = [{transform_indices = @transform_0, window_bounds = array<i64: 1, 17, 32>}, {transform_indices = @transform_1, window_bounds = array<i64: 1, 5, 64>}, {pipeline_mode = #tpu.pipeline_mode<synchronous>, transform_indices = @transform_2, window_bounds = array<i64: 1, 32>}, {pipeline_mode = #tpu.pipeline_mode<synchronous>, transform_indices = @transform_3, window_bounds = array<i64: 1, 32>}, {pipeline_mode = #tpu.pipeline_mode<synchronous>, transform_indices = @transform_4, window_bounds = array<i64: 32, 64>}, {pipeline_mode = #tpu.pipeline_mode<synchronous>, transform_indices = @transform_5, window_bounds = array<i64: 1, 64>}, {pipeline_mode = #tpu.pipeline_mode<synchronous>, transform_indices = @transform_6, window_bounds = array<i64: 1, 1, 64>}, {pipeline_mode = #tpu.pipeline_mode<synchronous>, transform_indices = @transform_7, window_bounds = array<i64: 1, 1, 64>}, {pipeline_mode = #tpu.pipeline_mode<synchronous>, transform_indices = @transform_8, window_bounds = array<i64: 1, 64, 64>}, {pipeline_mode = #tpu.pipeline_mode<synchronous>, transform_indices = @transform_9, window_bounds = array<i64: 1, 64, 64>}, {pipeline_mode = #tpu.pipeline_mode<synchronous>, transform_indices = @transform_10, window_bounds = array<i64: 1, 64, 64>}, {pipeline_mode = #tpu.pipeline_mode<synchronous>, transform_indices = @transform_11, window_bounds = array<i64: 1, 64, 64>}, {pipeline_mode = #tpu.pipeline_mode<synchronous>, transform_indices = @transform_12, window_bounds = array<i64: 1, 1, 64>}, {pipeline_mode = #tpu.pipeline_mode<synchronous>, transform_indices = @transform_13, window_bounds = array<i64: 1, 64>}, {pipeline_mode = #tpu.pipeline_mode<synchronous>, transform_indices = @transform_14, window_bounds = array<i64: 1, 64>}, {pipeline_mode = #tpu.pipeline_mode<synchronous>, transform_indices = @transform_15, window_bounds = array<i64: 64, 32>}, {pipeline_mode = #tpu.pipeline_mode<synchronous>, transform_indices = @transform_16, window_bounds = array<i64: 1, 32>}, {transform_indices = @transform_17, window_bounds = array<i64: 1, 17, 32>}]} {
    %c0 = arith.constant 0 : index
    %c0_0 = arith.constant 0 : index
    %c0_1 = arith.constant 0 : index
    %0 = vector.load %arg1[%c0, %c0_0, %c0_1] : memref<1x17x32xf32, #tpu.memory_space<vmem>>, vector<1x17x32xf32>
    %1 = vector.shape_cast %0 : vector<1x17x32xf32> to vector<17x32xf32>
    %c0_2 = arith.constant 0 : index
    %c0_3 = arith.constant 0 : index
    %c0_4 = arith.constant 0 : index
    %2 = vector.load %arg2[%c0_2, %c0_3, %c0_4] : memref<1x5x64xf32, #tpu.memory_space<vmem>>, vector<1x5x64xf32>
    %3 = vector.shape_cast %2 : vector<1x5x64xf32> to vector<5x64xf32>
    %4 = vector.extract_strided_slice %1 {offsets = [0, 0], sizes = [1, 32], strides = [1, 1]} : vector<17x32xf32> to vector<1x32xf32>
    %c0_5 = arith.constant 0 : index
    %c0_6 = arith.constant 0 : index
    %5 = vector.load %arg3[%c0_5, %c0_6] : memref<1x32xf32, #tpu.memory_space<vmem>>, vector<1x32xf32>
    %c0_7 = arith.constant 0 : index
    %c0_8 = arith.constant 0 : index
    %6 = vector.load %arg4[%c0_7, %c0_8] : memref<1x32xf32, #tpu.memory_space<vmem>>, vector<1x32xf32>
    %cst = arith.constant dense<0.000000e+00> : vector<1xf32>
    %7 = vector.multi_reduction <add>, %4, %cst [1] : vector<1x32xf32> to vector<1xf32>
    %8 = vector.shape_cast %7 : vector<1xf32> to vector<1x1xf32>
    %cst_9 = arith.constant 3.200000e+01 : f32
    %9 = vector.broadcast %cst_9 : f32 to vector<1x1xf32>
    %10 = arith.divf %8, %9 : vector<1x1xf32>
    %11 = vector.broadcast %10 : vector<1x1xf32> to vector<1x32xf32>
    %12 = arith.subf %4, %11 : vector<1x32xf32>
    %13 = arith.mulf %12, %12 : vector<1x32xf32>
    %cst_10 = arith.constant dense<0.000000e+00> : vector<1xf32>
    %14 = vector.multi_reduction <add>, %13, %cst_10 [1] : vector<1x32xf32> to vector<1xf32>
    %15 = vector.shape_cast %14 : vector<1xf32> to vector<1x1xf32>
    %cst_11 = arith.constant 3.200000e+01 : f32
    %16 = vector.broadcast %cst_11 : f32 to vector<1x1xf32>
    %17 = arith.divf %15, %16 : vector<1x1xf32>
    %cst_12 = arith.constant 9.99999974E-6 : f32
    %18 = vector.broadcast %cst_12 : f32 to vector<1x1xf32>
    %19 = arith.addf %17, %18 : vector<1x1xf32>
    %20 = math.rsqrt %19 : vector<1x1xf32>
    %21 = vector.broadcast %20 : vector<1x1xf32> to vector<1x32xf32>
    %22 = arith.mulf %12, %21 : vector<1x32xf32>
    %23 = arith.mulf %22, %5 : vector<1x32xf32>
    %24 = arith.addf %23, %6 : vector<1x32xf32>
    %cst_13 = arith.constant 5.000000e-01 : f32
    %25 = vector.broadcast %cst_13 : f32 to vector<1x32xf32>
    %26 = arith.mulf %25, %24 : vector<1x32xf32>
    %cst_14 = arith.constant 0.707106769 : f32
    %27 = vector.broadcast %cst_14 : f32 to vector<1x32xf32>
    %28 = arith.mulf %24, %27 : vector<1x32xf32>
    %29 = math.absf %28 : vector<1x32xf32>
    %cst_15 = arith.constant 0.327591091 : f32
    %30 = vector.broadcast %cst_15 : f32 to vector<1x32xf32>
    %31 = arith.mulf %30, %29 : vector<1x32xf32>
    %cst_16 = arith.constant 1.000000e+00 : f32
    %32 = vector.broadcast %cst_16 : f32 to vector<1x32xf32>
    %33 = arith.addf %32, %31 : vector<1x32xf32>
    %cst_17 = arith.constant 1.000000e+00 : f32
    %34 = vector.broadcast %cst_17 : f32 to vector<1x32xf32>
    %35 = arith.divf %34, %33 : vector<1x32xf32>
    %cst_18 = arith.constant 1.06140542 : f32
    %36 = vector.broadcast %cst_18 : f32 to vector<1x32xf32>
    %37 = arith.mulf %36, %35 : vector<1x32xf32>
    %cst_19 = arith.constant -1.45315206 : f32
    %38 = vector.broadcast %cst_19 : f32 to vector<1x32xf32>
    %39 = arith.addf %37, %38 : vector<1x32xf32>
    %40 = arith.mulf %39, %35 : vector<1x32xf32>
    %cst_20 = arith.constant 1.42141378 : f32
    %41 = vector.broadcast %cst_20 : f32 to vector<1x32xf32>
    %42 = arith.addf %40, %41 : vector<1x32xf32>
    %43 = arith.mulf %42, %35 : vector<1x32xf32>
    %cst_21 = arith.constant -0.284496725 : f32
    %44 = vector.broadcast %cst_21 : f32 to vector<1x32xf32>
    %45 = arith.addf %43, %44 : vector<1x32xf32>
    %46 = arith.mulf %45, %35 : vector<1x32xf32>
    %cst_22 = arith.constant 0.254829586 : f32
    %47 = vector.broadcast %cst_22 : f32 to vector<1x32xf32>
    %48 = arith.addf %46, %47 : vector<1x32xf32>
    %49 = arith.mulf %48, %35 : vector<1x32xf32>
    %cst_23 = arith.constant 0.000000e+00 : f32
    %50 = vector.broadcast %cst_23 : f32 to vector<1x32xf32>
    %51 = arith.subf %50, %29 : vector<1x32xf32>
    %52 = arith.mulf %51, %29 : vector<1x32xf32>
    %53 = math.exp %52 : vector<1x32xf32>
    %54 = arith.mulf %49, %53 : vector<1x32xf32>
    %cst_24 = arith.constant 1.000000e+00 : f32
    %55 = vector.broadcast %cst_24 : f32 to vector<1x32xf32>
    %56 = arith.subf %55, %54 : vector<1x32xf32>
    %cst_25 = arith.constant 0.000000e+00 : f32
    %57 = vector.broadcast %cst_25 : f32 to vector<1x32xf32>
    %58 = arith.cmpf oge, %28, %57 : vector<1x32xf32>
    %cst_26 = arith.constant 0.000000e+00 : f32
    %59 = vector.broadcast %cst_26 : f32 to vector<1x32xf32>
    %60 = arith.subf %59, %56 : vector<1x32xf32>
    %61 = arith.select %58, %56, %60 : vector<1x32xi1>, vector<1x32xf32>
    %cst_27 = arith.constant 1.000000e+00 : f32
    %62 = vector.broadcast %cst_27 : f32 to vector<1x32xf32>
    %63 = arith.addf %62, %61 : vector<1x32xf32>
    %64 = arith.mulf %26, %63 : vector<1x32xf32>
    %c0_28 = arith.constant 0 : index
    %c0_29 = arith.constant 0 : index
    %65 = vector.load %arg5[%c0_28, %c0_29] : memref<32x64xf32, #tpu.memory_space<vmem>>, vector<32x64xf32>
    %cst_30 = arith.constant dense<0.000000e+00> : vector<1x64xf32>
    %66 = tpu.matmul %64, %65, %cst_30 {dimension_numbers = #tpu.dot_dimension_numbers<[1], [0], [0], [1], [0, 0, 1, 1], [], []>} : vector<1x32xf32>, vector<32x64xf32>, vector<1x64xf32> -> vector<1x64xf32>
    %c0_31 = arith.constant 0 : index
    %c0_32 = arith.constant 0 : index
    %67 = vector.load %arg6[%c0_31, %c0_32] : memref<1x64xf32, #tpu.memory_space<vmem>>, vector<1x64xf32>
    %68 = arith.addf %66, %67 : vector<1x64xf32>
    %69 = tpu.iota {dimensions = array<i32: 0>} : vector<5x64xi32>
    %c0_i32 = arith.constant 0 : i32
    %70 = vector.broadcast %c0_i32 : i32 to vector<5x64xi32>
    %71 = arith.cmpi eq, %69, %70 : vector<5x64xi32>
    %72 = vector.shape_cast %68 : vector<1x64xf32> to vector<1x64xf32>
    %73 = vector.broadcast %72 : vector<1x64xf32> to vector<5x64xf32>
    %74 = arith.select %71, %73, %3 : vector<5x64xi1>, vector<5x64xf32>
    %c0_33 = arith.constant 0 : index
    %c0_34 = arith.constant 0 : index
    %c0_35 = arith.constant 0 : index
    %75 = vector.load %arg7[%c0_33, %c0_34, %c0_35] : memref<1x1x64xf32, #tpu.memory_space<vmem>>, vector<1x1x64xf32>
    %76 = vector.shape_cast %75 : vector<1x1x64xf32> to vector<1x64xf32>
    %c0_36 = arith.constant 0 : index
    %c0_37 = arith.constant 0 : index
    %c0_38 = arith.constant 0 : index
    %77 = vector.load %arg8[%c0_36, %c0_37, %c0_38] : memref<1x1x64xf32, #tpu.memory_space<vmem>>, vector<1x1x64xf32>
    %78 = vector.shape_cast %77 : vector<1x1x64xf32> to vector<1x64xf32>
    %cst_39 = arith.constant dense<0.000000e+00> : vector<5xf32>
    %79 = vector.multi_reduction <add>, %74, %cst_39 [1] : vector<5x64xf32> to vector<5xf32>
    %80 = vector.shape_cast %79 : vector<5xf32> to vector<5x1xf32>
    %cst_40 = arith.constant 6.400000e+01 : f32
    %81 = vector.broadcast %cst_40 : f32 to vector<5x1xf32>
    %82 = arith.divf %80, %81 : vector<5x1xf32>
    %83 = vector.broadcast %82 : vector<5x1xf32> to vector<5x64xf32>
    %84 = arith.subf %74, %83 : vector<5x64xf32>
    %85 = arith.mulf %84, %84 : vector<5x64xf32>
    %cst_41 = arith.constant dense<0.000000e+00> : vector<5xf32>
    %86 = vector.multi_reduction <add>, %85, %cst_41 [1] : vector<5x64xf32> to vector<5xf32>
    %87 = vector.shape_cast %86 : vector<5xf32> to vector<5x1xf32>
    %cst_42 = arith.constant 6.400000e+01 : f32
    %88 = vector.broadcast %cst_42 : f32 to vector<5x1xf32>
    %89 = arith.divf %87, %88 : vector<5x1xf32>
    %cst_43 = arith.constant 9.99999974E-6 : f32
    %90 = vector.broadcast %cst_43 : f32 to vector<5x1xf32>
    %91 = arith.addf %89, %90 : vector<5x1xf32>
    %92 = math.rsqrt %91 : vector<5x1xf32>
    %93 = vector.broadcast %92 : vector<5x1xf32> to vector<5x64xf32>
    %94 = arith.mulf %84, %93 : vector<5x64xf32>
    %95 = vector.broadcast %76 : vector<1x64xf32> to vector<5x64xf32>
    %96 = arith.mulf %94, %95 : vector<5x64xf32>
    %97 = vector.broadcast %78 : vector<1x64xf32> to vector<5x64xf32>
    %98 = arith.addf %96, %97 : vector<5x64xf32>
    %99 = vector.extract_strided_slice %98 {offsets = [0, 0], sizes = [1, 64], strides = [1, 1]} : vector<5x64xf32> to vector<1x64xf32>
    %c0_44 = arith.constant 0 : index
    %c0_45 = arith.constant 0 : index
    %c0_46 = arith.constant 0 : index
    %100 = vector.load %arg9[%c0_44, %c0_45, %c0_46] : memref<1x64x64xf32, #tpu.memory_space<vmem>>, vector<1x64x64xf32>
    %101 = vector.shape_cast %100 : vector<1x64x64xf32> to vector<64x64xf32>
    %cst_47 = arith.constant dense<0.000000e+00> : vector<1x64xf32>
    %102 = tpu.matmul %99, %101, %cst_47 {dimension_numbers = #tpu.dot_dimension_numbers<[1], [0], [0], [1], [0, 0, 1, 1], [], []>} : vector<1x64xf32>, vector<64x64xf32>, vector<1x64xf32> -> vector<1x64xf32>
    %c0_48 = arith.constant 0 : index
    %c0_49 = arith.constant 0 : index
    %c0_50 = arith.constant 0 : index
    %103 = vector.load %arg10[%c0_48, %c0_49, %c0_50] : memref<1x64x64xf32, #tpu.memory_space<vmem>>, vector<1x64x64xf32>
    %104 = vector.shape_cast %103 : vector<1x64x64xf32> to vector<64x64xf32>
    %cst_51 = arith.constant dense<0.000000e+00> : vector<5x64xf32>
    %105 = tpu.matmul %98, %104, %cst_51 {dimension_numbers = #tpu.dot_dimension_numbers<[1], [0], [0], [1], [0, 0, 1, 1], [], []>} : vector<5x64xf32>, vector<64x64xf32>, vector<5x64xf32> -> vector<5x64xf32>
    %c0_52 = arith.constant 0 : index
    %c0_53 = arith.constant 0 : index
    %c0_54 = arith.constant 0 : index
    %106 = vector.load %arg11[%c0_52, %c0_53, %c0_54] : memref<1x64x64xf32, #tpu.memory_space<vmem>>, vector<1x64x64xf32>
    %107 = vector.shape_cast %106 : vector<1x64x64xf32> to vector<64x64xf32>
    %cst_55 = arith.constant dense<0.000000e+00> : vector<5x64xf32>
    %108 = tpu.matmul %98, %107, %cst_55 {dimension_numbers = #tpu.dot_dimension_numbers<[1], [0], [0], [1], [0, 0, 1, 1], [], []>} : vector<5x64xf32>, vector<64x64xf32>, vector<5x64xf32> -> vector<5x64xf32>
    %c0_56 = arith.constant 0 : index
    %c0_57 = arith.constant 0 : index
    %c0_58 = arith.constant 0 : index
    %109 = vector.load %arg12[%c0_56, %c0_57, %c0_58] : memref<1x64x64xf32, #tpu.memory_space<vmem>>, vector<1x64x64xf32>
    %110 = vector.shape_cast %109 : vector<1x64x64xf32> to vector<64x64xf32>
    %cst_59 = arith.constant 0.000000e+00 : f32
    %111 = vector.broadcast %cst_59 : f32 to vector<1x64xf32>
    %112 = vector.extract_strided_slice %102 {offsets = [0, 0], sizes = [1, 8], strides = [1, 1]} : vector<1x64xf32> to vector<1x8xf32>
    %113 = vector.extract_strided_slice %105 {offsets = [0, 0], sizes = [5, 8], strides = [1, 1]} : vector<5x64xf32> to vector<5x8xf32>
    %114 = vector.extract_strided_slice %108 {offsets = [0, 0], sizes = [5, 8], strides = [1, 1]} : vector<5x64xf32> to vector<5x8xf32>
    %cst_60 = arith.constant dense<0.000000e+00> : vector<1x5xf32>
    %115 = tpu.matmul %112, %113, %cst_60 {dimension_numbers = #tpu.dot_dimension_numbers<[1], [1], [0], [0], [0, 0, 1, 0], [], []>} : vector<1x8xf32>, vector<5x8xf32>, vector<1x5xf32> -> vector<1x5xf32>
    %cst_61 = arith.constant 0.353553385 : f32
    %116 = vector.broadcast %cst_61 : f32 to vector<1x5xf32>
    %117 = arith.mulf %115, %116 : vector<1x5xf32>
    %cst_62 = arith.constant dense<0xFF800000> : vector<1xf32>
    %118 = vector.multi_reduction <maximumf>, %117, %cst_62 [1] : vector<1x5xf32> to vector<1xf32>
    %119 = vector.shape_cast %118 : vector<1xf32> to vector<1x1xf32>
    %120 = vector.broadcast %119 : vector<1x1xf32> to vector<1x5xf32>
    %121 = arith.subf %117, %120 : vector<1x5xf32>
    %122 = math.exp %121 : vector<1x5xf32>
    %cst_63 = arith.constant dense<0.000000e+00> : vector<1xf32>
    %123 = vector.multi_reduction <add>, %122, %cst_63 [1] : vector<1x5xf32> to vector<1xf32>
    %124 = vector.shape_cast %123 : vector<1xf32> to vector<1x1xf32>
    %125 = tpu.reciprocal %124 {approx = true} : vector<1x1xf32> -> vector<1x1xf32>
    %126 = vector.broadcast %125 : vector<1x1xf32> to vector<1x5xf32>
    %127 = arith.mulf %122, %126 : vector<1x5xf32>
    %cst_64 = arith.constant dense<0.000000e+00> : vector<1x8xf32>
    %128 = tpu.matmul %127, %114, %cst_64 {dimension_numbers = #tpu.dot_dimension_numbers<[1], [0], [0], [1], [0, 0, 1, 1], [], []>} : vector<1x5xf32>, vector<5x8xf32>, vector<1x8xf32> -> vector<1x8xf32>
    %129 = vector.extract_strided_slice %110 {offsets = [0, 0], sizes = [8, 64], strides = [1, 1]} : vector<64x64xf32> to vector<8x64xf32>
    %cst_65 = arith.constant dense<0.000000e+00> : vector<1x64xf32>
    %130 = tpu.matmul %128, %129, %cst_65 {dimension_numbers = #tpu.dot_dimension_numbers<[1], [0], [0], [1], [0, 0, 1, 1], [], []>} : vector<1x8xf32>, vector<8x64xf32>, vector<1x64xf32> -> vector<1x64xf32>
    %131 = arith.addf %111, %130 : vector<1x64xf32>
    %132 = vector.extract_strided_slice %102 {offsets = [0, 8], sizes = [1, 8], strides = [1, 1]} : vector<1x64xf32> to vector<1x8xf32>
    %133 = vector.extract_strided_slice %105 {offsets = [0, 8], sizes = [5, 8], strides = [1, 1]} : vector<5x64xf32> to vector<5x8xf32>
    %134 = vector.extract_strided_slice %108 {offsets = [0, 8], sizes = [5, 8], strides = [1, 1]} : vector<5x64xf32> to vector<5x8xf32>
    %cst_66 = arith.constant dense<0.000000e+00> : vector<1x5xf32>
    %135 = tpu.matmul %132, %133, %cst_66 {dimension_numbers = #tpu.dot_dimension_numbers<[1], [1], [0], [0], [0, 0, 1, 0], [], []>} : vector<1x8xf32>, vector<5x8xf32>, vector<1x5xf32> -> vector<1x5xf32>
    %cst_67 = arith.constant 0.353553385 : f32
    %136 = vector.broadcast %cst_67 : f32 to vector<1x5xf32>
    %137 = arith.mulf %135, %136 : vector<1x5xf32>
    %cst_68 = arith.constant dense<0xFF800000> : vector<1xf32>
    %138 = vector.multi_reduction <maximumf>, %137, %cst_68 [1] : vector<1x5xf32> to vector<1xf32>
    %139 = vector.shape_cast %138 : vector<1xf32> to vector<1x1xf32>
    %140 = vector.broadcast %139 : vector<1x1xf32> to vector<1x5xf32>
    %141 = arith.subf %137, %140 : vector<1x5xf32>
    %142 = math.exp %141 : vector<1x5xf32>
    %cst_69 = arith.constant dense<0.000000e+00> : vector<1xf32>
    %143 = vector.multi_reduction <add>, %142, %cst_69 [1] : vector<1x5xf32> to vector<1xf32>
    %144 = vector.shape_cast %143 : vector<1xf32> to vector<1x1xf32>
    %145 = tpu.reciprocal %144 {approx = true} : vector<1x1xf32> -> vector<1x1xf32>
    %146 = vector.broadcast %145 : vector<1x1xf32> to vector<1x5xf32>
    %147 = arith.mulf %142, %146 : vector<1x5xf32>
    %cst_70 = arith.constant dense<0.000000e+00> : vector<1x8xf32>
    %148 = tpu.matmul %147, %134, %cst_70 {dimension_numbers = #tpu.dot_dimension_numbers<[1], [0], [0], [1], [0, 0, 1, 1], [], []>} : vector<1x5xf32>, vector<5x8xf32>, vector<1x8xf32> -> vector<1x8xf32>
    %149 = vector.extract_strided_slice %110 {offsets = [8, 0], sizes = [8, 64], strides = [1, 1]} : vector<64x64xf32> to vector<8x64xf32>
    %cst_71 = arith.constant dense<0.000000e+00> : vector<1x64xf32>
    %150 = tpu.matmul %148, %149, %cst_71 {dimension_numbers = #tpu.dot_dimension_numbers<[1], [0], [0], [1], [0, 0, 1, 1], [], []>} : vector<1x8xf32>, vector<8x64xf32>, vector<1x64xf32> -> vector<1x64xf32>
    %151 = arith.addf %131, %150 : vector<1x64xf32>
    %152 = vector.extract_strided_slice %102 {offsets = [0, 16], sizes = [1, 8], strides = [1, 1]} : vector<1x64xf32> to vector<1x8xf32>
    %153 = vector.extract_strided_slice %105 {offsets = [0, 16], sizes = [5, 8], strides = [1, 1]} : vector<5x64xf32> to vector<5x8xf32>
    %154 = vector.extract_strided_slice %108 {offsets = [0, 16], sizes = [5, 8], strides = [1, 1]} : vector<5x64xf32> to vector<5x8xf32>
    %cst_72 = arith.constant dense<0.000000e+00> : vector<1x5xf32>
    %155 = tpu.matmul %152, %153, %cst_72 {dimension_numbers = #tpu.dot_dimension_numbers<[1], [1], [0], [0], [0, 0, 1, 0], [], []>} : vector<1x8xf32>, vector<5x8xf32>, vector<1x5xf32> -> vector<1x5xf32>
    %cst_73 = arith.constant 0.353553385 : f32
    %156 = vector.broadcast %cst_73 : f32 to vector<1x5xf32>
    %157 = arith.mulf %155, %156 : vector<1x5xf32>
    %cst_74 = arith.constant dense<0xFF800000> : vector<1xf32>
    %158 = vector.multi_reduction <maximumf>, %157, %cst_74 [1] : vector<1x5xf32> to vector<1xf32>
    %159 = vector.shape_cast %158 : vector<1xf32> to vector<1x1xf32>
    %160 = vector.broadcast %159 : vector<1x1xf32> to vector<1x5xf32>
    %161 = arith.subf %157, %160 : vector<1x5xf32>
    %162 = math.exp %161 : vector<1x5xf32>
    %cst_75 = arith.constant dense<0.000000e+00> : vector<1xf32>
    %163 = vector.multi_reduction <add>, %162, %cst_75 [1] : vector<1x5xf32> to vector<1xf32>
    %164 = vector.shape_cast %163 : vector<1xf32> to vector<1x1xf32>
    %165 = tpu.reciprocal %164 {approx = true} : vector<1x1xf32> -> vector<1x1xf32>
    %166 = vector.broadcast %165 : vector<1x1xf32> to vector<1x5xf32>
    %167 = arith.mulf %162, %166 : vector<1x5xf32>
    %cst_76 = arith.constant dense<0.000000e+00> : vector<1x8xf32>
    %168 = tpu.matmul %167, %154, %cst_76 {dimension_numbers = #tpu.dot_dimension_numbers<[1], [0], [0], [1], [0, 0, 1, 1], [], []>} : vector<1x5xf32>, vector<5x8xf32>, vector<1x8xf32> -> vector<1x8xf32>
    %169 = vector.extract_strided_slice %110 {offsets = [16, 0], sizes = [8, 64], strides = [1, 1]} : vector<64x64xf32> to vector<8x64xf32>
    %cst_77 = arith.constant dense<0.000000e+00> : vector<1x64xf32>
    %170 = tpu.matmul %168, %169, %cst_77 {dimension_numbers = #tpu.dot_dimension_numbers<[1], [0], [0], [1], [0, 0, 1, 1], [], []>} : vector<1x8xf32>, vector<8x64xf32>, vector<1x64xf32> -> vector<1x64xf32>
    %171 = arith.addf %151, %170 : vector<1x64xf32>
    %172 = vector.extract_strided_slice %102 {offsets = [0, 24], sizes = [1, 8], strides = [1, 1]} : vector<1x64xf32> to vector<1x8xf32>
    %173 = vector.extract_strided_slice %105 {offsets = [0, 24], sizes = [5, 8], strides = [1, 1]} : vector<5x64xf32> to vector<5x8xf32>
    %174 = vector.extract_strided_slice %108 {offsets = [0, 24], sizes = [5, 8], strides = [1, 1]} : vector<5x64xf32> to vector<5x8xf32>
    %cst_78 = arith.constant dense<0.000000e+00> : vector<1x5xf32>
    %175 = tpu.matmul %172, %173, %cst_78 {dimension_numbers = #tpu.dot_dimension_numbers<[1], [1], [0], [0], [0, 0, 1, 0], [], []>} : vector<1x8xf32>, vector<5x8xf32>, vector<1x5xf32> -> vector<1x5xf32>
    %cst_79 = arith.constant 0.353553385 : f32
    %176 = vector.broadcast %cst_79 : f32 to vector<1x5xf32>
    %177 = arith.mulf %175, %176 : vector<1x5xf32>
    %cst_80 = arith.constant dense<0xFF800000> : vector<1xf32>
    %178 = vector.multi_reduction <maximumf>, %177, %cst_80 [1] : vector<1x5xf32> to vector<1xf32>
    %179 = vector.shape_cast %178 : vector<1xf32> to vector<1x1xf32>
    %180 = vector.broadcast %179 : vector<1x1xf32> to vector<1x5xf32>
    %181 = arith.subf %177, %180 : vector<1x5xf32>
    %182 = math.exp %181 : vector<1x5xf32>
    %cst_81 = arith.constant dense<0.000000e+00> : vector<1xf32>
    %183 = vector.multi_reduction <add>, %182, %cst_81 [1] : vector<1x5xf32> to vector<1xf32>
    %184 = vector.shape_cast %183 : vector<1xf32> to vector<1x1xf32>
    %185 = tpu.reciprocal %184 {approx = true} : vector<1x1xf32> -> vector<1x1xf32>
    %186 = vector.broadcast %185 : vector<1x1xf32> to vector<1x5xf32>
    %187 = arith.mulf %182, %186 : vector<1x5xf32>
    %cst_82 = arith.constant dense<0.000000e+00> : vector<1x8xf32>
    %188 = tpu.matmul %187, %174, %cst_82 {dimension_numbers = #tpu.dot_dimension_numbers<[1], [0], [0], [1], [0, 0, 1, 1], [], []>} : vector<1x5xf32>, vector<5x8xf32>, vector<1x8xf32> -> vector<1x8xf32>
    %189 = vector.extract_strided_slice %110 {offsets = [24, 0], sizes = [8, 64], strides = [1, 1]} : vector<64x64xf32> to vector<8x64xf32>
    %cst_83 = arith.constant dense<0.000000e+00> : vector<1x64xf32>
    %190 = tpu.matmul %188, %189, %cst_83 {dimension_numbers = #tpu.dot_dimension_numbers<[1], [0], [0], [1], [0, 0, 1, 1], [], []>} : vector<1x8xf32>, vector<8x64xf32>, vector<1x64xf32> -> vector<1x64xf32>
    %191 = arith.addf %171, %190 : vector<1x64xf32>
    %192 = vector.extract_strided_slice %102 {offsets = [0, 32], sizes = [1, 8], strides = [1, 1]} : vector<1x64xf32> to vector<1x8xf32>
    %193 = vector.extract_strided_slice %105 {offsets = [0, 32], sizes = [5, 8], strides = [1, 1]} : vector<5x64xf32> to vector<5x8xf32>
    %194 = vector.extract_strided_slice %108 {offsets = [0, 32], sizes = [5, 8], strides = [1, 1]} : vector<5x64xf32> to vector<5x8xf32>
    %cst_84 = arith.constant dense<0.000000e+00> : vector<1x5xf32>
    %195 = tpu.matmul %192, %193, %cst_84 {dimension_numbers = #tpu.dot_dimension_numbers<[1], [1], [0], [0], [0, 0, 1, 0], [], []>} : vector<1x8xf32>, vector<5x8xf32>, vector<1x5xf32> -> vector<1x5xf32>
    %cst_85 = arith.constant 0.353553385 : f32
    %196 = vector.broadcast %cst_85 : f32 to vector<1x5xf32>
    %197 = arith.mulf %195, %196 : vector<1x5xf32>
    %cst_86 = arith.constant dense<0xFF800000> : vector<1xf32>
    %198 = vector.multi_reduction <maximumf>, %197, %cst_86 [1] : vector<1x5xf32> to vector<1xf32>
    %199 = vector.shape_cast %198 : vector<1xf32> to vector<1x1xf32>
    %200 = vector.broadcast %199 : vector<1x1xf32> to vector<1x5xf32>
    %201 = arith.subf %197, %200 : vector<1x5xf32>
    %202 = math.exp %201 : vector<1x5xf32>
    %cst_87 = arith.constant dense<0.000000e+00> : vector<1xf32>
    %203 = vector.multi_reduction <add>, %202, %cst_87 [1] : vector<1x5xf32> to vector<1xf32>
    %204 = vector.shape_cast %203 : vector<1xf32> to vector<1x1xf32>
    %205 = tpu.reciprocal %204 {approx = true} : vector<1x1xf32> -> vector<1x1xf32>
    %206 = vector.broadcast %205 : vector<1x1xf32> to vector<1x5xf32>
    %207 = arith.mulf %202, %206 : vector<1x5xf32>
    %cst_88 = arith.constant dense<0.000000e+00> : vector<1x8xf32>
    %208 = tpu.matmul %207, %194, %cst_88 {dimension_numbers = #tpu.dot_dimension_numbers<[1], [0], [0], [1], [0, 0, 1, 1], [], []>} : vector<1x5xf32>, vector<5x8xf32>, vector<1x8xf32> -> vector<1x8xf32>
    %209 = vector.extract_strided_slice %110 {offsets = [32, 0], sizes = [8, 64], strides = [1, 1]} : vector<64x64xf32> to vector<8x64xf32>
    %cst_89 = arith.constant dense<0.000000e+00> : vector<1x64xf32>
    %210 = tpu.matmul %208, %209, %cst_89 {dimension_numbers = #tpu.dot_dimension_numbers<[1], [0], [0], [1], [0, 0, 1, 1], [], []>} : vector<1x8xf32>, vector<8x64xf32>, vector<1x64xf32> -> vector<1x64xf32>
    %211 = arith.addf %191, %210 : vector<1x64xf32>
    %212 = vector.extract_strided_slice %102 {offsets = [0, 40], sizes = [1, 8], strides = [1, 1]} : vector<1x64xf32> to vector<1x8xf32>
    %213 = vector.extract_strided_slice %105 {offsets = [0, 40], sizes = [5, 8], strides = [1, 1]} : vector<5x64xf32> to vector<5x8xf32>
    %214 = vector.extract_strided_slice %108 {offsets = [0, 40], sizes = [5, 8], strides = [1, 1]} : vector<5x64xf32> to vector<5x8xf32>
    %cst_90 = arith.constant dense<0.000000e+00> : vector<1x5xf32>
    %215 = tpu.matmul %212, %213, %cst_90 {dimension_numbers = #tpu.dot_dimension_numbers<[1], [1], [0], [0], [0, 0, 1, 0], [], []>} : vector<1x8xf32>, vector<5x8xf32>, vector<1x5xf32> -> vector<1x5xf32>
    %cst_91 = arith.constant 0.353553385 : f32
    %216 = vector.broadcast %cst_91 : f32 to vector<1x5xf32>
    %217 = arith.mulf %215, %216 : vector<1x5xf32>
    %cst_92 = arith.constant dense<0xFF800000> : vector<1xf32>
    %218 = vector.multi_reduction <maximumf>, %217, %cst_92 [1] : vector<1x5xf32> to vector<1xf32>
    %219 = vector.shape_cast %218 : vector<1xf32> to vector<1x1xf32>
    %220 = vector.broadcast %219 : vector<1x1xf32> to vector<1x5xf32>
    %221 = arith.subf %217, %220 : vector<1x5xf32>
    %222 = math.exp %221 : vector<1x5xf32>
    %cst_93 = arith.constant dense<0.000000e+00> : vector<1xf32>
    %223 = vector.multi_reduction <add>, %222, %cst_93 [1] : vector<1x5xf32> to vector<1xf32>
    %224 = vector.shape_cast %223 : vector<1xf32> to vector<1x1xf32>
    %225 = tpu.reciprocal %224 {approx = true} : vector<1x1xf32> -> vector<1x1xf32>
    %226 = vector.broadcast %225 : vector<1x1xf32> to vector<1x5xf32>
    %227 = arith.mulf %222, %226 : vector<1x5xf32>
    %cst_94 = arith.constant dense<0.000000e+00> : vector<1x8xf32>
    %228 = tpu.matmul %227, %214, %cst_94 {dimension_numbers = #tpu.dot_dimension_numbers<[1], [0], [0], [1], [0, 0, 1, 1], [], []>} : vector<1x5xf32>, vector<5x8xf32>, vector<1x8xf32> -> vector<1x8xf32>
    %229 = vector.extract_strided_slice %110 {offsets = [40, 0], sizes = [8, 64], strides = [1, 1]} : vector<64x64xf32> to vector<8x64xf32>
    %cst_95 = arith.constant dense<0.000000e+00> : vector<1x64xf32>
    %230 = tpu.matmul %228, %229, %cst_95 {dimension_numbers = #tpu.dot_dimension_numbers<[1], [0], [0], [1], [0, 0, 1, 1], [], []>} : vector<1x8xf32>, vector<8x64xf32>, vector<1x64xf32> -> vector<1x64xf32>
    %231 = arith.addf %211, %230 : vector<1x64xf32>
    %232 = vector.extract_strided_slice %102 {offsets = [0, 48], sizes = [1, 8], strides = [1, 1]} : vector<1x64xf32> to vector<1x8xf32>
    %233 = vector.extract_strided_slice %105 {offsets = [0, 48], sizes = [5, 8], strides = [1, 1]} : vector<5x64xf32> to vector<5x8xf32>
    %234 = vector.extract_strided_slice %108 {offsets = [0, 48], sizes = [5, 8], strides = [1, 1]} : vector<5x64xf32> to vector<5x8xf32>
    %cst_96 = arith.constant dense<0.000000e+00> : vector<1x5xf32>
    %235 = tpu.matmul %232, %233, %cst_96 {dimension_numbers = #tpu.dot_dimension_numbers<[1], [1], [0], [0], [0, 0, 1, 0], [], []>} : vector<1x8xf32>, vector<5x8xf32>, vector<1x5xf32> -> vector<1x5xf32>
    %cst_97 = arith.constant 0.353553385 : f32
    %236 = vector.broadcast %cst_97 : f32 to vector<1x5xf32>
    %237 = arith.mulf %235, %236 : vector<1x5xf32>
    %cst_98 = arith.constant dense<0xFF800000> : vector<1xf32>
    %238 = vector.multi_reduction <maximumf>, %237, %cst_98 [1] : vector<1x5xf32> to vector<1xf32>
    %239 = vector.shape_cast %238 : vector<1xf32> to vector<1x1xf32>
    %240 = vector.broadcast %239 : vector<1x1xf32> to vector<1x5xf32>
    %241 = arith.subf %237, %240 : vector<1x5xf32>
    %242 = math.exp %241 : vector<1x5xf32>
    %cst_99 = arith.constant dense<0.000000e+00> : vector<1xf32>
    %243 = vector.multi_reduction <add>, %242, %cst_99 [1] : vector<1x5xf32> to vector<1xf32>
    %244 = vector.shape_cast %243 : vector<1xf32> to vector<1x1xf32>
    %245 = tpu.reciprocal %244 {approx = true} : vector<1x1xf32> -> vector<1x1xf32>
    %246 = vector.broadcast %245 : vector<1x1xf32> to vector<1x5xf32>
    %247 = arith.mulf %242, %246 : vector<1x5xf32>
    %cst_100 = arith.constant dense<0.000000e+00> : vector<1x8xf32>
    %248 = tpu.matmul %247, %234, %cst_100 {dimension_numbers = #tpu.dot_dimension_numbers<[1], [0], [0], [1], [0, 0, 1, 1], [], []>} : vector<1x5xf32>, vector<5x8xf32>, vector<1x8xf32> -> vector<1x8xf32>
    %249 = vector.extract_strided_slice %110 {offsets = [48, 0], sizes = [8, 64], strides = [1, 1]} : vector<64x64xf32> to vector<8x64xf32>
    %cst_101 = arith.constant dense<0.000000e+00> : vector<1x64xf32>
    %250 = tpu.matmul %248, %249, %cst_101 {dimension_numbers = #tpu.dot_dimension_numbers<[1], [0], [0], [1], [0, 0, 1, 1], [], []>} : vector<1x8xf32>, vector<8x64xf32>, vector<1x64xf32> -> vector<1x64xf32>
    %251 = arith.addf %231, %250 : vector<1x64xf32>
    %252 = vector.extract_strided_slice %102 {offsets = [0, 56], sizes = [1, 8], strides = [1, 1]} : vector<1x64xf32> to vector<1x8xf32>
    %253 = vector.extract_strided_slice %105 {offsets = [0, 56], sizes = [5, 8], strides = [1, 1]} : vector<5x64xf32> to vector<5x8xf32>
    %254 = vector.extract_strided_slice %108 {offsets = [0, 56], sizes = [5, 8], strides = [1, 1]} : vector<5x64xf32> to vector<5x8xf32>
    %cst_102 = arith.constant dense<0.000000e+00> : vector<1x5xf32>
    %255 = tpu.matmul %252, %253, %cst_102 {dimension_numbers = #tpu.dot_dimension_numbers<[1], [1], [0], [0], [0, 0, 1, 0], [], []>} : vector<1x8xf32>, vector<5x8xf32>, vector<1x5xf32> -> vector<1x5xf32>
    %cst_103 = arith.constant 0.353553385 : f32
    %256 = vector.broadcast %cst_103 : f32 to vector<1x5xf32>
    %257 = arith.mulf %255, %256 : vector<1x5xf32>
    %cst_104 = arith.constant dense<0xFF800000> : vector<1xf32>
    %258 = vector.multi_reduction <maximumf>, %257, %cst_104 [1] : vector<1x5xf32> to vector<1xf32>
    %259 = vector.shape_cast %258 : vector<1xf32> to vector<1x1xf32>
    %260 = vector.broadcast %259 : vector<1x1xf32> to vector<1x5xf32>
    %261 = arith.subf %257, %260 : vector<1x5xf32>
    %262 = math.exp %261 : vector<1x5xf32>
    %cst_105 = arith.constant dense<0.000000e+00> : vector<1xf32>
    %263 = vector.multi_reduction <add>, %262, %cst_105 [1] : vector<1x5xf32> to vector<1xf32>
    %264 = vector.shape_cast %263 : vector<1xf32> to vector<1x1xf32>
    %265 = tpu.reciprocal %264 {approx = true} : vector<1x1xf32> -> vector<1x1xf32>
    %266 = vector.broadcast %265 : vector<1x1xf32> to vector<1x5xf32>
    %267 = arith.mulf %262, %266 : vector<1x5xf32>
    %cst_106 = arith.constant dense<0.000000e+00> : vector<1x8xf32>
    %268 = tpu.matmul %267, %254, %cst_106 {dimension_numbers = #tpu.dot_dimension_numbers<[1], [0], [0], [1], [0, 0, 1, 1], [], []>} : vector<1x5xf32>, vector<5x8xf32>, vector<1x8xf32> -> vector<1x8xf32>
    %269 = vector.extract_strided_slice %110 {offsets = [56, 0], sizes = [8, 64], strides = [1, 1]} : vector<64x64xf32> to vector<8x64xf32>
    %cst_107 = arith.constant dense<0.000000e+00> : vector<1x64xf32>
    %270 = tpu.matmul %268, %269, %cst_107 {dimension_numbers = #tpu.dot_dimension_numbers<[1], [0], [0], [1], [0, 0, 1, 1], [], []>} : vector<1x8xf32>, vector<8x64xf32>, vector<1x64xf32> -> vector<1x64xf32>
    %271 = arith.addf %251, %270 : vector<1x64xf32>
    %272 = vector.extract_strided_slice %74 {offsets = [0, 0], sizes = [1, 64], strides = [1, 1]} : vector<5x64xf32> to vector<1x64xf32>
    %273 = arith.addf %272, %271 : vector<1x64xf32>
    %c0_108 = arith.constant 0 : index
    %c0_109 = arith.constant 0 : index
    %c0_110 = arith.constant 0 : index
    %274 = vector.load %arg13[%c0_108, %c0_109, %c0_110] : memref<1x1x64xf32, #tpu.memory_space<vmem>>, vector<1x1x64xf32>
    %275 = vector.shape_cast %274 : vector<1x1x64xf32> to vector<1x64xf32>
    %276 = arith.addf %273, %275 : vector<1x64xf32>
    %c0_111 = arith.constant 0 : index
    %c0_112 = arith.constant 0 : index
    %277 = vector.load %arg14[%c0_111, %c0_112] : memref<1x64xf32, #tpu.memory_space<vmem>>, vector<1x64xf32>
    %c0_113 = arith.constant 0 : index
    %c0_114 = arith.constant 0 : index
    %278 = vector.load %arg15[%c0_113, %c0_114] : memref<1x64xf32, #tpu.memory_space<vmem>>, vector<1x64xf32>
    %cst_115 = arith.constant dense<0.000000e+00> : vector<1xf32>
    %279 = vector.multi_reduction <add>, %276, %cst_115 [1] : vector<1x64xf32> to vector<1xf32>
    %280 = vector.shape_cast %279 : vector<1xf32> to vector<1x1xf32>
    %cst_116 = arith.constant 6.400000e+01 : f32
    %281 = vector.broadcast %cst_116 : f32 to vector<1x1xf32>
    %282 = arith.divf %280, %281 : vector<1x1xf32>
    %283 = vector.broadcast %282 : vector<1x1xf32> to vector<1x64xf32>
    %284 = arith.subf %276, %283 : vector<1x64xf32>
    %285 = arith.mulf %284, %284 : vector<1x64xf32>
    %cst_117 = arith.constant dense<0.000000e+00> : vector<1xf32>
    %286 = vector.multi_reduction <add>, %285, %cst_117 [1] : vector<1x64xf32> to vector<1xf32>
    %287 = vector.shape_cast %286 : vector<1xf32> to vector<1x1xf32>
    %cst_118 = arith.constant 6.400000e+01 : f32
    %288 = vector.broadcast %cst_118 : f32 to vector<1x1xf32>
    %289 = arith.divf %287, %288 : vector<1x1xf32>
    %cst_119 = arith.constant 9.99999974E-6 : f32
    %290 = vector.broadcast %cst_119 : f32 to vector<1x1xf32>
    %291 = arith.addf %289, %290 : vector<1x1xf32>
    %292 = math.rsqrt %291 : vector<1x1xf32>
    %293 = vector.broadcast %292 : vector<1x1xf32> to vector<1x64xf32>
    %294 = arith.mulf %284, %293 : vector<1x64xf32>
    %295 = arith.mulf %294, %277 : vector<1x64xf32>
    %296 = arith.addf %295, %278 : vector<1x64xf32>
    %cst_120 = arith.constant 5.000000e-01 : f32
    %297 = vector.broadcast %cst_120 : f32 to vector<1x64xf32>
    %298 = arith.mulf %297, %296 : vector<1x64xf32>
    %cst_121 = arith.constant 0.707106769 : f32
    %299 = vector.broadcast %cst_121 : f32 to vector<1x64xf32>
    %300 = arith.mulf %296, %299 : vector<1x64xf32>
    %301 = math.absf %300 : vector<1x64xf32>
    %cst_122 = arith.constant 0.327591091 : f32
    %302 = vector.broadcast %cst_122 : f32 to vector<1x64xf32>
    %303 = arith.mulf %302, %301 : vector<1x64xf32>
    %cst_123 = arith.constant 1.000000e+00 : f32
    %304 = vector.broadcast %cst_123 : f32 to vector<1x64xf32>
    %305 = arith.addf %304, %303 : vector<1x64xf32>
    %cst_124 = arith.constant 1.000000e+00 : f32
    %306 = vector.broadcast %cst_124 : f32 to vector<1x64xf32>
    %307 = arith.divf %306, %305 : vector<1x64xf32>
    %cst_125 = arith.constant 1.06140542 : f32
    %308 = vector.broadcast %cst_125 : f32 to vector<1x64xf32>
    %309 = arith.mulf %308, %307 : vector<1x64xf32>
    %cst_126 = arith.constant -1.45315206 : f32
    %310 = vector.broadcast %cst_126 : f32 to vector<1x64xf32>
    %311 = arith.addf %309, %310 : vector<1x64xf32>
    %312 = arith.mulf %311, %307 : vector<1x64xf32>
    %cst_127 = arith.constant 1.42141378 : f32
    %313 = vector.broadcast %cst_127 : f32 to vector<1x64xf32>
    %314 = arith.addf %312, %313 : vector<1x64xf32>
    %315 = arith.mulf %314, %307 : vector<1x64xf32>
    %cst_128 = arith.constant -0.284496725 : f32
    %316 = vector.broadcast %cst_128 : f32 to vector<1x64xf32>
    %317 = arith.addf %315, %316 : vector<1x64xf32>
    %318 = arith.mulf %317, %307 : vector<1x64xf32>
    %cst_129 = arith.constant 0.254829586 : f32
    %319 = vector.broadcast %cst_129 : f32 to vector<1x64xf32>
    %320 = arith.addf %318, %319 : vector<1x64xf32>
    %321 = arith.mulf %320, %307 : vector<1x64xf32>
    %cst_130 = arith.constant 0.000000e+00 : f32
    %322 = vector.broadcast %cst_130 : f32 to vector<1x64xf32>
    %323 = arith.subf %322, %301 : vector<1x64xf32>
    %324 = arith.mulf %323, %301 : vector<1x64xf32>
    %325 = math.exp %324 : vector<1x64xf32>
    %326 = arith.mulf %321, %325 : vector<1x64xf32>
    %cst_131 = arith.constant 1.000000e+00 : f32
    %327 = vector.broadcast %cst_131 : f32 to vector<1x64xf32>
    %328 = arith.subf %327, %326 : vector<1x64xf32>
    %cst_132 = arith.constant 0.000000e+00 : f32
    %329 = vector.broadcast %cst_132 : f32 to vector<1x64xf32>
    %330 = arith.cmpf oge, %300, %329 : vector<1x64xf32>
    %cst_133 = arith.constant 0.000000e+00 : f32
    %331 = vector.broadcast %cst_133 : f32 to vector<1x64xf32>
    %332 = arith.subf %331, %328 : vector<1x64xf32>
    %333 = arith.select %330, %328, %332 : vector<1x64xi1>, vector<1x64xf32>
    %cst_134 = arith.constant 1.000000e+00 : f32
    %334 = vector.broadcast %cst_134 : f32 to vector<1x64xf32>
    %335 = arith.addf %334, %333 : vector<1x64xf32>
    %336 = arith.mulf %298, %335 : vector<1x64xf32>
    %c0_135 = arith.constant 0 : index
    %c0_136 = arith.constant 0 : index
    %337 = vector.load %arg16[%c0_135, %c0_136] : memref<64x32xf32, #tpu.memory_space<vmem>>, vector<64x32xf32>
    %cst_137 = arith.constant dense<0.000000e+00> : vector<1x32xf32>
    %338 = tpu.matmul %336, %337, %cst_137 {dimension_numbers = #tpu.dot_dimension_numbers<[1], [0], [0], [1], [0, 0, 1, 1], [], []>} : vector<1x64xf32>, vector<64x32xf32>, vector<1x32xf32> -> vector<1x32xf32>
    %c0_138 = arith.constant 0 : index
    %c0_139 = arith.constant 0 : index
    %339 = vector.load %arg17[%c0_138, %c0_139] : memref<1x32xf32, #tpu.memory_space<vmem>>, vector<1x32xf32>
    %340 = arith.addf %338, %339 : vector<1x32xf32>
    %341 = tpu.iota {dimensions = array<i32: 0>} : vector<17x32xi32>
    %c0_i32_140 = arith.constant 0 : i32
    %342 = vector.broadcast %c0_i32_140 : i32 to vector<17x32xi32>
    %343 = arith.cmpi eq, %341, %342 : vector<17x32xi32>
    %344 = vector.shape_cast %340 : vector<1x32xf32> to vector<1x32xf32>
    %345 = vector.broadcast %344 : vector<1x32xf32> to vector<17x32xf32>
    %346 = arith.select %343, %345, %1 : vector<17x32xi1>, vector<17x32xf32>
    %c0_141 = arith.constant 0 : index
    %c0_142 = arith.constant 0 : index
    %c0_143 = arith.constant 0 : index
    %347 = vector.load %arg18[%c0_141, %c0_142, %c0_143] : memref<1x17x32xf32, #tpu.memory_space<vmem>>, vector<1x17x32xf32>
    %348 = vector.shape_cast %347 : vector<1x17x32xf32> to vector<17x32xf32>
    %349 = vector.shape_cast %346 : vector<17x32xf32> to vector<1x17x32xf32>
    tpu.vector_store %arg18[%c0_141, %c0_142, %c0_143], %349 {strides = array<i32>} : memref<1x17x32xf32, #tpu.memory_space<vmem>>, vector<1x17x32xf32>,
    return
  }
  func.func @transform_0(%arg0: i32) -> (i32, i32, i32) {
    %c0_i32 = arith.constant 0 : i32
    %c0_i32_0 = arith.constant 0 : i32
    %c0_i32_1 = arith.constant 0 : i32
    return %arg0, %c0_i32, %c0_i32_0 : i32, i32, i32
  }
  func.func @transform_1(%arg0: i32) -> (i32, i32, i32) {
    %c0_i32 = arith.constant 0 : i32
    %c0_i32_0 = arith.constant 0 : i32
    %c0_i32_1 = arith.constant 0 : i32
    return %arg0, %c0_i32, %c0_i32_0 : i32, i32, i32
  }
  func.func @transform_2(%arg0: i32) -> (i32, i32) {
    %c0_i32 = arith.constant 0 : i32
    %c0_i32_0 = arith.constant 0 : i32
    %c0_i32_1 = arith.constant 0 : i32
    return %c0_i32, %c0_i32_0 : i32, i32
  }
  func.func @transform_3(%arg0: i32) -> (i32, i32) {
    %c0_i32 = arith.constant 0 : i32
    %c0_i32_0 = arith.constant 0 : i32
    %c0_i32_1 = arith.constant 0 : i32
    return %c0_i32, %c0_i32_0 : i32, i32
  }
  func.func @transform_4(%arg0: i32) -> (i32, i32) {
    %c0_i32 = arith.constant 0 : i32
    %c0_i32_0 = arith.constant 0 : i32
    %c0_i32_1 = arith.constant 0 : i32
    return %c0_i32, %c0_i32_0 : i32, i32
  }
  func.func @transform_5(%arg0: i32) -> (i32, i32) {
    %c0_i32 = arith.constant 0 : i32
    %c0_i32_0 = arith.constant 0 : i32
    %c0_i32_1 = arith.constant 0 : i32
    return %c0_i32, %c0_i32_0 : i32, i32
  }
  func.func @transform_6(%arg0: i32) -> (i32, i32, i32) {
    %c0_i32 = arith.constant 0 : i32
    %c0_i32_0 = arith.constant 0 : i32
    %c0_i32_1 = arith.constant 0 : i32
    %c0_i32_2 = arith.constant 0 : i32
    return %c0_i32, %c0_i32_0, %c0_i32_1 : i32, i32, i32
  }
  func.func @transform_7(%arg0: i32) -> (i32, i32, i32) {
    %c0_i32 = arith.constant 0 : i32
    %c0_i32_0 = arith.constant 0 : i32
    %c0_i32_1 = arith.constant 0 : i32
    %c0_i32_2 = arith.constant 0 : i32
    return %c0_i32, %c0_i32_0, %c0_i32_1 : i32, i32, i32
  }
  func.func @transform_8(%arg0: i32) -> (i32, i32, i32) {
    %c0_i32 = arith.constant 0 : i32
    %c0_i32_0 = arith.constant 0 : i32
    %c0_i32_1 = arith.constant 0 : i32
    %c0_i32_2 = arith.constant 0 : i32
    return %c0_i32, %c0_i32_0, %c0_i32_1 : i32, i32, i32
  }
  func.func @transform_9(%arg0: i32) -> (i32, i32, i32) {
    %c0_i32 = arith.constant 0 : i32
    %c0_i32_0 = arith.constant 0 : i32
    %c0_i32_1 = arith.constant 0 : i32
    %c0_i32_2 = arith.constant 0 : i32
    return %c0_i32, %c0_i32_0, %c0_i32_1 : i32, i32, i32
  }
  func.func @transform_10(%arg0: i32) -> (i32, i32, i32) {
    %c0_i32 = arith.constant 0 : i32
    %c0_i32_0 = arith.constant 0 : i32
    %c0_i32_1 = arith.constant 0 : i32
    %c0_i32_2 = arith.constant 0 : i32
    return %c0_i32, %c0_i32_0, %c0_i32_1 : i32, i32, i32
  }
  func.func @transform_11(%arg0: i32) -> (i32, i32, i32) {
    %c0_i32 = arith.constant 0 : i32
    %c0_i32_0 = arith.constant 0 : i32
    %c0_i32_1 = arith.constant 0 : i32
    %c0_i32_2 = arith.constant 0 : i32
    return %c0_i32, %c0_i32_0, %c0_i32_1 : i32, i32, i32
  }
  func.func @transform_12(%arg0: i32) -> (i32, i32, i32) {
    %c0_i32 = arith.constant 0 : i32
    %c0_i32_0 = arith.constant 0 : i32
    %c0_i32_1 = arith.constant 0 : i32
    %c0_i32_2 = arith.constant 0 : i32
    return %c0_i32, %c0_i32_0, %c0_i32_1 : i32, i32, i32
  }
  func.func @transform_13(%arg0: i32) -> (i32, i32) {
    %c0_i32 = arith.constant 0 : i32
    %c0_i32_0 = arith.constant 0 : i32
    %c0_i32_1 = arith.constant 0 : i32
    return %c0_i32, %c0_i32_0 : i32, i32
  }
  func.func @transform_14(%arg0: i32) -> (i32, i32) {
    %c0_i32 = arith.constant 0 : i32
    %c0_i32_0 = arith.constant 0 : i32
    %c0_i32_1 = arith.constant 0 : i32
    return %c0_i32, %c0_i32_0 : i32, i32
  }
  func.func @transform_15(%arg0: i32) -> (i32, i32) {
    %c0_i32 = arith.constant 0 : i32
    %c0_i32_0 = arith.constant 0 : i32
    %c0_i32_1 = arith.constant 0 : i32
    return %c0_i32, %c0_i32_0 : i32, i32
  }
  func.func @transform_16(%arg0: i32) -> (i32, i32) {
    %c0_i32 = arith.constant 0 : i32
    %c0_i32_0 = arith.constant 0 : i32
    %c0_i32_1 = arith.constant 0 : i32
    return %c0_i32, %c0_i32_0 : i32, i32
  }
  func.func @transform_17(%arg0: i32) -> (i32, i32, i32) {
    %c0_i32 = arith.constant 0 : i32
    %c0_i32_0 = arith.constant 0 : i32
    %c0_i32_1 = arith.constant 0 : i32
    return %arg0, %c0_i32, %c0_i32_0 : i32, i32, i32
  }
}

module attributes {stable_mosaic.version = 11 : i64} {
  func.func @_vit_blocks_kernel(%arg0: i32, %arg1: memref<1x5x64xf32, #tpu.memory_space<vmem>>, %arg2: memref<2x1x64xf32, #tpu.memory_space<vmem>>, %arg3: memref<2x1x64xf32, #tpu.memory_space<vmem>>, %arg4: memref<2x64x192xf32, #tpu.memory_space<vmem>>, %arg5: memref<2x64x64xf32, #tpu.memory_space<vmem>>, %arg6: memref<2x1x64xf32, #tpu.memory_space<vmem>>, %arg7: memref<2x1x64xf32, #tpu.memory_space<vmem>>, %arg8: memref<2x1x64xf32, #tpu.memory_space<vmem>>, %arg9: memref<2x64x128xf32, #tpu.memory_space<vmem>>, %arg10: memref<2x1x128xf32, #tpu.memory_space<vmem>>, %arg11: memref<2x128x64xf32, #tpu.memory_space<vmem>>, %arg12: memref<2x1x64xf32, #tpu.memory_space<vmem>>, %arg13: memref<1x5x64xf32, #tpu.memory_space<vmem>>) attributes {dimension_semantics = [#tpu.dimension_semantics<parallel>], iteration_bounds = array<i64: 2>, scalar_prefetch = 0 : i64, scratch_operands = 0 : i64, tpu.core_type = #tpu.core_type<tc>, window_params = [{transform_indices = @transform_0, window_bounds = array<i64: 1, 5, 64>}, {pipeline_mode = #tpu.pipeline_mode<synchronous>, transform_indices = @transform_1, window_bounds = array<i64: 2, 1, 64>}, {pipeline_mode = #tpu.pipeline_mode<synchronous>, transform_indices = @transform_2, window_bounds = array<i64: 2, 1, 64>}, {pipeline_mode = #tpu.pipeline_mode<synchronous>, transform_indices = @transform_3, window_bounds = array<i64: 2, 64, 192>}, {pipeline_mode = #tpu.pipeline_mode<synchronous>, transform_indices = @transform_4, window_bounds = array<i64: 2, 64, 64>}, {pipeline_mode = #tpu.pipeline_mode<synchronous>, transform_indices = @transform_5, window_bounds = array<i64: 2, 1, 64>}, {pipeline_mode = #tpu.pipeline_mode<synchronous>, transform_indices = @transform_6, window_bounds = array<i64: 2, 1, 64>}, {pipeline_mode = #tpu.pipeline_mode<synchronous>, transform_indices = @transform_7, window_bounds = array<i64: 2, 1, 64>}, {pipeline_mode = #tpu.pipeline_mode<synchronous>, transform_indices = @transform_8, window_bounds = array<i64: 2, 64, 128>}, {pipeline_mode = #tpu.pipeline_mode<synchronous>, transform_indices = @transform_9, window_bounds = array<i64: 2, 1, 128>}, {pipeline_mode = #tpu.pipeline_mode<synchronous>, transform_indices = @transform_10, window_bounds = array<i64: 2, 128, 64>}, {pipeline_mode = #tpu.pipeline_mode<synchronous>, transform_indices = @transform_11, window_bounds = array<i64: 2, 1, 64>}, {transform_indices = @transform_12, window_bounds = array<i64: 1, 5, 64>}]} {
    %c0 = arith.constant 0 : index
    %c0_0 = arith.constant 0 : index
    %c0_1 = arith.constant 0 : index
    %0 = vector.load %arg1[%c0, %c0_0, %c0_1] : memref<1x5x64xf32, #tpu.memory_space<vmem>>, vector<1x5x64xf32>
    %1 = vector.shape_cast %0 : vector<1x5x64xf32> to vector<5x64xf32>
    %c0_2 = arith.constant 0 : index
    %c0_3 = arith.constant 0 : index
    %c0_4 = arith.constant 0 : index
    %2 = vector.load %arg2[%c0_2, %c0_3, %c0_4] : memref<2x1x64xf32, #tpu.memory_space<vmem>>, vector<1x1x64xf32>
    %3 = vector.shape_cast %2 : vector<1x1x64xf32> to vector<1x64xf32>
    %c0_5 = arith.constant 0 : index
    %c0_6 = arith.constant 0 : index
    %c0_7 = arith.constant 0 : index
    %4 = vector.load %arg3[%c0_5, %c0_6, %c0_7] : memref<2x1x64xf32, #tpu.memory_space<vmem>>, vector<1x1x64xf32>
    %5 = vector.shape_cast %4 : vector<1x1x64xf32> to vector<1x64xf32>
    %cst = arith.constant dense<0.000000e+00> : vector<5xf32>
    %6 = vector.multi_reduction <add>, %1, %cst [1] : vector<5x64xf32> to vector<5xf32>
    %7 = vector.shape_cast %6 : vector<5xf32> to vector<5x1xf32>
    %cst_8 = arith.constant 6.400000e+01 : f32
    %8 = vector.broadcast %cst_8 : f32 to vector<5x1xf32>
    %9 = arith.divf %7, %8 : vector<5x1xf32>
    %10 = vector.broadcast %9 : vector<5x1xf32> to vector<5x64xf32>
    %11 = arith.subf %1, %10 : vector<5x64xf32>
    %12 = arith.mulf %11, %11 : vector<5x64xf32>
    %cst_9 = arith.constant dense<0.000000e+00> : vector<5xf32>
    %13 = vector.multi_reduction <add>, %12, %cst_9 [1] : vector<5x64xf32> to vector<5xf32>
    %14 = vector.shape_cast %13 : vector<5xf32> to vector<5x1xf32>
    %cst_10 = arith.constant 6.400000e+01 : f32
    %15 = vector.broadcast %cst_10 : f32 to vector<5x1xf32>
    %16 = arith.divf %14, %15 : vector<5x1xf32>
    %cst_11 = arith.constant 9.99999974E-6 : f32
    %17 = vector.broadcast %cst_11 : f32 to vector<5x1xf32>
    %18 = arith.addf %16, %17 : vector<5x1xf32>
    %19 = math.rsqrt %18 : vector<5x1xf32>
    %20 = vector.broadcast %19 : vector<5x1xf32> to vector<5x64xf32>
    %21 = arith.mulf %11, %20 : vector<5x64xf32>
    %22 = vector.broadcast %3 : vector<1x64xf32> to vector<5x64xf32>
    %23 = arith.mulf %21, %22 : vector<5x64xf32>
    %24 = vector.broadcast %5 : vector<1x64xf32> to vector<5x64xf32>
    %25 = arith.addf %23, %24 : vector<5x64xf32>
    %c0_12 = arith.constant 0 : index
    %c0_13 = arith.constant 0 : index
    %c0_14 = arith.constant 0 : index
    %26 = vector.load %arg4[%c0_12, %c0_13, %c0_14] : memref<2x64x192xf32, #tpu.memory_space<vmem>>, vector<1x64x192xf32>
    %27 = vector.shape_cast %26 : vector<1x64x192xf32> to vector<64x192xf32>
    %cst_15 = arith.constant dense<0.000000e+00> : vector<5x192xf32>
    %28 = tpu.matmul %25, %27, %cst_15 {dimension_numbers = #tpu.dot_dimension_numbers<[1], [0], [0], [1], [0, 0, 1, 1], [], []>} : vector<5x64xf32>, vector<64x192xf32>, vector<5x192xf32> -> vector<5x192xf32>
    %c0_16 = arith.constant 0 : index
    %c0_17 = arith.constant 0 : index
    %c0_18 = arith.constant 0 : index
    %29 = vector.load %arg5[%c0_16, %c0_17, %c0_18] : memref<2x64x64xf32, #tpu.memory_space<vmem>>, vector<1x64x64xf32>
    %30 = vector.shape_cast %29 : vector<1x64x64xf32> to vector<64x64xf32>
    %cst_19 = arith.constant 0.000000e+00 : f32
    %31 = vector.broadcast %cst_19 : f32 to vector<5x64xf32>
    %32 = vector.extract_strided_slice %28 {offsets = [0, 0], sizes = [5, 8], strides = [1, 1]} : vector<5x192xf32> to vector<5x8xf32>
    %33 = vector.extract_strided_slice %28 {offsets = [0, 64], sizes = [5, 8], strides = [1, 1]} : vector<5x192xf32> to vector<5x8xf32>
    %34 = vector.extract_strided_slice %28 {offsets = [0, 128], sizes = [5, 8], strides = [1, 1]} : vector<5x192xf32> to vector<5x8xf32>
    %cst_20 = arith.constant dense<0.000000e+00> : vector<5x5xf32>
    %35 = tpu.matmul %32, %33, %cst_20 {dimension_numbers = #tpu.dot_dimension_numbers<[1], [1], [0], [0], [0, 0, 1, 0], [], []>} : vector<5x8xf32>, vector<5x8xf32>, vector<5x5xf32> -> vector<5x5xf32>
    %cst_21 = arith.constant 0.353553385 : f32
    %36 = vector.broadcast %cst_21 : f32 to vector<5x5xf32>
    %37 = arith.mulf %35, %36 : vector<5x5xf32>
    %cst_22 = arith.constant dense<0xFF800000> : vector<5xf32>
    %38 = vector.multi_reduction <maximumf>, %37, %cst_22 [1] : vector<5x5xf32> to vector<5xf32>
    %39 = vector.shape_cast %38 : vector<5xf32> to vector<5x1xf32>
    %40 = vector.broadcast %39 : vector<5x1xf32> to vector<5x5xf32>
    %41 = arith.subf %37, %40 : vector<5x5xf32>
    %42 = math.exp %41 : vector<5x5xf32>
    %cst_23 = arith.constant dense<0.000000e+00> : vector<5xf32>
    %43 = vector.multi_reduction <add>, %42, %cst_23 [1] : vector<5x5xf32> to vector<5xf32>
    %44 = vector.shape_cast %43 : vector<5xf32> to vector<5x1xf32>
    %45 = tpu.reciprocal %44 {approx = true} : vector<5x1xf32> -> vector<5x1xf32>
    %46 = vector.broadcast %45 : vector<5x1xf32> to vector<5x5xf32>
    %47 = arith.mulf %42, %46 : vector<5x5xf32>
    %cst_24 = arith.constant dense<0.000000e+00> : vector<5x8xf32>
    %48 = tpu.matmul %47, %34, %cst_24 {dimension_numbers = #tpu.dot_dimension_numbers<[1], [0], [0], [1], [0, 0, 1, 1], [], []>} : vector<5x5xf32>, vector<5x8xf32>, vector<5x8xf32> -> vector<5x8xf32>
    %49 = vector.extract_strided_slice %30 {offsets = [0, 0], sizes = [8, 64], strides = [1, 1]} : vector<64x64xf32> to vector<8x64xf32>
    %cst_25 = arith.constant dense<0.000000e+00> : vector<5x64xf32>
    %50 = tpu.matmul %48, %49, %cst_25 {dimension_numbers = #tpu.dot_dimension_numbers<[1], [0], [0], [1], [0, 0, 1, 1], [], []>} : vector<5x8xf32>, vector<8x64xf32>, vector<5x64xf32> -> vector<5x64xf32>
    %51 = arith.addf %31, %50 : vector<5x64xf32>
    %52 = vector.extract_strided_slice %28 {offsets = [0, 8], sizes = [5, 8], strides = [1, 1]} : vector<5x192xf32> to vector<5x8xf32>
    %53 = vector.extract_strided_slice %28 {offsets = [0, 72], sizes = [5, 8], strides = [1, 1]} : vector<5x192xf32> to vector<5x8xf32>
    %54 = vector.extract_strided_slice %28 {offsets = [0, 136], sizes = [5, 8], strides = [1, 1]} : vector<5x192xf32> to vector<5x8xf32>
    %cst_26 = arith.constant dense<0.000000e+00> : vector<5x5xf32>
    %55 = tpu.matmul %52, %53, %cst_26 {dimension_numbers = #tpu.dot_dimension_numbers<[1], [1], [0], [0], [0, 0, 1, 0], [], []>} : vector<5x8xf32>, vector<5x8xf32>, vector<5x5xf32> -> vector<5x5xf32>
    %cst_27 = arith.constant 0.353553385 : f32
    %56 = vector.broadcast %cst_27 : f32 to vector<5x5xf32>
    %57 = arith.mulf %55, %56 : vector<5x5xf32>
    %cst_28 = arith.constant dense<0xFF800000> : vector<5xf32>
    %58 = vector.multi_reduction <maximumf>, %57, %cst_28 [1] : vector<5x5xf32> to vector<5xf32>
    %59 = vector.shape_cast %58 : vector<5xf32> to vector<5x1xf32>
    %60 = vector.broadcast %59 : vector<5x1xf32> to vector<5x5xf32>
    %61 = arith.subf %57, %60 : vector<5x5xf32>
    %62 = math.exp %61 : vector<5x5xf32>
    %cst_29 = arith.constant dense<0.000000e+00> : vector<5xf32>
    %63 = vector.multi_reduction <add>, %62, %cst_29 [1] : vector<5x5xf32> to vector<5xf32>
    %64 = vector.shape_cast %63 : vector<5xf32> to vector<5x1xf32>
    %65 = tpu.reciprocal %64 {approx = true} : vector<5x1xf32> -> vector<5x1xf32>
    %66 = vector.broadcast %65 : vector<5x1xf32> to vector<5x5xf32>
    %67 = arith.mulf %62, %66 : vector<5x5xf32>
    %cst_30 = arith.constant dense<0.000000e+00> : vector<5x8xf32>
    %68 = tpu.matmul %67, %54, %cst_30 {dimension_numbers = #tpu.dot_dimension_numbers<[1], [0], [0], [1], [0, 0, 1, 1], [], []>} : vector<5x5xf32>, vector<5x8xf32>, vector<5x8xf32> -> vector<5x8xf32>
    %69 = vector.extract_strided_slice %30 {offsets = [8, 0], sizes = [8, 64], strides = [1, 1]} : vector<64x64xf32> to vector<8x64xf32>
    %cst_31 = arith.constant dense<0.000000e+00> : vector<5x64xf32>
    %70 = tpu.matmul %68, %69, %cst_31 {dimension_numbers = #tpu.dot_dimension_numbers<[1], [0], [0], [1], [0, 0, 1, 1], [], []>} : vector<5x8xf32>, vector<8x64xf32>, vector<5x64xf32> -> vector<5x64xf32>
    %71 = arith.addf %51, %70 : vector<5x64xf32>
    %72 = vector.extract_strided_slice %28 {offsets = [0, 16], sizes = [5, 8], strides = [1, 1]} : vector<5x192xf32> to vector<5x8xf32>
    %73 = vector.extract_strided_slice %28 {offsets = [0, 80], sizes = [5, 8], strides = [1, 1]} : vector<5x192xf32> to vector<5x8xf32>
    %74 = vector.extract_strided_slice %28 {offsets = [0, 144], sizes = [5, 8], strides = [1, 1]} : vector<5x192xf32> to vector<5x8xf32>
    %cst_32 = arith.constant dense<0.000000e+00> : vector<5x5xf32>
    %75 = tpu.matmul %72, %73, %cst_32 {dimension_numbers = #tpu.dot_dimension_numbers<[1], [1], [0], [0], [0, 0, 1, 0], [], []>} : vector<5x8xf32>, vector<5x8xf32>, vector<5x5xf32> -> vector<5x5xf32>
    %cst_33 = arith.constant 0.353553385 : f32
    %76 = vector.broadcast %cst_33 : f32 to vector<5x5xf32>
    %77 = arith.mulf %75, %76 : vector<5x5xf32>
    %cst_34 = arith.constant dense<0xFF800000> : vector<5xf32>
    %78 = vector.multi_reduction <maximumf>, %77, %cst_34 [1] : vector<5x5xf32> to vector<5xf32>
    %79 = vector.shape_cast %78 : vector<5xf32> to vector<5x1xf32>
    %80 = vector.broadcast %79 : vector<5x1xf32> to vector<5x5xf32>
    %81 = arith.subf %77, %80 : vector<5x5xf32>
    %82 = math.exp %81 : vector<5x5xf32>
    %cst_35 = arith.constant dense<0.000000e+00> : vector<5xf32>
    %83 = vector.multi_reduction <add>, %82, %cst_35 [1] : vector<5x5xf32> to vector<5xf32>
    %84 = vector.shape_cast %83 : vector<5xf32> to vector<5x1xf32>
    %85 = tpu.reciprocal %84 {approx = true} : vector<5x1xf32> -> vector<5x1xf32>
    %86 = vector.broadcast %85 : vector<5x1xf32> to vector<5x5xf32>
    %87 = arith.mulf %82, %86 : vector<5x5xf32>
    %cst_36 = arith.constant dense<0.000000e+00> : vector<5x8xf32>
    %88 = tpu.matmul %87, %74, %cst_36 {dimension_numbers = #tpu.dot_dimension_numbers<[1], [0], [0], [1], [0, 0, 1, 1], [], []>} : vector<5x5xf32>, vector<5x8xf32>, vector<5x8xf32> -> vector<5x8xf32>
    %89 = vector.extract_strided_slice %30 {offsets = [16, 0], sizes = [8, 64], strides = [1, 1]} : vector<64x64xf32> to vector<8x64xf32>
    %cst_37 = arith.constant dense<0.000000e+00> : vector<5x64xf32>
    %90 = tpu.matmul %88, %89, %cst_37 {dimension_numbers = #tpu.dot_dimension_numbers<[1], [0], [0], [1], [0, 0, 1, 1], [], []>} : vector<5x8xf32>, vector<8x64xf32>, vector<5x64xf32> -> vector<5x64xf32>
    %91 = arith.addf %71, %90 : vector<5x64xf32>
    %92 = vector.extract_strided_slice %28 {offsets = [0, 24], sizes = [5, 8], strides = [1, 1]} : vector<5x192xf32> to vector<5x8xf32>
    %93 = vector.extract_strided_slice %28 {offsets = [0, 88], sizes = [5, 8], strides = [1, 1]} : vector<5x192xf32> to vector<5x8xf32>
    %94 = vector.extract_strided_slice %28 {offsets = [0, 152], sizes = [5, 8], strides = [1, 1]} : vector<5x192xf32> to vector<5x8xf32>
    %cst_38 = arith.constant dense<0.000000e+00> : vector<5x5xf32>
    %95 = tpu.matmul %92, %93, %cst_38 {dimension_numbers = #tpu.dot_dimension_numbers<[1], [1], [0], [0], [0, 0, 1, 0], [], []>} : vector<5x8xf32>, vector<5x8xf32>, vector<5x5xf32> -> vector<5x5xf32>
    %cst_39 = arith.constant 0.353553385 : f32
    %96 = vector.broadcast %cst_39 : f32 to vector<5x5xf32>
    %97 = arith.mulf %95, %96 : vector<5x5xf32>
    %cst_40 = arith.constant dense<0xFF800000> : vector<5xf32>
    %98 = vector.multi_reduction <maximumf>, %97, %cst_40 [1] : vector<5x5xf32> to vector<5xf32>
    %99 = vector.shape_cast %98 : vector<5xf32> to vector<5x1xf32>
    %100 = vector.broadcast %99 : vector<5x1xf32> to vector<5x5xf32>
    %101 = arith.subf %97, %100 : vector<5x5xf32>
    %102 = math.exp %101 : vector<5x5xf32>
    %cst_41 = arith.constant dense<0.000000e+00> : vector<5xf32>
    %103 = vector.multi_reduction <add>, %102, %cst_41 [1] : vector<5x5xf32> to vector<5xf32>
    %104 = vector.shape_cast %103 : vector<5xf32> to vector<5x1xf32>
    %105 = tpu.reciprocal %104 {approx = true} : vector<5x1xf32> -> vector<5x1xf32>
    %106 = vector.broadcast %105 : vector<5x1xf32> to vector<5x5xf32>
    %107 = arith.mulf %102, %106 : vector<5x5xf32>
    %cst_42 = arith.constant dense<0.000000e+00> : vector<5x8xf32>
    %108 = tpu.matmul %107, %94, %cst_42 {dimension_numbers = #tpu.dot_dimension_numbers<[1], [0], [0], [1], [0, 0, 1, 1], [], []>} : vector<5x5xf32>, vector<5x8xf32>, vector<5x8xf32> -> vector<5x8xf32>
    %109 = vector.extract_strided_slice %30 {offsets = [24, 0], sizes = [8, 64], strides = [1, 1]} : vector<64x64xf32> to vector<8x64xf32>
    %cst_43 = arith.constant dense<0.000000e+00> : vector<5x64xf32>
    %110 = tpu.matmul %108, %109, %cst_43 {dimension_numbers = #tpu.dot_dimension_numbers<[1], [0], [0], [1], [0, 0, 1, 1], [], []>} : vector<5x8xf32>, vector<8x64xf32>, vector<5x64xf32> -> vector<5x64xf32>
    %111 = arith.addf %91, %110 : vector<5x64xf32>
    %112 = vector.extract_strided_slice %28 {offsets = [0, 32], sizes = [5, 8], strides = [1, 1]} : vector<5x192xf32> to vector<5x8xf32>
    %113 = vector.extract_strided_slice %28 {offsets = [0, 96], sizes = [5, 8], strides = [1, 1]} : vector<5x192xf32> to vector<5x8xf32>
    %114 = vector.extract_strided_slice %28 {offsets = [0, 160], sizes = [5, 8], strides = [1, 1]} : vector<5x192xf32> to vector<5x8xf32>
    %cst_44 = arith.constant dense<0.000000e+00> : vector<5x5xf32>
    %115 = tpu.matmul %112, %113, %cst_44 {dimension_numbers = #tpu.dot_dimension_numbers<[1], [1], [0], [0], [0, 0, 1, 0], [], []>} : vector<5x8xf32>, vector<5x8xf32>, vector<5x5xf32> -> vector<5x5xf32>
    %cst_45 = arith.constant 0.353553385 : f32
    %116 = vector.broadcast %cst_45 : f32 to vector<5x5xf32>
    %117 = arith.mulf %115, %116 : vector<5x5xf32>
    %cst_46 = arith.constant dense<0xFF800000> : vector<5xf32>
    %118 = vector.multi_reduction <maximumf>, %117, %cst_46 [1] : vector<5x5xf32> to vector<5xf32>
    %119 = vector.shape_cast %118 : vector<5xf32> to vector<5x1xf32>
    %120 = vector.broadcast %119 : vector<5x1xf32> to vector<5x5xf32>
    %121 = arith.subf %117, %120 : vector<5x5xf32>
    %122 = math.exp %121 : vector<5x5xf32>
    %cst_47 = arith.constant dense<0.000000e+00> : vector<5xf32>
    %123 = vector.multi_reduction <add>, %122, %cst_47 [1] : vector<5x5xf32> to vector<5xf32>
    %124 = vector.shape_cast %123 : vector<5xf32> to vector<5x1xf32>
    %125 = tpu.reciprocal %124 {approx = true} : vector<5x1xf32> -> vector<5x1xf32>
    %126 = vector.broadcast %125 : vector<5x1xf32> to vector<5x5xf32>
    %127 = arith.mulf %122, %126 : vector<5x5xf32>
    %cst_48 = arith.constant dense<0.000000e+00> : vector<5x8xf32>
    %128 = tpu.matmul %127, %114, %cst_48 {dimension_numbers = #tpu.dot_dimension_numbers<[1], [0], [0], [1], [0, 0, 1, 1], [], []>} : vector<5x5xf32>, vector<5x8xf32>, vector<5x8xf32> -> vector<5x8xf32>
    %129 = vector.extract_strided_slice %30 {offsets = [32, 0], sizes = [8, 64], strides = [1, 1]} : vector<64x64xf32> to vector<8x64xf32>
    %cst_49 = arith.constant dense<0.000000e+00> : vector<5x64xf32>
    %130 = tpu.matmul %128, %129, %cst_49 {dimension_numbers = #tpu.dot_dimension_numbers<[1], [0], [0], [1], [0, 0, 1, 1], [], []>} : vector<5x8xf32>, vector<8x64xf32>, vector<5x64xf32> -> vector<5x64xf32>
    %131 = arith.addf %111, %130 : vector<5x64xf32>
    %132 = vector.extract_strided_slice %28 {offsets = [0, 40], sizes = [5, 8], strides = [1, 1]} : vector<5x192xf32> to vector<5x8xf32>
    %133 = vector.extract_strided_slice %28 {offsets = [0, 104], sizes = [5, 8], strides = [1, 1]} : vector<5x192xf32> to vector<5x8xf32>
    %134 = vector.extract_strided_slice %28 {offsets = [0, 168], sizes = [5, 8], strides = [1, 1]} : vector<5x192xf32> to vector<5x8xf32>
    %cst_50 = arith.constant dense<0.000000e+00> : vector<5x5xf32>
    %135 = tpu.matmul %132, %133, %cst_50 {dimension_numbers = #tpu.dot_dimension_numbers<[1], [1], [0], [0], [0, 0, 1, 0], [], []>} : vector<5x8xf32>, vector<5x8xf32>, vector<5x5xf32> -> vector<5x5xf32>
    %cst_51 = arith.constant 0.353553385 : f32
    %136 = vector.broadcast %cst_51 : f32 to vector<5x5xf32>
    %137 = arith.mulf %135, %136 : vector<5x5xf32>
    %cst_52 = arith.constant dense<0xFF800000> : vector<5xf32>
    %138 = vector.multi_reduction <maximumf>, %137, %cst_52 [1] : vector<5x5xf32> to vector<5xf32>
    %139 = vector.shape_cast %138 : vector<5xf32> to vector<5x1xf32>
    %140 = vector.broadcast %139 : vector<5x1xf32> to vector<5x5xf32>
    %141 = arith.subf %137, %140 : vector<5x5xf32>
    %142 = math.exp %141 : vector<5x5xf32>
    %cst_53 = arith.constant dense<0.000000e+00> : vector<5xf32>
    %143 = vector.multi_reduction <add>, %142, %cst_53 [1] : vector<5x5xf32> to vector<5xf32>
    %144 = vector.shape_cast %143 : vector<5xf32> to vector<5x1xf32>
    %145 = tpu.reciprocal %144 {approx = true} : vector<5x1xf32> -> vector<5x1xf32>
    %146 = vector.broadcast %145 : vector<5x1xf32> to vector<5x5xf32>
    %147 = arith.mulf %142, %146 : vector<5x5xf32>
    %cst_54 = arith.constant dense<0.000000e+00> : vector<5x8xf32>
    %148 = tpu.matmul %147, %134, %cst_54 {dimension_numbers = #tpu.dot_dimension_numbers<[1], [0], [0], [1], [0, 0, 1, 1], [], []>} : vector<5x5xf32>, vector<5x8xf32>, vector<5x8xf32> -> vector<5x8xf32>
    %149 = vector.extract_strided_slice %30 {offsets = [40, 0], sizes = [8, 64], strides = [1, 1]} : vector<64x64xf32> to vector<8x64xf32>
    %cst_55 = arith.constant dense<0.000000e+00> : vector<5x64xf32>
    %150 = tpu.matmul %148, %149, %cst_55 {dimension_numbers = #tpu.dot_dimension_numbers<[1], [0], [0], [1], [0, 0, 1, 1], [], []>} : vector<5x8xf32>, vector<8x64xf32>, vector<5x64xf32> -> vector<5x64xf32>
    %151 = arith.addf %131, %150 : vector<5x64xf32>
    %152 = vector.extract_strided_slice %28 {offsets = [0, 48], sizes = [5, 8], strides = [1, 1]} : vector<5x192xf32> to vector<5x8xf32>
    %153 = vector.extract_strided_slice %28 {offsets = [0, 112], sizes = [5, 8], strides = [1, 1]} : vector<5x192xf32> to vector<5x8xf32>
    %154 = vector.extract_strided_slice %28 {offsets = [0, 176], sizes = [5, 8], strides = [1, 1]} : vector<5x192xf32> to vector<5x8xf32>
    %cst_56 = arith.constant dense<0.000000e+00> : vector<5x5xf32>
    %155 = tpu.matmul %152, %153, %cst_56 {dimension_numbers = #tpu.dot_dimension_numbers<[1], [1], [0], [0], [0, 0, 1, 0], [], []>} : vector<5x8xf32>, vector<5x8xf32>, vector<5x5xf32> -> vector<5x5xf32>
    %cst_57 = arith.constant 0.353553385 : f32
    %156 = vector.broadcast %cst_57 : f32 to vector<5x5xf32>
    %157 = arith.mulf %155, %156 : vector<5x5xf32>
    %cst_58 = arith.constant dense<0xFF800000> : vector<5xf32>
    %158 = vector.multi_reduction <maximumf>, %157, %cst_58 [1] : vector<5x5xf32> to vector<5xf32>
    %159 = vector.shape_cast %158 : vector<5xf32> to vector<5x1xf32>
    %160 = vector.broadcast %159 : vector<5x1xf32> to vector<5x5xf32>
    %161 = arith.subf %157, %160 : vector<5x5xf32>
    %162 = math.exp %161 : vector<5x5xf32>
    %cst_59 = arith.constant dense<0.000000e+00> : vector<5xf32>
    %163 = vector.multi_reduction <add>, %162, %cst_59 [1] : vector<5x5xf32> to vector<5xf32>
    %164 = vector.shape_cast %163 : vector<5xf32> to vector<5x1xf32>
    %165 = tpu.reciprocal %164 {approx = true} : vector<5x1xf32> -> vector<5x1xf32>
    %166 = vector.broadcast %165 : vector<5x1xf32> to vector<5x5xf32>
    %167 = arith.mulf %162, %166 : vector<5x5xf32>
    %cst_60 = arith.constant dense<0.000000e+00> : vector<5x8xf32>
    %168 = tpu.matmul %167, %154, %cst_60 {dimension_numbers = #tpu.dot_dimension_numbers<[1], [0], [0], [1], [0, 0, 1, 1], [], []>} : vector<5x5xf32>, vector<5x8xf32>, vector<5x8xf32> -> vector<5x8xf32>
    %169 = vector.extract_strided_slice %30 {offsets = [48, 0], sizes = [8, 64], strides = [1, 1]} : vector<64x64xf32> to vector<8x64xf32>
    %cst_61 = arith.constant dense<0.000000e+00> : vector<5x64xf32>
    %170 = tpu.matmul %168, %169, %cst_61 {dimension_numbers = #tpu.dot_dimension_numbers<[1], [0], [0], [1], [0, 0, 1, 1], [], []>} : vector<5x8xf32>, vector<8x64xf32>, vector<5x64xf32> -> vector<5x64xf32>
    %171 = arith.addf %151, %170 : vector<5x64xf32>
    %172 = vector.extract_strided_slice %28 {offsets = [0, 56], sizes = [5, 8], strides = [1, 1]} : vector<5x192xf32> to vector<5x8xf32>
    %173 = vector.extract_strided_slice %28 {offsets = [0, 120], sizes = [5, 8], strides = [1, 1]} : vector<5x192xf32> to vector<5x8xf32>
    %174 = vector.extract_strided_slice %28 {offsets = [0, 184], sizes = [5, 8], strides = [1, 1]} : vector<5x192xf32> to vector<5x8xf32>
    %cst_62 = arith.constant dense<0.000000e+00> : vector<5x5xf32>
    %175 = tpu.matmul %172, %173, %cst_62 {dimension_numbers = #tpu.dot_dimension_numbers<[1], [1], [0], [0], [0, 0, 1, 0], [], []>} : vector<5x8xf32>, vector<5x8xf32>, vector<5x5xf32> -> vector<5x5xf32>
    %cst_63 = arith.constant 0.353553385 : f32
    %176 = vector.broadcast %cst_63 : f32 to vector<5x5xf32>
    %177 = arith.mulf %175, %176 : vector<5x5xf32>
    %cst_64 = arith.constant dense<0xFF800000> : vector<5xf32>
    %178 = vector.multi_reduction <maximumf>, %177, %cst_64 [1] : vector<5x5xf32> to vector<5xf32>
    %179 = vector.shape_cast %178 : vector<5xf32> to vector<5x1xf32>
    %180 = vector.broadcast %179 : vector<5x1xf32> to vector<5x5xf32>
    %181 = arith.subf %177, %180 : vector<5x5xf32>
    %182 = math.exp %181 : vector<5x5xf32>
    %cst_65 = arith.constant dense<0.000000e+00> : vector<5xf32>
    %183 = vector.multi_reduction <add>, %182, %cst_65 [1] : vector<5x5xf32> to vector<5xf32>
    %184 = vector.shape_cast %183 : vector<5xf32> to vector<5x1xf32>
    %185 = tpu.reciprocal %184 {approx = true} : vector<5x1xf32> -> vector<5x1xf32>
    %186 = vector.broadcast %185 : vector<5x1xf32> to vector<5x5xf32>
    %187 = arith.mulf %182, %186 : vector<5x5xf32>
    %cst_66 = arith.constant dense<0.000000e+00> : vector<5x8xf32>
    %188 = tpu.matmul %187, %174, %cst_66 {dimension_numbers = #tpu.dot_dimension_numbers<[1], [0], [0], [1], [0, 0, 1, 1], [], []>} : vector<5x5xf32>, vector<5x8xf32>, vector<5x8xf32> -> vector<5x8xf32>
    %189 = vector.extract_strided_slice %30 {offsets = [56, 0], sizes = [8, 64], strides = [1, 1]} : vector<64x64xf32> to vector<8x64xf32>
    %cst_67 = arith.constant dense<0.000000e+00> : vector<5x64xf32>
    %190 = tpu.matmul %188, %189, %cst_67 {dimension_numbers = #tpu.dot_dimension_numbers<[1], [0], [0], [1], [0, 0, 1, 1], [], []>} : vector<5x8xf32>, vector<8x64xf32>, vector<5x64xf32> -> vector<5x64xf32>
    %191 = arith.addf %171, %190 : vector<5x64xf32>
    %192 = arith.addf %1, %191 : vector<5x64xf32>
    %c0_68 = arith.constant 0 : index
    %c0_69 = arith.constant 0 : index
    %c0_70 = arith.constant 0 : index
    %193 = vector.load %arg6[%c0_68, %c0_69, %c0_70] : memref<2x1x64xf32, #tpu.memory_space<vmem>>, vector<1x1x64xf32>
    %194 = vector.shape_cast %193 : vector<1x1x64xf32> to vector<1x64xf32>
    %195 = vector.broadcast %194 : vector<1x64xf32> to vector<5x64xf32>
    %196 = arith.addf %192, %195 : vector<5x64xf32>
    %c0_71 = arith.constant 0 : index
    %c0_72 = arith.constant 0 : index
    %c0_73 = arith.constant 0 : index
    %197 = vector.load %arg7[%c0_71, %c0_72, %c0_73] : memref<2x1x64xf32, #tpu.memory_space<vmem>>, vector<1x1x64xf32>
    %198 = vector.shape_cast %197 : vector<1x1x64xf32> to vector<1x64xf32>
    %c0_74 = arith.constant 0 : index
    %c0_75 = arith.constant 0 : index
    %c0_76 = arith.constant 0 : index
    %199 = vector.load %arg8[%c0_74, %c0_75, %c0_76] : memref<2x1x64xf32, #tpu.memory_space<vmem>>, vector<1x1x64xf32>
    %200 = vector.shape_cast %199 : vector<1x1x64xf32> to vector<1x64xf32>
    %cst_77 = arith.constant dense<0.000000e+00> : vector<5xf32>
    %201 = vector.multi_reduction <add>, %196, %cst_77 [1] : vector<5x64xf32> to vector<5xf32>
    %202 = vector.shape_cast %201 : vector<5xf32> to vector<5x1xf32>
    %cst_78 = arith.constant 6.400000e+01 : f32
    %203 = vector.broadcast %cst_78 : f32 to vector<5x1xf32>
    %204 = arith.divf %202, %203 : vector<5x1xf32>
    %205 = vector.broadcast %204 : vector<5x1xf32> to vector<5x64xf32>
    %206 = arith.subf %196, %205 : vector<5x64xf32>
    %207 = arith.mulf %206, %206 : vector<5x64xf32>
    %cst_79 = arith.constant dense<0.000000e+00> : vector<5xf32>
    %208 = vector.multi_reduction <add>, %207, %cst_79 [1] : vector<5x64xf32> to vector<5xf32>
    %209 = vector.shape_cast %208 : vector<5xf32> to vector<5x1xf32>
    %cst_80 = arith.constant 6.400000e+01 : f32
    %210 = vector.broadcast %cst_80 : f32 to vector<5x1xf32>
    %211 = arith.divf %209, %210 : vector<5x1xf32>
    %cst_81 = arith.constant 9.99999974E-6 : f32
    %212 = vector.broadcast %cst_81 : f32 to vector<5x1xf32>
    %213 = arith.addf %211, %212 : vector<5x1xf32>
    %214 = math.rsqrt %213 : vector<5x1xf32>
    %215 = vector.broadcast %214 : vector<5x1xf32> to vector<5x64xf32>
    %216 = arith.mulf %206, %215 : vector<5x64xf32>
    %217 = vector.broadcast %198 : vector<1x64xf32> to vector<5x64xf32>
    %218 = arith.mulf %216, %217 : vector<5x64xf32>
    %219 = vector.broadcast %200 : vector<1x64xf32> to vector<5x64xf32>
    %220 = arith.addf %218, %219 : vector<5x64xf32>
    %c0_82 = arith.constant 0 : index
    %c0_83 = arith.constant 0 : index
    %c0_84 = arith.constant 0 : index
    %221 = vector.load %arg9[%c0_82, %c0_83, %c0_84] : memref<2x64x128xf32, #tpu.memory_space<vmem>>, vector<1x64x128xf32>
    %222 = vector.shape_cast %221 : vector<1x64x128xf32> to vector<64x128xf32>
    %cst_85 = arith.constant dense<0.000000e+00> : vector<5x128xf32>
    %223 = tpu.matmul %220, %222, %cst_85 {dimension_numbers = #tpu.dot_dimension_numbers<[1], [0], [0], [1], [0, 0, 1, 1], [], []>} : vector<5x64xf32>, vector<64x128xf32>, vector<5x128xf32> -> vector<5x128xf32>
    %c0_86 = arith.constant 0 : index
    %c0_87 = arith.constant 0 : index
    %c0_88 = arith.constant 0 : index
    %224 = vector.load %arg10[%c0_86, %c0_87, %c0_88] : memref<2x1x128xf32, #tpu.memory_space<vmem>>, vector<1x1x128xf32>
    %225 = vector.shape_cast %224 : vector<1x1x128xf32> to vector<1x128xf32>
    %226 = vector.broadcast %225 : vector<1x128xf32> to vector<5x128xf32>
    %227 = arith.addf %223, %226 : vector<5x128xf32>
    %cst_89 = arith.constant 5.000000e-01 : f32
    %228 = vector.broadcast %cst_89 : f32 to vector<5x128xf32>
    %229 = arith.mulf %228, %227 : vector<5x128xf32>
    %cst_90 = arith.constant 0.707106769 : f32
    %230 = vector.broadcast %cst_90 : f32 to vector<5x128xf32>
    %231 = arith.mulf %227, %230 : vector<5x128xf32>
    %232 = math.absf %231 : vector<5x128xf32>
    %cst_91 = arith.constant 0.327591091 : f32
    %233 = vector.broadcast %cst_91 : f32 to vector<5x128xf32>
    %234 = arith.mulf %233, %232 : vector<5x128xf32>
    %cst_92 = arith.constant 1.000000e+00 : f32
    %235 = vector.broadcast %cst_92 : f32 to vector<5x128xf32>
    %236 = arith.addf %235, %234 : vector<5x128xf32>
    %cst_93 = arith.constant 1.000000e+00 : f32
    %237 = vector.broadcast %cst_93 : f32 to vector<5x128xf32>
    %238 = arith.divf %237, %236 : vector<5x128xf32>
    %cst_94 = arith.constant 1.06140542 : f32
    %239 = vector.broadcast %cst_94 : f32 to vector<5x128xf32>
    %240 = arith.mulf %239, %238 : vector<5x128xf32>
    %cst_95 = arith.constant -1.45315206 : f32
    %241 = vector.broadcast %cst_95 : f32 to vector<5x128xf32>
    %242 = arith.addf %240, %241 : vector<5x128xf32>
    %243 = arith.mulf %242, %238 : vector<5x128xf32>
    %cst_96 = arith.constant 1.42141378 : f32
    %244 = vector.broadcast %cst_96 : f32 to vector<5x128xf32>
    %245 = arith.addf %243, %244 : vector<5x128xf32>
    %246 = arith.mulf %245, %238 : vector<5x128xf32>
    %cst_97 = arith.constant -0.284496725 : f32
    %247 = vector.broadcast %cst_97 : f32 to vector<5x128xf32>
    %248 = arith.addf %246, %247 : vector<5x128xf32>
    %249 = arith.mulf %248, %238 : vector<5x128xf32>
    %cst_98 = arith.constant 0.254829586 : f32
    %250 = vector.broadcast %cst_98 : f32 to vector<5x128xf32>
    %251 = arith.addf %249, %250 : vector<5x128xf32>
    %252 = arith.mulf %251, %238 : vector<5x128xf32>
    %cst_99 = arith.constant 0.000000e+00 : f32
    %253 = vector.broadcast %cst_99 : f32 to vector<5x128xf32>
    %254 = arith.subf %253, %232 : vector<5x128xf32>
    %255 = arith.mulf %254, %232 : vector<5x128xf32>
    %256 = math.exp %255 : vector<5x128xf32>
    %257 = arith.mulf %252, %256 : vector<5x128xf32>
    %cst_100 = arith.constant 1.000000e+00 : f32
    %258 = vector.broadcast %cst_100 : f32 to vector<5x128xf32>
    %259 = arith.subf %258, %257 : vector<5x128xf32>
    %cst_101 = arith.constant 0.000000e+00 : f32
    %260 = vector.broadcast %cst_101 : f32 to vector<5x128xf32>
    %261 = arith.cmpf oge, %231, %260 : vector<5x128xf32>
    %cst_102 = arith.constant 0.000000e+00 : f32
    %262 = vector.broadcast %cst_102 : f32 to vector<5x128xf32>
    %263 = arith.subf %262, %259 : vector<5x128xf32>
    %264 = arith.select %261, %259, %263 : vector<5x128xi1>, vector<5x128xf32>
    %cst_103 = arith.constant 1.000000e+00 : f32
    %265 = vector.broadcast %cst_103 : f32 to vector<5x128xf32>
    %266 = arith.addf %265, %264 : vector<5x128xf32>
    %267 = arith.mulf %229, %266 : vector<5x128xf32>
    %c0_104 = arith.constant 0 : index
    %c0_105 = arith.constant 0 : index
    %c0_106 = arith.constant 0 : index
    %268 = vector.load %arg11[%c0_104, %c0_105, %c0_106] : memref<2x128x64xf32, #tpu.memory_space<vmem>>, vector<1x128x64xf32>
    %269 = vector.shape_cast %268 : vector<1x128x64xf32> to vector<128x64xf32>
    %cst_107 = arith.constant dense<0.000000e+00> : vector<5x64xf32>
    %270 = tpu.matmul %267, %269, %cst_107 {dimension_numbers = #tpu.dot_dimension_numbers<[1], [0], [0], [1], [0, 0, 1, 1], [], []>} : vector<5x128xf32>, vector<128x64xf32>, vector<5x64xf32> -> vector<5x64xf32>
    %271 = arith.addf %196, %270 : vector<5x64xf32>
    %c0_108 = arith.constant 0 : index
    %c0_109 = arith.constant 0 : index
    %c0_110 = arith.constant 0 : index
    %272 = vector.load %arg12[%c0_108, %c0_109, %c0_110] : memref<2x1x64xf32, #tpu.memory_space<vmem>>, vector<1x1x64xf32>
    %273 = vector.shape_cast %272 : vector<1x1x64xf32> to vector<1x64xf32>
    %274 = vector.broadcast %273 : vector<1x64xf32> to vector<5x64xf32>
    %275 = arith.addf %271, %274 : vector<5x64xf32>
    %c1 = arith.constant 1 : index
    %c0_111 = arith.constant 0 : index
    %c0_112 = arith.constant 0 : index
    %276 = vector.load %arg2[%c1, %c0_111, %c0_112] : memref<2x1x64xf32, #tpu.memory_space<vmem>>, vector<1x1x64xf32>
    %277 = vector.shape_cast %276 : vector<1x1x64xf32> to vector<1x64xf32>
    %c1_113 = arith.constant 1 : index
    %c0_114 = arith.constant 0 : index
    %c0_115 = arith.constant 0 : index
    %278 = vector.load %arg3[%c1_113, %c0_114, %c0_115] : memref<2x1x64xf32, #tpu.memory_space<vmem>>, vector<1x1x64xf32>
    %279 = vector.shape_cast %278 : vector<1x1x64xf32> to vector<1x64xf32>
    %cst_116 = arith.constant dense<0.000000e+00> : vector<5xf32>
    %280 = vector.multi_reduction <add>, %275, %cst_116 [1] : vector<5x64xf32> to vector<5xf32>
    %281 = vector.shape_cast %280 : vector<5xf32> to vector<5x1xf32>
    %cst_117 = arith.constant 6.400000e+01 : f32
    %282 = vector.broadcast %cst_117 : f32 to vector<5x1xf32>
    %283 = arith.divf %281, %282 : vector<5x1xf32>
    %284 = vector.broadcast %283 : vector<5x1xf32> to vector<5x64xf32>
    %285 = arith.subf %275, %284 : vector<5x64xf32>
    %286 = arith.mulf %285, %285 : vector<5x64xf32>
    %cst_118 = arith.constant dense<0.000000e+00> : vector<5xf32>
    %287 = vector.multi_reduction <add>, %286, %cst_118 [1] : vector<5x64xf32> to vector<5xf32>
    %288 = vector.shape_cast %287 : vector<5xf32> to vector<5x1xf32>
    %cst_119 = arith.constant 6.400000e+01 : f32
    %289 = vector.broadcast %cst_119 : f32 to vector<5x1xf32>
    %290 = arith.divf %288, %289 : vector<5x1xf32>
    %cst_120 = arith.constant 9.99999974E-6 : f32
    %291 = vector.broadcast %cst_120 : f32 to vector<5x1xf32>
    %292 = arith.addf %290, %291 : vector<5x1xf32>
    %293 = math.rsqrt %292 : vector<5x1xf32>
    %294 = vector.broadcast %293 : vector<5x1xf32> to vector<5x64xf32>
    %295 = arith.mulf %285, %294 : vector<5x64xf32>
    %296 = vector.broadcast %277 : vector<1x64xf32> to vector<5x64xf32>
    %297 = arith.mulf %295, %296 : vector<5x64xf32>
    %298 = vector.broadcast %279 : vector<1x64xf32> to vector<5x64xf32>
    %299 = arith.addf %297, %298 : vector<5x64xf32>
    %c1_121 = arith.constant 1 : index
    %c0_122 = arith.constant 0 : index
    %c0_123 = arith.constant 0 : index
    %300 = vector.load %arg4[%c1_121, %c0_122, %c0_123] : memref<2x64x192xf32, #tpu.memory_space<vmem>>, vector<1x64x192xf32>
    %301 = vector.shape_cast %300 : vector<1x64x192xf32> to vector<64x192xf32>
    %cst_124 = arith.constant dense<0.000000e+00> : vector<5x192xf32>
    %302 = tpu.matmul %299, %301, %cst_124 {dimension_numbers = #tpu.dot_dimension_numbers<[1], [0], [0], [1], [0, 0, 1, 1], [], []>} : vector<5x64xf32>, vector<64x192xf32>, vector<5x192xf32> -> vector<5x192xf32>
    %c1_125 = arith.constant 1 : index
    %c0_126 = arith.constant 0 : index
    %c0_127 = arith.constant 0 : index
    %303 = vector.load %arg5[%c1_125, %c0_126, %c0_127] : memref<2x64x64xf32, #tpu.memory_space<vmem>>, vector<1x64x64xf32>
    %304 = vector.shape_cast %303 : vector<1x64x64xf32> to vector<64x64xf32>
    %cst_128 = arith.constant 0.000000e+00 : f32
    %305 = vector.broadcast %cst_128 : f32 to vector<5x64xf32>
    %306 = vector.extract_strided_slice %302 {offsets = [0, 0], sizes = [5, 8], strides = [1, 1]} : vector<5x192xf32> to vector<5x8xf32>
    %307 = vector.extract_strided_slice %302 {offsets = [0, 64], sizes = [5, 8], strides = [1, 1]} : vector<5x192xf32> to vector<5x8xf32>
    %308 = vector.extract_strided_slice %302 {offsets = [0, 128], sizes = [5, 8], strides = [1, 1]} : vector<5x192xf32> to vector<5x8xf32>
    %cst_129 = arith.constant dense<0.000000e+00> : vector<5x5xf32>
    %309 = tpu.matmul %306, %307, %cst_129 {dimension_numbers = #tpu.dot_dimension_numbers<[1], [1], [0], [0], [0, 0, 1, 0], [], []>} : vector<5x8xf32>, vector<5x8xf32>, vector<5x5xf32> -> vector<5x5xf32>
    %cst_130 = arith.constant 0.353553385 : f32
    %310 = vector.broadcast %cst_130 : f32 to vector<5x5xf32>
    %311 = arith.mulf %309, %310 : vector<5x5xf32>
    %cst_131 = arith.constant dense<0xFF800000> : vector<5xf32>
    %312 = vector.multi_reduction <maximumf>, %311, %cst_131 [1] : vector<5x5xf32> to vector<5xf32>
    %313 = vector.shape_cast %312 : vector<5xf32> to vector<5x1xf32>
    %314 = vector.broadcast %313 : vector<5x1xf32> to vector<5x5xf32>
    %315 = arith.subf %311, %314 : vector<5x5xf32>
    %316 = math.exp %315 : vector<5x5xf32>
    %cst_132 = arith.constant dense<0.000000e+00> : vector<5xf32>
    %317 = vector.multi_reduction <add>, %316, %cst_132 [1] : vector<5x5xf32> to vector<5xf32>
    %318 = vector.shape_cast %317 : vector<5xf32> to vector<5x1xf32>
    %319 = tpu.reciprocal %318 {approx = true} : vector<5x1xf32> -> vector<5x1xf32>
    %320 = vector.broadcast %319 : vector<5x1xf32> to vector<5x5xf32>
    %321 = arith.mulf %316, %320 : vector<5x5xf32>
    %cst_133 = arith.constant dense<0.000000e+00> : vector<5x8xf32>
    %322 = tpu.matmul %321, %308, %cst_133 {dimension_numbers = #tpu.dot_dimension_numbers<[1], [0], [0], [1], [0, 0, 1, 1], [], []>} : vector<5x5xf32>, vector<5x8xf32>, vector<5x8xf32> -> vector<5x8xf32>
    %323 = vector.extract_strided_slice %304 {offsets = [0, 0], sizes = [8, 64], strides = [1, 1]} : vector<64x64xf32> to vector<8x64xf32>
    %cst_134 = arith.constant dense<0.000000e+00> : vector<5x64xf32>
    %324 = tpu.matmul %322, %323, %cst_134 {dimension_numbers = #tpu.dot_dimension_numbers<[1], [0], [0], [1], [0, 0, 1, 1], [], []>} : vector<5x8xf32>, vector<8x64xf32>, vector<5x64xf32> -> vector<5x64xf32>
    %325 = arith.addf %305, %324 : vector<5x64xf32>
    %326 = vector.extract_strided_slice %302 {offsets = [0, 8], sizes = [5, 8], strides = [1, 1]} : vector<5x192xf32> to vector<5x8xf32>
    %327 = vector.extract_strided_slice %302 {offsets = [0, 72], sizes = [5, 8], strides = [1, 1]} : vector<5x192xf32> to vector<5x8xf32>
    %328 = vector.extract_strided_slice %302 {offsets = [0, 136], sizes = [5, 8], strides = [1, 1]} : vector<5x192xf32> to vector<5x8xf32>
    %cst_135 = arith.constant dense<0.000000e+00> : vector<5x5xf32>
    %329 = tpu.matmul %326, %327, %cst_135 {dimension_numbers = #tpu.dot_dimension_numbers<[1], [1], [0], [0], [0, 0, 1, 0], [], []>} : vector<5x8xf32>, vector<5x8xf32>, vector<5x5xf32> -> vector<5x5xf32>
    %cst_136 = arith.constant 0.353553385 : f32
    %330 = vector.broadcast %cst_136 : f32 to vector<5x5xf32>
    %331 = arith.mulf %329, %330 : vector<5x5xf32>
    %cst_137 = arith.constant dense<0xFF800000> : vector<5xf32>
    %332 = vector.multi_reduction <maximumf>, %331, %cst_137 [1] : vector<5x5xf32> to vector<5xf32>
    %333 = vector.shape_cast %332 : vector<5xf32> to vector<5x1xf32>
    %334 = vector.broadcast %333 : vector<5x1xf32> to vector<5x5xf32>
    %335 = arith.subf %331, %334 : vector<5x5xf32>
    %336 = math.exp %335 : vector<5x5xf32>
    %cst_138 = arith.constant dense<0.000000e+00> : vector<5xf32>
    %337 = vector.multi_reduction <add>, %336, %cst_138 [1] : vector<5x5xf32> to vector<5xf32>
    %338 = vector.shape_cast %337 : vector<5xf32> to vector<5x1xf32>
    %339 = tpu.reciprocal %338 {approx = true} : vector<5x1xf32> -> vector<5x1xf32>
    %340 = vector.broadcast %339 : vector<5x1xf32> to vector<5x5xf32>
    %341 = arith.mulf %336, %340 : vector<5x5xf32>
    %cst_139 = arith.constant dense<0.000000e+00> : vector<5x8xf32>
    %342 = tpu.matmul %341, %328, %cst_139 {dimension_numbers = #tpu.dot_dimension_numbers<[1], [0], [0], [1], [0, 0, 1, 1], [], []>} : vector<5x5xf32>, vector<5x8xf32>, vector<5x8xf32> -> vector<5x8xf32>
    %343 = vector.extract_strided_slice %304 {offsets = [8, 0], sizes = [8, 64], strides = [1, 1]} : vector<64x64xf32> to vector<8x64xf32>
    %cst_140 = arith.constant dense<0.000000e+00> : vector<5x64xf32>
    %344 = tpu.matmul %342, %343, %cst_140 {dimension_numbers = #tpu.dot_dimension_numbers<[1], [0], [0], [1], [0, 0, 1, 1], [], []>} : vector<5x8xf32>, vector<8x64xf32>, vector<5x64xf32> -> vector<5x64xf32>
    %345 = arith.addf %325, %344 : vector<5x64xf32>
    %346 = vector.extract_strided_slice %302 {offsets = [0, 16], sizes = [5, 8], strides = [1, 1]} : vector<5x192xf32> to vector<5x8xf32>
    %347 = vector.extract_strided_slice %302 {offsets = [0, 80], sizes = [5, 8], strides = [1, 1]} : vector<5x192xf32> to vector<5x8xf32>
    %348 = vector.extract_strided_slice %302 {offsets = [0, 144], sizes = [5, 8], strides = [1, 1]} : vector<5x192xf32> to vector<5x8xf32>
    %cst_141 = arith.constant dense<0.000000e+00> : vector<5x5xf32>
    %349 = tpu.matmul %346, %347, %cst_141 {dimension_numbers = #tpu.dot_dimension_numbers<[1], [1], [0], [0], [0, 0, 1, 0], [], []>} : vector<5x8xf32>, vector<5x8xf32>, vector<5x5xf32> -> vector<5x5xf32>
    %cst_142 = arith.constant 0.353553385 : f32
    %350 = vector.broadcast %cst_142 : f32 to vector<5x5xf32>
    %351 = arith.mulf %349, %350 : vector<5x5xf32>
    %cst_143 = arith.constant dense<0xFF800000> : vector<5xf32>
    %352 = vector.multi_reduction <maximumf>, %351, %cst_143 [1] : vector<5x5xf32> to vector<5xf32>
    %353 = vector.shape_cast %352 : vector<5xf32> to vector<5x1xf32>
    %354 = vector.broadcast %353 : vector<5x1xf32> to vector<5x5xf32>
    %355 = arith.subf %351, %354 : vector<5x5xf32>
    %356 = math.exp %355 : vector<5x5xf32>
    %cst_144 = arith.constant dense<0.000000e+00> : vector<5xf32>
    %357 = vector.multi_reduction <add>, %356, %cst_144 [1] : vector<5x5xf32> to vector<5xf32>
    %358 = vector.shape_cast %357 : vector<5xf32> to vector<5x1xf32>
    %359 = tpu.reciprocal %358 {approx = true} : vector<5x1xf32> -> vector<5x1xf32>
    %360 = vector.broadcast %359 : vector<5x1xf32> to vector<5x5xf32>
    %361 = arith.mulf %356, %360 : vector<5x5xf32>
    %cst_145 = arith.constant dense<0.000000e+00> : vector<5x8xf32>
    %362 = tpu.matmul %361, %348, %cst_145 {dimension_numbers = #tpu.dot_dimension_numbers<[1], [0], [0], [1], [0, 0, 1, 1], [], []>} : vector<5x5xf32>, vector<5x8xf32>, vector<5x8xf32> -> vector<5x8xf32>
    %363 = vector.extract_strided_slice %304 {offsets = [16, 0], sizes = [8, 64], strides = [1, 1]} : vector<64x64xf32> to vector<8x64xf32>
    %cst_146 = arith.constant dense<0.000000e+00> : vector<5x64xf32>
    %364 = tpu.matmul %362, %363, %cst_146 {dimension_numbers = #tpu.dot_dimension_numbers<[1], [0], [0], [1], [0, 0, 1, 1], [], []>} : vector<5x8xf32>, vector<8x64xf32>, vector<5x64xf32> -> vector<5x64xf32>
    %365 = arith.addf %345, %364 : vector<5x64xf32>
    %366 = vector.extract_strided_slice %302 {offsets = [0, 24], sizes = [5, 8], strides = [1, 1]} : vector<5x192xf32> to vector<5x8xf32>
    %367 = vector.extract_strided_slice %302 {offsets = [0, 88], sizes = [5, 8], strides = [1, 1]} : vector<5x192xf32> to vector<5x8xf32>
    %368 = vector.extract_strided_slice %302 {offsets = [0, 152], sizes = [5, 8], strides = [1, 1]} : vector<5x192xf32> to vector<5x8xf32>
    %cst_147 = arith.constant dense<0.000000e+00> : vector<5x5xf32>
    %369 = tpu.matmul %366, %367, %cst_147 {dimension_numbers = #tpu.dot_dimension_numbers<[1], [1], [0], [0], [0, 0, 1, 0], [], []>} : vector<5x8xf32>, vector<5x8xf32>, vector<5x5xf32> -> vector<5x5xf32>
    %cst_148 = arith.constant 0.353553385 : f32
    %370 = vector.broadcast %cst_148 : f32 to vector<5x5xf32>
    %371 = arith.mulf %369, %370 : vector<5x5xf32>
    %cst_149 = arith.constant dense<0xFF800000> : vector<5xf32>
    %372 = vector.multi_reduction <maximumf>, %371, %cst_149 [1] : vector<5x5xf32> to vector<5xf32>
    %373 = vector.shape_cast %372 : vector<5xf32> to vector<5x1xf32>
    %374 = vector.broadcast %373 : vector<5x1xf32> to vector<5x5xf32>
    %375 = arith.subf %371, %374 : vector<5x5xf32>
    %376 = math.exp %375 : vector<5x5xf32>
    %cst_150 = arith.constant dense<0.000000e+00> : vector<5xf32>
    %377 = vector.multi_reduction <add>, %376, %cst_150 [1] : vector<5x5xf32> to vector<5xf32>
    %378 = vector.shape_cast %377 : vector<5xf32> to vector<5x1xf32>
    %379 = tpu.reciprocal %378 {approx = true} : vector<5x1xf32> -> vector<5x1xf32>
    %380 = vector.broadcast %379 : vector<5x1xf32> to vector<5x5xf32>
    %381 = arith.mulf %376, %380 : vector<5x5xf32>
    %cst_151 = arith.constant dense<0.000000e+00> : vector<5x8xf32>
    %382 = tpu.matmul %381, %368, %cst_151 {dimension_numbers = #tpu.dot_dimension_numbers<[1], [0], [0], [1], [0, 0, 1, 1], [], []>} : vector<5x5xf32>, vector<5x8xf32>, vector<5x8xf32> -> vector<5x8xf32>
    %383 = vector.extract_strided_slice %304 {offsets = [24, 0], sizes = [8, 64], strides = [1, 1]} : vector<64x64xf32> to vector<8x64xf32>
    %cst_152 = arith.constant dense<0.000000e+00> : vector<5x64xf32>
    %384 = tpu.matmul %382, %383, %cst_152 {dimension_numbers = #tpu.dot_dimension_numbers<[1], [0], [0], [1], [0, 0, 1, 1], [], []>} : vector<5x8xf32>, vector<8x64xf32>, vector<5x64xf32> -> vector<5x64xf32>
    %385 = arith.addf %365, %384 : vector<5x64xf32>
    %386 = vector.extract_strided_slice %302 {offsets = [0, 32], sizes = [5, 8], strides = [1, 1]} : vector<5x192xf32> to vector<5x8xf32>
    %387 = vector.extract_strided_slice %302 {offsets = [0, 96], sizes = [5, 8], strides = [1, 1]} : vector<5x192xf32> to vector<5x8xf32>
    %388 = vector.extract_strided_slice %302 {offsets = [0, 160], sizes = [5, 8], strides = [1, 1]} : vector<5x192xf32> to vector<5x8xf32>
    %cst_153 = arith.constant dense<0.000000e+00> : vector<5x5xf32>
    %389 = tpu.matmul %386, %387, %cst_153 {dimension_numbers = #tpu.dot_dimension_numbers<[1], [1], [0], [0], [0, 0, 1, 0], [], []>} : vector<5x8xf32>, vector<5x8xf32>, vector<5x5xf32> -> vector<5x5xf32>
    %cst_154 = arith.constant 0.353553385 : f32
    %390 = vector.broadcast %cst_154 : f32 to vector<5x5xf32>
    %391 = arith.mulf %389, %390 : vector<5x5xf32>
    %cst_155 = arith.constant dense<0xFF800000> : vector<5xf32>
    %392 = vector.multi_reduction <maximumf>, %391, %cst_155 [1] : vector<5x5xf32> to vector<5xf32>
    %393 = vector.shape_cast %392 : vector<5xf32> to vector<5x1xf32>
    %394 = vector.broadcast %393 : vector<5x1xf32> to vector<5x5xf32>
    %395 = arith.subf %391, %394 : vector<5x5xf32>
    %396 = math.exp %395 : vector<5x5xf32>
    %cst_156 = arith.constant dense<0.000000e+00> : vector<5xf32>
    %397 = vector.multi_reduction <add>, %396, %cst_156 [1] : vector<5x5xf32> to vector<5xf32>
    %398 = vector.shape_cast %397 : vector<5xf32> to vector<5x1xf32>
    %399 = tpu.reciprocal %398 {approx = true} : vector<5x1xf32> -> vector<5x1xf32>
    %400 = vector.broadcast %399 : vector<5x1xf32> to vector<5x5xf32>
    %401 = arith.mulf %396, %400 : vector<5x5xf32>
    %cst_157 = arith.constant dense<0.000000e+00> : vector<5x8xf32>
    %402 = tpu.matmul %401, %388, %cst_157 {dimension_numbers = #tpu.dot_dimension_numbers<[1], [0], [0], [1], [0, 0, 1, 1], [], []>} : vector<5x5xf32>, vector<5x8xf32>, vector<5x8xf32> -> vector<5x8xf32>
    %403 = vector.extract_strided_slice %304 {offsets = [32, 0], sizes = [8, 64], strides = [1, 1]} : vector<64x64xf32> to vector<8x64xf32>
    %cst_158 = arith.constant dense<0.000000e+00> : vector<5x64xf32>
    %404 = tpu.matmul %402, %403, %cst_158 {dimension_numbers = #tpu.dot_dimension_numbers<[1], [0], [0], [1], [0, 0, 1, 1], [], []>} : vector<5x8xf32>, vector<8x64xf32>, vector<5x64xf32> -> vector<5x64xf32>
    %405 = arith.addf %385, %404 : vector<5x64xf32>
    %406 = vector.extract_strided_slice %302 {offsets = [0, 40], sizes = [5, 8], strides = [1, 1]} : vector<5x192xf32> to vector<5x8xf32>
    %407 = vector.extract_strided_slice %302 {offsets = [0, 104], sizes = [5, 8], strides = [1, 1]} : vector<5x192xf32> to vector<5x8xf32>
    %408 = vector.extract_strided_slice %302 {offsets = [0, 168], sizes = [5, 8], strides = [1, 1]} : vector<5x192xf32> to vector<5x8xf32>
    %cst_159 = arith.constant dense<0.000000e+00> : vector<5x5xf32>
    %409 = tpu.matmul %406, %407, %cst_159 {dimension_numbers = #tpu.dot_dimension_numbers<[1], [1], [0], [0], [0, 0, 1, 0], [], []>} : vector<5x8xf32>, vector<5x8xf32>, vector<5x5xf32> -> vector<5x5xf32>
    %cst_160 = arith.constant 0.353553385 : f32
    %410 = vector.broadcast %cst_160 : f32 to vector<5x5xf32>
    %411 = arith.mulf %409, %410 : vector<5x5xf32>
    %cst_161 = arith.constant dense<0xFF800000> : vector<5xf32>
    %412 = vector.multi_reduction <maximumf>, %411, %cst_161 [1] : vector<5x5xf32> to vector<5xf32>
    %413 = vector.shape_cast %412 : vector<5xf32> to vector<5x1xf32>
    %414 = vector.broadcast %413 : vector<5x1xf32> to vector<5x5xf32>
    %415 = arith.subf %411, %414 : vector<5x5xf32>
    %416 = math.exp %415 : vector<5x5xf32>
    %cst_162 = arith.constant dense<0.000000e+00> : vector<5xf32>
    %417 = vector.multi_reduction <add>, %416, %cst_162 [1] : vector<5x5xf32> to vector<5xf32>
    %418 = vector.shape_cast %417 : vector<5xf32> to vector<5x1xf32>
    %419 = tpu.reciprocal %418 {approx = true} : vector<5x1xf32> -> vector<5x1xf32>
    %420 = vector.broadcast %419 : vector<5x1xf32> to vector<5x5xf32>
    %421 = arith.mulf %416, %420 : vector<5x5xf32>
    %cst_163 = arith.constant dense<0.000000e+00> : vector<5x8xf32>
    %422 = tpu.matmul %421, %408, %cst_163 {dimension_numbers = #tpu.dot_dimension_numbers<[1], [0], [0], [1], [0, 0, 1, 1], [], []>} : vector<5x5xf32>, vector<5x8xf32>, vector<5x8xf32> -> vector<5x8xf32>
    %423 = vector.extract_strided_slice %304 {offsets = [40, 0], sizes = [8, 64], strides = [1, 1]} : vector<64x64xf32> to vector<8x64xf32>
    %cst_164 = arith.constant dense<0.000000e+00> : vector<5x64xf32>
    %424 = tpu.matmul %422, %423, %cst_164 {dimension_numbers = #tpu.dot_dimension_numbers<[1], [0], [0], [1], [0, 0, 1, 1], [], []>} : vector<5x8xf32>, vector<8x64xf32>, vector<5x64xf32> -> vector<5x64xf32>
    %425 = arith.addf %405, %424 : vector<5x64xf32>
    %426 = vector.extract_strided_slice %302 {offsets = [0, 48], sizes = [5, 8], strides = [1, 1]} : vector<5x192xf32> to vector<5x8xf32>
    %427 = vector.extract_strided_slice %302 {offsets = [0, 112], sizes = [5, 8], strides = [1, 1]} : vector<5x192xf32> to vector<5x8xf32>
    %428 = vector.extract_strided_slice %302 {offsets = [0, 176], sizes = [5, 8], strides = [1, 1]} : vector<5x192xf32> to vector<5x8xf32>
    %cst_165 = arith.constant dense<0.000000e+00> : vector<5x5xf32>
    %429 = tpu.matmul %426, %427, %cst_165 {dimension_numbers = #tpu.dot_dimension_numbers<[1], [1], [0], [0], [0, 0, 1, 0], [], []>} : vector<5x8xf32>, vector<5x8xf32>, vector<5x5xf32> -> vector<5x5xf32>
    %cst_166 = arith.constant 0.353553385 : f32
    %430 = vector.broadcast %cst_166 : f32 to vector<5x5xf32>
    %431 = arith.mulf %429, %430 : vector<5x5xf32>
    %cst_167 = arith.constant dense<0xFF800000> : vector<5xf32>
    %432 = vector.multi_reduction <maximumf>, %431, %cst_167 [1] : vector<5x5xf32> to vector<5xf32>
    %433 = vector.shape_cast %432 : vector<5xf32> to vector<5x1xf32>
    %434 = vector.broadcast %433 : vector<5x1xf32> to vector<5x5xf32>
    %435 = arith.subf %431, %434 : vector<5x5xf32>
    %436 = math.exp %435 : vector<5x5xf32>
    %cst_168 = arith.constant dense<0.000000e+00> : vector<5xf32>
    %437 = vector.multi_reduction <add>, %436, %cst_168 [1] : vector<5x5xf32> to vector<5xf32>
    %438 = vector.shape_cast %437 : vector<5xf32> to vector<5x1xf32>
    %439 = tpu.reciprocal %438 {approx = true} : vector<5x1xf32> -> vector<5x1xf32>
    %440 = vector.broadcast %439 : vector<5x1xf32> to vector<5x5xf32>
    %441 = arith.mulf %436, %440 : vector<5x5xf32>
    %cst_169 = arith.constant dense<0.000000e+00> : vector<5x8xf32>
    %442 = tpu.matmul %441, %428, %cst_169 {dimension_numbers = #tpu.dot_dimension_numbers<[1], [0], [0], [1], [0, 0, 1, 1], [], []>} : vector<5x5xf32>, vector<5x8xf32>, vector<5x8xf32> -> vector<5x8xf32>
    %443 = vector.extract_strided_slice %304 {offsets = [48, 0], sizes = [8, 64], strides = [1, 1]} : vector<64x64xf32> to vector<8x64xf32>
    %cst_170 = arith.constant dense<0.000000e+00> : vector<5x64xf32>
    %444 = tpu.matmul %442, %443, %cst_170 {dimension_numbers = #tpu.dot_dimension_numbers<[1], [0], [0], [1], [0, 0, 1, 1], [], []>} : vector<5x8xf32>, vector<8x64xf32>, vector<5x64xf32> -> vector<5x64xf32>
    %445 = arith.addf %425, %444 : vector<5x64xf32>
    %446 = vector.extract_strided_slice %302 {offsets = [0, 56], sizes = [5, 8], strides = [1, 1]} : vector<5x192xf32> to vector<5x8xf32>
    %447 = vector.extract_strided_slice %302 {offsets = [0, 120], sizes = [5, 8], strides = [1, 1]} : vector<5x192xf32> to vector<5x8xf32>
    %448 = vector.extract_strided_slice %302 {offsets = [0, 184], sizes = [5, 8], strides = [1, 1]} : vector<5x192xf32> to vector<5x8xf32>
    %cst_171 = arith.constant dense<0.000000e+00> : vector<5x5xf32>
    %449 = tpu.matmul %446, %447, %cst_171 {dimension_numbers = #tpu.dot_dimension_numbers<[1], [1], [0], [0], [0, 0, 1, 0], [], []>} : vector<5x8xf32>, vector<5x8xf32>, vector<5x5xf32> -> vector<5x5xf32>
    %cst_172 = arith.constant 0.353553385 : f32
    %450 = vector.broadcast %cst_172 : f32 to vector<5x5xf32>
    %451 = arith.mulf %449, %450 : vector<5x5xf32>
    %cst_173 = arith.constant dense<0xFF800000> : vector<5xf32>
    %452 = vector.multi_reduction <maximumf>, %451, %cst_173 [1] : vector<5x5xf32> to vector<5xf32>
    %453 = vector.shape_cast %452 : vector<5xf32> to vector<5x1xf32>
    %454 = vector.broadcast %453 : vector<5x1xf32> to vector<5x5xf32>
    %455 = arith.subf %451, %454 : vector<5x5xf32>
    %456 = math.exp %455 : vector<5x5xf32>
    %cst_174 = arith.constant dense<0.000000e+00> : vector<5xf32>
    %457 = vector.multi_reduction <add>, %456, %cst_174 [1] : vector<5x5xf32> to vector<5xf32>
    %458 = vector.shape_cast %457 : vector<5xf32> to vector<5x1xf32>
    %459 = tpu.reciprocal %458 {approx = true} : vector<5x1xf32> -> vector<5x1xf32>
    %460 = vector.broadcast %459 : vector<5x1xf32> to vector<5x5xf32>
    %461 = arith.mulf %456, %460 : vector<5x5xf32>
    %cst_175 = arith.constant dense<0.000000e+00> : vector<5x8xf32>
    %462 = tpu.matmul %461, %448, %cst_175 {dimension_numbers = #tpu.dot_dimension_numbers<[1], [0], [0], [1], [0, 0, 1, 1], [], []>} : vector<5x5xf32>, vector<5x8xf32>, vector<5x8xf32> -> vector<5x8xf32>
    %463 = vector.extract_strided_slice %304 {offsets = [56, 0], sizes = [8, 64], strides = [1, 1]} : vector<64x64xf32> to vector<8x64xf32>
    %cst_176 = arith.constant dense<0.000000e+00> : vector<5x64xf32>
    %464 = tpu.matmul %462, %463, %cst_176 {dimension_numbers = #tpu.dot_dimension_numbers<[1], [0], [0], [1], [0, 0, 1, 1], [], []>} : vector<5x8xf32>, vector<8x64xf32>, vector<5x64xf32> -> vector<5x64xf32>
    %465 = arith.addf %445, %464 : vector<5x64xf32>
    %466 = arith.addf %275, %465 : vector<5x64xf32>
    %c1_177 = arith.constant 1 : index
    %c0_178 = arith.constant 0 : index
    %c0_179 = arith.constant 0 : index
    %467 = vector.load %arg6[%c1_177, %c0_178, %c0_179] : memref<2x1x64xf32, #tpu.memory_space<vmem>>, vector<1x1x64xf32>
    %468 = vector.shape_cast %467 : vector<1x1x64xf32> to vector<1x64xf32>
    %469 = vector.broadcast %468 : vector<1x64xf32> to vector<5x64xf32>
    %470 = arith.addf %466, %469 : vector<5x64xf32>
    %c1_180 = arith.constant 1 : index
    %c0_181 = arith.constant 0 : index
    %c0_182 = arith.constant 0 : index
    %471 = vector.load %arg7[%c1_180, %c0_181, %c0_182] : memref<2x1x64xf32, #tpu.memory_space<vmem>>, vector<1x1x64xf32>
    %472 = vector.shape_cast %471 : vector<1x1x64xf32> to vector<1x64xf32>
    %c1_183 = arith.constant 1 : index
    %c0_184 = arith.constant 0 : index
    %c0_185 = arith.constant 0 : index
    %473 = vector.load %arg8[%c1_183, %c0_184, %c0_185] : memref<2x1x64xf32, #tpu.memory_space<vmem>>, vector<1x1x64xf32>
    %474 = vector.shape_cast %473 : vector<1x1x64xf32> to vector<1x64xf32>
    %cst_186 = arith.constant dense<0.000000e+00> : vector<5xf32>
    %475 = vector.multi_reduction <add>, %470, %cst_186 [1] : vector<5x64xf32> to vector<5xf32>
    %476 = vector.shape_cast %475 : vector<5xf32> to vector<5x1xf32>
    %cst_187 = arith.constant 6.400000e+01 : f32
    %477 = vector.broadcast %cst_187 : f32 to vector<5x1xf32>
    %478 = arith.divf %476, %477 : vector<5x1xf32>
    %479 = vector.broadcast %478 : vector<5x1xf32> to vector<5x64xf32>
    %480 = arith.subf %470, %479 : vector<5x64xf32>
    %481 = arith.mulf %480, %480 : vector<5x64xf32>
    %cst_188 = arith.constant dense<0.000000e+00> : vector<5xf32>
    %482 = vector.multi_reduction <add>, %481, %cst_188 [1] : vector<5x64xf32> to vector<5xf32>
    %483 = vector.shape_cast %482 : vector<5xf32> to vector<5x1xf32>
    %cst_189 = arith.constant 6.400000e+01 : f32
    %484 = vector.broadcast %cst_189 : f32 to vector<5x1xf32>
    %485 = arith.divf %483, %484 : vector<5x1xf32>
    %cst_190 = arith.constant 9.99999974E-6 : f32
    %486 = vector.broadcast %cst_190 : f32 to vector<5x1xf32>
    %487 = arith.addf %485, %486 : vector<5x1xf32>
    %488 = math.rsqrt %487 : vector<5x1xf32>
    %489 = vector.broadcast %488 : vector<5x1xf32> to vector<5x64xf32>
    %490 = arith.mulf %480, %489 : vector<5x64xf32>
    %491 = vector.broadcast %472 : vector<1x64xf32> to vector<5x64xf32>
    %492 = arith.mulf %490, %491 : vector<5x64xf32>
    %493 = vector.broadcast %474 : vector<1x64xf32> to vector<5x64xf32>
    %494 = arith.addf %492, %493 : vector<5x64xf32>
    %c1_191 = arith.constant 1 : index
    %c0_192 = arith.constant 0 : index
    %c0_193 = arith.constant 0 : index
    %495 = vector.load %arg9[%c1_191, %c0_192, %c0_193] : memref<2x64x128xf32, #tpu.memory_space<vmem>>, vector<1x64x128xf32>
    %496 = vector.shape_cast %495 : vector<1x64x128xf32> to vector<64x128xf32>
    %cst_194 = arith.constant dense<0.000000e+00> : vector<5x128xf32>
    %497 = tpu.matmul %494, %496, %cst_194 {dimension_numbers = #tpu.dot_dimension_numbers<[1], [0], [0], [1], [0, 0, 1, 1], [], []>} : vector<5x64xf32>, vector<64x128xf32>, vector<5x128xf32> -> vector<5x128xf32>
    %c1_195 = arith.constant 1 : index
    %c0_196 = arith.constant 0 : index
    %c0_197 = arith.constant 0 : index
    %498 = vector.load %arg10[%c1_195, %c0_196, %c0_197] : memref<2x1x128xf32, #tpu.memory_space<vmem>>, vector<1x1x128xf32>
    %499 = vector.shape_cast %498 : vector<1x1x128xf32> to vector<1x128xf32>
    %500 = vector.broadcast %499 : vector<1x128xf32> to vector<5x128xf32>
    %501 = arith.addf %497, %500 : vector<5x128xf32>
    %cst_198 = arith.constant 5.000000e-01 : f32
    %502 = vector.broadcast %cst_198 : f32 to vector<5x128xf32>
    %503 = arith.mulf %502, %501 : vector<5x128xf32>
    %cst_199 = arith.constant 0.707106769 : f32
    %504 = vector.broadcast %cst_199 : f32 to vector<5x128xf32>
    %505 = arith.mulf %501, %504 : vector<5x128xf32>
    %506 = math.absf %505 : vector<5x128xf32>
    %cst_200 = arith.constant 0.327591091 : f32
    %507 = vector.broadcast %cst_200 : f32 to vector<5x128xf32>
    %508 = arith.mulf %507, %506 : vector<5x128xf32>
    %cst_201 = arith.constant 1.000000e+00 : f32
    %509 = vector.broadcast %cst_201 : f32 to vector<5x128xf32>
    %510 = arith.addf %509, %508 : vector<5x128xf32>
    %cst_202 = arith.constant 1.000000e+00 : f32
    %511 = vector.broadcast %cst_202 : f32 to vector<5x128xf32>
    %512 = arith.divf %511, %510 : vector<5x128xf32>
    %cst_203 = arith.constant 1.06140542 : f32
    %513 = vector.broadcast %cst_203 : f32 to vector<5x128xf32>
    %514 = arith.mulf %513, %512 : vector<5x128xf32>
    %cst_204 = arith.constant -1.45315206 : f32
    %515 = vector.broadcast %cst_204 : f32 to vector<5x128xf32>
    %516 = arith.addf %514, %515 : vector<5x128xf32>
    %517 = arith.mulf %516, %512 : vector<5x128xf32>
    %cst_205 = arith.constant 1.42141378 : f32
    %518 = vector.broadcast %cst_205 : f32 to vector<5x128xf32>
    %519 = arith.addf %517, %518 : vector<5x128xf32>
    %520 = arith.mulf %519, %512 : vector<5x128xf32>
    %cst_206 = arith.constant -0.284496725 : f32
    %521 = vector.broadcast %cst_206 : f32 to vector<5x128xf32>
    %522 = arith.addf %520, %521 : vector<5x128xf32>
    %523 = arith.mulf %522, %512 : vector<5x128xf32>
    %cst_207 = arith.constant 0.254829586 : f32
    %524 = vector.broadcast %cst_207 : f32 to vector<5x128xf32>
    %525 = arith.addf %523, %524 : vector<5x128xf32>
    %526 = arith.mulf %525, %512 : vector<5x128xf32>
    %cst_208 = arith.constant 0.000000e+00 : f32
    %527 = vector.broadcast %cst_208 : f32 to vector<5x128xf32>
    %528 = arith.subf %527, %506 : vector<5x128xf32>
    %529 = arith.mulf %528, %506 : vector<5x128xf32>
    %530 = math.exp %529 : vector<5x128xf32>
    %531 = arith.mulf %526, %530 : vector<5x128xf32>
    %cst_209 = arith.constant 1.000000e+00 : f32
    %532 = vector.broadcast %cst_209 : f32 to vector<5x128xf32>
    %533 = arith.subf %532, %531 : vector<5x128xf32>
    %cst_210 = arith.constant 0.000000e+00 : f32
    %534 = vector.broadcast %cst_210 : f32 to vector<5x128xf32>
    %535 = arith.cmpf oge, %505, %534 : vector<5x128xf32>
    %cst_211 = arith.constant 0.000000e+00 : f32
    %536 = vector.broadcast %cst_211 : f32 to vector<5x128xf32>
    %537 = arith.subf %536, %533 : vector<5x128xf32>
    %538 = arith.select %535, %533, %537 : vector<5x128xi1>, vector<5x128xf32>
    %cst_212 = arith.constant 1.000000e+00 : f32
    %539 = vector.broadcast %cst_212 : f32 to vector<5x128xf32>
    %540 = arith.addf %539, %538 : vector<5x128xf32>
    %541 = arith.mulf %503, %540 : vector<5x128xf32>
    %c1_213 = arith.constant 1 : index
    %c0_214 = arith.constant 0 : index
    %c0_215 = arith.constant 0 : index
    %542 = vector.load %arg11[%c1_213, %c0_214, %c0_215] : memref<2x128x64xf32, #tpu.memory_space<vmem>>, vector<1x128x64xf32>
    %543 = vector.shape_cast %542 : vector<1x128x64xf32> to vector<128x64xf32>
    %cst_216 = arith.constant dense<0.000000e+00> : vector<5x64xf32>
    %544 = tpu.matmul %541, %543, %cst_216 {dimension_numbers = #tpu.dot_dimension_numbers<[1], [0], [0], [1], [0, 0, 1, 1], [], []>} : vector<5x128xf32>, vector<128x64xf32>, vector<5x64xf32> -> vector<5x64xf32>
    %545 = arith.addf %470, %544 : vector<5x64xf32>
    %c1_217 = arith.constant 1 : index
    %c0_218 = arith.constant 0 : index
    %c0_219 = arith.constant 0 : index
    %546 = vector.load %arg12[%c1_217, %c0_218, %c0_219] : memref<2x1x64xf32, #tpu.memory_space<vmem>>, vector<1x1x64xf32>
    %547 = vector.shape_cast %546 : vector<1x1x64xf32> to vector<1x64xf32>
    %548 = vector.broadcast %547 : vector<1x64xf32> to vector<5x64xf32>
    %549 = arith.addf %545, %548 : vector<5x64xf32>
    %c0_220 = arith.constant 0 : index
    %c0_221 = arith.constant 0 : index
    %c0_222 = arith.constant 0 : index
    %550 = vector.load %arg13[%c0_220, %c0_221, %c0_222] : memref<1x5x64xf32, #tpu.memory_space<vmem>>, vector<1x5x64xf32>
    %551 = vector.shape_cast %550 : vector<1x5x64xf32> to vector<5x64xf32>
    %552 = vector.shape_cast %549 : vector<5x64xf32> to vector<1x5x64xf32>
    tpu.vector_store %arg13[%c0_220, %c0_221, %c0_222], %552 {strides = array<i32>} : memref<1x5x64xf32, #tpu.memory_space<vmem>>, vector<1x5x64xf32>,
    return
  }
  func.func @transform_0(%arg0: i32) -> (i32, i32, i32) {
    %c0_i32 = arith.constant 0 : i32
    %c0_i32_0 = arith.constant 0 : i32
    %c0_i32_1 = arith.constant 0 : i32
    return %arg0, %c0_i32, %c0_i32_0 : i32, i32, i32
  }
  func.func @transform_1(%arg0: i32) -> (i32, i32, i32) {
    %c0_i32 = arith.constant 0 : i32
    %c0_i32_0 = arith.constant 0 : i32
    %c0_i32_1 = arith.constant 0 : i32
    %c0_i32_2 = arith.constant 0 : i32
    return %c0_i32, %c0_i32_0, %c0_i32_1 : i32, i32, i32
  }
  func.func @transform_2(%arg0: i32) -> (i32, i32, i32) {
    %c0_i32 = arith.constant 0 : i32
    %c0_i32_0 = arith.constant 0 : i32
    %c0_i32_1 = arith.constant 0 : i32
    %c0_i32_2 = arith.constant 0 : i32
    return %c0_i32, %c0_i32_0, %c0_i32_1 : i32, i32, i32
  }
  func.func @transform_3(%arg0: i32) -> (i32, i32, i32) {
    %c0_i32 = arith.constant 0 : i32
    %c0_i32_0 = arith.constant 0 : i32
    %c0_i32_1 = arith.constant 0 : i32
    %c0_i32_2 = arith.constant 0 : i32
    return %c0_i32, %c0_i32_0, %c0_i32_1 : i32, i32, i32
  }
  func.func @transform_4(%arg0: i32) -> (i32, i32, i32) {
    %c0_i32 = arith.constant 0 : i32
    %c0_i32_0 = arith.constant 0 : i32
    %c0_i32_1 = arith.constant 0 : i32
    %c0_i32_2 = arith.constant 0 : i32
    return %c0_i32, %c0_i32_0, %c0_i32_1 : i32, i32, i32
  }
  func.func @transform_5(%arg0: i32) -> (i32, i32, i32) {
    %c0_i32 = arith.constant 0 : i32
    %c0_i32_0 = arith.constant 0 : i32
    %c0_i32_1 = arith.constant 0 : i32
    %c0_i32_2 = arith.constant 0 : i32
    return %c0_i32, %c0_i32_0, %c0_i32_1 : i32, i32, i32
  }
  func.func @transform_6(%arg0: i32) -> (i32, i32, i32) {
    %c0_i32 = arith.constant 0 : i32
    %c0_i32_0 = arith.constant 0 : i32
    %c0_i32_1 = arith.constant 0 : i32
    %c0_i32_2 = arith.constant 0 : i32
    return %c0_i32, %c0_i32_0, %c0_i32_1 : i32, i32, i32
  }
  func.func @transform_7(%arg0: i32) -> (i32, i32, i32) {
    %c0_i32 = arith.constant 0 : i32
    %c0_i32_0 = arith.constant 0 : i32
    %c0_i32_1 = arith.constant 0 : i32
    %c0_i32_2 = arith.constant 0 : i32
    return %c0_i32, %c0_i32_0, %c0_i32_1 : i32, i32, i32
  }
  func.func @transform_8(%arg0: i32) -> (i32, i32, i32) {
    %c0_i32 = arith.constant 0 : i32
    %c0_i32_0 = arith.constant 0 : i32
    %c0_i32_1 = arith.constant 0 : i32
    %c0_i32_2 = arith.constant 0 : i32
    return %c0_i32, %c0_i32_0, %c0_i32_1 : i32, i32, i32
  }
  func.func @transform_9(%arg0: i32) -> (i32, i32, i32) {
    %c0_i32 = arith.constant 0 : i32
    %c0_i32_0 = arith.constant 0 : i32
    %c0_i32_1 = arith.constant 0 : i32
    %c0_i32_2 = arith.constant 0 : i32
    return %c0_i32, %c0_i32_0, %c0_i32_1 : i32, i32, i32
  }
  func.func @transform_10(%arg0: i32) -> (i32, i32, i32) {
    %c0_i32 = arith.constant 0 : i32
    %c0_i32_0 = arith.constant 0 : i32
    %c0_i32_1 = arith.constant 0 : i32
    %c0_i32_2 = arith.constant 0 : i32
    return %c0_i32, %c0_i32_0, %c0_i32_1 : i32, i32, i32
  }
  func.func @transform_11(%arg0: i32) -> (i32, i32, i32) {
    %c0_i32 = arith.constant 0 : i32
    %c0_i32_0 = arith.constant 0 : i32
    %c0_i32_1 = arith.constant 0 : i32
    %c0_i32_2 = arith.constant 0 : i32
    return %c0_i32, %c0_i32_0, %c0_i32_1 : i32, i32, i32
  }
  func.func @transform_12(%arg0: i32) -> (i32, i32, i32) {
    %c0_i32 = arith.constant 0 : i32
    %c0_i32_0 = arith.constant 0 : i32
    %c0_i32_1 = arith.constant 0 : i32
    return %arg0, %c0_i32, %c0_i32_0 : i32, i32, i32
  }
}

module attributes {stable_mosaic.version = 11 : i64} {
  func.func @_fusion_path_kernel(%arg0: i32, %arg1: memref<1x5x64xf32, #tpu.memory_space<vmem>>, %arg2: memref<1x17x32xf32, #tpu.memory_space<vmem>>, %arg3: memref<1x64xf32, #tpu.memory_space<vmem>>, %arg4: memref<1x64xf32, #tpu.memory_space<vmem>>, %arg5: memref<64x32xf32, #tpu.memory_space<vmem>>, %arg6: memref<1x32xf32, #tpu.memory_space<vmem>>, %arg7: memref<1x1x32xf32, #tpu.memory_space<vmem>>, %arg8: memref<1x1x32xf32, #tpu.memory_space<vmem>>, %arg9: memref<1x32x32xf32, #tpu.memory_space<vmem>>, %arg10: memref<1x32x32xf32, #tpu.memory_space<vmem>>, %arg11: memref<1x32x32xf32, #tpu.memory_space<vmem>>, %arg12: memref<1x32x32xf32, #tpu.memory_space<vmem>>, %arg13: memref<1x1x32xf32, #tpu.memory_space<vmem>>, %arg14: memref<1x32xf32, #tpu.memory_space<vmem>>, %arg15: memref<1x32xf32, #tpu.memory_space<vmem>>, %arg16: memref<32x64xf32, #tpu.memory_space<vmem>>, %arg17: memref<1x64xf32, #tpu.memory_space<vmem>>, %arg18: memref<1x5x64xf32, #tpu.memory_space<vmem>>) attributes {dimension_semantics = [#tpu.dimension_semantics<parallel>], iteration_bounds = array<i64: 2>, scalar_prefetch = 0 : i64, scratch_operands = 0 : i64, tpu.core_type = #tpu.core_type<tc>, window_params = [{transform_indices = @transform_0, window_bounds = array<i64: 1, 5, 64>}, {transform_indices = @transform_1, window_bounds = array<i64: 1, 17, 32>}, {pipeline_mode = #tpu.pipeline_mode<synchronous>, transform_indices = @transform_2, window_bounds = array<i64: 1, 64>}, {pipeline_mode = #tpu.pipeline_mode<synchronous>, transform_indices = @transform_3, window_bounds = array<i64: 1, 64>}, {pipeline_mode = #tpu.pipeline_mode<synchronous>, transform_indices = @transform_4, window_bounds = array<i64: 64, 32>}, {pipeline_mode = #tpu.pipeline_mode<synchronous>, transform_indices = @transform_5, window_bounds = array<i64: 1, 32>}, {pipeline_mode = #tpu.pipeline_mode<synchronous>, transform_indices = @transform_6, window_bounds = array<i64: 1, 1, 32>}, {pipeline_mode = #tpu.pipeline_mode<synchronous>, transform_indices = @transform_7, window_bounds = array<i64: 1, 1, 32>}, {pipeline_mode = #tpu.pipeline_mode<synchronous>, transform_indices = @transform_8, window_bounds = array<i64: 1, 32, 32>}, {pipeline_mode = #tpu.pipeline_mode<synchronous>, transform_indices = @transform_9, window_bounds = array<i64: 1, 32, 32>}, {pipeline_mode = #tpu.pipeline_mode<synchronous>, transform_indices = @transform_10, window_bounds = array<i64: 1, 32, 32>}, {pipeline_mode = #tpu.pipeline_mode<synchronous>, transform_indices = @transform_11, window_bounds = array<i64: 1, 32, 32>}, {pipeline_mode = #tpu.pipeline_mode<synchronous>, transform_indices = @transform_12, window_bounds = array<i64: 1, 1, 32>}, {pipeline_mode = #tpu.pipeline_mode<synchronous>, transform_indices = @transform_13, window_bounds = array<i64: 1, 32>}, {pipeline_mode = #tpu.pipeline_mode<synchronous>, transform_indices = @transform_14, window_bounds = array<i64: 1, 32>}, {pipeline_mode = #tpu.pipeline_mode<synchronous>, transform_indices = @transform_15, window_bounds = array<i64: 32, 64>}, {pipeline_mode = #tpu.pipeline_mode<synchronous>, transform_indices = @transform_16, window_bounds = array<i64: 1, 64>}, {transform_indices = @transform_17, window_bounds = array<i64: 1, 5, 64>}]} {
    %c0 = arith.constant 0 : index
    %c0_0 = arith.constant 0 : index
    %c0_1 = arith.constant 0 : index
    %0 = vector.load %arg1[%c0, %c0_0, %c0_1] : memref<1x5x64xf32, #tpu.memory_space<vmem>>, vector<1x5x64xf32>
    %1 = vector.shape_cast %0 : vector<1x5x64xf32> to vector<5x64xf32>
    %c0_2 = arith.constant 0 : index
    %c0_3 = arith.constant 0 : index
    %c0_4 = arith.constant 0 : index
    %2 = vector.load %arg2[%c0_2, %c0_3, %c0_4] : memref<1x17x32xf32, #tpu.memory_space<vmem>>, vector<1x17x32xf32>
    %3 = vector.shape_cast %2 : vector<1x17x32xf32> to vector<17x32xf32>
    %4 = vector.extract_strided_slice %1 {offsets = [0, 0], sizes = [1, 64], strides = [1, 1]} : vector<5x64xf32> to vector<1x64xf32>
    %c0_5 = arith.constant 0 : index
    %c0_6 = arith.constant 0 : index
    %5 = vector.load %arg3[%c0_5, %c0_6] : memref<1x64xf32, #tpu.memory_space<vmem>>, vector<1x64xf32>
    %c0_7 = arith.constant 0 : index
    %c0_8 = arith.constant 0 : index
    %6 = vector.load %arg4[%c0_7, %c0_8] : memref<1x64xf32, #tpu.memory_space<vmem>>, vector<1x64xf32>
    %cst = arith.constant dense<0.000000e+00> : vector<1xf32>
    %7 = vector.multi_reduction <add>, %4, %cst [1] : vector<1x64xf32> to vector<1xf32>
    %8 = vector.shape_cast %7 : vector<1xf32> to vector<1x1xf32>
    %cst_9 = arith.constant 6.400000e+01 : f32
    %9 = vector.broadcast %cst_9 : f32 to vector<1x1xf32>
    %10 = arith.divf %8, %9 : vector<1x1xf32>
    %11 = vector.broadcast %10 : vector<1x1xf32> to vector<1x64xf32>
    %12 = arith.subf %4, %11 : vector<1x64xf32>
    %13 = arith.mulf %12, %12 : vector<1x64xf32>
    %cst_10 = arith.constant dense<0.000000e+00> : vector<1xf32>
    %14 = vector.multi_reduction <add>, %13, %cst_10 [1] : vector<1x64xf32> to vector<1xf32>
    %15 = vector.shape_cast %14 : vector<1xf32> to vector<1x1xf32>
    %cst_11 = arith.constant 6.400000e+01 : f32
    %16 = vector.broadcast %cst_11 : f32 to vector<1x1xf32>
    %17 = arith.divf %15, %16 : vector<1x1xf32>
    %cst_12 = arith.constant 9.99999974E-6 : f32
    %18 = vector.broadcast %cst_12 : f32 to vector<1x1xf32>
    %19 = arith.addf %17, %18 : vector<1x1xf32>
    %20 = math.rsqrt %19 : vector<1x1xf32>
    %21 = vector.broadcast %20 : vector<1x1xf32> to vector<1x64xf32>
    %22 = arith.mulf %12, %21 : vector<1x64xf32>
    %23 = arith.mulf %22, %5 : vector<1x64xf32>
    %24 = arith.addf %23, %6 : vector<1x64xf32>
    %cst_13 = arith.constant 5.000000e-01 : f32
    %25 = vector.broadcast %cst_13 : f32 to vector<1x64xf32>
    %26 = arith.mulf %25, %24 : vector<1x64xf32>
    %cst_14 = arith.constant 0.707106769 : f32
    %27 = vector.broadcast %cst_14 : f32 to vector<1x64xf32>
    %28 = arith.mulf %24, %27 : vector<1x64xf32>
    %29 = math.absf %28 : vector<1x64xf32>
    %cst_15 = arith.constant 0.327591091 : f32
    %30 = vector.broadcast %cst_15 : f32 to vector<1x64xf32>
    %31 = arith.mulf %30, %29 : vector<1x64xf32>
    %cst_16 = arith.constant 1.000000e+00 : f32
    %32 = vector.broadcast %cst_16 : f32 to vector<1x64xf32>
    %33 = arith.addf %32, %31 : vector<1x64xf32>
    %cst_17 = arith.constant 1.000000e+00 : f32
    %34 = vector.broadcast %cst_17 : f32 to vector<1x64xf32>
    %35 = arith.divf %34, %33 : vector<1x64xf32>
    %cst_18 = arith.constant 1.06140542 : f32
    %36 = vector.broadcast %cst_18 : f32 to vector<1x64xf32>
    %37 = arith.mulf %36, %35 : vector<1x64xf32>
    %cst_19 = arith.constant -1.45315206 : f32
    %38 = vector.broadcast %cst_19 : f32 to vector<1x64xf32>
    %39 = arith.addf %37, %38 : vector<1x64xf32>
    %40 = arith.mulf %39, %35 : vector<1x64xf32>
    %cst_20 = arith.constant 1.42141378 : f32
    %41 = vector.broadcast %cst_20 : f32 to vector<1x64xf32>
    %42 = arith.addf %40, %41 : vector<1x64xf32>
    %43 = arith.mulf %42, %35 : vector<1x64xf32>
    %cst_21 = arith.constant -0.284496725 : f32
    %44 = vector.broadcast %cst_21 : f32 to vector<1x64xf32>
    %45 = arith.addf %43, %44 : vector<1x64xf32>
    %46 = arith.mulf %45, %35 : vector<1x64xf32>
    %cst_22 = arith.constant 0.254829586 : f32
    %47 = vector.broadcast %cst_22 : f32 to vector<1x64xf32>
    %48 = arith.addf %46, %47 : vector<1x64xf32>
    %49 = arith.mulf %48, %35 : vector<1x64xf32>
    %cst_23 = arith.constant 0.000000e+00 : f32
    %50 = vector.broadcast %cst_23 : f32 to vector<1x64xf32>
    %51 = arith.subf %50, %29 : vector<1x64xf32>
    %52 = arith.mulf %51, %29 : vector<1x64xf32>
    %53 = math.exp %52 : vector<1x64xf32>
    %54 = arith.mulf %49, %53 : vector<1x64xf32>
    %cst_24 = arith.constant 1.000000e+00 : f32
    %55 = vector.broadcast %cst_24 : f32 to vector<1x64xf32>
    %56 = arith.subf %55, %54 : vector<1x64xf32>
    %cst_25 = arith.constant 0.000000e+00 : f32
    %57 = vector.broadcast %cst_25 : f32 to vector<1x64xf32>
    %58 = arith.cmpf oge, %28, %57 : vector<1x64xf32>
    %cst_26 = arith.constant 0.000000e+00 : f32
    %59 = vector.broadcast %cst_26 : f32 to vector<1x64xf32>
    %60 = arith.subf %59, %56 : vector<1x64xf32>
    %61 = arith.select %58, %56, %60 : vector<1x64xi1>, vector<1x64xf32>
    %cst_27 = arith.constant 1.000000e+00 : f32
    %62 = vector.broadcast %cst_27 : f32 to vector<1x64xf32>
    %63 = arith.addf %62, %61 : vector<1x64xf32>
    %64 = arith.mulf %26, %63 : vector<1x64xf32>
    %c0_28 = arith.constant 0 : index
    %c0_29 = arith.constant 0 : index
    %65 = vector.load %arg5[%c0_28, %c0_29] : memref<64x32xf32, #tpu.memory_space<vmem>>, vector<64x32xf32>
    %cst_30 = arith.constant dense<0.000000e+00> : vector<1x32xf32>
    %66 = tpu.matmul %64, %65, %cst_30 {dimension_numbers = #tpu.dot_dimension_numbers<[1], [0], [0], [1], [0, 0, 1, 1], [], []>} : vector<1x64xf32>, vector<64x32xf32>, vector<1x32xf32> -> vector<1x32xf32>
    %c0_31 = arith.constant 0 : index
    %c0_32 = arith.constant 0 : index
    %67 = vector.load %arg6[%c0_31, %c0_32] : memref<1x32xf32, #tpu.memory_space<vmem>>, vector<1x32xf32>
    %68 = arith.addf %66, %67 : vector<1x32xf32>
    %69 = tpu.iota {dimensions = array<i32: 0>} : vector<17x32xi32>
    %c0_i32 = arith.constant 0 : i32
    %70 = vector.broadcast %c0_i32 : i32 to vector<17x32xi32>
    %71 = arith.cmpi eq, %69, %70 : vector<17x32xi32>
    %72 = vector.shape_cast %68 : vector<1x32xf32> to vector<1x32xf32>
    %73 = vector.broadcast %72 : vector<1x32xf32> to vector<17x32xf32>
    %74 = arith.select %71, %73, %3 : vector<17x32xi1>, vector<17x32xf32>
    %c0_33 = arith.constant 0 : index
    %c0_34 = arith.constant 0 : index
    %c0_35 = arith.constant 0 : index
    %75 = vector.load %arg7[%c0_33, %c0_34, %c0_35] : memref<1x1x32xf32, #tpu.memory_space<vmem>>, vector<1x1x32xf32>
    %76 = vector.shape_cast %75 : vector<1x1x32xf32> to vector<1x32xf32>
    %c0_36 = arith.constant 0 : index
    %c0_37 = arith.constant 0 : index
    %c0_38 = arith.constant 0 : index
    %77 = vector.load %arg8[%c0_36, %c0_37, %c0_38] : memref<1x1x32xf32, #tpu.memory_space<vmem>>, vector<1x1x32xf32>
    %78 = vector.shape_cast %77 : vector<1x1x32xf32> to vector<1x32xf32>
    %cst_39 = arith.constant dense<0.000000e+00> : vector<17xf32>
    %79 = vector.multi_reduction <add>, %74, %cst_39 [1] : vector<17x32xf32> to vector<17xf32>
    %80 = vector.shape_cast %79 : vector<17xf32> to vector<17x1xf32>
    %cst_40 = arith.constant 3.200000e+01 : f32
    %81 = vector.broadcast %cst_40 : f32 to vector<17x1xf32>
    %82 = arith.divf %80, %81 : vector<17x1xf32>
    %83 = vector.broadcast %82 : vector<17x1xf32> to vector<17x32xf32>
    %84 = arith.subf %74, %83 : vector<17x32xf32>
    %85 = arith.mulf %84, %84 : vector<17x32xf32>
    %cst_41 = arith.constant dense<0.000000e+00> : vector<17xf32>
    %86 = vector.multi_reduction <add>, %85, %cst_41 [1] : vector<17x32xf32> to vector<17xf32>
    %87 = vector.shape_cast %86 : vector<17xf32> to vector<17x1xf32>
    %cst_42 = arith.constant 3.200000e+01 : f32
    %88 = vector.broadcast %cst_42 : f32 to vector<17x1xf32>
    %89 = arith.divf %87, %88 : vector<17x1xf32>
    %cst_43 = arith.constant 9.99999974E-6 : f32
    %90 = vector.broadcast %cst_43 : f32 to vector<17x1xf32>
    %91 = arith.addf %89, %90 : vector<17x1xf32>
    %92 = math.rsqrt %91 : vector<17x1xf32>
    %93 = vector.broadcast %92 : vector<17x1xf32> to vector<17x32xf32>
    %94 = arith.mulf %84, %93 : vector<17x32xf32>
    %95 = vector.broadcast %76 : vector<1x32xf32> to vector<17x32xf32>
    %96 = arith.mulf %94, %95 : vector<17x32xf32>
    %97 = vector.broadcast %78 : vector<1x32xf32> to vector<17x32xf32>
    %98 = arith.addf %96, %97 : vector<17x32xf32>
    %99 = vector.extract_strided_slice %98 {offsets = [0, 0], sizes = [1, 32], strides = [1, 1]} : vector<17x32xf32> to vector<1x32xf32>
    %c0_44 = arith.constant 0 : index
    %c0_45 = arith.constant 0 : index
    %c0_46 = arith.constant 0 : index
    %100 = vector.load %arg9[%c0_44, %c0_45, %c0_46] : memref<1x32x32xf32, #tpu.memory_space<vmem>>, vector<1x32x32xf32>
    %101 = vector.shape_cast %100 : vector<1x32x32xf32> to vector<32x32xf32>
    %cst_47 = arith.constant dense<0.000000e+00> : vector<1x32xf32>
    %102 = tpu.matmul %99, %101, %cst_47 {dimension_numbers = #tpu.dot_dimension_numbers<[1], [0], [0], [1], [0, 0, 1, 1], [], []>} : vector<1x32xf32>, vector<32x32xf32>, vector<1x32xf32> -> vector<1x32xf32>
    %c0_48 = arith.constant 0 : index
    %c0_49 = arith.constant 0 : index
    %c0_50 = arith.constant 0 : index
    %103 = vector.load %arg10[%c0_48, %c0_49, %c0_50] : memref<1x32x32xf32, #tpu.memory_space<vmem>>, vector<1x32x32xf32>
    %104 = vector.shape_cast %103 : vector<1x32x32xf32> to vector<32x32xf32>
    %cst_51 = arith.constant dense<0.000000e+00> : vector<17x32xf32>
    %105 = tpu.matmul %98, %104, %cst_51 {dimension_numbers = #tpu.dot_dimension_numbers<[1], [0], [0], [1], [0, 0, 1, 1], [], []>} : vector<17x32xf32>, vector<32x32xf32>, vector<17x32xf32> -> vector<17x32xf32>
    %c0_52 = arith.constant 0 : index
    %c0_53 = arith.constant 0 : index
    %c0_54 = arith.constant 0 : index
    %106 = vector.load %arg11[%c0_52, %c0_53, %c0_54] : memref<1x32x32xf32, #tpu.memory_space<vmem>>, vector<1x32x32xf32>
    %107 = vector.shape_cast %106 : vector<1x32x32xf32> to vector<32x32xf32>
    %cst_55 = arith.constant dense<0.000000e+00> : vector<17x32xf32>
    %108 = tpu.matmul %98, %107, %cst_55 {dimension_numbers = #tpu.dot_dimension_numbers<[1], [0], [0], [1], [0, 0, 1, 1], [], []>} : vector<17x32xf32>, vector<32x32xf32>, vector<17x32xf32> -> vector<17x32xf32>
    %c0_56 = arith.constant 0 : index
    %c0_57 = arith.constant 0 : index
    %c0_58 = arith.constant 0 : index
    %109 = vector.load %arg12[%c0_56, %c0_57, %c0_58] : memref<1x32x32xf32, #tpu.memory_space<vmem>>, vector<1x32x32xf32>
    %110 = vector.shape_cast %109 : vector<1x32x32xf32> to vector<32x32xf32>
    %cst_59 = arith.constant 0.000000e+00 : f32
    %111 = vector.broadcast %cst_59 : f32 to vector<1x32xf32>
    %112 = vector.extract_strided_slice %102 {offsets = [0, 0], sizes = [1, 8], strides = [1, 1]} : vector<1x32xf32> to vector<1x8xf32>
    %113 = vector.extract_strided_slice %105 {offsets = [0, 0], sizes = [17, 8], strides = [1, 1]} : vector<17x32xf32> to vector<17x8xf32>
    %114 = vector.extract_strided_slice %108 {offsets = [0, 0], sizes = [17, 8], strides = [1, 1]} : vector<17x32xf32> to vector<17x8xf32>
    %cst_60 = arith.constant dense<0.000000e+00> : vector<1x17xf32>
    %115 = tpu.matmul %112, %113, %cst_60 {dimension_numbers = #tpu.dot_dimension_numbers<[1], [1], [0], [0], [0, 0, 1, 0], [], []>} : vector<1x8xf32>, vector<17x8xf32>, vector<1x17xf32> -> vector<1x17xf32>
    %cst_61 = arith.constant 0.353553385 : f32
    %116 = vector.broadcast %cst_61 : f32 to vector<1x17xf32>
    %117 = arith.mulf %115, %116 : vector<1x17xf32>
    %cst_62 = arith.constant dense<0xFF800000> : vector<1xf32>
    %118 = vector.multi_reduction <maximumf>, %117, %cst_62 [1] : vector<1x17xf32> to vector<1xf32>
    %119 = vector.shape_cast %118 : vector<1xf32> to vector<1x1xf32>
    %120 = vector.broadcast %119 : vector<1x1xf32> to vector<1x17xf32>
    %121 = arith.subf %117, %120 : vector<1x17xf32>
    %122 = math.exp %121 : vector<1x17xf32>
    %cst_63 = arith.constant dense<0.000000e+00> : vector<1xf32>
    %123 = vector.multi_reduction <add>, %122, %cst_63 [1] : vector<1x17xf32> to vector<1xf32>
    %124 = vector.shape_cast %123 : vector<1xf32> to vector<1x1xf32>
    %125 = tpu.reciprocal %124 {approx = true} : vector<1x1xf32> -> vector<1x1xf32>
    %126 = vector.broadcast %125 : vector<1x1xf32> to vector<1x17xf32>
    %127 = arith.mulf %122, %126 : vector<1x17xf32>
    %cst_64 = arith.constant dense<0.000000e+00> : vector<1x8xf32>
    %128 = tpu.matmul %127, %114, %cst_64 {dimension_numbers = #tpu.dot_dimension_numbers<[1], [0], [0], [1], [0, 0, 1, 1], [], []>} : vector<1x17xf32>, vector<17x8xf32>, vector<1x8xf32> -> vector<1x8xf32>
    %129 = vector.extract_strided_slice %110 {offsets = [0, 0], sizes = [8, 32], strides = [1, 1]} : vector<32x32xf32> to vector<8x32xf32>
    %cst_65 = arith.constant dense<0.000000e+00> : vector<1x32xf32>
    %130 = tpu.matmul %128, %129, %cst_65 {dimension_numbers = #tpu.dot_dimension_numbers<[1], [0], [0], [1], [0, 0, 1, 1], [], []>} : vector<1x8xf32>, vector<8x32xf32>, vector<1x32xf32> -> vector<1x32xf32>
    %131 = arith.addf %111, %130 : vector<1x32xf32>
    %132 = vector.extract_strided_slice %102 {offsets = [0, 8], sizes = [1, 8], strides = [1, 1]} : vector<1x32xf32> to vector<1x8xf32>
    %133 = vector.extract_strided_slice %105 {offsets = [0, 8], sizes = [17, 8], strides = [1, 1]} : vector<17x32xf32> to vector<17x8xf32>
    %134 = vector.extract_strided_slice %108 {offsets = [0, 8], sizes = [17, 8], strides = [1, 1]} : vector<17x32xf32> to vector<17x8xf32>
    %cst_66 = arith.constant dense<0.000000e+00> : vector<1x17xf32>
    %135 = tpu.matmul %132, %133, %cst_66 {dimension_numbers = #tpu.dot_dimension_numbers<[1], [1], [0], [0], [0, 0, 1, 0], [], []>} : vector<1x8xf32>, vector<17x8xf32>, vector<1x17xf32> -> vector<1x17xf32>
    %cst_67 = arith.constant 0.353553385 : f32
    %136 = vector.broadcast %cst_67 : f32 to vector<1x17xf32>
    %137 = arith.mulf %135, %136 : vector<1x17xf32>
    %cst_68 = arith.constant dense<0xFF800000> : vector<1xf32>
    %138 = vector.multi_reduction <maximumf>, %137, %cst_68 [1] : vector<1x17xf32> to vector<1xf32>
    %139 = vector.shape_cast %138 : vector<1xf32> to vector<1x1xf32>
    %140 = vector.broadcast %139 : vector<1x1xf32> to vector<1x17xf32>
    %141 = arith.subf %137, %140 : vector<1x17xf32>
    %142 = math.exp %141 : vector<1x17xf32>
    %cst_69 = arith.constant dense<0.000000e+00> : vector<1xf32>
    %143 = vector.multi_reduction <add>, %142, %cst_69 [1] : vector<1x17xf32> to vector<1xf32>
    %144 = vector.shape_cast %143 : vector<1xf32> to vector<1x1xf32>
    %145 = tpu.reciprocal %144 {approx = true} : vector<1x1xf32> -> vector<1x1xf32>
    %146 = vector.broadcast %145 : vector<1x1xf32> to vector<1x17xf32>
    %147 = arith.mulf %142, %146 : vector<1x17xf32>
    %cst_70 = arith.constant dense<0.000000e+00> : vector<1x8xf32>
    %148 = tpu.matmul %147, %134, %cst_70 {dimension_numbers = #tpu.dot_dimension_numbers<[1], [0], [0], [1], [0, 0, 1, 1], [], []>} : vector<1x17xf32>, vector<17x8xf32>, vector<1x8xf32> -> vector<1x8xf32>
    %149 = vector.extract_strided_slice %110 {offsets = [8, 0], sizes = [8, 32], strides = [1, 1]} : vector<32x32xf32> to vector<8x32xf32>
    %cst_71 = arith.constant dense<0.000000e+00> : vector<1x32xf32>
    %150 = tpu.matmul %148, %149, %cst_71 {dimension_numbers = #tpu.dot_dimension_numbers<[1], [0], [0], [1], [0, 0, 1, 1], [], []>} : vector<1x8xf32>, vector<8x32xf32>, vector<1x32xf32> -> vector<1x32xf32>
    %151 = arith.addf %131, %150 : vector<1x32xf32>
    %152 = vector.extract_strided_slice %102 {offsets = [0, 16], sizes = [1, 8], strides = [1, 1]} : vector<1x32xf32> to vector<1x8xf32>
    %153 = vector.extract_strided_slice %105 {offsets = [0, 16], sizes = [17, 8], strides = [1, 1]} : vector<17x32xf32> to vector<17x8xf32>
    %154 = vector.extract_strided_slice %108 {offsets = [0, 16], sizes = [17, 8], strides = [1, 1]} : vector<17x32xf32> to vector<17x8xf32>
    %cst_72 = arith.constant dense<0.000000e+00> : vector<1x17xf32>
    %155 = tpu.matmul %152, %153, %cst_72 {dimension_numbers = #tpu.dot_dimension_numbers<[1], [1], [0], [0], [0, 0, 1, 0], [], []>} : vector<1x8xf32>, vector<17x8xf32>, vector<1x17xf32> -> vector<1x17xf32>
    %cst_73 = arith.constant 0.353553385 : f32
    %156 = vector.broadcast %cst_73 : f32 to vector<1x17xf32>
    %157 = arith.mulf %155, %156 : vector<1x17xf32>
    %cst_74 = arith.constant dense<0xFF800000> : vector<1xf32>
    %158 = vector.multi_reduction <maximumf>, %157, %cst_74 [1] : vector<1x17xf32> to vector<1xf32>
    %159 = vector.shape_cast %158 : vector<1xf32> to vector<1x1xf32>
    %160 = vector.broadcast %159 : vector<1x1xf32> to vector<1x17xf32>
    %161 = arith.subf %157, %160 : vector<1x17xf32>
    %162 = math.exp %161 : vector<1x17xf32>
    %cst_75 = arith.constant dense<0.000000e+00> : vector<1xf32>
    %163 = vector.multi_reduction <add>, %162, %cst_75 [1] : vector<1x17xf32> to vector<1xf32>
    %164 = vector.shape_cast %163 : vector<1xf32> to vector<1x1xf32>
    %165 = tpu.reciprocal %164 {approx = true} : vector<1x1xf32> -> vector<1x1xf32>
    %166 = vector.broadcast %165 : vector<1x1xf32> to vector<1x17xf32>
    %167 = arith.mulf %162, %166 : vector<1x17xf32>
    %cst_76 = arith.constant dense<0.000000e+00> : vector<1x8xf32>
    %168 = tpu.matmul %167, %154, %cst_76 {dimension_numbers = #tpu.dot_dimension_numbers<[1], [0], [0], [1], [0, 0, 1, 1], [], []>} : vector<1x17xf32>, vector<17x8xf32>, vector<1x8xf32> -> vector<1x8xf32>
    %169 = vector.extract_strided_slice %110 {offsets = [16, 0], sizes = [8, 32], strides = [1, 1]} : vector<32x32xf32> to vector<8x32xf32>
    %cst_77 = arith.constant dense<0.000000e+00> : vector<1x32xf32>
    %170 = tpu.matmul %168, %169, %cst_77 {dimension_numbers = #tpu.dot_dimension_numbers<[1], [0], [0], [1], [0, 0, 1, 1], [], []>} : vector<1x8xf32>, vector<8x32xf32>, vector<1x32xf32> -> vector<1x32xf32>
    %171 = arith.addf %151, %170 : vector<1x32xf32>
    %172 = vector.extract_strided_slice %102 {offsets = [0, 24], sizes = [1, 8], strides = [1, 1]} : vector<1x32xf32> to vector<1x8xf32>
    %173 = vector.extract_strided_slice %105 {offsets = [0, 24], sizes = [17, 8], strides = [1, 1]} : vector<17x32xf32> to vector<17x8xf32>
    %174 = vector.extract_strided_slice %108 {offsets = [0, 24], sizes = [17, 8], strides = [1, 1]} : vector<17x32xf32> to vector<17x8xf32>
    %cst_78 = arith.constant dense<0.000000e+00> : vector<1x17xf32>
    %175 = tpu.matmul %172, %173, %cst_78 {dimension_numbers = #tpu.dot_dimension_numbers<[1], [1], [0], [0], [0, 0, 1, 0], [], []>} : vector<1x8xf32>, vector<17x8xf32>, vector<1x17xf32> -> vector<1x17xf32>
    %cst_79 = arith.constant 0.353553385 : f32
    %176 = vector.broadcast %cst_79 : f32 to vector<1x17xf32>
    %177 = arith.mulf %175, %176 : vector<1x17xf32>
    %cst_80 = arith.constant dense<0xFF800000> : vector<1xf32>
    %178 = vector.multi_reduction <maximumf>, %177, %cst_80 [1] : vector<1x17xf32> to vector<1xf32>
    %179 = vector.shape_cast %178 : vector<1xf32> to vector<1x1xf32>
    %180 = vector.broadcast %179 : vector<1x1xf32> to vector<1x17xf32>
    %181 = arith.subf %177, %180 : vector<1x17xf32>
    %182 = math.exp %181 : vector<1x17xf32>
    %cst_81 = arith.constant dense<0.000000e+00> : vector<1xf32>
    %183 = vector.multi_reduction <add>, %182, %cst_81 [1] : vector<1x17xf32> to vector<1xf32>
    %184 = vector.shape_cast %183 : vector<1xf32> to vector<1x1xf32>
    %185 = tpu.reciprocal %184 {approx = true} : vector<1x1xf32> -> vector<1x1xf32>
    %186 = vector.broadcast %185 : vector<1x1xf32> to vector<1x17xf32>
    %187 = arith.mulf %182, %186 : vector<1x17xf32>
    %cst_82 = arith.constant dense<0.000000e+00> : vector<1x8xf32>
    %188 = tpu.matmul %187, %174, %cst_82 {dimension_numbers = #tpu.dot_dimension_numbers<[1], [0], [0], [1], [0, 0, 1, 1], [], []>} : vector<1x17xf32>, vector<17x8xf32>, vector<1x8xf32> -> vector<1x8xf32>
    %189 = vector.extract_strided_slice %110 {offsets = [24, 0], sizes = [8, 32], strides = [1, 1]} : vector<32x32xf32> to vector<8x32xf32>
    %cst_83 = arith.constant dense<0.000000e+00> : vector<1x32xf32>
    %190 = tpu.matmul %188, %189, %cst_83 {dimension_numbers = #tpu.dot_dimension_numbers<[1], [0], [0], [1], [0, 0, 1, 1], [], []>} : vector<1x8xf32>, vector<8x32xf32>, vector<1x32xf32> -> vector<1x32xf32>
    %191 = arith.addf %171, %190 : vector<1x32xf32>
    %192 = vector.extract_strided_slice %74 {offsets = [0, 0], sizes = [1, 32], strides = [1, 1]} : vector<17x32xf32> to vector<1x32xf32>
    %193 = arith.addf %192, %191 : vector<1x32xf32>
    %c0_84 = arith.constant 0 : index
    %c0_85 = arith.constant 0 : index
    %c0_86 = arith.constant 0 : index
    %194 = vector.load %arg13[%c0_84, %c0_85, %c0_86] : memref<1x1x32xf32, #tpu.memory_space<vmem>>, vector<1x1x32xf32>
    %195 = vector.shape_cast %194 : vector<1x1x32xf32> to vector<1x32xf32>
    %196 = arith.addf %193, %195 : vector<1x32xf32>
    %c0_87 = arith.constant 0 : index
    %c0_88 = arith.constant 0 : index
    %197 = vector.load %arg14[%c0_87, %c0_88] : memref<1x32xf32, #tpu.memory_space<vmem>>, vector<1x32xf32>
    %c0_89 = arith.constant 0 : index
    %c0_90 = arith.constant 0 : index
    %198 = vector.load %arg15[%c0_89, %c0_90] : memref<1x32xf32, #tpu.memory_space<vmem>>, vector<1x32xf32>
    %cst_91 = arith.constant dense<0.000000e+00> : vector<1xf32>
    %199 = vector.multi_reduction <add>, %196, %cst_91 [1] : vector<1x32xf32> to vector<1xf32>
    %200 = vector.shape_cast %199 : vector<1xf32> to vector<1x1xf32>
    %cst_92 = arith.constant 3.200000e+01 : f32
    %201 = vector.broadcast %cst_92 : f32 to vector<1x1xf32>
    %202 = arith.divf %200, %201 : vector<1x1xf32>
    %203 = vector.broadcast %202 : vector<1x1xf32> to vector<1x32xf32>
    %204 = arith.subf %196, %203 : vector<1x32xf32>
    %205 = arith.mulf %204, %204 : vector<1x32xf32>
    %cst_93 = arith.constant dense<0.000000e+00> : vector<1xf32>
    %206 = vector.multi_reduction <add>, %205, %cst_93 [1] : vector<1x32xf32> to vector<1xf32>
    %207 = vector.shape_cast %206 : vector<1xf32> to vector<1x1xf32>
    %cst_94 = arith.constant 3.200000e+01 : f32
    %208 = vector.broadcast %cst_94 : f32 to vector<1x1xf32>
    %209 = arith.divf %207, %208 : vector<1x1xf32>
    %cst_95 = arith.constant 9.99999974E-6 : f32
    %210 = vector.broadcast %cst_95 : f32 to vector<1x1xf32>
    %211 = arith.addf %209, %210 : vector<1x1xf32>
    %212 = math.rsqrt %211 : vector<1x1xf32>
    %213 = vector.broadcast %212 : vector<1x1xf32> to vector<1x32xf32>
    %214 = arith.mulf %204, %213 : vector<1x32xf32>
    %215 = arith.mulf %214, %197 : vector<1x32xf32>
    %216 = arith.addf %215, %198 : vector<1x32xf32>
    %cst_96 = arith.constant 5.000000e-01 : f32
    %217 = vector.broadcast %cst_96 : f32 to vector<1x32xf32>
    %218 = arith.mulf %217, %216 : vector<1x32xf32>
    %cst_97 = arith.constant 0.707106769 : f32
    %219 = vector.broadcast %cst_97 : f32 to vector<1x32xf32>
    %220 = arith.mulf %216, %219 : vector<1x32xf32>
    %221 = math.absf %220 : vector<1x32xf32>
    %cst_98 = arith.constant 0.327591091 : f32
    %222 = vector.broadcast %cst_98 : f32 to vector<1x32xf32>
    %223 = arith.mulf %222, %221 : vector<1x32xf32>
    %cst_99 = arith.constant 1.000000e+00 : f32
    %224 = vector.broadcast %cst_99 : f32 to vector<1x32xf32>
    %225 = arith.addf %224, %223 : vector<1x32xf32>
    %cst_100 = arith.constant 1.000000e+00 : f32
    %226 = vector.broadcast %cst_100 : f32 to vector<1x32xf32>
    %227 = arith.divf %226, %225 : vector<1x32xf32>
    %cst_101 = arith.constant 1.06140542 : f32
    %228 = vector.broadcast %cst_101 : f32 to vector<1x32xf32>
    %229 = arith.mulf %228, %227 : vector<1x32xf32>
    %cst_102 = arith.constant -1.45315206 : f32
    %230 = vector.broadcast %cst_102 : f32 to vector<1x32xf32>
    %231 = arith.addf %229, %230 : vector<1x32xf32>
    %232 = arith.mulf %231, %227 : vector<1x32xf32>
    %cst_103 = arith.constant 1.42141378 : f32
    %233 = vector.broadcast %cst_103 : f32 to vector<1x32xf32>
    %234 = arith.addf %232, %233 : vector<1x32xf32>
    %235 = arith.mulf %234, %227 : vector<1x32xf32>
    %cst_104 = arith.constant -0.284496725 : f32
    %236 = vector.broadcast %cst_104 : f32 to vector<1x32xf32>
    %237 = arith.addf %235, %236 : vector<1x32xf32>
    %238 = arith.mulf %237, %227 : vector<1x32xf32>
    %cst_105 = arith.constant 0.254829586 : f32
    %239 = vector.broadcast %cst_105 : f32 to vector<1x32xf32>
    %240 = arith.addf %238, %239 : vector<1x32xf32>
    %241 = arith.mulf %240, %227 : vector<1x32xf32>
    %cst_106 = arith.constant 0.000000e+00 : f32
    %242 = vector.broadcast %cst_106 : f32 to vector<1x32xf32>
    %243 = arith.subf %242, %221 : vector<1x32xf32>
    %244 = arith.mulf %243, %221 : vector<1x32xf32>
    %245 = math.exp %244 : vector<1x32xf32>
    %246 = arith.mulf %241, %245 : vector<1x32xf32>
    %cst_107 = arith.constant 1.000000e+00 : f32
    %247 = vector.broadcast %cst_107 : f32 to vector<1x32xf32>
    %248 = arith.subf %247, %246 : vector<1x32xf32>
    %cst_108 = arith.constant 0.000000e+00 : f32
    %249 = vector.broadcast %cst_108 : f32 to vector<1x32xf32>
    %250 = arith.cmpf oge, %220, %249 : vector<1x32xf32>
    %cst_109 = arith.constant 0.000000e+00 : f32
    %251 = vector.broadcast %cst_109 : f32 to vector<1x32xf32>
    %252 = arith.subf %251, %248 : vector<1x32xf32>
    %253 = arith.select %250, %248, %252 : vector<1x32xi1>, vector<1x32xf32>
    %cst_110 = arith.constant 1.000000e+00 : f32
    %254 = vector.broadcast %cst_110 : f32 to vector<1x32xf32>
    %255 = arith.addf %254, %253 : vector<1x32xf32>
    %256 = arith.mulf %218, %255 : vector<1x32xf32>
    %c0_111 = arith.constant 0 : index
    %c0_112 = arith.constant 0 : index
    %257 = vector.load %arg16[%c0_111, %c0_112] : memref<32x64xf32, #tpu.memory_space<vmem>>, vector<32x64xf32>
    %cst_113 = arith.constant dense<0.000000e+00> : vector<1x64xf32>
    %258 = tpu.matmul %256, %257, %cst_113 {dimension_numbers = #tpu.dot_dimension_numbers<[1], [0], [0], [1], [0, 0, 1, 1], [], []>} : vector<1x32xf32>, vector<32x64xf32>, vector<1x64xf32> -> vector<1x64xf32>
    %c0_114 = arith.constant 0 : index
    %c0_115 = arith.constant 0 : index
    %259 = vector.load %arg17[%c0_114, %c0_115] : memref<1x64xf32, #tpu.memory_space<vmem>>, vector<1x64xf32>
    %260 = arith.addf %258, %259 : vector<1x64xf32>
    %261 = tpu.iota {dimensions = array<i32: 0>} : vector<5x64xi32>
    %c0_i32_116 = arith.constant 0 : i32
    %262 = vector.broadcast %c0_i32_116 : i32 to vector<5x64xi32>
    %263 = arith.cmpi eq, %261, %262 : vector<5x64xi32>
    %264 = vector.shape_cast %260 : vector<1x64xf32> to vector<1x64xf32>
    %265 = vector.broadcast %264 : vector<1x64xf32> to vector<5x64xf32>
    %266 = arith.select %263, %265, %1 : vector<5x64xi1>, vector<5x64xf32>
    %c0_117 = arith.constant 0 : index
    %c0_118 = arith.constant 0 : index
    %c0_119 = arith.constant 0 : index
    %267 = vector.load %arg18[%c0_117, %c0_118, %c0_119] : memref<1x5x64xf32, #tpu.memory_space<vmem>>, vector<1x5x64xf32>
    %268 = vector.shape_cast %267 : vector<1x5x64xf32> to vector<5x64xf32>
    %269 = vector.shape_cast %266 : vector<5x64xf32> to vector<1x5x64xf32>
    tpu.vector_store %arg18[%c0_117, %c0_118, %c0_119], %269 {strides = array<i32>} : memref<1x5x64xf32, #tpu.memory_space<vmem>>, vector<1x5x64xf32>,
    return
  }
  func.func @transform_0(%arg0: i32) -> (i32, i32, i32) {
    %c0_i32 = arith.constant 0 : i32
    %c0_i32_0 = arith.constant 0 : i32
    %c0_i32_1 = arith.constant 0 : i32
    return %arg0, %c0_i32, %c0_i32_0 : i32, i32, i32
  }
  func.func @transform_1(%arg0: i32) -> (i32, i32, i32) {
    %c0_i32 = arith.constant 0 : i32
    %c0_i32_0 = arith.constant 0 : i32
    %c0_i32_1 = arith.constant 0 : i32
    return %arg0, %c0_i32, %c0_i32_0 : i32, i32, i32
  }
  func.func @transform_2(%arg0: i32) -> (i32, i32) {
    %c0_i32 = arith.constant 0 : i32
    %c0_i32_0 = arith.constant 0 : i32
    %c0_i32_1 = arith.constant 0 : i32
    return %c0_i32, %c0_i32_0 : i32, i32
  }
  func.func @transform_3(%arg0: i32) -> (i32, i32) {
    %c0_i32 = arith.constant 0 : i32
    %c0_i32_0 = arith.constant 0 : i32
    %c0_i32_1 = arith.constant 0 : i32
    return %c0_i32, %c0_i32_0 : i32, i32
  }
  func.func @transform_4(%arg0: i32) -> (i32, i32) {
    %c0_i32 = arith.constant 0 : i32
    %c0_i32_0 = arith.constant 0 : i32
    %c0_i32_1 = arith.constant 0 : i32
    return %c0_i32, %c0_i32_0 : i32, i32
  }
  func.func @transform_5(%arg0: i32) -> (i32, i32) {
    %c0_i32 = arith.constant 0 : i32
    %c0_i32_0 = arith.constant 0 : i32
    %c0_i32_1 = arith.constant 0 : i32
    return %c0_i32, %c0_i32_0 : i32, i32
  }
  func.func @transform_6(%arg0: i32) -> (i32, i32, i32) {
    %c0_i32 = arith.constant 0 : i32
    %c0_i32_0 = arith.constant 0 : i32
    %c0_i32_1 = arith.constant 0 : i32
    %c0_i32_2 = arith.constant 0 : i32
    return %c0_i32, %c0_i32_0, %c0_i32_1 : i32, i32, i32
  }
  func.func @transform_7(%arg0: i32) -> (i32, i32, i32) {
    %c0_i32 = arith.constant 0 : i32
    %c0_i32_0 = arith.constant 0 : i32
    %c0_i32_1 = arith.constant 0 : i32
    %c0_i32_2 = arith.constant 0 : i32
    return %c0_i32, %c0_i32_0, %c0_i32_1 : i32, i32, i32
  }
  func.func @transform_8(%arg0: i32) -> (i32, i32, i32) {
    %c0_i32 = arith.constant 0 : i32
    %c0_i32_0 = arith.constant 0 : i32
    %c0_i32_1 = arith.constant 0 : i32
    %c0_i32_2 = arith.constant 0 : i32
    return %c0_i32, %c0_i32_0, %c0_i32_1 : i32, i32, i32
  }
  func.func @transform_9(%arg0: i32) -> (i32, i32, i32) {
    %c0_i32 = arith.constant 0 : i32
    %c0_i32_0 = arith.constant 0 : i32
    %c0_i32_1 = arith.constant 0 : i32
    %c0_i32_2 = arith.constant 0 : i32
    return %c0_i32, %c0_i32_0, %c0_i32_1 : i32, i32, i32
  }
  func.func @transform_10(%arg0: i32) -> (i32, i32, i32) {
    %c0_i32 = arith.constant 0 : i32
    %c0_i32_0 = arith.constant 0 : i32
    %c0_i32_1 = arith.constant 0 : i32
    %c0_i32_2 = arith.constant 0 : i32
    return %c0_i32, %c0_i32_0, %c0_i32_1 : i32, i32, i32
  }
  func.func @transform_11(%arg0: i32) -> (i32, i32, i32) {
    %c0_i32 = arith.constant 0 : i32
    %c0_i32_0 = arith.constant 0 : i32
    %c0_i32_1 = arith.constant 0 : i32
    %c0_i32_2 = arith.constant 0 : i32
    return %c0_i32, %c0_i32_0, %c0_i32_1 : i32, i32, i32
  }
  func.func @transform_12(%arg0: i32) -> (i32, i32, i32) {
    %c0_i32 = arith.constant 0 : i32
    %c0_i32_0 = arith.constant 0 : i32
    %c0_i32_1 = arith.constant 0 : i32
    %c0_i32_2 = arith.constant 0 : i32
    return %c0_i32, %c0_i32_0, %c0_i32_1 : i32, i32, i32
  }
  func.func @transform_13(%arg0: i32) -> (i32, i32) {
    %c0_i32 = arith.constant 0 : i32
    %c0_i32_0 = arith.constant 0 : i32
    %c0_i32_1 = arith.constant 0 : i32
    return %c0_i32, %c0_i32_0 : i32, i32
  }
  func.func @transform_14(%arg0: i32) -> (i32, i32) {
    %c0_i32 = arith.constant 0 : i32
    %c0_i32_0 = arith.constant 0 : i32
    %c0_i32_1 = arith.constant 0 : i32
    return %c0_i32, %c0_i32_0 : i32, i32
  }
  func.func @transform_15(%arg0: i32) -> (i32, i32) {
    %c0_i32 = arith.constant 0 : i32
    %c0_i32_0 = arith.constant 0 : i32
    %c0_i32_1 = arith.constant 0 : i32
    return %c0_i32, %c0_i32_0 : i32, i32
  }
  func.func @transform_16(%arg0: i32) -> (i32, i32) {
    %c0_i32 = arith.constant 0 : i32
    %c0_i32_0 = arith.constant 0 : i32
    %c0_i32_1 = arith.constant 0 : i32
    return %c0_i32, %c0_i32_0 : i32, i32
  }
  func.func @transform_17(%arg0: i32) -> (i32, i32, i32) {
    %c0_i32 = arith.constant 0 : i32
    %c0_i32_0 = arith.constant 0 : i32
    %c0_i32_1 = arith.constant 0 : i32
    return %arg0, %c0_i32, %c0_i32_0 : i32, i32, i32
  }
}

module attributes {stable_mosaic.version = 11 : i64} {
  func.func @_ln_act_linear_kernel(%arg0: memref<2x32xf32, #tpu.memory_space<vmem>>, %arg1: memref<1x32xf32, #tpu.memory_space<vmem>>, %arg2: memref<1x32xf32, #tpu.memory_space<vmem>>, %arg3: memref<32x10xf32, #tpu.memory_space<vmem>>, %arg4: memref<1x10xf32, #tpu.memory_space<vmem>>, %arg5: memref<2x10xf32, #tpu.memory_space<vmem>>) attributes {dimension_semantics = [], scalar_prefetch = 0 : i64, scratch_operands = 0 : i64, tpu.core_type = #tpu.core_type<tc>} {
    %c0 = arith.constant 0 : index
    %c0_0 = arith.constant 0 : index
    %0 = vector.load %arg0[%c0, %c0_0] : memref<2x32xf32, #tpu.memory_space<vmem>>, vector<2x32xf32>
    %c0_1 = arith.constant 0 : index
    %c0_2 = arith.constant 0 : index
    %1 = vector.load %arg1[%c0_1, %c0_2] : memref<1x32xf32, #tpu.memory_space<vmem>>, vector<1x32xf32>
    %c0_3 = arith.constant 0 : index
    %c0_4 = arith.constant 0 : index
    %2 = vector.load %arg2[%c0_3, %c0_4] : memref<1x32xf32, #tpu.memory_space<vmem>>, vector<1x32xf32>
    %cst = arith.constant dense<0.000000e+00> : vector<2xf32>
    %3 = vector.multi_reduction <add>, %0, %cst [1] : vector<2x32xf32> to vector<2xf32>
    %4 = vector.shape_cast %3 : vector<2xf32> to vector<2x1xf32>
    %cst_5 = arith.constant 3.200000e+01 : f32
    %5 = vector.broadcast %cst_5 : f32 to vector<2x1xf32>
    %6 = arith.divf %4, %5 : vector<2x1xf32>
    %7 = vector.broadcast %6 : vector<2x1xf32> to vector<2x32xf32>
    %8 = arith.subf %0, %7 : vector<2x32xf32>
    %9 = arith.mulf %8, %8 : vector<2x32xf32>
    %cst_6 = arith.constant dense<0.000000e+00> : vector<2xf32>
    %10 = vector.multi_reduction <add>, %9, %cst_6 [1] : vector<2x32xf32> to vector<2xf32>
    %11 = vector.shape_cast %10 : vector<2xf32> to vector<2x1xf32>
    %cst_7 = arith.constant 3.200000e+01 : f32
    %12 = vector.broadcast %cst_7 : f32 to vector<2x1xf32>
    %13 = arith.divf %11, %12 : vector<2x1xf32>
    %cst_8 = arith.constant 9.99999974E-6 : f32
    %14 = vector.broadcast %cst_8 : f32 to vector<2x1xf32>
    %15 = arith.addf %13, %14 : vector<2x1xf32>
    %16 = math.rsqrt %15 : vector<2x1xf32>
    %17 = vector.broadcast %16 : vector<2x1xf32> to vector<2x32xf32>
    %18 = arith.mulf %8, %17 : vector<2x32xf32>
    %19 = vector.broadcast %1 : vector<1x32xf32> to vector<2x32xf32>
    %20 = arith.mulf %18, %19 : vector<2x32xf32>
    %21 = vector.broadcast %2 : vector<1x32xf32> to vector<2x32xf32>
    %22 = arith.addf %20, %21 : vector<2x32xf32>
    %c0_9 = arith.constant 0 : index
    %c0_10 = arith.constant 0 : index
    %23 = vector.load %arg3[%c0_9, %c0_10] : memref<32x10xf32, #tpu.memory_space<vmem>>, vector<32x10xf32>
    %cst_11 = arith.constant dense<0.000000e+00> : vector<2x10xf32>
    %24 = tpu.matmul %22, %23, %cst_11 {dimension_numbers = #tpu.dot_dimension_numbers<[1], [0], [0], [1], [0, 0, 1, 1], [], []>} : vector<2x32xf32>, vector<32x10xf32>, vector<2x10xf32> -> vector<2x10xf32>
    %c0_12 = arith.constant 0 : index
    %c0_13 = arith.constant 0 : index
    %25 = vector.load %arg4[%c0_12, %c0_13] : memref<1x10xf32, #tpu.memory_space<vmem>>, vector<1x10xf32>
    %26 = vector.broadcast %25 : vector<1x10xf32> to vector<2x10xf32>
    %27 = arith.addf %24, %26 : vector<2x10xf32>
    %c0_14 = arith.constant 0 : index
    %c0_15 = arith.constant 0 : index
    %28 = vector.load %arg5[%c0_14, %c0_15] : memref<2x10xf32, #tpu.memory_space<vmem>>, vector<2x10xf32>
    tpu.vector_store %arg5[%c0_14, %c0_15], %27 {strides = array<i32>} : memref<2x10xf32, #tpu.memory_space<vmem>>, vector<2x10xf32>,
    return
  }
}

module attributes {stable_mosaic.version = 11 : i64} {
  func.func @_ln_act_linear_kernel(%arg0: memref<2x64xf32, #tpu.memory_space<vmem>>, %arg1: memref<1x64xf32, #tpu.memory_space<vmem>>, %arg2: memref<1x64xf32, #tpu.memory_space<vmem>>, %arg3: memref<64x10xf32, #tpu.memory_space<vmem>>, %arg4: memref<1x10xf32, #tpu.memory_space<vmem>>, %arg5: memref<2x10xf32, #tpu.memory_space<vmem>>) attributes {dimension_semantics = [], scalar_prefetch = 0 : i64, scratch_operands = 0 : i64, tpu.core_type = #tpu.core_type<tc>} {
    %c0 = arith.constant 0 : index
    %c0_0 = arith.constant 0 : index
    %0 = vector.load %arg0[%c0, %c0_0] : memref<2x64xf32, #tpu.memory_space<vmem>>, vector<2x64xf32>
    %c0_1 = arith.constant 0 : index
    %c0_2 = arith.constant 0 : index
    %1 = vector.load %arg1[%c0_1, %c0_2] : memref<1x64xf32, #tpu.memory_space<vmem>>, vector<1x64xf32>
    %c0_3 = arith.constant 0 : index
    %c0_4 = arith.constant 0 : index
    %2 = vector.load %arg2[%c0_3, %c0_4] : memref<1x64xf32, #tpu.memory_space<vmem>>, vector<1x64xf32>
    %cst = arith.constant dense<0.000000e+00> : vector<2xf32>
    %3 = vector.multi_reduction <add>, %0, %cst [1] : vector<2x64xf32> to vector<2xf32>
    %4 = vector.shape_cast %3 : vector<2xf32> to vector<2x1xf32>
    %cst_5 = arith.constant 6.400000e+01 : f32
    %5 = vector.broadcast %cst_5 : f32 to vector<2x1xf32>
    %6 = arith.divf %4, %5 : vector<2x1xf32>
    %7 = vector.broadcast %6 : vector<2x1xf32> to vector<2x64xf32>
    %8 = arith.subf %0, %7 : vector<2x64xf32>
    %9 = arith.mulf %8, %8 : vector<2x64xf32>
    %cst_6 = arith.constant dense<0.000000e+00> : vector<2xf32>
    %10 = vector.multi_reduction <add>, %9, %cst_6 [1] : vector<2x64xf32> to vector<2xf32>
    %11 = vector.shape_cast %10 : vector<2xf32> to vector<2x1xf32>
    %cst_7 = arith.constant 6.400000e+01 : f32
    %12 = vector.broadcast %cst_7 : f32 to vector<2x1xf32>
    %13 = arith.divf %11, %12 : vector<2x1xf32>
    %cst_8 = arith.constant 9.99999974E-6 : f32
    %14 = vector.broadcast %cst_8 : f32 to vector<2x1xf32>
    %15 = arith.addf %13, %14 : vector<2x1xf32>
    %16 = math.rsqrt %15 : vector<2x1xf32>
    %17 = vector.broadcast %16 : vector<2x1xf32> to vector<2x64xf32>
    %18 = arith.mulf %8, %17 : vector<2x64xf32>
    %19 = vector.broadcast %1 : vector<1x64xf32> to vector<2x64xf32>
    %20 = arith.mulf %18, %19 : vector<2x64xf32>
    %21 = vector.broadcast %2 : vector<1x64xf32> to vector<2x64xf32>
    %22 = arith.addf %20, %21 : vector<2x64xf32>
    %c0_9 = arith.constant 0 : index
    %c0_10 = arith.constant 0 : index
    %23 = vector.load %arg3[%c0_9, %c0_10] : memref<64x10xf32, #tpu.memory_space<vmem>>, vector<64x10xf32>
    %cst_11 = arith.constant dense<0.000000e+00> : vector<2x10xf32>
    %24 = tpu.matmul %22, %23, %cst_11 {dimension_numbers = #tpu.dot_dimension_numbers<[1], [0], [0], [1], [0, 0, 1, 1], [], []>} : vector<2x64xf32>, vector<64x10xf32>, vector<2x10xf32> -> vector<2x10xf32>
    %c0_12 = arith.constant 0 : index
    %c0_13 = arith.constant 0 : index
    %25 = vector.load %arg4[%c0_12, %c0_13] : memref<1x10xf32, #tpu.memory_space<vmem>>, vector<1x10xf32>
    %26 = vector.broadcast %25 : vector<1x10xf32> to vector<2x10xf32>
    %27 = arith.addf %24, %26 : vector<2x10xf32>
    %c0_14 = arith.constant 0 : index
    %c0_15 = arith.constant 0 : index
    %28 = vector.load %arg5[%c0_14, %c0_15] : memref<2x10xf32, #tpu.memory_space<vmem>>, vector<2x10xf32>
    tpu.vector_store %arg5[%c0_14, %c0_15], %27 {strides = array<i32>} : memref<2x10xf32, #tpu.memory_space<vmem>>, vector<2x10xf32>,
    return
  }
}

</mosaic_0001>

<bundles_post_ra>
// kernel: _lambda_.20
= control target key start
LH: loop header
LB: loop body
LE: loop exit
PB: predicated region body
PF: predicated region fallthrough
CT: control target
= control target key end

     0   :  { %vm33_vm0 = vcmask 523264   ;;  %vm131_vm1 = vcmask 261120   ;;  %s278_s1 = inlined_call_operand.vmem [shape: f32[64,32], index: 1, kind: input, shape index: {}]   ;;  %s279_s0 = inlined_call_operand.vmem [shape: f32[32,64], index: 0, kind: input, shape index: {}]   ;;  %s280_s2 = inlined_call_operand.vmem [shape: f32[1,32], index: 2, kind: input, shape index: {}]   ;;  %s281_s3 = inlined_call_operand.vmem [shape: f32[32,32], index: 3, kind: output, shape index: {}]  }
   0x1   :  { %v18_v0 = vld [vmem:[%s278_s1] sm:$0xff]  ;;  %v19_v1 = vld [vmem:[%s278_s1 + $0x8] sm:$0xff]  ;;  %v20_v2 = vld [vmem:[%s278_s1 + $0x10] sm:$0xff] }
   0x2   :  { %v179_v3 = vpack.c.bf16 %v19_v1, %v18_v0  ;;  %v21_v4 = vld [vmem:[%s278_s1 + $0x18] sm:$0xff]  ;;  %v22_v6 = vld [vmem:[%s278_s1 + $0x20] sm:$0xff]  ;;  %v23_v7 = vld [vmem:[%s278_s1 + $0x28] sm:$0xff] }
   0x3   :  { %v183_v5 = vpack.c.bf16 %v21_v4, %v20_v2  ;;  %v14_v8 = vld [vmem:[%s279_s0] sm:$0xff]  ;;  %v16_v9 = vld [vmem:[%s279_s0 + $0x10] sm:$0xff]  ;;  %v187_v10 = vpack.c.bf16 %v23_v7, %v22_v6  ;;  %v25_v12 = vld [vmem:[%s278_s1 + $0x38] sm:$0xff] }
   0x4   :  { %180 = vmatprep.subr.bf16.mxu0 %v179_v3  ;;  %195 = vmatprep.subr.bf16.mxu1 %v179_v3  ;;  %v24_v11 = vld [vmem:[%s278_s1 + $0x30] sm:$0xff]  ;;  %v15_v14 = vld [vmem:[%s279_s0 + $0x8] sm:$0xff]  ;;  %v17_v15 = vld [vmem:[%s279_s0 + $0x18] sm:$0xff] }
   0x5   :  { %182 = vmatpush3.bf16.msra.mxu0 %v179_v3  ;;  %199 = vmatpush3.bf16.msra.mxu1 %v179_v3  ;;  %v191_v13 = vpack.c.bf16 %v25_v12, %v24_v11  ;;  %v140_v16 = vld [vmem:[%s280_s2] ss:$0 sm:$0xff] }
   0x6   :  { %184 = vmatprep.subr.bf16.mxu0 %v183_v5  ;;  %196 = vmatprep.subr.bf16.mxu1 %v183_v5 }
   0x7   :  { %173 = vmatprep.mubr.msk.f32.mxu0 %vm33_vm0, %v14_v8  ;;  %176 = vmatprep.mubr.msk.f32.mxu1 %vm33_vm0, %v16_v9 }
   0x9   :  { %186 = vmatpush3.bf16.msra.mxu0 %v183_v5  ;;  %200 = vmatpush3.bf16.msra.mxu1 %v183_v5 }
   0xa   :  { %188 = vmatprep.subr.bf16.mxu0 %v187_v10  ;;  %197 = vmatprep.subr.bf16.mxu1 %v187_v10 }
   0xd   :  { %190 = vmatpush3.bf16.msra.mxu0 %v187_v10  ;;  %201 = vmatpush3.bf16.msra.mxu1 %v187_v10 }
   0xe   :  { %192 = vmatprep.subr.bf16.mxu0 %v191_v13  ;;  %198 = vmatprep.subr.bf16.mxu1 %v191_v13 }
  0x11   :  { %194 = vmatpush3.bf16.msra.mxu0 %v191_v13  ;;  %202 = vmatpush3.bf16.msra.mxu1 %v191_v13 }
  0x14   :  { %174 = vmatmul.mubr.msk.f32.vlgmr.msra.gmra.mrb[0].mxu0 %vm33_vm0, %v15_v14  ;;  %177 = vmatmul.mubr.msk.f32.vlgmr.msra.gmra.mrb[0].mxu1 %vm33_vm0, %v17_v15 }
  0xe7   :  { %v175_v17 = vpop.f32.mrb[0].mxu0  ;;  %v178_v18 = vpop.f32.mrb[0].mxu1 }
  0xe8   :  { %v118_v19 = vadd.f32 %v175_v17, %v140_v16  ;;  %v128_v20 = vadd.f32 %v178_v18, %v140_v16  ;;  %v112_v21 = vpop.f32.mrb[1].mxu0  ;;  %v122_v22 = vpop.f32.mrb[1].mxu1 }
  0xe9   :  { %v113_v23 = vadd.f32 %v140_v16, %v112_v21  ;;  %v123_v24 = vadd.f32 %v140_v16, %v122_v22 }
  0xea   :  { %133 = vst.msk [vmem:[%s281_s3 + $0x8] sm:$0xff] %vm131_vm1, %v118_v19  ;;  %135 = vst.msk [vmem:[%s281_s3 + $0x18] sm:$0xff] %vm131_vm1, %v128_v20 }
  0xeb   :  { %132 = vst.msk [vmem:[%s281_s3] sm:$0xff] %vm131_vm1, %v113_v23  ;;  %134 = vst.msk [vmem:[%s281_s3 + $0x10] sm:$0xff] %vm131_vm1, %v123_v24 }

// kernel: _lambda_.21
= control target key start
LH: loop header
LB: loop body
LE: loop exit
PB: predicated region body
PF: predicated region fallthrough
CT: control target
= control target key end

     0   :  { %vm125_vm0 = vcmask 523264   ;;  %s327_s1 = inlined_call_operand.vmem [shape: f32[256,64], index: 1, kind: input, shape index: {}]   ;;  %s328_s0 = inlined_call_operand.vmem [shape: f32[8,256], index: 0, kind: input, shape index: {}]   ;;  %s329_s2 = inlined_call_operand.vmem [shape: f32[1,64], index: 2, kind: input, shape index: {}]   ;;  %s330_s3 = inlined_call_operand.vmem [shape: f32[8,64], index: 3, kind: output, shape index: {}]  }
   0x1   :  { %v32_v0 = vld [vmem:[%s327_s1 + $0x80] sm:$0xff]  ;;  %v33_v1 = vld [vmem:[%s327_s1 + $0x88] sm:$0xff]  ;;  %v34_v5 = vld [vmem:[%s327_s1 + $0x90] sm:$0xff] }
   0x2   :  { %v16_v2 = vld [vmem:[%s327_s1] sm:$0xff]  ;;  %v167_v3 = vpack.c.bf16 %v33_v1, %v32_v0  ;;  %v17_v4 = vld [vmem:[%s327_s1 + $0x8] sm:$0xff]  ;;  %v35_v6 = vld [vmem:[%s327_s1 + $0x98] sm:$0xff] }
   0x3   :  { %v169_v7 = vpack.c.bf16 %v17_v4, %v16_v2  ;;  %v171_v8 = vpack.c.bf16 %v35_v6, %v34_v5  ;;  %v18_v9 = vld [vmem:[%s327_s1 + $0x10] sm:$0xff]  ;;  %v19_v10 = vld [vmem:[%s327_s1 + $0x18] sm:$0xff]  ;;  %v36_v11 = vld [vmem:[%s327_s1 + $0xa0] sm:$0xff] }
   0x4   :  { %168 = vmatprep.subr.bf16.mxu0 %v167_v3  ;;  %v37_v12 = vld [vmem:[%s327_s1 + $0xa8] sm:$0xff]  ;;  %v173_v13 = vpack.c.bf16 %v19_v10, %v18_v9  ;;  %v20_v15 = vld [vmem:[%s327_s1 + $0x20] sm:$0xff]  ;;  %v38_v17 = vld [vmem:[%s327_s1 + $0xb0] sm:$0xff] }
   0x5   :  { %170 = vmatpush3.bf16.msra.mxu0 %v169_v7  ;;  %v175_v14 = vpack.c.bf16 %v37_v12, %v36_v11  ;;  %v21_v16 = vld [vmem:[%s327_s1 + $0x28] sm:$0xff]  ;;  %v39_v18 = vld [vmem:[%s327_s1 + $0xb8] sm:$0xff]  ;;  %v22_v21 = vld [vmem:[%s327_s1 + $0x30] sm:$0xff] }
   0x6   :  { %172 = vmatprep.subr.bf16.mxu0 %v171_v8  ;;  %v177_v19 = vpack.c.bf16 %v21_v16, %v20_v15  ;;  %v179_v20 = vpack.c.bf16 %v39_v18, %v38_v17  ;;  %v23_v22 = vld [vmem:[%s327_s1 + $0x38] sm:$0xff]  ;;  %v40_v23 = vld [vmem:[%s327_s1 + $0xc0] sm:$0xff]  ;;  %v41_v24 = vld [vmem:[%s327_s1 + $0xc8] sm:$0xff] }
   0x7   :  { %v15_v25 = vld [vmem:[%s328_s0 + $0x8] sm:$0xff]  ;;  %v181_v26 = vpack.c.bf16 %v23_v22, %v22_v21  ;;  %v183_v27 = vpack.c.bf16 %v41_v24, %v40_v23  ;;  %v24_v28 = vld [vmem:[%s327_s1 + $0x40] sm:$0xff]  ;;  %v42_v30 = vld [vmem:[%s327_s1 + $0xd0] sm:$0xff] }
   0x8   :  { %119 = vmatprep.mubr.f32.mxu0 %v15_v25  ;;  %v25_v29 = vld [vmem:[%s327_s1 + $0x48] sm:$0xff]  ;;  %v43_v31 = vld [vmem:[%s327_s1 + $0xd8] sm:$0xff]  ;;  %v26_v34 = vld [vmem:[%s327_s1 + $0x50] sm:$0xff] }
   0x9   :  { %174 = vmatpush3.bf16.msra.mxu0 %v173_v13  ;;  %v185_v32 = vpack.c.bf16 %v25_v29, %v24_v28  ;;  %v187_v33 = vpack.c.bf16 %v43_v31, %v42_v30  ;;  %v27_v35 = vld [vmem:[%s327_s1 + $0x58] sm:$0xff]  ;;  %v44_v36 = vld [vmem:[%s327_s1 + $0xe0] sm:$0xff]  ;;  %v45_v37 = vld [vmem:[%s327_s1 + $0xe8] sm:$0xff] }
   0xa   :  { %176 = vmatprep.subr.bf16.mxu0 %v175_v14  ;;  %v189_v38 = vpack.c.bf16 %v27_v35, %v26_v34  ;;  %v191_v39 = vpack.c.bf16 %v45_v37, %v44_v36  ;;  %v28_v40 = vld [vmem:[%s327_s1 + $0x60] sm:$0xff]  ;;  %v29_v41 = vld [vmem:[%s327_s1 + $0x68] sm:$0xff]  ;;  %v46_v42 = vld [vmem:[%s327_s1 + $0xf0] sm:$0xff] }
   0xb   :  { %v47_v43 = vld [vmem:[%s327_s1 + $0xf8] sm:$0xff]  ;;  %v193_v44 = vpack.c.bf16 %v29_v41, %v28_v40  ;;  %v30_v46 = vld [vmem:[%s327_s1 + $0x70] sm:$0xff]  ;;  %v14_v49 = vld [vmem:[%s328_s0] sm:$0xff] }
   0xc   :  { %v195_v45 = vpack.c.bf16 %v47_v43, %v46_v42  ;;  %v31_v47 = vld [vmem:[%s327_s1 + $0x78] sm:$0xff]  ;;  %v131_v51 = vld [vmem:[%s329_s2] ss:$0 sm:$0xff] }
   0xd   :  { %178 = vmatpush3.bf16.msra.mxu0 %v177_v19  ;;  %v197_v48 = vpack.c.bf16 %v31_v47, %v30_v46 }
   0xe   :  { %180 = vmatprep.subr.bf16.mxu0 %v179_v20 }
  0x11   :  { %182 = vmatpush3.bf16.msra.mxu0 %v181_v26 }
  0x12   :  { %184 = vmatprep.subr.bf16.mxu0 %v183_v27 }
  0x15   :  { %186 = vmatpush3.bf16.msra.mxu0 %v185_v32 }
  0x16   :  { %188 = vmatprep.subr.bf16.mxu0 %v187_v33 }
  0x19   :  { %190 = vmatpush3.bf16.msra.mxu0 %v189_v38 }
  0x1a   :  { %192 = vmatprep.subr.bf16.mxu0 %v191_v39 }
  0x1d   :  { %194 = vmatpush3.bf16.msra.mxu0 %v193_v44 }
  0x1e   :  { %196 = vmatprep.subr.bf16.mxu0 %v195_v45 }
  0x21   :  { %198 = vmatpush3.bf16.msra.mxu0 %v197_v48 }
  0x24   :  { %120 = vmatmul.mubr.f32.vlgmr.msra.gmra.mrb[0].mxu0 %v14_v49 }
  0xf7   :  { %v164_v50 = vpop.f32.mrb[0].mxu0 }
  0xf8   :  { %v165_v52 = vpop.f32.mrb[1].mxu0 }
  0xf9   :  { %v166_v53 = vadd.f32 %v165_v52, %v164_v50 }
  0xfb   :  { %v122_v54 = vadd.f32 %v166_v53, %v131_v51 }
  0xfd   :  { %126 = vst.msk [vmem:[%s330_s3] sm:$0xff] %vm125_vm0, %v122_v54 }

// kernel: _lambda_.22
= control target key start
LH: loop header
LB: loop body
LE: loop exit
PB: predicated region body
PF: predicated region fallthrough
CT: control target
= control target key end

     0   :  { %s2987_s21 = smov 0   ;;  %s3416_s0 = inlined_call_operand.vmem [shape: f32[2,17,32], index: 0, kind: input, shape index: {}]   ;;  %s3417_s1 = inlined_call_operand.vmem [shape: f32[1,1,32], index: 1, kind: input, shape index: {}, may-alias: {1,6}]   ;;  %s3418_s2 = inlined_call_operand.vmem [shape: f32[1,1,32], index: 2, kind: input, shape index: {}, may-alias: {2,5,7,11}]   ;;  %s3419_s3 = inlined_call_operand.vmem [shape: f32[1,32,96], index: 3, kind: input, shape index: {}]   ;;  %s3420_s4 = inlined_call_operand.vmem [shape: f32[1,32,32], index: 4, kind: input, shape index: {}]   ;;  %s3421_s5 = inlined_call_operand.vmem [shape: f32[1,1,32], index: 5, kind: input, shape index: {}, may-alias: {2,5,7,11}]   ;;  %s3422_s6 = inlined_call_operand.vmem [shape: f32[1,1,32], index: 6, kind: input, shape index: {}, may-alias: {1,6}]   ;;  %s3423_s7 = inlined_call_operand.vmem [shape: f32[1,1,32], index: 7, kind: input, shape index: {}, may-alias: {2,5,7,11}]   ;;  %s3424_s8 = inlined_call_operand.vmem [shape: f32[1,32,64], index: 8, kind: input, shape index: {}]   ;;  %s3425_s9 = inlined_call_operand.vmem [shape: f32[1,1,64], index: 9, kind: input, shape index: {}]   ;;  %s3426_s10 = inlined_call_operand.vmem [shape: f32[1,64,32], index: 10, kind: input, shape index: {}]   ;;  %s3427_s11 = inlined_call_operand.vmem [shape: f32[1,1,32], index: 11, kind: input, shape index: {}, may-alias: {2,5,7,11}]   ;;  %s3428_s12 = inlined_call_operand.vmem [shape: f32[2,17,32], index: 12, kind: output, shape index: {}]  }
   0x1 LB: > { %s2317_s22 = sadd.s32 4294967295, %s2906_s21   ;;  %p2321_p0 = scmp.ge.s32.totalorder %s2906_s21, 1  ;;  %s2906_s21 = sphi %s2987_s21, %s22_s21  }
   0x2   : > { %p362_p1 = scmp.lt.s32.totalorder %s2906_s21, 3 }
   0x4   : > { %p363_p2 = pnand %p2321_p0, %p362_p1 }
   0x5   : > { %p404_p3 = scmp.lt.s32.totalorder (!%p363_p2), %s2317_s22, 1  ;;  %vm419_vm0 = vcmask (!%p363_p2), 261120   ;;  %vm426_vm1 = vcmask (!%p363_p2), 253952   ;;  %v479_v21 = vld [vmem:[%s3419_s3] sm:$0xff] (!%p363_p2)  ;;  %v480_v22 = vld [vmem:[%s3419_s3 + $0x8] sm:$0xff] (!%p363_p2)  ;;  %v481_v23 = vld [vmem:[%s3419_s3 + $0x10] sm:$0xff] (!%p363_p2) }
   0x6   : > { %366 = sbr.rel (%p363_p2) target bundleno = 3763 (0xeb3), region = 68  ;;  %v2908_v24 = vmov (!%p363_p2), 0.0|0.0   ;;  %v2707_v25 = vpack.c.bf16 (!%p363_p2), %v480_v22, %v479_v21  ;;  %v482_v26 = vld [vmem:[%s3419_s3 + $0x18] sm:$0xff] (!%p363_p2)  ;;  %vm2909_vm2 = vmmov (!%p363_p2), 0   ;;  %v2910_v27 = vmov (!%p363_p2), 0.0   ;;  %s2911_s24 = smov (!%p363_p2), 96  }
   0x7   : > { %2706 = vmatprep.subr.bf16.mxu1 (!%p363_p2), %v2908_v24  ;;  %2491 = vmatprep.mubr.msk.f32.mxu1 (!%p363_p2), %vm2909_vm2, %v2910_v27  ;;  %v2710_v28 = vpack.c.bf16 (!%p363_p2), %v482_v26, %v481_v23  ;;  %v2324_v39 = vld [vmem:[%s3417_s1] ss:$0 sm:$0xff] (!%p363_p2)  ;;  %s2912_s25 = smov (!%p363_p2), 120   ;;  %s2913_s27 = smov (!%p363_p2), 88   ;;  %vm585_vm3 = vcmask (!%p363_p2), 64512   ;;  %vm681_vm5 = vcmask (!%p363_p2), 138240  }
   0x8   : > { %2716 = vmatprep.subr.bf16.mxu0 (!%p363_p2), %v2908_v24  ;;  %2521 = vmatprep.mubr.msk.f32.mxu0 (!%p363_p2), %vm2909_vm2, %v2910_v27  ;;  %v2325_v41 = vld [vmem:[%s3418_s2] ss:$0 sm:$0xff] (!%p363_p2)  ;;  %vm3068_vm4 = vmpackc.low (!%p363_p2), %vm585_vm3, %vm585_vm3  ;;  %vm688_vm6 = vcmask (!%p363_p2), 131072   ;;  %s2914_s28 = smov (!%p363_p2), 64   ;;  %vm733_vm7 = vcmask (!%p363_p2), 1040384   ;;  %s2915_s29 = smov (!%p363_p2), 56  }
   0x9   : > { %2708 = vmatpush3.bf16.msra.mxu1 (!%p363_p2), %v2707_v25  ;;  %s2916_s30 = smov (!%p363_p2), 80   ;;  %s2917_s13 = smov (!%p363_p2), 112   ;;  %vm2156_vm9 = vcmask (!%p363_p2), 523264  }
   0xa   : > { %2709 = vmatprep.subr.bf16.mxu1 (!%p363_p2), %v2908_v24  ;;  %s2918_s18 = smov (!%p363_p2), 48   ;;  %s2919_s19 = smov (!%p363_p2), 72  }
   0xb   : > { %s2920_s20 = smov (!%p363_p2), 104  }
   0xd   : > { %s3432_s22 = smov (!%p404_p3, %s2317_s22), 1  ;;  %2711 = vmatpush3.bf16.msra.mxu1 %v2710_v28 }
   0xe   : > { %s2762_s23 = smul.u32 24, %s3432_s22  ;;  %2712 = vmatprep.subr.bf16.mxu1 %v2908_v24 }
  0x10   : > { %s3003_s26 = scalar_lea.vmem %s3416_s0, %s2762_s23  ;;  %s413_s17 = scalar_lea.vmem %s3428_s12, %s2762_s23 }
  0x11   : > { %v414_v0 = vld [vmem:[%s3003_s26] sm:$0xff]  ;;  %v416_v1 = vld [vmem:[%s3003_s26 + $0x10] sm:$0x1]  ;;  %v415_v2 = vld [vmem:[%s3003_s26 + $0x8] sm:$0xff] }
  0x12   : > { %v420_v3 = vsel %vm419_vm0, %v414_v0, 0.0  ;;  %v427_v4 = vsel %vm426_vm1, %v416_v1, 0.0  ;;  %v423_v5 = vsel %vm419_vm0, %v415_v2, 0.0 }
  0x13   : > { %421 = vadd.xlane.f32.xlu0 %v420_v3  ;;  %428 = vadd.xlane.f32.xlu1 %v427_v4 }
  0x17   : > { %424 = vadd.xlane.f32.xlu0 %v423_v5 }
  0xa0   : > { %v422_v6 = vpop.xlane.xlu0 %421  ;;  %v429_v7 = vpop.xlane.xlu1 %428 }
  0xa1   : > { %v431_v8 = vmul.f32 0.03125, %v422_v6  ;;  %v433_v9 = vmul.f32 0.03125, %v429_v7 }
  0xa3   : > { %v434_v10 = vsub.f32 %v414_v0, %v431_v8  ;;  %v436_v11 = vsub.f32 %v416_v1, %v433_v9 }
  0xa4   : > { %v425_v12 = vpop.xlane.xlu0 %424 }
  0xa5   : > { %v432_v13 = vmul.f32 0.03125, %v425_v12  ;;  %v437_v14 = vmul.f32 %v434_v10, %v434_v10  ;;  %v439_v15 = vmul.f32 %v436_v11, %v436_v11 }
  0xa7   : > { %v435_v16 = vsub.f32 %v415_v2, %v432_v13  ;;  %v440_v17 = vsel %vm419_vm0, %v437_v14, 0.0  ;;  %v446_v18 = vsel %vm426_vm1, %v439_v15, 0.0 }
  0xa8   : > { %441 = vadd.xlane.f32.xlu1 %v440_v17 }
  0xa9   : > { %v438_v19 = vmul.f32 %v435_v16, %v435_v16 }
  0xab   : > { %v443_v20 = vsel %vm419_vm0, %v438_v19, 0.0 }
  0xac   : > { %447 = vadd.xlane.f32.xlu1 %v446_v18  ;;  %444 = vadd.xlane.f32.xlu0 %v443_v20 }
 0x135   : > { %v442_v29 = vpop.xlane.xlu1 %441 }
 0x136   : > { %v449_v30 = vmul.f32 0.03125, %v442_v29 }
 0x138   : > { %v452_v31 = vadd.f32 1e-05, %v449_v30 }
 0x139   : > { %v448_v32 = vpop.xlane.xlu1 %447  ;;  %v445_v33 = vpop.xlane.xlu0 %444 }
 0x13a   : > { %2825 = vrsqrt.f32 %v452_v31  ;;  %v451_v34 = vmul.f32 0.03125, %v448_v32  ;;  %v450_v35 = vmul.f32 0.03125, %v445_v33 }
 0x13c   : > { %v454_v36 = vadd.f32 1e-05, %v451_v34  ;;  %v453_v37 = vadd.f32 1e-05, %v450_v35 }
 0x13e   : > { %2827 = vrsqrt.f32 %v454_v36 }
 0x13f   : > { %2829 = vrsqrt.f32 %v453_v37 }
 0x144   : > { %v2826_v38 = vpop.eup %2825 }
 0x145   : > { %v458_v40 = vmul.f32 %v2826_v38, %v434_v10 }
 0x147   : > { %v467_v42 = vmul.f32 %v2324_v39, %v458_v40 }
 0x148   : > { %v2828_v43 = vpop.eup %2827 }
 0x149   : > { %v2830_v44 = vpop.eup %2829  ;;  %v476_v45 = vadd.f32 %v2325_v41, %v467_v42  ;;  %v460_v47 = vmul.f32 %v2828_v43, %v436_v11 }
 0x14a   : > { %v459_v46 = vmul.f32 %v2830_v44, %v435_v16 }
 0x14b   : > { %2492 = vmatmul.mubr.msk.f32.vlgmr.msra.gmra.mrb[0].mxu1 %vm419_vm0, %v476_v45  ;;  %v469_v50 = vmul.f32 %v2324_v39, %v460_v47 }
 0x14c   : > { %2494 = vmatprep.mubr.msk.f32.mxu1 %vm2909_vm2, %v2910_v27  ;;  %v468_v48 = vmul.f32 %v2324_v39, %v459_v46 }
 0x14d   : > { %v478_v51 = vadd.f32 %v2325_v41, %v469_v50 }
 0x14e   : > { %v477_v49 = vadd.f32 %v2325_v41, %v468_v48 }
 0x150   : > { %2495 = vmatmul.mubr.msk.f32.gmra.mrb[2].mxu1 %vm419_vm0, %v477_v49 }
 0x151   : > { %2497 = vmatprep.mubr.msk.f32.mxu1 %vm2909_vm2, %v2910_v27 }
 0x154   : > { %2498 = vmatmul.mubr.msk.f32.gmra.mrb[4].mxu1 %vm419_vm0, %v478_v51 }
 0x155   : > { %2506 = vmatprep.mubr.msk.f32.mxu1 %vm2909_vm2, %v2910_v27 }
 0x21e   : > { %v3049_v52 = vpop.f32.mrb[0].mxu1 }
 0x21f   : > { %v2493_v53 = vpop.f32.mrb[1].mxu1 }
 0x223   : > { %v3051_v54 = vpop.f32.mrb[2].mxu1 }
 0x224   : > { %v2496_v55 = vpop.f32.mrb[3].mxu1  ;;  %v3055_v56 = vpack.i.bf16 %v3051_v54, %v3049_v52 }
 0x226   : > { %2786 = vrot.lane.b32.xlu0 %v3055_v56, %s2911_s24 }
 0x227   : > { %v3058_v57 = vpop.f32.mrb[4].mxu1 }
 0x228   : > { %583 = vrot.lane.b32.xlu1 %v3058_v57, %s2911_s24  ;;  %v2499_v58 = vpop.f32.mrb[5].mxu1 }
 0x22a   : > { %816 = vrot.lane.b32.xlu0 %v3049_v52, %s2912_s25 }
 0x22c   : > { %2791 = vrot.lane.b32.xlu1 %v3055_v56, %s2913_s27 }
 0x22e   : > { %820 = vrot.lane.b32.xlu0 %v3058_v57, %s2912_s25 }
 0x230   : > { %826 = vrot.lane.b32.xlu1 %v3058_v57, %s2913_s27  ;;  %s2921_s27 = smov 40  }
 0x234   : > { %818 = vrot.lane.b32.xlu1 %v3051_v54, %s2912_s25 }
 0x298   : > { %v2787_v59 = vpop.permute.xlu0 %2786 }
 0x299   : > { %v2789_v60 = vunpack.i.h.bf16 %v2787_v59  ;;  %v2788_v61 = vunpack.i.l.bf16 %v2787_v59 }
 0x29a   : > { %v584_v62 = vpop.permute.xlu1 %583 }
 0x29b   : > { %v2713_v0 = vpack.c.bf16 %v2789_v60, %v2788_v61 }
 0x29c   : > { %v817_v6 = vpop.permute.xlu0 %816 }
 0x29d   : > { %2715 = vmatpush3.bf16.xpose.msk.msra.mxu1 %vm3068_vm4, %v2713_v0 }
 0x29e   : > { %2504 = vmatprep.subr.mxu1 %v2910_v27  ;;  %v2792_v1 = vpop.permute.xlu1 %2791 }
 0x29f   : > { %v2794_v2 = vunpack.i.h.bf16 %v2792_v1  ;;  %v2793_v3 = vunpack.i.l.bf16 %v2792_v1 }
 0x2a0   : > { %v821_v8 = vpop.permute.xlu0 %820 }
 0x2a1   : > { %v2720_v4 = vpack.c.bf16 %v2794_v2, %v2793_v3 }
 0x2a2   : > { %v827_v5 = vpop.permute.xlu1 %826 }
 0x2a5   : > { %2505 = vmatpush3.xpose.msk.msra.mxu1 %vm585_vm3, %v584_v62 }
 0x2a6   : > { %2719 = vmatprep.subr.bf16.mxu1 %v2908_v24  ;;  %v819_v7 = vpop.permute.xlu1 %818 }
 0x2a8   : > { %2507 = vmatmul.mubr.msk.f32.vlgmr.msra.gmra.mrb[6].mxu1 %vm585_vm3, %v3049_v52 }
 0x2a9   : > { %2722 = vmatpush3.bf16.xpose.msk.msra.mxu1 %vm3068_vm4, %v2720_v4  ;;  %2509 = vmatprep.mubr.msk.f32.mxu1 %vm2909_vm2, %v2910_v27 }
 0x2aa   : > { %2534 = vmatprep.subr.mxu1 %v2910_v27 }
 0x2ac   : > { %2510 = vmatmul.mubr.msk.f32.gmra.mrb[8].mxu1 %vm585_vm3, %v3051_v54 }
 0x2ad   : > { %2512 = vmatprep.mubr.msk.f32.mxu1 %vm2909_vm2, %v2910_v27 }
 0x2b0   : > { %2513 = vmatmul.mubr.msk.f32.gmra.mrb[10].mxu1 %vm585_vm3, %v3058_v57 }
 0x2b1   : > { %2535 = vmatpush3.xpose.msk.msra.mxu1 %vm585_vm3, %v827_v5  ;;  %2536 = vmatprep.mubr.msk.f32.mxu1 %vm2909_vm2, %v2910_v27 }
 0x2b2   : > { %2560 = vmatprep.subr.mxu1 %v2910_v27 }
 0x2b4   : > { %2537 = vmatmul.mubr.msk.f32.vlgmr.msra.gmra.mrb[12].mxu1 %vm585_vm3, %v817_v6 }
 0x2b5   : > { %2539 = vmatprep.mubr.msk.f32.mxu1 %vm2909_vm2, %v2910_v27 }
 0x2b8   : > { %2540 = vmatmul.mubr.msk.f32.gmra.mrb[14].mxu1 %vm585_vm3, %v819_v7 }
 0x2b9   : > { %2542 = vmatprep.mubr.msk.f32.mxu1 %vm2909_vm2, %v2910_v27 }
 0x2bc   : > { %2543 = vmatmul.mubr.msk.f32.gmra.mrb[16].mxu1 %vm585_vm3, %v821_v8 }
 0x2bd   : > { %2562 = vmatprep.mubr.msk.f32.mxu1 %vm2909_vm2, %v2910_v27 }
 0x37b   : > { %v664_v9 = vpop.f32.mrb[6].mxu1 }
 0x37c   : > { %v678_v10 = vmul.f32 0.35355338, %v664_v9  ;;  %v2508_v11 = vpop.f32.mrb[7].mxu1 }
 0x37e   : > { %v682_v12 = vsel %vm681_vm5, %v678_v10, -inf }
 0x37f   : > { %683 = vmax.xlane.f32.xlu1 %v682_v12  ;;  %v669_v13 = vpop.f32.mrb[8].mxu1 }
 0x380   : > { %v679_v14 = vmul.f32 0.35355338, %v669_v13  ;;  %v2511_v15 = vpop.f32.mrb[9].mxu1 }
 0x382   : > { %v685_v16 = vsel %vm681_vm5, %v679_v14, -inf }
 0x383   : > { %686 = vmax.xlane.f32.xlu0 %v685_v16  ;;  %v674_v17 = vpop.f32.mrb[10].mxu1 }
 0x384   : > { %v680_v18 = vmul.f32 0.35355338, %v674_v17  ;;  %v2514_v19 = vpop.f32.mrb[11].mxu1 }
 0x386   : > { %v689_v20 = vsel %vm688_vm6, %v680_v18, -inf }
 0x387   : > { %690 = vmax.xlane.f32.xlu0 %v689_v20  ;;  %v906_v21 = vpop.f32.mrb[12].mxu1 }
 0x388   : > { %v920_v22 = vmul.f32 0.35355338, %v906_v21  ;;  %v2538_v23 = vpop.f32.mrb[13].mxu1 }
 0x38a   : > { %v923_v25 = vsel %vm681_vm5, %v920_v22, -inf }
 0x38b   : > { %924 = vmax.xlane.f32.xlu0 %v923_v25  ;;  %v911_v26 = vpop.f32.mrb[14].mxu1 }
 0x38c   : > { %v921_v28 = vmul.f32 0.35355338, %v911_v26  ;;  %v2541_v29 = vpop.f32.mrb[15].mxu1 }
 0x38e   : > { %v926_v30 = vsel %vm681_vm5, %v921_v28, -inf }
 0x38f   : > { %927 = vmax.xlane.f32.xlu1 %v926_v30  ;;  %v916_v31 = vpop.f32.mrb[16].mxu1 }
 0x390   : > { %v922_v32 = vmul.f32 0.35355338, %v916_v31  ;;  %v2544_v33 = vpop.f32.mrb[17].mxu1 }
 0x392   : > { %v929_v34 = vsel %vm688_vm6, %v922_v32, -inf }
 0x393   : > { %930 = vmax.xlane.f32.xlu0 %v929_v34 }
 0x3a0   : > { %720 = vrot.lane.b32.xlu1 %v3058_v57, %s2914_s28 }
 0x3a9   : > { %2796 = vrot.lane.b32.xlu0 %v3055_v56, %s2914_s28 }
 0x40c   : > { %v684_v35 = vpop.xlane.xlu1 %683 }
 0x40d   : > { %v692_v36 = vsub.f32 %v678_v10, %v684_v35 }
 0x40f   : > { %v695_v37 = vmul.f32 1.442695, %v692_v36  ;;  %v572_v36 = vld [vmem:[%s3420_s4] sm:$0xff] }
 0x410   : > { %v687_v38 = vpop.xlane.xlu0 %686 }
 0x411   : > { %2831 = vpow2.f32 %v695_v37  ;;  %v693_v39 = vsub.f32 %v679_v14, %v687_v38  ;;  %v573_v37 = vld [vmem:[%s3420_s4 + $0x8] sm:$0xff] }
 0x412   : > { %2561 = vmatpush3.msra.mxu1 %v573_v37 }
 0x413   : > { %v697_v40 = vmul.f32 1.442695, %v693_v39  ;;  %2726 = vmatprep.subr.bf16.mxu1 %v2908_v24 }
 0x414   : > { %v691_v41 = vpop.xlane.xlu0 %690 }
 0x415   : > { %2833 = vpow2.f32 %v697_v40  ;;  %v694_v42 = vsub.f32 %v680_v18, %v691_v41 }
 0x417   : > { %v699_v43 = vmul.f32 1.442695, %v694_v42 }
 0x418   : > { %v925_v44 = vpop.xlane.xlu0 %924 }
 0x419   : > { %2835 = vpow2.f32 %v699_v43  ;;  %v932_v45 = vsub.f32 %v920_v22, %v925_v44 }
 0x41b   : > { %v2832_v46 = vpop.eup %2831  ;;  %v935_v47 = vmul.f32 1.442695, %v932_v45 }
 0x41c   : > { %v928_v48 = vpop.xlane.xlu1 %927  ;;  %v701_v49 = vsel %vm681_vm5, %v2832_v46, 0.0 }
 0x41d   : > { %2837 = vpow2.f32 %v935_v47  ;;  %v933_v50 = vsub.f32 %v921_v28, %v928_v48  ;;  %702 = vadd.xlane.f32.xlu1 %v701_v49 }
 0x41f   : > { %v2834_v51 = vpop.eup %2833  ;;  %v937_v53 = vmul.f32 1.442695, %v933_v50 }
 0x420   : > { %v931_v55 = vpop.xlane.xlu0 %930  ;;  %v704_v58 = vsel %vm681_vm5, %v2834_v51, 0.0  ;;  %v721_v7 = vpop.permute.xlu1 %720 }
 0x421   : > { %2839 = vpow2.f32 %v937_v53  ;;  %v934_v59 = vsub.f32 %v922_v32, %v931_v55  ;;  %705 = vadd.xlane.f32.xlu0 %v704_v58 }
 0x423   : > { %v2836_v60 = vpop.eup %2835  ;;  %v939_v61 = vmul.f32 1.442695, %v934_v59 }
 0x424   : > { %v2797_v62 = vpop.permute.xlu0 %2796  ;;  %v707_v0 = vsel %vm688_vm6, %v2836_v60, 0.0 }
 0x425   : > { %2841 = vpow2.f32 %v939_v61  ;;  %v2799_v1 = vunpack.i.h.bf16 %v2797_v62  ;;  %v2798_v2 = vunpack.i.l.bf16 %v2797_v62  ;;  %708 = vadd.xlane.f32.xlu1 %v707_v0 }
 0x427   : > { %v2838_v3 = vpop.eup %2837  ;;  %v2717_v4 = vpack.c.bf16 %v2799_v1, %v2798_v2 }
 0x428   : > { %v941_v5 = vsel %vm681_vm5, %v2838_v3, 0.0 }
 0x429   : > { %942 = vadd.xlane.f32.xlu0 %v941_v5  ;;  %2718 = vmatpush3.bf16.msra.mxu0 %v2717_v4 }
 0x42a   : > { %2519 = vmatprep.subr.mxu0 %v2910_v27 }
 0x42b   : > { %v2840_v6 = vpop.eup %2839 }
 0x42c   : > { %v944_v8 = vsel %vm681_vm5, %v2840_v6, 0.0 }
 0x42d   : > { %945 = vadd.xlane.f32.xlu1 %v944_v8  ;;  %2520 = vmatpush3.msk.msra.mxu0 %vm733_vm7, %v721_v7 }
 0x42e   : > { %2723 = vmatprep.subr.bf16.mxu0 %v2908_v24 }
 0x42f   : > { %v2842_v9 = vpop.eup %2841 }
 0x430   : > { %v947_v10 = vsel %vm688_vm6, %v2842_v9, 0.0 }
 0x431   : > { %948 = vadd.xlane.f32.xlu1 %v947_v10 }
 0x43f   : > { %960 = vrot.lane.b32.xlu0 %v3058_v57, %s2915_s29 }
 0x442   : > { %2801 = vrot.lane.b32.xlu1 %v3055_v56, %s2915_s29 }
 0x443   : > { %1243 = vrot.lane.b32.xlu0 %v3058_v57, %s2916_s30 }
 0x446   : > { %2806 = vrot.lane.b32.xlu1 %v3055_v56, %s2916_s30 }
 0x447   : > { %1235 = vrot.lane.b32.xlu0 %v3051_v54, %s2917_s13 }
 0x44a   : > { %1233 = vrot.lane.b32.xlu1 %v3049_v52, %s2917_s13 }
 0x44e   : > { %1237 = vrot.lane.b32.xlu1 %v3058_v57, %s2917_s13 }
 0x4aa   : > { %v703_v11 = vpop.xlane.xlu1 %702 }
 0x4ab   : > { %2843 = vrcp.f32 %v703_v11 }
 0x4ae   : > { %v706_v12 = vpop.xlane.xlu0 %705 }
 0x4af   : > { %2845 = vrcp.f32 %v706_v12 }
 0x4b2   : > { %v709_v13 = vpop.xlane.xlu1 %708 }
 0x4b3   : > { %2847 = vrcp.f32 %v709_v13 }
 0x4b5   : > { %v2844_v14 = vpop.eup %2843 }
 0x4b6   : > { %v713_v15 = vmul.f32 %v2844_v14, %v2832_v46  ;;  %v943_v17 = vpop.xlane.xlu0 %942 }
 0x4b7   : > { %2849 = vrcp.f32 %v943_v17 }
 0x4b8   : > { %2522 = vmatmul.mubr.msk.f32.vlgmr.msra.gmra.mrb[0].mxu0 %vm681_vm5, %v713_v15 }
 0x4b9   : > { %v2846_v16 = vpop.eup %2845  ;;  %2524 = vmatprep.mubr.msk.f32.mxu0 %vm2909_vm2, %v2910_v27 }
 0x4ba   : > { %v946_v18 = vpop.xlane.xlu1 %945  ;;  %v714_v19 = vmul.f32 %v2846_v16, %v2834_v51  ;;  %v961_v31 = vpop.permute.xlu0 %960 }
 0x4bb   : > { %2851 = vrcp.f32 %v946_v18 }
 0x4bc   : > { %2525 = vmatmul.mubr.msk.f32.gmra.mrb[2].mxu0 %vm681_vm5, %v714_v19 }
 0x4bd   : > { %v2848_v20 = vpop.eup %2847  ;;  %2527 = vmatprep.mubr.msk.f32.mxu0 %vm2909_vm2, %v2910_v27 }
 0x4be   : > { %v949_v21 = vpop.xlane.xlu1 %948  ;;  %v715_v22 = vmul.f32 %v2848_v20, %v2836_v60  ;;  %v1244_v55 = vpop.permute.xlu0 %1243 }
 0x4bf   : > { %2853 = vrcp.f32 %v949_v21 }
 0x4c0   : > { %2528 = vmatmul.mubr.msk.f32.gmra.mrb[4].mxu0 %vm681_vm5, %v715_v22 }
 0x4c1   : > { %2551 = vmatprep.mubr.msk.f32.mxu0 %vm2909_vm2, %v2910_v27  ;;  %v2850_v29 = vpop.eup %2849 }
 0x4c2   : > { %v2802_v23 = vpop.permute.xlu1 %2801  ;;  %v953_v30 = vmul.f32 %v2850_v29, %v2838_v3  ;;  %v1236_v60 = vpop.permute.xlu0 %1235 }
 0x4c3   : > { %v2804_v25 = vunpack.i.h.bf16 %v2802_v23  ;;  %v2803_v26 = vunpack.i.l.bf16 %v2802_v23 }
 0x4c5   : > { %v2724_v28 = vpack.c.bf16 %v2804_v25, %v2803_v26  ;;  %v2852_v32 = vpop.eup %2851 }
 0x4c6   : > { %v954_v33 = vmul.f32 %v2852_v32, %v2840_v6  ;;  %v2807_v44 = vpop.permute.xlu1 %2806 }
 0x4c7   : > { %2725 = vmatpush3.bf16.msra.mxu0 %v2724_v28  ;;  %v2809_v45 = vunpack.i.h.bf16 %v2807_v44  ;;  %v2808_v46 = vunpack.i.l.bf16 %v2807_v44 }
 0x4c8   : > { %2549 = vmatprep.subr.mxu0 %v2910_v27 }
 0x4c9   : > { %v2854_v34 = vpop.eup %2853  ;;  %v2727_v47 = vpack.c.bf16 %v2809_v45, %v2808_v46 }
 0x4ca   : > { %v955_v35 = vmul.f32 %v2854_v34, %v2842_v9  ;;  %v1234_v59 = vpop.permute.xlu1 %1233 }
 0x4cb   : > { %2550 = vmatpush3.msk.msra.mxu0 %vm733_vm7, %v961_v31 }
 0x4cc   : > { %2552 = vmatmul.mubr.msk.f32.vlgmr.msra.gmra.mrb[6].mxu0 %vm681_vm5, %v953_v30  ;;  %2571 = vmatprep.subr.mxu0 %v2910_v27 }
 0x4cd   : > { %2554 = vmatprep.mubr.msk.f32.mxu0 %vm2909_vm2, %v2910_v27  ;;  %2572 = vmatpush3.msra.mxu0 %v572_v36 }
 0x4ce   : > { %2730 = vmatprep.subr.bf16.mxu0 %v2908_v24  ;;  %v1238_v61 = vpop.permute.xlu1 %1237 }
 0x4d0   : > { %2555 = vmatmul.mubr.msk.f32.gmra.mrb[8].mxu0 %vm681_vm5, %v954_v33 }
 0x4d1   : > { %2557 = vmatprep.mubr.msk.f32.mxu0 %vm2909_vm2, %v2910_v27 }
 0x4d4   : > { %2558 = vmatmul.mubr.msk.f32.gmra.mrb[10].mxu0 %vm681_vm5, %v955_v35 }
 0x4d5   : > { %2573 = vmatprep.mubr.msk.f32.mxu0 %vm2909_vm2, %v2910_v27 }
 0x58b   : > { %v802_v38 = vpop.f32.mrb[0].mxu0 }
 0x58c   : > { %v2523_v39 = vpop.f32.mrb[1].mxu0  ;;  %2574 = vmatmul.mubr.msk.f32.vlgmr.msra.gmra.mrb[12].mxu0 %vm585_vm3, %v802_v38 }
 0x58d   : > { %2576 = vmatprep.mubr.msk.f32.mxu0 %vm2909_vm2, %v2910_v27 }
 0x58f   : > { %v807_v40 = vpop.f32.mrb[2].mxu0 }
 0x590   : > { %v2526_v41 = vpop.f32.mrb[3].mxu0  ;;  %2577 = vmatmul.mubr.msk.f32.gmra.mrb[14].mxu0 %vm585_vm3, %v807_v40 }
 0x591   : > { %2579 = vmatprep.mubr.msk.f32.mxu0 %vm2909_vm2, %v2910_v27 }
 0x593   : > { %v812_v42 = vpop.f32.mrb[4].mxu0 }
 0x594   : > { %v2529_v43 = vpop.f32.mrb[5].mxu0  ;;  %2580 = vmatmul.mubr.msk.f32.gmra.mrb[16].mxu0 %vm585_vm3, %v812_v42 }
 0x595   : > { %2603 = vmatprep.mubr.msk.f32.mxu0 %vm2909_vm2, %v2910_v27 }
 0x59f   : > { %v1041_v48 = vpop.f32.mrb[6].mxu0 }
 0x5a0   : > { %v2553_v49 = vpop.f32.mrb[7].mxu0  ;;  %2563 = vmatmul.mubr.msk.f32.vlgmr.msra.gmra.mrb[18].mxu1 %vm585_vm3, %v1041_v48 }
 0x5a1   : > { %2729 = vmatpush3.bf16.xpose.msk.msra.mxu1 %vm3068_vm4, %v2727_v47  ;;  %2565 = vmatprep.mubr.msk.f32.mxu1 %vm2909_vm2, %v2910_v27 }
 0x5a2   : > { %2586 = vmatprep.subr.mxu1 %v2910_v27 }
 0x5a3   : > { %v1046_v50 = vpop.f32.mrb[8].mxu0 }
 0x5a4   : > { %v2556_v51 = vpop.f32.mrb[9].mxu0  ;;  %2566 = vmatmul.mubr.msk.f32.gmra.mrb[20].mxu1 %vm585_vm3, %v1046_v50 }
 0x5a5   : > { %2568 = vmatprep.mubr.msk.f32.mxu1 %vm2909_vm2, %v2910_v27 }
 0x5a7   : > { %v1051_v53 = vpop.f32.mrb[10].mxu0 }
 0x5a8   : > { %v2559_v58 = vpop.f32.mrb[11].mxu0  ;;  %2569 = vmatmul.mubr.msk.f32.gmra.mrb[22].mxu1 %vm585_vm3, %v1051_v53 }
 0x5a9   : > { %2587 = vmatpush3.xpose.msk.msra.mxu1 %vm585_vm3, %v1244_v55  ;;  %2588 = vmatprep.mubr.msk.f32.mxu1 %vm2909_vm2, %v2910_v27 }
 0x5aa   : > { %2612 = vmatprep.subr.mxu1 %v2910_v27 }
 0x5ac   : > { %2589 = vmatmul.mubr.msk.f32.vlgmr.msra.gmra.mrb[24].mxu1 %vm585_vm3, %v1234_v59 }
 0x5ad   : > { %2591 = vmatprep.mubr.msk.f32.mxu1 %vm2909_vm2, %v2910_v27 }
 0x5b0   : > { %2592 = vmatmul.mubr.msk.f32.gmra.mrb[26].mxu1 %vm585_vm3, %v1236_v60 }
 0x5b1   : > { %2594 = vmatprep.mubr.msk.f32.mxu1 %vm2909_vm2, %v2910_v27 }
 0x5b4   : > { %2595 = vmatmul.mubr.msk.f32.gmra.mrb[28].mxu1 %vm585_vm3, %v1238_v61 }
 0x5b5   : > { %2614 = vmatprep.mubr.msk.f32.mxu1 %vm2909_vm2, %v2910_v27 }
 0x65f   : > { %v1219_v62 = vpop.f32.mrb[12].mxu0 }
 0x660   : > { %v2575_v0 = vpop.f32.mrb[13].mxu0 }
 0x663   : > { %v1224_v1 = vpop.f32.mrb[14].mxu0 }
 0x664   : > { %v2578_v2 = vpop.f32.mrb[15].mxu0 }
 0x667   : > { %v1229_v3 = vpop.f32.mrb[16].mxu0 }
 0x668   : > { %v2581_v4 = vpop.f32.mrb[17].mxu0 }
 0x673   : > { %v1130_v5 = vpop.f32.mrb[18].mxu1 }
 0x674   : > { %v3188_v6 = vadd.f32 %v1219_v62, %v1130_v5  ;;  %v2564_v7 = vpop.f32.mrb[19].mxu1 }
 0x677   : > { %v1135_v8 = vpop.f32.mrb[20].mxu1 }
 0x678   : > { %v3190_v9 = vadd.f32 %v1224_v1, %v1135_v8  ;;  %v2567_v10 = vpop.f32.mrb[21].mxu1 }
 0x67b   : > { %v1140_v11 = vpop.f32.mrb[22].mxu1 }
 0x67c   : > { %v3192_v12 = vadd.f32 %v1229_v3, %v1140_v11  ;;  %v2570_v13 = vpop.f32.mrb[23].mxu1  ;;  %v574_v3 = vld [vmem:[%s3420_s4 + $0x10] sm:$0xff] }
 0x67d   : > { %2613 = vmatpush3.msra.mxu1 %v574_v3 }
 0x67e   : > { %2758 = vmatprep.subr.bf16.mxu1 %v2908_v24 }
 0x67f   : > { %v1323_v14 = vpop.f32.mrb[24].mxu1 }
 0x680   : > { %v1337_v15 = vmul.f32 0.35355338, %v1323_v14  ;;  %v2590_v16 = vpop.f32.mrb[25].mxu1 }
 0x682   : > { %v1340_v17 = vsel %vm681_vm5, %v1337_v15, -inf }
 0x683   : > { %1341 = vmax.xlane.f32.xlu0 %v1340_v17  ;;  %v1328_v18 = vpop.f32.mrb[26].mxu1 }
 0x684   : > { %v1338_v19 = vmul.f32 0.35355338, %v1328_v18  ;;  %v2593_v20 = vpop.f32.mrb[27].mxu1 }
 0x686   : > { %v1343_v21 = vsel %vm681_vm5, %v1338_v19, -inf }
 0x687   : > { %1344 = vmax.xlane.f32.xlu1 %v1343_v21  ;;  %v1333_v22 = vpop.f32.mrb[28].mxu1 }
 0x688   : > { %v1339_v23 = vmul.f32 0.35355338, %v1333_v22  ;;  %v2596_v25 = vpop.f32.mrb[29].mxu1 }
 0x68a   : > { %v1346_v26 = vsel %vm688_vm6, %v1339_v23, -inf }
 0x68b   : > { %1347 = vmax.xlane.f32.xlu0 %v1346_v26 }
 0x698   : > { %1377 = vrot.lane.b32.xlu1 %v3058_v57, %s2918_s18 }
 0x69c   : > { %2816 = vrot.lane.b32.xlu1 %v3055_v56, %s2919_s19 }
 0x6a0   : > { %1574 = vrot.lane.b32.xlu1 %v3058_v57, %s2919_s19 }
 0x710   : > { %v1342_v28 = vpop.xlane.xlu0 %1341 }
 0x711   : > { %v1349_v29 = vsub.f32 %v1337_v15, %v1342_v28 }
 0x713   : > { %v1352_v30 = vmul.f32 1.442695, %v1349_v29 }
 0x714   : > { %v1345_v31 = vpop.xlane.xlu1 %1344 }
 0x715   : > { %2855 = vpow2.f32 %v1352_v30  ;;  %v1350_v32 = vsub.f32 %v1338_v19, %v1345_v31 }
 0x717   : > { %v1354_v33 = vmul.f32 1.442695, %v1350_v32 }
 0x718   : > { %v1348_v34 = vpop.xlane.xlu0 %1347  ;;  %v1378_v43 = vpop.permute.xlu1 %1377 }
 0x719   : > { %2857 = vpow2.f32 %v1354_v33  ;;  %v1351_v35 = vsub.f32 %v1339_v23, %v1348_v34 }
 0x71b   : > { %v1356_v36 = vmul.f32 1.442695, %v1351_v35 }
 0x71c   : > { %v2817_v44 = vpop.permute.xlu1 %2816 }
 0x71d   : > { %2859 = vpow2.f32 %v1356_v36  ;;  %v2819_v58 = vunpack.i.h.bf16 %v2817_v44  ;;  %v2818_v59 = vunpack.i.l.bf16 %v2817_v44 }
 0x71f   : > { %v2856_v37 = vpop.eup %2855  ;;  %v2734_v62 = vpack.c.bf16 %v2819_v58, %v2818_v59 }
 0x720   : > { %v1358_v38 = vsel %vm681_vm5, %v2856_v37, 0.0  ;;  %v1575_v46 = vpop.permute.xlu1 %1574 }
 0x721   : > { %1359 = vadd.xlane.f32.xlu0 %v1358_v38 }
 0x723   : > { %v2858_v39 = vpop.eup %2857 }
 0x724   : > { %v1361_v40 = vsel %vm681_vm5, %v2858_v39, 0.0 }
 0x725   : > { %1362 = vadd.xlane.f32.xlu0 %v1361_v40 }
 0x727   : > { %v2860_v41 = vpop.eup %2859 }
 0x728   : > { %v1364_v42 = vsel %vm688_vm6, %v2860_v41, 0.0 }
 0x729   : > { %1365 = vadd.xlane.f32.xlu1 %v1364_v42 }
 0x73a   : > { %1566 = vrot.lane.b32.xlu1 %v3051_v54, %s2920_s20 }
 0x73b   : > { %2811 = vrot.lane.b32.xlu0 %v3055_v56, %s2918_s18 }
 0x73f   : > { %1564 = vrot.lane.b32.xlu0 %v3049_v52, %s2920_s20 }
 0x743   : > { %1568 = vrot.lane.b32.xlu0 %v3058_v57, %s2920_s20 }
 0x7ae   : > { %v1360_v45 = vpop.xlane.xlu0 %1359 }
 0x7af   : > { %2861 = vrcp.f32 %v1360_v45 }
 0x7b2   : > { %v1363_v47 = vpop.xlane.xlu0 %1362 }
 0x7b3   : > { %2863 = vrcp.f32 %v1363_v47 }
 0x7b6   : > { %v1366_v48 = vpop.xlane.xlu1 %1365  ;;  %v2812_v49 = vpop.permute.xlu0 %2811 }
 0x7b7   : > { %v2814_v50 = vunpack.i.h.bf16 %v2812_v49  ;;  %v2813_v51 = vunpack.i.l.bf16 %v2812_v49  ;;  %2865 = vrcp.f32 %v1366_v48 }
 0x7b9   : > { %v2731_v53 = vpack.c.bf16 %v2814_v50, %v2813_v51  ;;  %v2862_v54 = vpop.eup %2861 }
 0x7ba   : > { %v1370_v52 = vmul.f32 %v2862_v54, %v2856_v37  ;;  %v1565_v1 = vpop.permute.xlu0 %1564  ;;  %v1567_v63 = vpop.permute.xlu1 %1566 }
 0x7bb   : > { %2732 = vmatpush3.bf16.msra.mxu0 %v2731_v53 }
 0x7bc   : > { %2601 = vmatprep.subr.mxu0 %v2910_v27 }
 0x7bd   : > { %v2864_v55 = vpop.eup %2863 }
 0x7be   : > { %v1371_v60 = vmul.f32 %v2864_v55, %v2858_v39  ;;  %v1569_v2 = vpop.permute.xlu0 %1568 }
 0x7bf   : > { %2602 = vmatpush3.msk.msra.mxu0 %vm733_vm7, %v1378_v43 }
 0x7c0   : > { %2604 = vmatmul.mubr.msk.f32.vlgmr.msra.gmra.mrb[18].mxu0 %vm681_vm5, %v1370_v52  ;;  %2733 = vmatprep.subr.bf16.mxu0 %v2908_v24 }
 0x7c1   : > { %2606 = vmatprep.mubr.msk.f32.mxu0 %vm2909_vm2, %v2910_v27  ;;  %v2866_v61 = vpop.eup %2865 }
 0x7c2   : > { %v1372_v0 = vmul.f32 %v2866_v61, %v2860_v41 }
 0x7c4   : > { %2607 = vmatmul.mubr.msk.f32.gmra.mrb[20].mxu0 %vm681_vm5, %v1371_v60 }
 0x7c5   : > { %2609 = vmatprep.mubr.msk.f32.mxu0 %vm2909_vm2, %v2910_v27 }
 0x7c6   : > { %2736 = vmatpush3.bf16.xpose.msk.msra.mxu0 %vm3068_vm4, %v2734_v62  ;;  %v575_v62 = vld [vmem:[%s3420_s4 + $0x18] sm:$0xff] }
 0x7c7   : > { %2627 = vmatprep.subr.mxu0 %v2910_v27 }
 0x7c8   : > { %2610 = vmatmul.mubr.msk.f32.gmra.mrb[22].mxu0 %vm681_vm5, %v1372_v0 }
 0x7c9   : > { %2629 = vmatprep.mubr.msk.f32.mxu0 %vm2909_vm2, %v2910_v27 }
 0x7ce   : > { %2628 = vmatpush3.xpose.msk.msra.mxu0 %vm585_vm3, %v1575_v46 }
 0x7cf   : > { %2737 = vmatprep.subr.bf16.mxu0 %v2908_v24 }
 0x7d1   : > { %2630 = vmatmul.mubr.msk.f32.vlgmr.msra.gmra.mrb[24].mxu0 %vm585_vm3, %v1565_v1 }
 0x7d2   : > { %2632 = vmatprep.mubr.msk.f32.mxu0 %vm2909_vm2, %v2910_v27 }
 0x7d5   : > { %2633 = vmatmul.mubr.msk.f32.gmra.mrb[26].mxu0 %vm585_vm3, %v1567_v63 }
 0x7d6   : > { %2635 = vmatprep.mubr.msk.f32.mxu0 %vm2909_vm2, %v2910_v27 }
 0x7d9   : > { %2636 = vmatmul.mubr.msk.f32.gmra.mrb[28].mxu0 %vm585_vm3, %v1569_v2 }
 0x7da   : > { %2644 = vmatprep.mubr.msk.f32.mxu0 %vm2909_vm2, %v2910_v27 }
 0x893   : > { %v1458_v4 = vpop.f32.mrb[18].mxu0 }
 0x894   : > { %v2605_v5 = vpop.f32.mrb[19].mxu0  ;;  %2615 = vmatmul.mubr.msk.f32.vlgmr.msra.gmra.mrb[30].mxu1 %vm585_vm3, %v1458_v4 }
 0x895   : > { %2617 = vmatprep.mubr.msk.f32.mxu1 %vm2909_vm2, %v2910_v27 }
 0x897   : > { %v1463_v7 = vpop.f32.mrb[20].mxu0 }
 0x898   : > { %v2608_v8 = vpop.f32.mrb[21].mxu0  ;;  %2618 = vmatmul.mubr.msk.f32.gmra.mrb[32].mxu1 %vm585_vm3, %v1463_v7 }
 0x899   : > { %2620 = vmatprep.mubr.msk.f32.mxu1 %vm2909_vm2, %v2910_v27 }
 0x89b   : > { %v1468_v10 = vpop.f32.mrb[22].mxu0 }
 0x89c   : > { %v2611_v11 = vpop.f32.mrb[23].mxu0  ;;  %2621 = vmatmul.mubr.msk.f32.gmra.mrb[34].mxu1 %vm585_vm3, %v1468_v10  ;;  %v2381_v10 = vld [vmem:[%s3421_s5] ss:$0 sm:$0xff] }
 0x89d   : > { %2647 = vmatprep.mubr.msk.f32.mxu1 %vm2909_vm2, %v2910_v27  ;;  %v2897_v11 = vld [vmem:[%s3003_s26] sm:$0xff] }
 0x8a4   : > { %v1654_v13 = vpop.f32.mrb[24].mxu0 }
 0x8a5   : > { %v1668_v14 = vmul.f32 0.35355338, %v1654_v13  ;;  %v2631_v15 = vpop.f32.mrb[25].mxu0 }
 0x8a7   : > { %v1671_v16 = vsel %vm681_vm5, %v1668_v14, -inf }
 0x8a8   : > { %1672 = vmax.xlane.f32.xlu1 %v1671_v16  ;;  %v1659_v17 = vpop.f32.mrb[26].mxu0 }
 0x8a9   : > { %v1669_v18 = vmul.f32 0.35355338, %v1659_v17  ;;  %v2634_v19 = vpop.f32.mrb[27].mxu0 }
 0x8ab   : > { %v1674_v20 = vsel %vm681_vm5, %v1669_v18, -inf }
 0x8ac   : > { %1675 = vmax.xlane.f32.xlu0 %v1674_v20  ;;  %v1664_v21 = vpop.f32.mrb[28].mxu0 }
 0x8ad   : > { %v1670_v22 = vmul.f32 0.35355338, %v1664_v21  ;;  %v2637_v23 = vpop.f32.mrb[29].mxu0 }
 0x8af   : > { %v1677_v25 = vsel %vm688_vm6, %v1670_v22, -inf }
 0x8b0   : > { %1678 = vmax.xlane.f32.xlu0 %v1677_v25 }
 0x935   : > { %v1673_v26 = vpop.xlane.xlu1 %1672 }
 0x936   : > { %v1680_v28 = vsub.f32 %v1668_v14, %v1673_v26  ;;  %v2899_v26 = vld [vmem:[%s3003_s26 + $0x10] sm:$0x1] }
 0x938   : > { %v1683_v29 = vmul.f32 1.442695, %v1680_v28 }
 0x939   : > { %v1676_v30 = vpop.xlane.xlu0 %1675 }
 0x93a   : > { %2867 = vpow2.f32 %v1683_v29  ;;  %v1681_v31 = vsub.f32 %v1669_v18, %v1676_v30  ;;  %v2898_v18 = vld [vmem:[%s3003_s26 + $0x8] sm:$0xff] }
 0x93c   : > { %v1685_v32 = vmul.f32 1.442695, %v1681_v31 }
 0x93d   : > { %v1679_v33 = vpop.xlane.xlu0 %1678 }
 0x93e   : > { %2869 = vpow2.f32 %v1685_v32  ;;  %v1682_v34 = vsub.f32 %v1670_v22, %v1679_v33 }
 0x940   : > { %v1687_v35 = vmul.f32 1.442695, %v1682_v34 }
 0x942   : > { %2871 = vpow2.f32 %v1687_v35 }
 0x944   : > { %v2868_v36 = vpop.eup %2867 }
 0x945   : > { %v1689_v37 = vsel %vm681_vm5, %v2868_v36, 0.0 }
 0x946   : > { %1690 = vadd.xlane.f32.xlu0 %v1689_v37 }
 0x948   : > { %v2870_v38 = vpop.eup %2869 }
 0x949   : > { %v1692_v39 = vsel %vm681_vm5, %v2870_v38, 0.0 }
 0x94a   : > { %1693 = vadd.xlane.f32.xlu1 %v1692_v39 }
 0x94c   : > { %v2872_v40 = vpop.eup %2871 }
 0x94d   : > { %v1695_v41 = vsel %vm688_vm6, %v2872_v40, 0.0 }
 0x94e   : > { %1696 = vadd.xlane.f32.xlu0 %v1695_v41 }
 0x95b   : > { %2821 = vrot.lane.b32.xlu1 %v3055_v56, %s2921_s27 }
 0x964   : > { %1708 = vrot.lane.b32.xlu0 %v3058_v57, %s2921_s27 }
 0x967   : > { %v1547_v42 = vpop.f32.mrb[30].mxu1 }
 0x968   : > { %v1561_v43 = vadd.f32 %v1547_v42, %v3188_v6  ;;  %v2616_v44 = vpop.f32.mrb[31].mxu1 }
 0x96b   : > { %v1552_v45 = vpop.f32.mrb[32].mxu1 }
 0x96c   : > { %v1562_v46 = vadd.f32 %v1552_v45, %v3190_v9  ;;  %v2619_v47 = vpop.f32.mrb[33].mxu1 }
 0x96d   : > { %v1967_v47 = vld [vmem:[%s3424_s8] sm:$0xff] }
 0x96f   : > { %v1557_v48 = vpop.f32.mrb[34].mxu1 }
 0x970   : > { %v3257_v49 = vadd.f32 %v1557_v48, %v3192_v12  ;;  %v2622_v50 = vpop.f32.mrb[35].mxu1  ;;  %v1968_v48 = vld [vmem:[%s3424_s8 + $0x8] sm:$0xff] }
 0x971   : > { %v1969_v50 = vld [vmem:[%s3424_s8 + $0x10] sm:$0xff] }
 0x9d3   : > { %v1691_v51 = vpop.xlane.xlu0 %1690 }
 0x9d4   : > { %2873 = vrcp.f32 %v1691_v51  ;;  %v1970_v51 = vld [vmem:[%s3424_s8 + $0x18] sm:$0xff] }
 0x9d7   : > { %v1694_v53 = vpop.xlane.xlu1 %1693 }
 0x9d8   : > { %2875 = vrcp.f32 %v1694_v53  ;;  %v2744_v53 = vpack.c.bf16 %v1970_v51, %v1969_v50 }
 0x9db   : > { %v2822_v56 = vpop.permute.xlu1 %2821  ;;  %v1697_v54 = vpop.xlane.xlu0 %1696 }
 0x9dc   : > { %v2824_v57 = vunpack.i.h.bf16 %v2822_v56  ;;  %v2823_v52 = vunpack.i.l.bf16 %v2822_v56  ;;  %2877 = vrcp.f32 %v1697_v54 }
 0x9de   : > { %v2738_v6 = vpack.c.bf16 %v2824_v57, %v2823_v52  ;;  %v2874_v55 = vpop.eup %2873 }
 0x9df   : > { %v1701_v12 = vmul.f32 %v2874_v55, %v2868_v36  ;;  %v1709_v59 = vpop.permute.xlu0 %1708 }
 0x9e0   : > { %2739 = vmatpush3.bf16.msra.mxu0 %v2738_v6  ;;  %2760 = vmatpush3.bf16.msra.mxu1 %v2738_v6 }
 0x9e1   : > { %2642 = vmatprep.subr.mxu0 %v2910_v27  ;;  %2759 = vmatprep.subr.mxu1 %v2910_v27 }
 0x9e2   : > { %v2876_v9 = vpop.eup %2875 }
 0x9e3   : > { %v1702_v58 = vmul.f32 %v2876_v9, %v2870_v38 }
 0x9e4   : > { %2643 = vmatpush3.msk.msra.mxu0 %vm733_vm7, %v1709_v59  ;;  %2761 = vmatpush3.msk.msra.mxu1 %vm733_vm7, %v1709_v59 }
 0x9e5   : > { %2645 = vmatmul.mubr.msk.f32.vlgmr.msra.gmra.mrb[30].mxu0 %vm681_vm5, %v1701_v12  ;;  %2648 = vmatmul.mubr.msk.f32.vlgmr.msra.gmra.mrb[36].mxu1 %vm681_vm5, %v1702_v58 }
 0x9e6   : > { %v2878_v60 = vpop.eup %2877  ;;  %2650 = vmatprep.mubr.msk.f32.mxu1 %vm2909_vm2, %v2910_v27  ;;  %2653 = vmatprep.subr.mxu0 %v2910_v27 }
 0x9e7   : > { %v1703_v61 = vmul.f32 %v2878_v60, %v2872_v40  ;;  %2655 = vmatprep.mubr.msk.f32.mxu0 %vm2909_vm2, %v2910_v27  ;;  %2740 = vmatprep.subr.bf16.mxu1 %v2908_v24  ;;  %v2382_v60 = vld [vmem:[%s3422_s6] ss:$0 sm:$0xff] }
 0x9e8   : > { %2654 = vmatpush3.msra.mxu0 %v575_v62  ;;  %v2383_v62 = vld [vmem:[%s3423_s7] ss:$0 sm:$0xff] }
 0x9e9   : > { %2651 = vmatmul.mubr.msk.f32.gmra.mrb[38].mxu1 %vm681_vm5, %v1703_v61  ;;  %2746 = vmatprep.subr.bf16.mxu0 %v2908_v24 }
 0x9ea   : > { %2672 = vmatprep.mubr.msk.f32.mxu1 %vm2909_vm2, %v2910_v27 }
 0xab8   : > { %v1789_v0 = vpop.f32.mrb[30].mxu0  ;;  %v1794_v1 = vpop.f32.mrb[36].mxu1 }
 0xab9   : > { %v2646_v63 = vpop.f32.mrb[31].mxu0  ;;  %v2649_v2 = vpop.f32.mrb[37].mxu1  ;;  %2656 = vmatmul.mubr.msk.f32.vlgmr.msra.gmra.mrb[32].mxu0 %vm585_vm3, %v1789_v0 }
 0xaba   : > { %2658 = vmatprep.mubr.msk.f32.mxu0 %vm2909_vm2, %v2910_v27 }
 0xabc   : > { %v1799_v3 = vpop.f32.mrb[38].mxu1 }
 0xabd   : > { %v2652_v4 = vpop.f32.mrb[39].mxu1  ;;  %2659 = vmatmul.mubr.msk.f32.gmra.mrb[34].mxu0 %vm585_vm3, %v1794_v1 }
 0xabe   : > { %2661 = vmatprep.mubr.msk.f32.mxu0 %vm2909_vm2, %v2910_v27 }
 0xac1   : > { %2662 = vmatmul.mubr.msk.f32.gmra.mrb[36].mxu0 %vm585_vm3, %v1799_v3 }
 0xac2   : > { %2697 = vmatprep.mubr.msk.f32.mxu0 %vm2909_vm2, %v2910_v27 }
 0xb8c   : > { %v1878_v5 = vpop.f32.mrb[32].mxu0 }
 0xb8d   : > { %v1892_v7 = vadd.f32 %v1878_v5, %v1561_v43  ;;  %v2657_v8 = vpop.f32.mrb[33].mxu0 }
 0xb8f   : > { %v1895_v13 = vadd.f32 %v2897_v11, %v1892_v7  ;;  %v2148_v11 = vld [vmem:[%s3426_s10] sm:$0xff] }
 0xb90   : > { %v1883_v14 = vpop.f32.mrb[34].mxu0 }
 0xb91   : > { %v3291_v15 = vadd.f32 %v2381_v10, %v1895_v13  ;;  %v1893_v16 = vadd.f32 %v1883_v14, %v1562_v46  ;;  %v2660_v17 = vpop.f32.mrb[35].mxu0  ;;  %v2149_v13 = vld [vmem:[%s3426_s10 + $0x8] sm:$0xff] }
 0xb92   : > { %v2747_v14 = vpack.c.bf16 %v2149_v13, %v2148_v11  ;;  %v2151_v17 = vld [vmem:[%s3426_s10 + $0x18] sm:$0xff] }
 0xb93   : > { %v1896_v19 = vadd.f32 %v2898_v18, %v1893_v16  ;;  %v1910_v20 = vsel %vm419_vm0, %v3291_v15, 0.0  ;;  %v2150_v16 = vld [vmem:[%s3426_s10 + $0x10] sm:$0xff] }
 0xb94   : > { %1911 = vadd.xlane.f32.xlu1 %v1910_v20  ;;  %v1888_v21 = vpop.f32.mrb[36].mxu0  ;;  %2748 = vmatpush3.bf16.msra.mxu0 %v2747_v14  ;;  %v2750_v18 = vpack.c.bf16 %v2151_v17, %v2150_v16  ;;  %v2153_v20 = vld [vmem:[%s3426_s10 + $0x28] sm:$0xff] }
 0xb95   : > { %v3296_v22 = vadd.f32 %v2381_v10, %v1896_v19  ;;  %v1894_v23 = vadd.f32 %v1888_v21, %v3257_v49  ;;  %v2663_v25 = vpop.f32.mrb[37].mxu0  ;;  %v2741_v49 = vpack.c.bf16 %v1968_v48, %v1967_v47  ;;  %2749 = vmatprep.subr.bf16.mxu0 %v2908_v24  ;;  %v2152_v19 = vld [vmem:[%s3426_s10 + $0x20] sm:$0xff] }
 0xb96   : > { %v2753_v21 = vpack.c.bf16 %v2153_v20, %v2152_v19  ;;  %v2155_v25 = vld [vmem:[%s3426_s10 + $0x38] sm:$0xff] }
 0xb97   : > { %v1897_v28 = vadd.f32 %v2899_v26, %v1894_v23  ;;  %v1913_v29 = vsel %vm419_vm0, %v3296_v22, 0.0  ;;  %2742 = vmatpush3.bf16.msra.mxu1 %v2741_v49  ;;  %v2154_v23 = vld [vmem:[%s3426_s10 + $0x30] sm:$0xff] }
 0xb98   : > { %1914 = vadd.xlane.f32.xlu0 %v1913_v29  ;;  %2743 = vmatprep.subr.bf16.mxu1 %v2908_v24  ;;  %v2756_v26 = vpack.c.bf16 %v2155_v25, %v2154_v23 }
 0xb99   : > { %v3302_v30 = vadd.f32 %v2381_v10, %v1897_v28  ;;  %2751 = vmatpush3.bf16.msra.mxu0 %v2750_v18  ;;  %v2384_v28 = vld [vmem:[%s3425_s9] ss:$0 sm:$0xff] }
 0xb9a   : > { %2752 = vmatprep.subr.bf16.mxu0 %v2908_v24 }
 0xb9b   : > { %v1916_v31 = vsel %vm426_vm1, %v3302_v30, 0.0  ;;  %2745 = vmatpush3.bf16.msra.mxu1 %v2744_v53 }
 0xb9c   : > { %1917 = vadd.xlane.f32.xlu1 %v1916_v31 }
 0xb9d   : > { %2754 = vmatpush3.bf16.msra.mxu0 %v2753_v21 }
 0xb9e   : > { %2755 = vmatprep.subr.bf16.mxu0 %v2908_v24 }
 0xba1   : > { %2757 = vmatpush3.bf16.msra.mxu0 %v2756_v26 }
 0xc21   : > { %v1912_v32 = vpop.xlane.xlu1 %1911 }
 0xc22   : > { %v1919_v33 = vmul.f32 0.03125, %v1912_v32 }
 0xc24   : > { %v1922_v34 = vsub.f32 %v3291_v15, %v1919_v33 }
 0xc25   : > { %v1915_v35 = vpop.xlane.xlu0 %1914 }
 0xc26   : > { %v1920_v36 = vmul.f32 0.03125, %v1915_v35  ;;  %v1925_v37 = vmul.f32 %v1922_v34, %v1922_v34 }
 0xc28   : > { %v1923_v38 = vsub.f32 %v3296_v22, %v1920_v36  ;;  %v1928_v39 = vsel %vm419_vm0, %v1925_v37, 0.0 }
 0xc29   : > { %1929 = vadd.xlane.f32.xlu0 %v1928_v39  ;;  %v1918_v40 = vpop.xlane.xlu1 %1917 }
 0xc2a   : > { %v1921_v41 = vmul.f32 0.03125, %v1918_v40  ;;  %v1926_v42 = vmul.f32 %v1923_v38, %v1923_v38 }
 0xc2c   : > { %v1924_v43 = vsub.f32 %v3302_v30, %v1921_v41  ;;  %v1931_v44 = vsel %vm419_vm0, %v1926_v42, 0.0 }
 0xc2d   : > { %1932 = vadd.xlane.f32.xlu1 %v1931_v44 }
 0xc2e   : > { %v1927_v45 = vmul.f32 %v1924_v43, %v1924_v43 }
 0xc30   : > { %v1934_v46 = vsel %vm426_vm1, %v1927_v45, 0.0 }
 0xc31   : > { %1935 = vadd.xlane.f32.xlu0 %v1934_v46 }
 0xcb6   : > { %v1930_v56 = vpop.xlane.xlu0 %1929 }
 0xcb7   : > { %v1937_v54 = vmul.f32 0.03125, %v1930_v56 }
 0xcb9   : > { %v1940_v57 = vadd.f32 1e-05, %v1937_v54 }
 0xcba   : > { %v1933_v52 = vpop.xlane.xlu1 %1932 }
 0xcbb   : > { %2879 = vrsqrt.f32 %v1940_v57  ;;  %v1938_v6 = vmul.f32 0.03125, %v1933_v52 }
 0xcbd   : > { %v1941_v55 = vadd.f32 1e-05, %v1938_v6 }
 0xcbe   : > { %v1936_v9 = vpop.xlane.xlu0 %1935 }
 0xcbf   : > { %2881 = vrsqrt.f32 %v1941_v55  ;;  %v1939_v12 = vmul.f32 0.03125, %v1936_v9 }
 0xcc1   : > { %v1942_v58 = vadd.f32 1e-05, %v1939_v12 }
 0xcc3   : > { %2883 = vrsqrt.f32 %v1942_v58 }
 0xcc5   : > { %v2880_v59 = vpop.eup %2879 }
 0xcc6   : > { %v1946_v61 = vmul.f32 %v2880_v59, %v1922_v34 }
 0xcc8   : > { %v1955_v0 = vmul.f32 %v2382_v60, %v1946_v61 }
 0xcc9   : > { %v2882_v1 = vpop.eup %2881 }
 0xcca   : > { %v1964_v63 = vadd.f32 %v2383_v62, %v1955_v0  ;;  %v1947_v2 = vmul.f32 %v2882_v1, %v1923_v38 }
 0xccc   : > { %2673 = vmatmul.mubr.msk.f32.vlgmr.msra.gmra.mrb[40].mxu1 %vm419_vm0, %v1964_v63  ;;  %v1956_v3 = vmul.f32 %v2382_v60, %v1947_v2 }
 0xccd   : > { %v2884_v4 = vpop.eup %2883  ;;  %2675 = vmatprep.mubr.msk.f32.mxu1 %vm2909_vm2, %v2910_v27 }
 0xcce   : > { %v1965_v5 = vadd.f32 %v2383_v62, %v1956_v3  ;;  %v1948_v7 = vmul.f32 %v2884_v4, %v1924_v43 }
 0xcd0   : > { %2676 = vmatmul.mubr.msk.f32.gmra.mrb[42].mxu1 %vm419_vm0, %v1965_v5  ;;  %v1957_v8 = vmul.f32 %v2382_v60, %v1948_v7 }
 0xcd1   : > { %2678 = vmatprep.mubr.msk.f32.mxu1 %vm2909_vm2, %v2910_v27 }
 0xcd2   : > { %v1966_v10 = vadd.f32 %v2383_v62, %v1957_v8 }
 0xcd4   : > { %2679 = vmatmul.mubr.msk.f32.gmra.mrb[44].mxu1 %vm419_vm0, %v1966_v10 }
 0xd9f   : > { %v2053_v29 = vpop.f32.mrb[40].mxu1 }
 0xda0   : > { %v3368_v31 = vadd.f32 %v2384_v28, %v2053_v29  ;;  %v2674_v32 = vpop.f32.mrb[41].mxu1 }
 0xda2   : > { %v3371_v24 = vmul.f32 0.70710677, %v3368_v31 }
 0xda3   : > { %v2058_v33 = vpop.f32.mrb[42].mxu1 }
 0xda4   : > { %v2073_v34 = vand.u32 2147483647, %v3371_v24  ;;  %v3374_v35 = vadd.f32 %v2384_v28, %v2058_v33  ;;  %v2677_v36 = vpop.f32.mrb[43].mxu1  ;;  %vm2133_vm8 = vcmp.ge.f32.partialorder %v3371_v24, 0.0 }
 0xda6   : > { %v2076_v37 = vmul.f32 0.3275911, %v2073_v34  ;;  %v3377_v38 = vmul.f32 0.70710677, %v3374_v35  ;;  %v2115_v49 = vsub.f32 0.0, %v2073_v34 }
 0xda7   : > { %v2063_v39 = vpop.f32.mrb[44].mxu1 }
 0xda8   : > { %v2079_v40 = vadd.f32 1.0, %v2076_v37  ;;  %v2074_v41 = vand.u32 2147483647, %v3377_v38  ;;  %v2680_v42 = vpop.f32.mrb[45].mxu1  ;;  %v3380_v43 = vadd.f32 %v2384_v28, %v2063_v39  ;;  %v2118_v53 = vmul.f32 %v2115_v49, %v2073_v34 }
 0xda9   : > { %vm2134_vm10 = vcmp.ge.f32.partialorder %v3377_v38, 0.0 }
 0xdaa   : > { %2885 = vrcp.f32 %v2079_v40  ;;  %v2077_v44 = vmul.f32 0.3275911, %v2074_v41  ;;  %v3383_v45 = vmul.f32 0.70710677, %v3380_v43  ;;  %v2116_v56 = vsub.f32 0.0, %v2074_v41 }
 0xdab   : > { %v2121_v6 = vmul.f32 1.442695, %v2118_v53  ;;  %v2067_v40 = vmul.f32 0.5, %v3368_v31  ;;  %v2069_v38 = vmul.f32 0.5, %v3380_v43 }
 0xdac   : > { %v2080_v46 = vadd.f32 1.0, %v2077_v44  ;;  %v2075_v47 = vand.u32 2147483647, %v3383_v45  ;;  %v2119_v55 = vmul.f32 %v2116_v56, %v2074_v41  ;;  %vm2135_vm11 = vcmp.ge.f32.partialorder %v3383_v45, 0.0 }
 0xdae   : > { %2887 = vrcp.f32 %v2080_v46  ;;  %v2078_v48 = vmul.f32 0.3275911, %v2075_v47  ;;  %v2117_v58 = vsub.f32 0.0, %v2075_v47  ;;  %v2123_v61 = vmul.f32 1.442695, %v2119_v55 }
 0xdb0   : > { %v2081_v50 = vadd.f32 1.0, %v2078_v48  ;;  %v2120_v63 = vmul.f32 %v2117_v58, %v2075_v47 }
 0xdb2   : > { %2889 = vrcp.f32 %v2081_v50  ;;  %v2125_v10 = vmul.f32 1.442695, %v2120_v63  ;;  %v2068_v50 = vmul.f32 0.5, %v3374_v35 }
 0xdb3   : > { %2891 = vpow2.f32 %v2121_v6 }
 0xdb4   : > { %v2886_v51 = vpop.eup %2885  ;;  %2893 = vpow2.f32 %v2123_v61 }
 0xdb5   : > { %v2088_v54 = vmul.f32 1.0614054, %v2886_v51  ;;  %2895 = vpow2.f32 %v2125_v10 }
 0xdb7   : > { %v2091_v57 = vadd.f32 -1.4531521, %v2088_v54 }
 0xdb8   : > { %v2888_v52 = vpop.eup %2887 }
 0xdb9   : > { %v2094_v9 = vmul.f32 %v2886_v51, %v2091_v57  ;;  %v2089_v12 = vmul.f32 1.0614054, %v2888_v52 }
 0xdbb   : > { %v2097_v59 = vadd.f32 1.4214138, %v2094_v9  ;;  %v2092_v60 = vadd.f32 -1.4531521, %v2089_v12 }
 0xdbc   : > { %v2890_v62 = vpop.eup %2889 }
 0xdbd   : > { %v2100_v0 = vmul.f32 %v2886_v51, %v2097_v59  ;;  %v2095_v1 = vmul.f32 %v2888_v52, %v2092_v60  ;;  %v2090_v2 = vmul.f32 1.0614054, %v2890_v62  ;;  %v2892_v19 = vpop.eup %2891 }
 0xdbe   : > { %v2894_v29 = vpop.eup %2893 }
 0xdbf   : > { %v2103_v3 = vadd.f32 -0.28449672, %v2100_v0  ;;  %v2098_v4 = vadd.f32 1.4214138, %v2095_v1  ;;  %v2093_v5 = vadd.f32 -1.4531521, %v2090_v2  ;;  %v2896_v44 = vpop.eup %2895 }
 0xdc1   : > { %v2106_v7 = vmul.f32 %v2886_v51, %v2103_v3  ;;  %v2101_v8 = vmul.f32 %v2888_v52, %v2098_v4  ;;  %v2096_v11 = vmul.f32 %v2890_v62, %v2093_v5 }
 0xdc3   : > { %v2109_v13 = vadd.f32 0.2548296, %v2106_v7  ;;  %v2104_v14 = vadd.f32 -0.28449672, %v2101_v8  ;;  %v2099_v16 = vadd.f32 1.4214138, %v2096_v11 }
 0xdc5   : > { %v2112_v17 = vmul.f32 %v2886_v51, %v2109_v13  ;;  %v2107_v18 = vmul.f32 %v2888_v52, %v2104_v14  ;;  %v2102_v20 = vmul.f32 %v2890_v62, %v2099_v16 }
 0xdc7   : > { %v2127_v21 = vmul.f32 %v2892_v19, %v2112_v17  ;;  %v2110_v23 = vadd.f32 0.2548296, %v2107_v18  ;;  %v2105_v25 = vadd.f32 -0.28449672, %v2102_v20 }
 0xdc9   : > { %v2130_v26 = vsub.f32 1.0, %v2127_v21  ;;  %v2113_v28 = vmul.f32 %v2888_v52, %v2110_v23  ;;  %v2108_v32 = vmul.f32 %v2890_v62, %v2105_v25  ;;  %v2391_v52 = vld [vmem:[%s3427_s11] ss:$0 sm:$0xff] }
 0xdcb   : > { %v2136_v33 = vsub.f32 0.0, %v2130_v26  ;;  %v2128_v34 = vmul.f32 %v2894_v29, %v2113_v28  ;;  %v2111_v36 = vadd.f32 0.2548296, %v2108_v32 }
 0xdcd   : > { %v2139_v37 = vsel %vm2133_vm8, %v2130_v26, %v2136_v33  ;;  %v2131_v39 = vsub.f32 1.0, %v2128_v34  ;;  %v2114_v42 = vmul.f32 %v2890_v62, %v2111_v36 }
 0xdce   : > { %v2142_v41 = vadd.f32 1.0, %v2139_v37 }
 0xdcf   : > { %v2137_v46 = vsub.f32 0.0, %v2131_v39  ;;  %v2129_v48 = vmul.f32 %v2896_v44, %v2114_v42 }
 0xdd0   : > { %v2145_v47 = vmul.f32 %v2142_v41, %v2067_v40 }
 0xdd1   : > { %v2140_v49 = vsel %vm2134_vm10, %v2131_v39, %v2137_v46  ;;  %v2132_v53 = vsub.f32 1.0, %v2129_v48 }
 0xdd2   : > { %v2143_v51 = vadd.f32 1.0, %v2140_v49  ;;  %2698 = vmatmul.mubr.msk.f32.vlgmr.msra.gmra.mrb[38].mxu0 %vm2156_vm9, %v2145_v47 }
 0xdd3   : > { %2700 = vmatprep.mubr.msk.f32.mxu0 %vm2909_vm2, %v2910_v27  ;;  %v2138_v24 = vsub.f32 0.0, %v2132_v53 }
 0xdd4   : > { %v2146_v31 = vmul.f32 %v2143_v51, %v2068_v50 }
 0xdd5   : > { %v2141_v56 = vsel %vm2135_vm11, %v2132_v53, %v2138_v24 }
 0xdd6   : > { %2701 = vmatmul.mubr.msk.f32.gmra.mrb[40].mxu0 %vm2156_vm9, %v2146_v31  ;;  %v2144_v54 = vadd.f32 1.0, %v2141_v56 }
 0xdd7   : > { %2703 = vmatprep.mubr.msk.f32.mxu0 %vm2909_vm2, %v2910_v27 }
 0xdd8   : > { %v2147_v35 = vmul.f32 %v2144_v54, %v2069_v38 }
 0xdda   : > { %2704 = vmatmul.mubr.msk.f32.gmra.mrb[42].mxu0 %vm2156_vm9, %v2147_v35 }
 0xea5   : > { %v2232_v57 = vpop.f32.mrb[38].mxu0 }
 0xea6   : > { %v2246_v6 = vadd.f32 %v2232_v57, %v3291_v15  ;;  %v2699_v45 = vpop.f32.mrb[39].mxu0 }
 0xea8   : > { %v2256_v43 = vadd.f32 %v2391_v52, %v2246_v6 }
 0xea9   : > { %v2237_v55 = vpop.f32.mrb[40].mxu0 }
 0xeaa   : > { %2259 = vst.msk [vmem:[%s413_s17] sm:$0xff] %vm419_vm0, %v2256_v43  ;;  %v2247_v27 = vadd.f32 %v2237_v55, %v3296_v22  ;;  %v2702_v9 = vpop.f32.mrb[41].mxu0 }
 0xeac   : > { %v2257_v12 = vadd.f32 %v2391_v52, %v2247_v27 }
 0xead   : > { %v2242_v58 = vpop.f32.mrb[42].mxu0 }
 0xeae   : > { %2260 = vst.msk [vmem:[%s413_s17 + $0x8] sm:$0xff] %vm419_vm0, %v2257_v12  ;;  %v2248_v59 = vadd.f32 %v2242_v58, %v3302_v30  ;;  %v2705_v15 = vpop.f32.mrb[43].mxu0 }
 0xeb0   : > { %v2258_v60 = vadd.f32 %v2391_v52, %v2248_v59 }
 0xeb2   : > { %2261 = vst.msk [vmem:[%s413_s17 + $0x10] sm:$0x1] %vm426_vm1, %v2258_v60 }
 0xeb3 PF: > { %s22_s21 = sadd.s32 1, %s2906_s21  }
 0xeb4   : > { %p19_p4 = scmp.ge.s32.totalorder %s22_s21, 4  }
 0xeb6   :  { %21 = sbr.rel (!%p19_p4) target bundleno = 1 (0x1), region = 98 }

// kernel: _lambda_.38
= control target key start
LH: loop header
LB: loop body
LE: loop exit
PB: predicated region body
PF: predicated region fallthrough
CT: control target
= control target key end

     0   :  { %vm23_vm0 = vcmask 254976   ;;  %v174_v7 = vmov 0.0|0.0   ;;  %vm175_vm1 = vmmov 0   ;;  %v176_v11 = vmov 0.0   ;;  %s234_s0 = inlined_call_operand.vmem [shape: f32[2,32], index: 0, kind: input, shape index: {}]   ;;  %s235_s3 = inlined_call_operand.vmem [shape: f32[32,10], index: 3, kind: input, shape index: {}]   ;;  %s236_s1 = inlined_call_operand.vmem [shape: f32[1,32], index: 1, kind: input, shape index: {}]   ;;  %s237_s2 = inlined_call_operand.vmem [shape: f32[1,32], index: 2, kind: input, shape index: {}]   ;;  %s238_s4 = inlined_call_operand.vmem [shape: f32[1,10], index: 4, kind: input, shape index: {}]   ;;  %s239_s5 = inlined_call_operand.vmem [shape: f32[2,10], index: 5, kind: output, shape index: {}]  }
   0x1   :  { %v20_v0 = vld [vmem:[%s234_s0] sm:$0x3]  ;;  %163 = vmatprep.subr.bf16.mxu0 %v174_v7  ;;  %v53_v9 = vld [vmem:[%s235_s3 + $0x8] sm:$0xff]  ;;  %v54_v10 = vld [vmem:[%s235_s3 + $0x10] sm:$0xff]  ;;  %160 = vmatprep.mubr.msk.f32.mxu0 %vm175_vm1, %v176_v11  ;;  %vm63_vm2 = vcmask 261120   ;;  %vm137_vm3 = vcmask 74752  }
   0x2   :  { %v24_v1 = vsel %vm23_vm0, %v20_v0, 0.0  ;;  %v52_v8 = vld [vmem:[%s235_s3] sm:$0xff]  ;;  %v55_v13 = vld [vmem:[%s235_s3 + $0x18] sm:$0xff] }
   0x3   :  { %25 = vadd.xlane.f32.xlu0 %v24_v1  ;;  %v164_v12 = vpack.c.bf16 %v53_v9, %v52_v8  ;;  %v167_v14 = vpack.c.bf16 %v55_v13, %v54_v10  ;;  %v143_v19 = vld [vmem:[%s236_s1] ss:$0 sm:$0xff] }
   0x4   :  { %v144_v21 = vld [vmem:[%s237_s2] ss:$0 sm:$0xff] }
   0x5   :  { %165 = vmatpush3.bf16.msra.mxu0 %v164_v12  ;;  %v145_v24 = vld [vmem:[%s238_s4] ss:$0 sm:$0xff] }
   0x6   :  { %166 = vmatprep.subr.bf16.mxu0 %v174_v7 }
   0x9   :  { %168 = vmatpush3.bf16.msra.mxu0 %v167_v14 }
  0x90   :  { %v26_v2 = vpop.xlane.xlu0 %25 }
  0x91   :  { %v28_v3 = vmul.f32 0.03125, %v26_v2 }
  0x93   :  { %v29_v4 = vsub.f32 %v20_v0, %v28_v3 }
  0x95   :  { %v30_v5 = vmul.f32 %v29_v4, %v29_v4 }
  0x97   :  { %v31_v6 = vsel %vm23_vm0, %v30_v5, 0.0 }
  0x98   :  { %32 = vadd.xlane.f32.xlu0 %v31_v6 }
 0x125   :  { %v33_v15 = vpop.xlane.xlu0 %32 }
 0x126   :  { %v34_v16 = vmul.f32 0.03125, %v33_v15 }
 0x128   :  { %v35_v17 = vadd.f32 1e-05, %v34_v16 }
 0x12a   :  { %172 = vrsqrt.f32 %v35_v17 }
 0x134   :  { %v173_v18 = vpop.eup %172 }
 0x135   :  { %v37_v20 = vmul.f32 %v173_v18, %v29_v4 }
 0x137   :  { %v44_v22 = vmul.f32 %v143_v19, %v37_v20 }
 0x139   :  { %v51_v23 = vadd.f32 %v144_v21, %v44_v22 }
 0x13b   :  { %161 = vmatmul.mubr.msk.f32.vlgmr.msra.gmra.mrb[0].mxu0 %vm63_vm2, %v51_v23 }
 0x20e   :  { %v133_v25 = vpop.f32.mrb[0].mxu0 }
 0x20f   :  { %v134_v26 = vadd.f32 %v145_v24, %v133_v25  ;;  %v162_v27 = vpop.f32.mrb[1].mxu0 }
 0x211   :  { %138 = vst.msk [vmem:[%s239_s5] sm:$0x3] %vm137_vm3, %v134_v26 }

// kernel: _lambda_.24
= control target key start
LH: loop header
LB: loop body
LE: loop exit
PB: predicated region body
PF: predicated region fallthrough
CT: control target
= control target key end

     0   :  { %s3699_s24 = smov 0   ;;  %s4124_s0 = inlined_call_operand.vmem [shape: f32[2,17,32], index: 0, kind: input, shape index: {}]   ;;  %s4125_s1 = inlined_call_operand.vmem [shape: f32[2,5,64], index: 1, kind: input, shape index: {}]   ;;  %s4126_s2 = inlined_call_operand.vmem [shape: f32[1,32], index: 2, kind: input, shape index: {}]   ;;  %s4127_s3 = inlined_call_operand.vmem [shape: f32[1,32], index: 3, kind: input, shape index: {}, may-alias: {3,16}]   ;;  %s4128_s4 = inlined_call_operand.vmem [shape: f32[32,64], index: 4, kind: input, shape index: {}]   ;;  %s4129_s5 = inlined_call_operand.vmem [shape: f32[1,64], index: 5, kind: input, shape index: {}, may-alias: {5,14}]   ;;  %s4130_s6 = inlined_call_operand.vmem [shape: f32[1,1,64], index: 6, kind: input, shape index: {}]   ;;  %s4131_s7 = inlined_call_operand.vmem [shape: f32[1,1,64], index: 7, kind: input, shape index: {}, may-alias: {7,12}]   ;;  %s4132_s8 = inlined_call_operand.vmem [shape: f32[1,64,64], index: 8, kind: input, shape index: {}]   ;;  %s4133_s9 = inlined_call_operand.vmem [shape: f32[1,64,64], index: 9, kind: input, shape index: {}]   ;;  %s4134_s10 = inlined_call_operand.vmem [shape: f32[1,64,64], index: 10, kind: input, shape index: {}]   ;;  %s4135_s11 = inlined_call_operand.vmem [shape: f32[1,64,64], index: 11, kind: input, shape index: {}]   ;;  %s4136_s12 = inlined_call_operand.vmem [shape: f32[1,1,64], index: 12, kind: input, shape index: {}, may-alias: {7,12}]   ;;  %s4137_s13 = inlined_call_operand.vmem [shape: f32[1,64], index: 13, kind: input, shape index: {}]   ;;  %s4138_s14 = inlined_call_operand.vmem [shape: f32[1,64], index: 14, kind: input, shape index: {}, may-alias: {5,14}]   ;;  %s4139_s15 = inlined_call_operand.vmem [shape: f32[64,32], index: 15, kind: input, shape index: {}]   ;;  %s4140_s16 = inlined_call_operand.vmem [shape: f32[1,32], index: 16, kind: input, shape index: {}, may-alias: {3,16}]   ;;  %s4141_s17 = inlined_call_operand.vmem [shape: f32[2,17,32], index: 17, kind: output, shape index: {}]  }
   0x1   :  { %4142 = sst [smem:[#allocation2_spill]] %s4124_s0 }
   0x2   :  { %4143 = sst [smem:[#allocation3_spill]] %s4125_s1 }
   0x3 LB: > { %s3118_s25 = sadd.s32 4294967295, %s3597_s24   ;;  %p3122_p0 = scmp.ge.s32.totalorder %s3597_s24, 1  ;;  %s3597_s24 = sphi %s3699_s24, %s27_s24  }
   0x4   : > { %p496_p1 = scmp.lt.s32.totalorder %s3597_s24, 3 }
   0x6   : > { %p497_p2 = pnand %p3122_p0, %p496_p1 }
   0x7   : > { %p552_p3 = scmp.lt.s32.totalorder (!%p497_p2), %s3118_s25, 1  ;;  %vm572_vm0 = vcmask (!%p497_p2), 253952   ;;  %s4144_s29 = sld [smem:[#allocation2_spill]] (!%p497_p2)  ;;  %v616_v8 = vld [vmem:[%s4128_s4] sm:$0xff] (!%p497_p2)  ;;  %v617_v9 = vld [vmem:[%s4128_s4 + $0x8] sm:$0xff] (!%p497_p2)  ;;  %v618_v10 = vld [vmem:[%s4128_s4 + $0x10] sm:$0xff] (!%p497_p2)  ;;  %v695_v51 = vlaneseq (!%p497_p2) }
   0x8   : > { %500 = sbr.rel (%p497_p2) target bundleno = 6599 (0x19c7), region = 88  ;;  %v3599_v11 = vmov (!%p497_p2), 0.0|0.0   ;;  %v3472_v12 = vpack.c.bf16 (!%p497_p2), %v617_v9, %v616_v8  ;;  %v619_v13 = vld [vmem:[%s4128_s4 + $0x18] sm:$0xff] (!%p497_p2)  ;;  %vm3600_vm1 = vmmov (!%p497_p2), 0   ;;  %v3601_v14 = vmov (!%p497_p2), 0.0   ;;  %s4145_s27 = sld [smem:[#allocation3_spill]] (!%p497_p2) }
   0x9   : > { %3471 = vmatprep.subr.bf16.mxu1 (!%p497_p2), %v3599_v11  ;;  %3272 = vmatprep.mubr.msk.f32.mxu1 (!%p497_p2), %vm3600_vm1, %v3601_v14  ;;  %v3475_v15 = vpack.c.bf16 (!%p497_p2), %v619_v13, %v618_v10  ;;  %vm621_vm2 = vcmask (!%p497_p2), 261120   ;;  %v570_v21 = vld [vmem:[%s4126_s2] sm:$0x1] (!%p497_p2)  ;;  %v3755_v52 = vshrl.u32 (!%p497_p2), %v695_v51, 7  ;;  %vm705_vm5 = vcmask (!%p497_p2), 520192   ;;  %v736_v9 = vld [vmem:[%s4132_s8 + $0x10] sm:$0xff] (!%p497_p2) }
   0xa   : > { %3489 = vmatprep.subr.bf16.mxu0 (!%p497_p2), %v3599_v11  ;;  %3310 = vmatprep.mubr.msk.f32.mxu0 (!%p497_p2), %vm3600_vm1, %v3601_v14  ;;  %v571_v23 = vld [vmem:[%s4127_s3] sm:$0x1] (!%p497_p2)  ;;  %v737_v10 = vld [vmem:[%s4132_s8 + $0x18] sm:$0xff] (!%p497_p2)  ;;  %v818_v13 = vld [vmem:[%s4133_s9 + $0x10] sm:$0xff] (!%p497_p2)  ;;  %vm742_vm6 = vcmask (!%p497_p2), 523264   ;;  %vm980_vm7 = vcmask (!%p497_p2), 64512  }
   0xb   : > { %3473 = vmatpush3.bf16.msra.mxu1 (!%p497_p2), %v3472_v12  ;;  %v620_v53 = vld [vmem:[%s4129_s5] sm:$0x1] (!%p497_p2)  ;;  %v700_v54 = vsub.s32 (!%p497_p2), 0, %v3755_v52  ;;  %vm697_vm4 = vcmp.eq.s32.totalorder (!%p497_p2), %v3755_v52, 0  ;;  %v3481_v12 = vpack.c.bf16 (!%p497_p2), %v737_v10, %v736_v9  ;;  %vm1074_vm8 = vcmask (!%p497_p2), 1044480   ;;  %s3602_s1 = smov (!%p497_p2), 120  }
   0xc   : > { %3474 = vmatprep.subr.bf16.mxu1 (!%p497_p2), %v3599_v11  ;;  %vm1058_vm9 = vcmask (!%p497_p2), 32768   ;;  %vm1070_vm10 = vcmask (!%p497_p2), 39936   ;;  %s3607_s22 = smov (!%p497_p2), 80   ;;  %vm2912_vm11 = vcmask (!%p497_p2), 516096  }
   0xf   : > { %s4147_s25 = smov (!%p552_p3, %s3118_s25), 1  ;;  %3476 = vmatpush3.bf16.msra.mxu1 %v3475_v15  ;;  %v819_v15 = vld [vmem:[%s4133_s9 + $0x18] sm:$0xff] }
  0x10   : > { %s3525_s26 = smul.u32 24, %s4147_s25  ;;  %3477 = vmatprep.subr.bf16.mxu1 %v3599_v11  ;;  %s3124_s20 = sshll.u32 %s4147_s25, 3 }
  0x11   : > { %s560_s28 = scalar_lea.vmem %s4145_s27, %s3124_s20  ;;  %s3603_s20 = smov 112  }
  0x12   : > { %s3713_s0 = scalar_lea.vmem %s4144_s29, %s3525_s26  ;;  %s3718_s19 = scalar_lea.vmem %s4141_s17, %s3525_s26  ;;  %v569_v58 = vld [vmem:[%s560_s28] sm:$0x1f] }
  0x13   : > { %v566_v0 = vld [vmem:[%s3713_s0] sm:$0xff]  ;;  %v568_v1 = vld [vmem:[%s3713_s0 + $0x10] sm:$0x1]  ;;  %v567_v16 = vld [vmem:[%s3713_s0 + $0x8] sm:$0xff]  ;;  %s3604_s27 = smov 104   ;;  %s3605_s29 = smov 96  }
  0x14   : > { %v573_v2 = vsel %vm572_vm0, %v566_v0, 0.0  ;;  %3050 = vst.msk [vmem:[%s3718_s19 + $0x10] sm:$0x1] %vm572_vm0, %v568_v1 }
  0x15   : > { %574 = vadd.xlane.f32.xlu0 %v573_v2  ;;  %3049 = vst.msk [vmem:[%s3718_s19 + $0x8] sm:$0xff] %vm621_vm2, %v567_v16  ;;  %v3493_v16 = vpack.c.bf16 %v819_v15, %v818_v13 }
  0xa2   : > { %v575_v3 = vpop.xlane.xlu0 %574 }
  0xa3   : > { %v577_v4 = vmul.f32 0.03125, %v575_v3  ;;  %v734_v3 = vld [vmem:[%s4132_s8] sm:$0xff] }
  0xa5   : > { %v578_v5 = vsub.f32 %v566_v0, %v577_v4  ;;  %v735_v4 = vld [vmem:[%s4132_s8 + $0x8] sm:$0xff] }
  0xa7   : > { %v579_v6 = vmul.f32 %v578_v5, %v578_v5 }
  0xa9   : > { %v580_v7 = vsel %vm572_vm0, %v579_v6, 0.0  ;;  %v816_v6 = vld [vmem:[%s4133_s9] sm:$0xff] }
  0xaa   : > { %581 = vadd.xlane.f32.xlu0 %v580_v7  ;;  %v817_v7 = vld [vmem:[%s4133_s9 + $0x8] sm:$0xff] }
  0xab   : > { %v3490_v8 = vpack.c.bf16 %v817_v7, %v816_v6 }
  0xad   : > { %3491 = vmatpush3.bf16.msra.mxu0 %v3490_v8 }
  0xae   : > { %3492 = vmatprep.subr.bf16.mxu0 %v3599_v11 }
  0xb1   : > { %3494 = vmatpush3.bf16.msra.mxu0 %v3493_v16 }
  0xb2   : > { %3495 = vmatprep.subr.bf16.mxu0 %v3599_v11 }
 0x137   : > { %v582_v17 = vpop.xlane.xlu0 %581 }
 0x138   : > { %v583_v18 = vmul.f32 0.03125, %v582_v17  ;;  %v738_v17 = vld [vmem:[%s4132_s8 + $0x20] sm:$0xff] }
 0x13a   : > { %v584_v19 = vadd.f32 1e-05, %v583_v18  ;;  %v739_v18 = vld [vmem:[%s4132_s8 + $0x28] sm:$0xff] }
 0x13c   : > { %3544 = vrsqrt.f32 %v584_v19  ;;  %v3484_v19 = vpack.c.bf16 %v739_v18, %v738_v17 }
 0x146   : > { %v3545_v20 = vpop.eup %3544 }
 0x147   : > { %v586_v22 = vmul.f32 %v3545_v20, %v578_v5  ;;  %v3478_v5 = vpack.c.bf16 %v735_v4, %v734_v3  ;;  %v820_v20 = vld [vmem:[%s4133_s9 + $0x20] sm:$0xff] }
 0x149   : > { %v587_v24 = vmul.f32 %v586_v22, %v570_v21  ;;  %v821_v21 = vld [vmem:[%s4133_s9 + $0x28] sm:$0xff] }
 0x14a   : > { %v3496_v22 = vpack.c.bf16 %v821_v21, %v820_v20 }
 0x14b   : > { %v588_v25 = vadd.f32 %v587_v24, %v571_v23  ;;  %v740_v23 = vld [vmem:[%s4132_s8 + $0x30] sm:$0xff]  ;;  %v741_v24 = vld [vmem:[%s4132_s8 + $0x38] sm:$0xff] }
 0x14c   : > { %3497 = vmatpush3.bf16.msra.mxu0 %v3496_v22  ;;  %v973_v22 = vld [vmem:[%s4135_s11 + $0x8] sm:$0xff] }
 0x14d   : > { %v590_v26 = vmul.f32 0.70710677, %v588_v25  ;;  %v589_v48 = vmul.f32 0.5, %v588_v25  ;;  %v3487_v25 = vpack.c.bf16 %v741_v24, %v740_v23  ;;  %3498 = vmatprep.subr.bf16.mxu0 %v3599_v11 }
 0x14f   : > { %v591_v27 = vand.u32 2147483647, %v590_v26  ;;  %vm611_vm3 = vcmp.ge.f32.partialorder %v590_v26, 0.0  ;;  %v822_v26 = vld [vmem:[%s4133_s9 + $0x30] sm:$0xff] }
 0x151   : > { %v592_v28 = vmul.f32 0.3275911, %v591_v27  ;;  %v605_v30 = vsub.f32 0.0, %v591_v27 }
 0x153   : > { %v593_v29 = vadd.f32 1.0, %v592_v28  ;;  %v606_v32 = vmul.f32 %v605_v30, %v591_v27  ;;  %v823_v27 = vld [vmem:[%s4133_s9 + $0x38] sm:$0xff] }
 0x154   : > { %v3499_v28 = vpack.c.bf16 %v823_v27, %v822_v26  ;;  %v972_v27 = vld [vmem:[%s4135_s11] sm:$0xff] }
 0x155   : > { %3546 = vrcp.f32 %v593_v29  ;;  %v607_v35 = vmul.f32 1.442695, %v606_v32 }
 0x156   : > { %3500 = vmatpush3.bf16.msra.mxu0 %v3499_v28 }
 0x157   : > { %3548 = vpow2.f32 %v607_v35  ;;  %3332 = vmatprep.subr.mxu0 %v3601_v14  ;;  %v894_v35 = vld [vmem:[%s4134_s10] sm:$0xff] }
 0x15f   : > { %v3547_v31 = vpop.eup %3546 }
 0x160   : > { %v596_v33 = vmul.f32 1.0614054, %v3547_v31 }
 0x161   : > { %v3549_v43 = vpop.eup %3548 }
 0x162   : > { %v597_v34 = vadd.f32 -1.4531521, %v596_v33  ;;  %v3127_v33 = vld [vmem:[%s4130_s6] ss:$0 sm:$0xff] }
 0x164   : > { %v598_v36 = vmul.f32 %v3547_v31, %v597_v34 }
 0x166   : > { %v599_v37 = vadd.f32 1.4214138, %v598_v36  ;;  %v895_v36 = vld [vmem:[%s4134_s10 + $0x8] sm:$0xff] }
 0x168   : > { %v600_v38 = vmul.f32 %v3547_v31, %v599_v37  ;;  %v3128_v37 = vld [vmem:[%s4131_s7] ss:$0 sm:$0xff] }
 0x16a   : > { %v601_v39 = vadd.f32 -0.28449672, %v600_v38 }
 0x16c   : > { %v602_v40 = vmul.f32 %v3547_v31, %v601_v39  ;;  %v3502_v39 = vpack.c.bf16 %v895_v36, %v894_v35 }
 0x16e   : > { %v603_v41 = vadd.f32 0.2548296, %v602_v40 }
 0x170   : > { %v604_v42 = vmul.f32 %v3547_v31, %v603_v41  ;;  %v896_v41 = vld [vmem:[%s4134_s10 + $0x10] sm:$0xff] }
 0x172   : > { %v609_v44 = vmul.f32 %v3549_v43, %v604_v42  ;;  %v897_v42 = vld [vmem:[%s4134_s10 + $0x18] sm:$0xff] }
 0x173   : > { %v3505_v43 = vpack.c.bf16 %v897_v42, %v896_v41 }
 0x174   : > { %v610_v45 = vsub.f32 1.0, %v609_v44  ;;  %v898_v44 = vld [vmem:[%s4134_s10 + $0x20] sm:$0xff] }
 0x176   : > { %v612_v46 = vsub.f32 0.0, %v610_v45 }
 0x178   : > { %v613_v47 = vsel %vm611_vm3, %v610_v45, %v612_v46  ;;  %v899_v45 = vld [vmem:[%s4134_s10 + $0x28] sm:$0xff] }
 0x179   : > { %v614_v49 = vadd.f32 1.0, %v613_v47  ;;  %v3508_v46 = vpack.c.bf16 %v899_v45, %v898_v44  ;;  %v900_v47 = vld [vmem:[%s4134_s10 + $0x30] sm:$0xff] }
 0x17b   : > { %v615_v50 = vmul.f32 %v614_v49, %v589_v48  ;;  %v901_v48 = vld [vmem:[%s4134_s10 + $0x38] sm:$0xff] }
 0x17c   : > { %v3511_v49 = vpack.c.bf16 %v901_v48, %v900_v47 }
 0x17d   : > { %3273 = vmatmul.mubr.msk.f32.vlgmr.msra.gmra.mrb[0].mxu1 %vm621_vm2, %v615_v50 }
 0x17e   : > { %3291 = vmatprep.mubr.msk.f32.mxu1 %vm3600_vm1, %v3601_v14  ;;  %3479 = vmatpush3.bf16.msra.mxu1 %v3478_v5 }
 0x17f   : > { %3480 = vmatprep.subr.bf16.mxu1 %v3599_v11 }
 0x182   : > { %3482 = vmatpush3.bf16.msra.mxu1 %v3481_v12 }
 0x183   : > { %3483 = vmatprep.subr.bf16.mxu1 %v3599_v11 }
 0x186   : > { %3485 = vmatpush3.bf16.msra.mxu1 %v3484_v19 }
 0x187   : > { %3486 = vmatprep.subr.bf16.mxu1 %v3599_v11 }
 0x18a   : > { %3488 = vmatpush3.bf16.msra.mxu1 %v3487_v25 }
 0x18b   : > { %3501 = vmatprep.subr.bf16.mxu1 %v3599_v11 }
 0x250   : > { %v691_v55 = vpop.f32.mrb[0].mxu1 }
 0x251   : > { %v692_v56 = vadd.f32 %v691_v55, %v620_v53  ;;  %v3274_v57 = vpop.f32.mrb[1].mxu1 }
 0x253   : > { %v701_v59 = vrot.slane %v692_v56, %v700_v54 }
 0x255   : > { %v3770_v60 = vsel %vm697_vm4, %v701_v59, %v569_v58 }
 0x256   : > { %v706_v61 = vsel %vm705_vm5, %v3770_v60, 0.0 }
 0x257   : > { %707 = vadd.xlane.f32.xlu1 %v706_v61 }
 0x2e4   : > { %v708_v62 = vpop.xlane.xlu1 %707 }
 0x2e5   : > { %v710_v63 = vmul.f32 0.015625, %v708_v62 }
 0x2e7   : > { %v711_v0 = vsub.f32 %v3770_v60, %v710_v63 }
 0x2e9   : > { %v712_v1 = vmul.f32 %v711_v0, %v711_v0 }
 0x2eb   : > { %v713_v2 = vsel %vm705_vm5, %v712_v1, 0.0 }
 0x2ec   : > { %714 = vadd.xlane.f32.xlu1 %v713_v2 }
 0x379   : > { %v715_v29 = vpop.xlane.xlu1 %714 }
 0x37a   : > { %v716_v30 = vmul.f32 0.015625, %v715_v29 }
 0x37c   : > { %v717_v31 = vadd.f32 1e-05, %v716_v30 }
 0x37e   : > { %3550 = vrsqrt.f32 %v717_v31 }
 0x388   : > { %v3551_v32 = vpop.eup %3550 }
 0x389   : > { %v719_v34 = vmul.f32 %v3551_v32, %v711_v0 }
 0x38b   : > { %v726_v38 = vmul.f32 %v3127_v33, %v719_v34 }
 0x38d   : > { %v733_v40 = vadd.f32 %v3128_v37, %v726_v38 }
 0x38f   : > { %3292 = vmatmul.mubr.msk.f32.vlgmr.msra.gmra.mrb[2].mxu1 %vm742_vm6, %v733_v40  ;;  %3311 = vmatmul.mubr.msk.f32.vlgmr.msra.gmra.mrb[0].mxu0 %vm742_vm6, %v733_v40 }
 0x390   : > { %3503 = vmatpush3.bf16.msra.mxu1 %v3502_v39  ;;  %3329 = vmatprep.mubr.msk.f32.mxu1 %vm3600_vm1, %v3601_v14 }
 0x391   : > { %3504 = vmatprep.subr.bf16.mxu1 %v3599_v11  ;;  %3334 = vmatprep.mubr.msk.f32.mxu0 %vm3600_vm1, %v3601_v14 }
 0x394   : > { %3506 = vmatpush3.bf16.msra.mxu1 %v3505_v43 }
 0x395   : > { %3507 = vmatprep.subr.bf16.mxu1 %v3599_v11 }
 0x398   : > { %3509 = vmatpush3.bf16.msra.mxu1 %v3508_v46 }
 0x399   : > { %3510 = vmatprep.subr.bf16.mxu1 %v3599_v11 }
 0x39c   : > { %3512 = vmatpush3.bf16.msra.mxu1 %v3511_v49 }
 0x39d   : > { %3347 = vmatprep.subr.mxu1 %v3601_v14 }
 0x39f   : > { %3330 = vmatmul.mubr.msk.f32.vlgmr.msra.gmra.mrb[4].mxu1 %vm742_vm6, %v733_v40 }
 0x3a0   : > { %3349 = vmatprep.mubr.msk.f32.mxu1 %vm3600_vm1, %v3601_v14 }
 0x462   : > { %v3873_v50 = vpop.f32.mrb[2].mxu1  ;;  %v3875_v51 = vpop.f32.mrb[0].mxu0 }
 0x463   : > { %v3293_v53 = vpop.f32.mrb[3].mxu1  ;;  %v3312_v55 = vpop.f32.mrb[1].mxu0  ;;  %3333 = vmatpush3.xpose.msk.msra.mxu0 %vm980_vm7, %v3875_v51 }
 0x464   : > { %3337 = vmatprep.subr.mxu0 %v3601_v14 }
 0x466   : > { %3335 = vmatmul.mubr.msk.f32.vlgmr.msra.gmra.mrb[2].mxu0 %vm980_vm7, %v3873_v50 }
 0x467   : > { %3339 = vmatprep.mubr.msk.f32.mxu0 %vm3600_vm1, %v3601_v14 }
 0x472   : > { %v3884_v56 = vpop.f32.mrb[4].mxu1 }
 0x473   : > { %v3331_v57 = vpop.f32.mrb[5].mxu1  ;;  %3338 = vmatpush3.msk.msra.mxu0 %vm1074_vm8, %v3884_v56 }
 0x474   : > { %3342 = vmatprep.subr.mxu0 %v3601_v14  ;;  %v974_v57 = vld [vmem:[%s4135_s11 + $0x10] sm:$0xff] }
 0x539   : > { %v1053_v58 = vpop.f32.mrb[2].mxu0 }
 0x53a   : > { %v1057_v59 = vmul.f32 0.35355338, %v1053_v58  ;;  %v3336_v61 = vpop.f32.mrb[3].mxu0 }
 0x53c   : > { %v1059_v62 = vsel %vm1058_vm9, %v1057_v59, -inf }
 0x53d   : > { %1060 = vmax.xlane.f32.xlu0 %v1059_v62 }
 0x553   : > { %1150 = vrot.lane.b32.xlu0 %v3875_v51, %s3602_s1 }
 0x5ca   : > { %v1061_v63 = vpop.xlane.xlu0 %1060 }
 0x5cb   : > { %v1062_v0 = vsub.f32 %v1057_v59, %v1061_v63 }
 0x5cd   : > { %v1063_v1 = vmul.f32 1.442695, %v1062_v0 }
 0x5ce   : > { %v1151_v7 = vpop.permute.xlu0 %1150 }
 0x5cf   : > { %3552 = vpow2.f32 %v1063_v1 }
 0x5d9   : > { %v3553_v2 = vpop.eup %3552 }
 0x5da   : > { %v1065_v3 = vsel %vm1058_vm9, %v3553_v2, 0.0 }
 0x5db   : > { %1066 = vadd.xlane.f32.xlu1 %v1065_v3 }
 0x5ec   : > { %1148 = vrot.lane.b32.xlu1 %v3873_v50, %s3602_s1 }
 0x668   : > { %v1067_v4 = vpop.xlane.xlu1 %1066 }
 0x669   : > { %3554 = vrcp.f32 %v1067_v4 }
 0x66c   : > { %v1149_v8 = vpop.permute.xlu1 %1148 }
 0x673   : > { %v3555_v5 = vpop.eup %3554 }
 0x674   : > { %v1069_v6 = vmul.f32 %v3555_v5, %v3553_v2 }
 0x676   : > { %3340 = vmatmul.mubr.msk.f32.vlgmr.msra.gmra.mrb[4].mxu0 %vm1070_vm10, %v1069_v6 }
 0x677   : > { %3343 = vmatpush3.xpose.msk.msra.mxu0 %vm980_vm7, %v1151_v7  ;;  %3344 = vmatprep.mubr.msk.f32.mxu0 %vm3600_vm1, %v3601_v14 }
 0x678   : > { %3352 = vmatprep.subr.mxu0 %v3601_v14 }
 0x67a   : > { %3345 = vmatmul.mubr.msk.f32.vlgmr.msra.gmra.mrb[6].mxu0 %vm980_vm7, %v1149_v8 }
 0x67b   : > { %3354 = vmatprep.mubr.msk.f32.mxu0 %vm3600_vm1, %v3601_v14  ;;  %3353 = vmatpush3.msra.mxu0 %v973_v22 }
 0x67c   : > { %3362 = vmatprep.subr.mxu0 %v3601_v14 }
 0x749   : > { %v1144_v9 = vpop.f32.mrb[4].mxu0 }
 0x74a   : > { %v3341_v10 = vpop.f32.mrb[5].mxu0 }
 0x74d   : > { %v1222_v12 = vpop.f32.mrb[6].mxu0 }
 0x74e   : > { %v1226_v13 = vmul.f32 0.35355338, %v1222_v12  ;;  %v3346_v15 = vpop.f32.mrb[7].mxu0 }
 0x750   : > { %v1227_v16 = vsel %vm1058_vm9, %v1226_v13, -inf }
 0x751   : > { %1228 = vmax.xlane.f32.xlu1 %v1227_v16 }
 0x762   : > { %1463 = vrot.lane.b32.xlu1 %v3875_v51, %s3603_s20 }
 0x766   : > { %1461 = vrot.lane.b32.xlu1 %v3873_v50, %s3603_s20 }
 0x7de   : > { %v1229_v17 = vpop.xlane.xlu1 %1228 }
 0x7df   : > { %v1230_v18 = vsub.f32 %v1226_v13, %v1229_v17  ;;  %v975_v17 = vld [vmem:[%s4135_s11 + $0x18] sm:$0xff] }
 0x7e1   : > { %v1231_v19 = vmul.f32 1.442695, %v1230_v18 }
 0x7e2   : > { %v1464_v28 = vpop.permute.xlu1 %1463 }
 0x7e3   : > { %3556 = vpow2.f32 %v1231_v19 }
 0x7e6   : > { %v1462_v31 = vpop.permute.xlu1 %1461 }
 0x7ed   : > { %v3557_v20 = vpop.eup %3556 }
 0x7ee   : > { %v1233_v21 = vsel %vm1058_vm9, %v3557_v20, 0.0 }
 0x7ef   : > { %1234 = vadd.xlane.f32.xlu0 %v1233_v21 }
 0x805   : > { %1238 = vrot.lane.b32.xlu0 %v3884_v56, %s3602_s1  ;;  %s3606_s1 = smov 88  }
 0x87c   : > { %v1235_v23 = vpop.xlane.xlu0 %1234 }
 0x87d   : > { %3558 = vrcp.f32 %v1235_v23 }
 0x880   : > { %v1239_v24 = vpop.permute.xlu0 %1238 }
 0x881   : > { %3348 = vmatpush3.msk.msra.mxu1 %vm1074_vm8, %v1239_v24 }
 0x882   : > { %3357 = vmatprep.subr.mxu1 %v3601_v14 }
 0x887   : > { %v3559_v25 = vpop.eup %3558 }
 0x888   : > { %v1237_v26 = vmul.f32 %v3559_v25, %v3557_v20 }
 0x88a   : > { %3350 = vmatmul.mubr.msk.f32.vlgmr.msra.gmra.mrb[6].mxu1 %vm1070_vm10, %v1237_v26 }
 0x88b   : > { %3358 = vmatpush3.msra.mxu1 %v972_v27  ;;  %3359 = vmatprep.mubr.msk.f32.mxu1 %vm3600_vm1, %v3601_v14 }
 0x88c   : > { %3367 = vmatprep.subr.mxu1 %v3601_v14 }
 0x88e   : > { %3360 = vmatmul.mubr.msk.f32.vlgmr.msra.gmra.mrb[8].mxu1 %vm980_vm7, %v1144_v9 }
 0x88f   : > { %3369 = vmatprep.mubr.msk.f32.mxu1 %vm3600_vm1, %v3601_v14 }
 0x95d   : > { %v1311_v29 = vpop.f32.mrb[6].mxu1 }
 0x95e   : > { %v3351_v30 = vpop.f32.mrb[7].mxu1  ;;  %3355 = vmatmul.mubr.msk.f32.vlgmr.msra.gmra.mrb[8].mxu0 %vm980_vm7, %v1311_v29 }
 0x95f   : > { %3363 = vmatpush3.xpose.msk.msra.mxu0 %vm980_vm7, %v1464_v28  ;;  %3364 = vmatprep.mubr.msk.f32.mxu0 %vm3600_vm1, %v3601_v14 }
 0x960   : > { %3372 = vmatprep.subr.mxu0 %v3601_v14 }
 0x961   : > { %v1457_v32 = vpop.f32.mrb[8].mxu1 }
 0x962   : > { %v3361_v33 = vpop.f32.mrb[9].mxu1  ;;  %3365 = vmatmul.mubr.msk.f32.vlgmr.msra.gmra.mrb[10].mxu0 %vm980_vm7, %v1462_v31 }
 0x963   : > { %3374 = vmatprep.mubr.msk.f32.mxu0 %vm3600_vm1, %v3601_v14  ;;  %3373 = vmatpush3.msra.mxu0 %v974_v57 }
 0x964   : > { %3382 = vmatprep.subr.mxu0 %v3601_v14 }
 0xa31   : > { %v1384_v34 = vpop.f32.mrb[8].mxu0 }
 0xa32   : > { %v1458_v35 = vadd.f32 %v1457_v32, %v1384_v34  ;;  %v3356_v36 = vpop.f32.mrb[9].mxu0 }
 0xa35   : > { %v1535_v37 = vpop.f32.mrb[10].mxu0 }
 0xa36   : > { %v1539_v38 = vmul.f32 0.35355338, %v1535_v37  ;;  %v3366_v39 = vpop.f32.mrb[11].mxu0 }
 0xa38   : > { %v1540_v40 = vsel %vm1058_vm9, %v1539_v38, -inf }
 0xa39   : > { %1541 = vmax.xlane.f32.xlu1 %v1540_v40 }
 0xa4a   : > { %1704 = vrot.lane.b32.xlu1 %v3875_v51, %s3604_s27 }
 0xa4e   : > { %1702 = vrot.lane.b32.xlu1 %v3873_v50, %s3604_s27 }
 0xac6   : > { %v1542_v41 = vpop.xlane.xlu1 %1541 }
 0xac7   : > { %v1543_v42 = vsub.f32 %v1539_v38, %v1542_v41  ;;  %v976_v38 = vld [vmem:[%s4135_s11 + $0x20] sm:$0xff] }
 0xac9   : > { %v1544_v43 = vmul.f32 1.442695, %v1543_v42 }
 0xaca   : > { %v1705_v49 = vpop.permute.xlu1 %1704 }
 0xacb   : > { %3560 = vpow2.f32 %v1544_v43 }
 0xace   : > { %v1703_v55 = vpop.permute.xlu1 %1702 }
 0xad5   : > { %v3561_v44 = vpop.eup %3560 }
 0xad6   : > { %v1546_v45 = vsel %vm1058_vm9, %v3561_v44, 0.0 }
 0xad7   : > { %1547 = vadd.xlane.f32.xlu0 %v1546_v45 }
 0xaed   : > { %1551 = vrot.lane.b32.xlu0 %v3884_v56, %s3603_s20 }
 0xb64   : > { %v1548_v46 = vpop.xlane.xlu0 %1547 }
 0xb65   : > { %3562 = vrcp.f32 %v1548_v46 }
 0xb68   : > { %v1552_v47 = vpop.permute.xlu0 %1551 }
 0xb69   : > { %3368 = vmatpush3.msk.msra.mxu1 %vm1074_vm8, %v1552_v47 }
 0xb6a   : > { %3377 = vmatprep.subr.mxu1 %v3601_v14 }
 0xb6f   : > { %v3563_v48 = vpop.eup %3562 }
 0xb70   : > { %v1550_v53 = vmul.f32 %v3563_v48, %v3561_v44 }
 0xb72   : > { %3370 = vmatmul.mubr.msk.f32.vlgmr.msra.gmra.mrb[10].mxu1 %vm1070_vm10, %v1550_v53 }
 0xb73   : > { %3378 = vmatpush3.xpose.msk.msra.mxu1 %vm980_vm7, %v1705_v49  ;;  %3379 = vmatprep.mubr.msk.f32.mxu1 %vm3600_vm1, %v3601_v14 }
 0xb74   : > { %3387 = vmatprep.subr.mxu1 %v3601_v14 }
 0xb76   : > { %3380 = vmatmul.mubr.msk.f32.vlgmr.msra.gmra.mrb[12].mxu1 %vm980_vm7, %v1703_v55 }
 0xb77   : > { %3389 = vmatprep.mubr.msk.f32.mxu1 %vm3600_vm1, %v3601_v14  ;;  %3388 = vmatpush3.msra.mxu1 %v975_v17 }
 0xb78   : > { %3397 = vmatprep.subr.mxu1 %v3601_v14 }
 0xc45   : > { %v1624_v58 = vpop.f32.mrb[10].mxu1 }
 0xc46   : > { %v3371_v59 = vpop.f32.mrb[11].mxu1  ;;  %3375 = vmatmul.mubr.msk.f32.vlgmr.msra.gmra.mrb[12].mxu0 %vm980_vm7, %v1624_v58 }
 0xc47   : > { %3384 = vmatprep.mubr.msk.f32.mxu0 %vm3600_vm1, %v3601_v14 }
 0xc49   : > { %v1776_v61 = vpop.f32.mrb[12].mxu1 }
 0xc4a   : > { %v1780_v62 = vmul.f32 0.35355338, %v1776_v61  ;;  %v3381_v63 = vpop.f32.mrb[13].mxu1 }
 0xc4c   : > { %v1781_v0 = vsel %vm1058_vm9, %v1780_v62, -inf }
 0xc4d   : > { %1782 = vmax.xlane.f32.xlu0 %v1781_v0 }
 0xc63   : > { %1792 = vrot.lane.b32.xlu0 %v3884_v56, %s3604_s27  ;;  %s3608_s27 = smov 72  }
 0xc67   : > { %1943 = vrot.lane.b32.xlu0 %v3873_v50, %s3605_s29 }
 0xcda   : > { %v1783_v1 = vpop.xlane.xlu0 %1782 }
 0xcdb   : > { %v1784_v2 = vsub.f32 %v1780_v62, %v1783_v1  ;;  %v977_v1 = vld [vmem:[%s4135_s11 + $0x28] sm:$0xff] }
 0xcdd   : > { %v1785_v3 = vmul.f32 1.442695, %v1784_v2 }
 0xcde   : > { %v1793_v4 = vpop.permute.xlu0 %1792 }
 0xcdf   : > { %3564 = vpow2.f32 %v1785_v3  ;;  %3383 = vmatpush3.msk.msra.mxu0 %vm1074_vm8, %v1793_v4 }
 0xce0   : > { %3392 = vmatprep.subr.mxu0 %v3601_v14 }
 0xce2   : > { %v1944_v16 = vpop.permute.xlu0 %1943 }
 0xce9   : > { %v3565_v5 = vpop.eup %3564 }
 0xcea   : > { %v1787_v6 = vsel %vm1058_vm9, %v3565_v5, 0.0 }
 0xceb   : > { %1788 = vadd.xlane.f32.xlu1 %v1787_v6 }
 0xcfc   : > { %1945 = vrot.lane.b32.xlu1 %v3875_v51, %s3605_s29 }
 0xd19   : > { %v1697_v7 = vpop.f32.mrb[12].mxu0 }
 0xd1a   : > { %v1701_v8 = vadd.f32 %v1697_v7, %v1458_v35  ;;  %v3376_v9 = vpop.f32.mrb[13].mxu0 }
 0xd78   : > { %v1789_v10 = vpop.xlane.xlu1 %1788 }
 0xd79   : > { %3566 = vrcp.f32 %v1789_v10 }
 0xd7c   : > { %v1946_v15 = vpop.permute.xlu1 %1945 }
 0xd83   : > { %v3567_v12 = vpop.eup %3566 }
 0xd84   : > { %v1791_v13 = vmul.f32 %v3567_v12, %v3565_v5 }
 0xd86   : > { %3385 = vmatmul.mubr.msk.f32.vlgmr.msra.gmra.mrb[14].mxu0 %vm1070_vm10, %v1791_v13 }
 0xd87   : > { %3393 = vmatpush3.xpose.msk.msra.mxu0 %vm980_vm7, %v1946_v15  ;;  %3394 = vmatprep.mubr.msk.f32.mxu0 %vm3600_vm1, %v3601_v14 }
 0xd88   : > { %3402 = vmatprep.subr.mxu0 %v3601_v14 }
 0xd8a   : > { %3395 = vmatmul.mubr.msk.f32.vlgmr.msra.gmra.mrb[16].mxu0 %vm980_vm7, %v1944_v16 }
 0xd8b   : > { %3404 = vmatprep.mubr.msk.f32.mxu0 %vm3600_vm1, %v3601_v14  ;;  %3403 = vmatpush3.msra.mxu0 %v976_v38 }
 0xd8c   : > { %3412 = vmatprep.subr.mxu0 %v3601_v14 }
 0xe59   : > { %v1865_v18 = vpop.f32.mrb[14].mxu0 }
 0xe5a   : > { %v3386_v19 = vpop.f32.mrb[15].mxu0  ;;  %3390 = vmatmul.mubr.msk.f32.vlgmr.msra.gmra.mrb[14].mxu1 %vm980_vm7, %v1865_v18 }
 0xe5b   : > { %3399 = vmatprep.mubr.msk.f32.mxu1 %vm3600_vm1, %v3601_v14 }
 0xe5d   : > { %v2017_v20 = vpop.f32.mrb[16].mxu0 }
 0xe5e   : > { %v2021_v21 = vmul.f32 0.35355338, %v2017_v20  ;;  %v3396_v22 = vpop.f32.mrb[17].mxu0 }
 0xe5f   : > { %v978_v22 = vld [vmem:[%s4135_s11 + $0x30] sm:$0xff] }
 0xe60   : > { %v2022_v23 = vsel %vm1058_vm9, %v2021_v21, -inf }
 0xe61   : > { %2023 = vmax.xlane.f32.xlu1 %v2022_v23 }
 0xe72   : > { %2186 = vrot.lane.b32.xlu1 %v3875_v51, %s3606_s1 }
 0xe76   : > { %2184 = vrot.lane.b32.xlu1 %v3873_v50, %s3606_s1 }
 0xeee   : > { %v2024_v24 = vpop.xlane.xlu1 %2023 }
 0xeef   : > { %v2025_v25 = vsub.f32 %v2021_v21, %v2024_v24 }
 0xef1   : > { %v2026_v26 = vmul.f32 1.442695, %v2025_v25 }
 0xef2   : > { %v2187_v35 = vpop.permute.xlu1 %2186 }
 0xef3   : > { %3568 = vpow2.f32 %v2026_v26 }
 0xef6   : > { %v2185_v37 = vpop.permute.xlu1 %2184 }
 0xefd   : > { %v3569_v27 = vpop.eup %3568 }
 0xefe   : > { %v2028_v28 = vsel %vm1058_vm9, %v3569_v27, 0.0 }
 0xeff   : > { %2029 = vadd.xlane.f32.xlu0 %v2028_v28 }
 0xf15   : > { %2033 = vrot.lane.b32.xlu0 %v3884_v56, %s3605_s29 }
 0xf2d   : > { %v1938_v29 = vpop.f32.mrb[14].mxu1 }
 0xf2e   : > { %v1942_v30 = vadd.f32 %v1938_v29, %v1701_v8  ;;  %v3391_v31 = vpop.f32.mrb[15].mxu1 }
 0xf8c   : > { %v2030_v32 = vpop.xlane.xlu0 %2029 }
 0xf8d   : > { %3570 = vrcp.f32 %v2030_v32 }
 0xf90   : > { %v2034_v33 = vpop.permute.xlu0 %2033 }
 0xf91   : > { %3398 = vmatpush3.msk.msra.mxu1 %vm1074_vm8, %v2034_v33 }
 0xf92   : > { %3407 = vmatprep.subr.mxu1 %v3601_v14 }
 0xf97   : > { %v3571_v34 = vpop.eup %3570 }
 0xf98   : > { %v2032_v36 = vmul.f32 %v3571_v34, %v3569_v27 }
 0xf9a   : > { %3400 = vmatmul.mubr.msk.f32.vlgmr.msra.gmra.mrb[16].mxu1 %vm1070_vm10, %v2032_v36 }
 0xf9b   : > { %3408 = vmatpush3.xpose.msk.msra.mxu1 %vm980_vm7, %v2187_v35  ;;  %3409 = vmatprep.mubr.msk.f32.mxu1 %vm3600_vm1, %v3601_v14  ;;  %v979_v35 = vld [vmem:[%s4135_s11 + $0x38] sm:$0xff] }
 0xf9c   : > { %3417 = vmatprep.subr.mxu1 %v3601_v14 }
 0xf9e   : > { %3410 = vmatmul.mubr.msk.f32.vlgmr.msra.gmra.mrb[18].mxu1 %vm980_vm7, %v2185_v37 }
 0xf9f   : > { %3419 = vmatprep.mubr.msk.f32.mxu1 %vm3600_vm1, %v3601_v14  ;;  %3418 = vmatpush3.msra.mxu1 %v977_v1  ;;  %v2959_v1 = vld [vmem:[%s4139_s15 + $0x20] sm:$0xff] }
 0xfa0   : > { %3427 = vmatprep.subr.mxu1 %v3601_v14 }
0x106d   : > { %v2106_v39 = vpop.f32.mrb[16].mxu1 }
0x106e   : > { %v3401_v40 = vpop.f32.mrb[17].mxu1  ;;  %3405 = vmatmul.mubr.msk.f32.vlgmr.msra.gmra.mrb[18].mxu0 %vm980_vm7, %v2106_v39 }
0x106f   : > { %3414 = vmatprep.mubr.msk.f32.mxu0 %vm3600_vm1, %v3601_v14 }
0x1071   : > { %v2258_v41 = vpop.f32.mrb[18].mxu1 }
0x1072   : > { %v2262_v42 = vmul.f32 0.35355338, %v2258_v41  ;;  %v3411_v43 = vpop.f32.mrb[19].mxu1 }
0x1074   : > { %v2263_v44 = vsel %vm1058_vm9, %v2262_v42, -inf }
0x1075   : > { %2264 = vmax.xlane.f32.xlu0 %v2263_v44 }
0x108b   : > { %2274 = vrot.lane.b32.xlu0 %v3884_v56, %s3606_s1 }
0x108f   : > { %2425 = vrot.lane.b32.xlu0 %v3873_v50, %s3607_s22 }
0x1102   : > { %v2265_v45 = vpop.xlane.xlu0 %2264 }
0x1103   : > { %v2266_v46 = vsub.f32 %v2262_v42, %v2265_v45 }
0x1105   : > { %v2267_v47 = vmul.f32 1.442695, %v2266_v46  ;;  %v2908_v46 = vld [vmem:[%s4136_s12] sm:$0x1] }
0x1106   : > { %v2275_v48 = vpop.permute.xlu0 %2274 }
0x1107   : > { %3572 = vpow2.f32 %v2267_v47  ;;  %3413 = vmatpush3.msk.msra.mxu0 %vm1074_vm8, %v2275_v48 }
0x1108   : > { %3422 = vmatprep.subr.mxu0 %v3601_v14 }
0x110a   : > { %v2426_v0 = vpop.permute.xlu0 %2425 }
0x1111   : > { %v3573_v49 = vpop.eup %3572 }
0x1112   : > { %v2269_v53 = vsel %vm1058_vm9, %v3573_v49, 0.0 }
0x1113   : > { %2270 = vadd.xlane.f32.xlu1 %v2269_v53 }
0x1124   : > { %2427 = vrot.lane.b32.xlu1 %v3875_v51, %s3607_s22 }
0x1141   : > { %v2179_v55 = vpop.f32.mrb[18].mxu0 }
0x1142   : > { %v2183_v57 = vadd.f32 %v2179_v55, %v1942_v30  ;;  %v3406_v58 = vpop.f32.mrb[19].mxu0 }
0x11a0   : > { %v2271_v59 = vpop.xlane.xlu1 %2270 }
0x11a1   : > { %3574 = vrcp.f32 %v2271_v59  ;;  %v2955_v59 = vld [vmem:[%s4139_s15] sm:$0xff] }
0x11a4   : > { %v2428_v63 = vpop.permute.xlu1 %2427 }
0x11ab   : > { %v3575_v61 = vpop.eup %3574 }
0x11ac   : > { %v2273_v62 = vmul.f32 %v3575_v61, %v3573_v49  ;;  %v2956_v61 = vld [vmem:[%s4139_s15 + $0x8] sm:$0xff] }
0x11ae   : > { %3415 = vmatmul.mubr.msk.f32.vlgmr.msra.gmra.mrb[20].mxu0 %vm1070_vm10, %v2273_v62  ;;  %v3514_v62 = vpack.c.bf16 %v2956_v61, %v2955_v59 }
0x11af   : > { %3423 = vmatpush3.xpose.msk.msra.mxu0 %vm980_vm7, %v2428_v63  ;;  %3424 = vmatprep.mubr.msk.f32.mxu0 %vm3600_vm1, %v3601_v14  ;;  %v2958_v63 = vld [vmem:[%s4139_s15 + $0x18] sm:$0xff] }
0x11b0   : > { %3432 = vmatprep.subr.mxu0 %v3601_v14 }
0x11b2   : > { %3425 = vmatmul.mubr.msk.f32.vlgmr.msra.gmra.mrb[22].mxu0 %vm980_vm7, %v2426_v0 }
0x11b3   : > { %3434 = vmatprep.mubr.msk.f32.mxu0 %vm3600_vm1, %v3601_v14  ;;  %3433 = vmatpush3.msra.mxu0 %v978_v22 }
0x11b4   : > { %3442 = vmatprep.subr.mxu0 %v3601_v14 }
0x1281   : > { %v2347_v2 = vpop.f32.mrb[20].mxu0 }
0x1282   : > { %v3416_v3 = vpop.f32.mrb[21].mxu0  ;;  %3420 = vmatmul.mubr.msk.f32.vlgmr.msra.gmra.mrb[20].mxu1 %vm980_vm7, %v2347_v2  ;;  %v2960_v2 = vld [vmem:[%s4139_s15 + $0x28] sm:$0xff] }
0x1283   : > { %3429 = vmatprep.mubr.msk.f32.mxu1 %vm3600_vm1, %v3601_v14  ;;  %v3520_v3 = vpack.c.bf16 %v2960_v2, %v2959_v1 }
0x1285   : > { %v2499_v4 = vpop.f32.mrb[22].mxu0 }
0x1286   : > { %v2503_v5 = vmul.f32 0.35355338, %v2499_v4  ;;  %v3426_v6 = vpop.f32.mrb[23].mxu0  ;;  %v2961_v4 = vld [vmem:[%s4139_s15 + $0x30] sm:$0xff] }
0x1288   : > { %v2504_v7 = vsel %vm1058_vm9, %v2503_v5, -inf }
0x1289   : > { %2505 = vmax.xlane.f32.xlu1 %v2504_v7 }
0x129a   : > { %2668 = vrot.lane.b32.xlu1 %v3875_v51, %s3608_s27 }
0x129e   : > { %2666 = vrot.lane.b32.xlu1 %v3873_v50, %s3608_s27 }
0x1316   : > { %v2506_v8 = vpop.xlane.xlu1 %2505 }
0x1317   : > { %v2507_v9 = vsub.f32 %v2503_v5, %v2506_v8  ;;  %v2962_v5 = vld [vmem:[%s4139_s15 + $0x38] sm:$0xff] }
0x1318   : > { %v3523_v6 = vpack.c.bf16 %v2962_v5, %v2961_v4 }
0x1319   : > { %v2508_v10 = vmul.f32 1.442695, %v2507_v9 }
0x131a   : > { %v2669_v19 = vpop.permute.xlu1 %2668 }
0x131b   : > { %3576 = vpow2.f32 %v2508_v10 }
0x131e   : > { %v2667_v21 = vpop.permute.xlu1 %2666 }
0x1325   : > { %v3577_v12 = vpop.eup %3576 }
0x1326   : > { %v2510_v13 = vsel %vm1058_vm9, %v3577_v12, 0.0 }
0x1327   : > { %2511 = vadd.xlane.f32.xlu0 %v2510_v13 }
0x133d   : > { %2515 = vrot.lane.b32.xlu0 %v3884_v56, %s3607_s22 }
0x1355   : > { %v2420_v15 = vpop.f32.mrb[20].mxu1 }
0x1356   : > { %v2424_v16 = vadd.f32 %v2420_v15, %v2183_v57  ;;  %v3421_v17 = vpop.f32.mrb[21].mxu1  ;;  %v2911_v15 = vld [vmem:[%s4138_s14] sm:$0x1] }
0x13b4   : > { %v2512_v18 = vpop.xlane.xlu0 %2511 }
0x13b5   : > { %3578 = vrcp.f32 %v2512_v18 }
0x13b8   : > { %v2516_v51 = vpop.permute.xlu0 %2515 }
0x13b9   : > { %3428 = vmatpush3.msk.msra.mxu1 %vm1074_vm8, %v2516_v51 }
0x13ba   : > { %3437 = vmatprep.subr.mxu1 %v3601_v14 }
0x13bf   : > { %v3579_v50 = vpop.eup %3578 }
0x13c0   : > { %v2514_v20 = vmul.f32 %v3579_v50, %v3577_v12  ;;  %v2910_v12 = vld [vmem:[%s4137_s13] sm:$0x1] }
0x13c2   : > { %3430 = vmatmul.mubr.msk.f32.vlgmr.msra.gmra.mrb[22].mxu1 %vm1070_vm10, %v2514_v20 }
0x13c3   : > { %3438 = vmatpush3.xpose.msk.msra.mxu1 %vm980_vm7, %v2669_v19  ;;  %3439 = vmatprep.mubr.msk.f32.mxu1 %vm3600_vm1, %v3601_v14 }
0x13c4   : > { %3447 = vmatprep.subr.mxu1 %v3601_v14 }
0x13c6   : > { %3440 = vmatmul.mubr.msk.f32.vlgmr.msra.gmra.mrb[24].mxu1 %vm980_vm7, %v2667_v21 }
0x13c7   : > { %3449 = vmatprep.mubr.msk.f32.mxu1 %vm3600_vm1, %v3601_v14  ;;  %3448 = vmatpush3.msra.mxu1 %v979_v35 }
0x1495   : > { %v2588_v23 = vpop.f32.mrb[22].mxu1 }
0x1496   : > { %v3431_v24 = vpop.f32.mrb[23].mxu1  ;;  %3435 = vmatmul.mubr.msk.f32.vlgmr.msra.gmra.mrb[24].mxu0 %vm980_vm7, %v2588_v23 }
0x1497   : > { %3444 = vmatprep.mubr.msk.f32.mxu0 %vm3600_vm1, %v3601_v14 }
0x1499   : > { %v2740_v25 = vpop.f32.mrb[24].mxu1 }
0x149a   : > { %v2744_v26 = vmul.f32 0.35355338, %v2740_v25  ;;  %v3441_v27 = vpop.f32.mrb[25].mxu1 }
0x149c   : > { %v2745_v28 = vsel %vm1058_vm9, %v2744_v26, -inf }
0x149d   : > { %2746 = vmax.xlane.f32.xlu0 %v2745_v28 }
0x14b3   : > { %2756 = vrot.lane.b32.xlu0 %v3884_v56, %s3608_s27 }
0x152a   : > { %v2747_v29 = vpop.xlane.xlu0 %2746 }
0x152b   : > { %v2748_v30 = vsub.f32 %v2744_v26, %v2747_v29 }
0x152d   : > { %v2749_v31 = vmul.f32 1.442695, %v2748_v30 }
0x152e   : > { %v2757_v32 = vpop.permute.xlu0 %2756 }
0x152f   : > { %3580 = vpow2.f32 %v2749_v31  ;;  %3443 = vmatpush3.msk.msra.mxu0 %vm1074_vm8, %v2757_v32 }
0x1530   : > { %3513 = vmatprep.subr.bf16.mxu0 %v3599_v11 }
0x1539   : > { %v3581_v33 = vpop.eup %3580 }
0x153a   : > { %v2751_v34 = vsel %vm1058_vm9, %v3581_v33, 0.0 }
0x153b   : > { %2752 = vadd.xlane.f32.xlu1 %v2751_v34 }
0x1569   : > { %v2661_v36 = vpop.f32.mrb[24].mxu0 }
0x156a   : > { %v2665_v56 = vadd.f32 %v2661_v36, %v2424_v16  ;;  %v3436_v37 = vpop.f32.mrb[25].mxu0 }
0x15c8   : > { %v2753_v38 = vpop.xlane.xlu1 %2752 }
0x15c9   : > { %3582 = vrcp.f32 %v2753_v38 }
0x15d3   : > { %v3583_v39 = vpop.eup %3582 }
0x15d4   : > { %v2755_v40 = vmul.f32 %v3583_v39, %v3581_v33  ;;  %v2963_v39 = vld [vmem:[%s4140_s16] sm:$0x1] }
0x15d6   : > { %3445 = vmatmul.mubr.msk.f32.vlgmr.msra.gmra.mrb[26].mxu0 %vm1070_vm10, %v2755_v40 }
0x15d7   : > { %3468 = vmatprep.mubr.msk.f32.mxu0 %vm3600_vm1, %v3601_v14  ;;  %3515 = vmatpush3.bf16.msra.mxu0 %v3514_v62 }
0x15d8   : > { %3516 = vmatprep.subr.bf16.mxu0 %v3599_v11 }
0x16a9   : > { %v2829_v41 = vpop.f32.mrb[26].mxu0 }
0x16aa   : > { %v3446_v42 = vpop.f32.mrb[27].mxu0  ;;  %3450 = vmatmul.mubr.msk.f32.vlgmr.msra.gmra.mrb[26].mxu1 %vm980_vm7, %v2829_v41 }
0x177d   : > { %v2902_v43 = vpop.f32.mrb[26].mxu1 }
0x177e   : > { %v2906_v44 = vadd.f32 %v2902_v43, %v2665_v56  ;;  %v3451_v45 = vpop.f32.mrb[27].mxu1 }
0x1780   : > { %v2907_v47 = vadd.f32 %v2906_v44, %v3770_v60  ;;  %v2957_v60 = vld [vmem:[%s4139_s15 + $0x10] sm:$0xff]  ;;  %v3590_v44 = vld [vmem:[%s3713_s0] sm:$0xff] }
0x1781   : > { %v3517_v0 = vpack.c.bf16 %v2958_v63, %v2957_v60 }
0x1782   : > { %v2909_v48 = vadd.f32 %v2908_v46, %v2907_v47 }
0x1783   : > { %3518 = vmatpush3.bf16.msra.mxu0 %v3517_v0 }
0x1784   : > { %v2913_v49 = vsel %vm2912_vm11, %v2909_v48, 0.0  ;;  %3519 = vmatprep.subr.bf16.mxu0 %v3599_v11 }
0x1785   : > { %2914 = vadd.xlane.f32.xlu1 %v2913_v49 }
0x1787   : > { %3521 = vmatpush3.bf16.msra.mxu0 %v3520_v3 }
0x1788   : > { %3522 = vmatprep.subr.bf16.mxu0 %v3599_v11 }
0x178b   : > { %3524 = vmatpush3.bf16.msra.mxu0 %v3523_v6 }
0x1812   : > { %v2915_v53 = vpop.xlane.xlu1 %2914 }
0x1813   : > { %v2916_v55 = vmul.f32 0.015625, %v2915_v53 }
0x1815   : > { %v2917_v14 = vsub.f32 %v2909_v48, %v2916_v55 }
0x1817   : > { %v2918_v57 = vmul.f32 %v2917_v14, %v2917_v14 }
0x1819   : > { %v2919_v58 = vsel %vm2912_vm11, %v2918_v57, 0.0 }
0x181a   : > { %2920 = vadd.xlane.f32.xlu1 %v2919_v58 }
0x18a7   : > { %v2921_v7 = vpop.xlane.xlu1 %2920 }
0x18a8   : > { %v2922_v8 = vmul.f32 0.015625, %v2921_v7 }
0x18aa   : > { %v2923_v9 = vadd.f32 1e-05, %v2922_v8 }
0x18ac   : > { %3584 = vrsqrt.f32 %v2923_v9 }
0x18b6   : > { %v3585_v10 = vpop.eup %3584 }
0x18b7   : > { %v2925_v13 = vmul.f32 %v3585_v10, %v2917_v14 }
0x18b9   : > { %v2926_v16 = vmul.f32 %v2925_v13, %v2910_v12 }
0x18bb   : > { %v2927_v17 = vadd.f32 %v2926_v16, %v2911_v15 }
0x18bd   : > { %v2929_v18 = vmul.f32 0.70710677, %v2927_v17  ;;  %v2928_v56 = vmul.f32 0.5, %v2927_v17 }
0x18bf   : > { %v2930_v51 = vand.u32 2147483647, %v2929_v18  ;;  %vm2950_vm12 = vcmp.ge.f32.partialorder %v2929_v18, 0.0 }
0x18c1   : > { %v2931_v11 = vmul.f32 0.3275911, %v2930_v51  ;;  %v2944_v19 = vsub.f32 0.0, %v2930_v51 }
0x18c3   : > { %v2932_v50 = vadd.f32 1.0, %v2931_v11  ;;  %v2945_v21 = vmul.f32 %v2944_v19, %v2930_v51 }
0x18c5   : > { %3586 = vrcp.f32 %v2932_v50  ;;  %v2946_v24 = vmul.f32 1.442695, %v2945_v21 }
0x18c7   : > { %3588 = vpow2.f32 %v2946_v24 }
0x18cf   : > { %v3587_v20 = vpop.eup %3586 }
0x18d0   : > { %v2935_v22 = vmul.f32 1.0614054, %v3587_v20 }
0x18d1   : > { %v3589_v32 = vpop.eup %3588 }
0x18d2   : > { %v2936_v23 = vadd.f32 -1.4531521, %v2935_v22 }
0x18d4   : > { %v2937_v25 = vmul.f32 %v3587_v20, %v2936_v23 }
0x18d6   : > { %v2938_v26 = vadd.f32 1.4214138, %v2937_v25 }
0x18d8   : > { %v2939_v27 = vmul.f32 %v3587_v20, %v2938_v26 }
0x18da   : > { %v2940_v28 = vadd.f32 -0.28449672, %v2939_v27 }
0x18dc   : > { %v2941_v29 = vmul.f32 %v3587_v20, %v2940_v28 }
0x18de   : > { %v2942_v30 = vadd.f32 0.2548296, %v2941_v29 }
0x18e0   : > { %v2943_v31 = vmul.f32 %v3587_v20, %v2942_v30 }
0x18e2   : > { %v2948_v33 = vmul.f32 %v3589_v32, %v2943_v31 }
0x18e4   : > { %v2949_v34 = vsub.f32 1.0, %v2948_v33 }
0x18e6   : > { %v2951_v35 = vsub.f32 0.0, %v2949_v34 }
0x18e8   : > { %v2952_v36 = vsel %vm2950_vm12, %v2949_v34, %v2951_v35 }
0x18e9   : > { %v2953_v37 = vadd.f32 1.0, %v2952_v36 }
0x18eb   : > { %v2954_v38 = vmul.f32 %v2953_v37, %v2928_v56 }
0x18ed   : > { %3469 = vmatmul.mubr.msk.f32.vlgmr.msra.gmra.mrb[28].mxu0 %vm742_vm6, %v2954_v38 }
0x19c0   : > { %v3033_v40 = vpop.f32.mrb[28].mxu0 }
0x19c1   : > { %v3034_v41 = vadd.f32 %v3033_v40, %v2963_v39  ;;  %v3470_v42 = vpop.f32.mrb[29].mxu0 }
0x19c3   : > { %v3044_v43 = vrot.slane %v3034_v41, %v700_v54 }
0x19c5   : > { %v3045_v45 = vsel %vm697_vm4, %v3044_v43, %v3590_v44 }
0x19c6   : > { %3048 = vst.msk [vmem:[%s3718_s19] sm:$0xff] %vm621_vm2, %v3045_v45 }
0x19c7 PF: > { %s27_s24 = sadd.s32 1, %s3597_s24  }
0x19c8   : > { %p24_p4 = scmp.ge.s32.totalorder %s27_s24, 4  }
0x19ca   :  { %26 = sbr.rel (!%p24_p4) target bundleno = 3 (0x3), region = 121 }

// kernel: _lambda_.25
= control target key start
LH: loop header
LB: loop body
LE: loop exit
PB: predicated region body
PF: predicated region fallthrough
CT: control target
= control target key end

     0   :  { %s2774_s24 = smov 0   ;;  %s3107_s0 = inlined_call_operand.vmem [shape: f32[2,5,64], index: 0, kind: input, shape index: {}]   ;;  %s3108_s1 = inlined_call_operand.vmem [shape: f32[2,17,32], index: 1, kind: input, shape index: {}]   ;;  %s3109_s2 = inlined_call_operand.vmem [shape: f32[1,64], index: 2, kind: input, shape index: {}]   ;;  %s3110_s3 = inlined_call_operand.vmem [shape: f32[1,64], index: 3, kind: input, shape index: {}, may-alias: {3,16}]   ;;  %s3111_s4 = inlined_call_operand.vmem [shape: f32[64,32], index: 4, kind: input, shape index: {}]   ;;  %s3112_s5 = inlined_call_operand.vmem [shape: f32[1,32], index: 5, kind: input, shape index: {}, may-alias: {5,14}]   ;;  %s3113_s6 = inlined_call_operand.vmem [shape: f32[1,1,32], index: 6, kind: input, shape index: {}]   ;;  %s3114_s7 = inlined_call_operand.vmem [shape: f32[1,1,32], index: 7, kind: input, shape index: {}, may-alias: {7,12}]   ;;  %s3115_s8 = inlined_call_operand.vmem [shape: f32[1,32,32], index: 8, kind: input, shape index: {}]   ;;  %s3116_s9 = inlined_call_operand.vmem [shape: f32[1,32,32], index: 9, kind: input, shape index: {}]   ;;  %s3117_s10 = inlined_call_operand.vmem [shape: f32[1,32,32], index: 10, kind: input, shape index: {}]   ;;  %s3118_s11 = inlined_call_operand.vmem [shape: f32[1,32,32], index: 11, kind: input, shape index: {}]   ;;  %s3119_s12 = inlined_call_operand.vmem [shape: f32[1,1,32], index: 12, kind: input, shape index: {}, may-alias: {7,12}]   ;;  %s3120_s13 = inlined_call_operand.vmem [shape: f32[1,32], index: 13, kind: input, shape index: {}]   ;;  %s3121_s14 = inlined_call_operand.vmem [shape: f32[1,32], index: 14, kind: input, shape index: {}, may-alias: {5,14}]   ;;  %s3122_s15 = inlined_call_operand.vmem [shape: f32[32,64], index: 15, kind: input, shape index: {}]   ;;  %s3123_s16 = inlined_call_operand.vmem [shape: f32[1,64], index: 16, kind: input, shape index: {}, may-alias: {3,16}]   ;;  %s3124_s17 = inlined_call_operand.vmem [shape: f32[2,5,64], index: 17, kind: output, shape index: {}]  }
   0x1   :  { %3125 = sst [smem:[#allocation2_spill]] %s3107_s0 }
   0x2   :  { %3126 = sst [smem:[#allocation3_spill]] %s3108_s1 }
   0x3 LB: > { %s2238_s25 = sadd.s32 4294967295, %s2676_s24   ;;  %p2242_p0 = scmp.ge.s32.totalorder %s2676_s24, 1  ;;  %s2676_s24 = sphi %s2774_s24, %s27_s24  }
   0x4   : > { %p496_p1 = scmp.lt.s32.totalorder %s2676_s24, 3 }
   0x6   : > { %p497_p2 = pnand %p2242_p0, %p496_p1 }
   0x7   : > { %p551_p3 = scmp.lt.s32.totalorder (!%p497_p2), %s2238_s25, 1  ;;  %vm570_vm0 = vcmask (!%p497_p2), 516096   ;;  %s3127_s29 = sld [smem:[#allocation2_spill]] (!%p497_p2)  ;;  %v614_v7 = vld [vmem:[%s3111_s4] sm:$0xff] (!%p497_p2)  ;;  %v615_v8 = vld [vmem:[%s3111_s4 + $0x8] sm:$0xff] (!%p497_p2)  ;;  %v616_v9 = vld [vmem:[%s3111_s4 + $0x10] sm:$0xff] (!%p497_p2)  ;;  %v697_v57 = vlaneseq (!%p497_p2) }
   0x8   : > { %500 = sbr.rel (%p497_p2) target bundleno = 3773 (0xebd), region = 88  ;;  %v2678_v10 = vmov (!%p497_p2), 0.0|0.0   ;;  %v2528_v11 = vpack.c.bf16 (!%p497_p2), %v615_v8, %v614_v7  ;;  %v617_v12 = vld [vmem:[%s3111_s4 + $0x18] sm:$0xff] (!%p497_p2)  ;;  %vm2679_vm1 = vmmov (!%p497_p2), 0   ;;  %v2680_v13 = vmov (!%p497_p2), 0.0   ;;  %v618_v15 = vld [vmem:[%s3111_s4 + $0x20] sm:$0xff] (!%p497_p2) }
   0x9   : > { %2527 = vmatprep.subr.bf16.mxu0 (!%p497_p2), %v2678_v10  ;;  %2376 = vmatprep.mubr.msk.f32.mxu0 (!%p497_p2), %vm2679_vm1, %v2680_v13  ;;  %v2531_v14 = vpack.c.bf16 (!%p497_p2), %v617_v12, %v616_v9  ;;  %v619_v16 = vld [vmem:[%s3111_s4 + $0x28] sm:$0xff] (!%p497_p2)  ;;  %v620_v18 = vld [vmem:[%s3111_s4 + $0x30] sm:$0xff] (!%p497_p2)  ;;  %v621_v19 = vld [vmem:[%s3111_s4 + $0x38] sm:$0xff] (!%p497_p2)  ;;  %vm623_vm3 = vcmask (!%p497_p2), 523264   ;;  %vm720_vm4 = vcmask (!%p497_p2), 253952   ;;  %v2841_v58 = vshrl.u32 (!%p497_p2), %v697_v57, 7 }
   0xa   : > { %2539 = vmatprep.subr.bf16.mxu1 (!%p497_p2), %v2678_v10  ;;  %2387 = vmatprep.mubr.msk.f32.mxu1 (!%p497_p2), %vm2679_vm1, %v2680_v13  ;;  %v2534_v17 = vpack.c.bf16 (!%p497_p2), %v619_v16, %v618_v15  ;;  %v2537_v20 = vpack.c.bf16 (!%p497_p2), %v621_v19, %v620_v18  ;;  %v568_v25 = vld [vmem:[%s3109_s2] sm:$0x1] (!%p497_p2)  ;;  %vm713_vm6 = vcmask (!%p497_p2), 261120   ;;  %v853_v57 = vld [vmem:[%s3116_s9 + $0x18] sm:$0xff] (!%p497_p2)  ;;  %vm1028_vm7 = vcmask (!%p497_p2), 64512   ;;  %s2681_s23 = smov (!%p497_p2), 120  }
   0xb   : > { %2529 = vmatpush3.bf16.msra.mxu0 (!%p497_p2), %v2528_v11  ;;  %v569_v27 = vld [vmem:[%s3110_s3] sm:$0x1] (!%p497_p2)  ;;  %v706_v60 = vsub.s32 (!%p497_p2), 0, %v2841_v58  ;;  %vm701_vm5 = vcmp.eq.s32.totalorder (!%p497_p2), %v2841_v58, 0  ;;  %vm2938_vm8 = vmpackc.low (!%p497_p2), %vm1028_vm7, %vm1028_vm7  ;;  %vm1128_vm9 = vcmask (!%p497_p2), 1040384   ;;  %vm1112_vm10 = vcmask (!%p497_p2), 131072  }
   0xc   : > { %2530 = vmatprep.subr.bf16.mxu0 (!%p497_p2), %v2678_v10  ;;  %v622_v59 = vld [vmem:[%s3112_s5] sm:$0x1] (!%p497_p2)  ;;  %s2683_s28 = smov (!%p497_p2), 104   ;;  %vm1124_vm11 = vcmask (!%p497_p2), 138240   ;;  %vm2171_vm13 = vcmask (!%p497_p2), 520192  }
   0xf   : > { %s3132_s25 = smov (!%p551_p3, %s2238_s25), 1  ;;  %2532 = vmatpush3.bf16.msra.mxu0 %v2531_v14 }
  0x10   : > { %s2243_s26 = sshll.u32 %s3132_s25, 3  ;;  %2533 = vmatprep.subr.bf16.mxu0 %v2678_v10  ;;  %s2591_s27 = smul.u32 24, %s3132_s25 }
  0x11   : > { %s554_s0 = scalar_lea.vmem %s3127_s29, %s2243_s26 }
  0x12   : > { %v2790_v0 = vld [vmem:[%s554_s0] sm:$0x1f]  ;;  %s3128_s0 = sld [smem:[#allocation3_spill]] }
  0x13   : > { %v571_v1 = vsel %vm570_vm0, %v2790_v0, 0.0  ;;  %2535 = vmatpush3.bf16.msra.mxu0 %v2534_v17 }
  0x14   : > { %572 = vadd.xlane.f32.xlu0 %v571_v1  ;;  %2536 = vmatprep.subr.bf16.mxu0 %v2678_v10 }
  0x17   : > { %2538 = vmatpush3.bf16.msra.mxu0 %v2537_v20 }
  0x18   : > { %2551 = vmatprep.subr.bf16.mxu0 %v2678_v10  ;;  %s559_s30 = scalar_lea.vmem %s3128_s0, %s2591_s27  ;;  %s2682_s27 = smov 112  }
  0x19   : > { %v567_v55 = vld [vmem:[%s559_s30 + $0x10] sm:$0x1]  ;;  %v565_v1 = vld [vmem:[%s559_s30] sm:$0xff] }
  0x1a   : > { %v721_v56 = vsel %vm720_vm4, %v567_v55, 0.0 }
  0xa1   : > { %v573_v2 = vpop.xlane.xlu0 %572 }
  0xa2   : > { %v575_v3 = vmul.f32 0.015625, %v573_v2 }
  0xa4   : > { %v576_v4 = vsub.f32 %v2790_v0, %v575_v3 }
  0xa6   : > { %v577_v5 = vmul.f32 %v576_v4, %v576_v4 }
  0xa8   : > { %v578_v6 = vsel %vm570_vm0, %v577_v5, 0.0 }
  0xa9   : > { %579 = vadd.xlane.f32.xlu0 %v578_v6 }
  0xad   : > { %722 = vadd.xlane.f32.xlu0 %v721_v56  ;;  %v852_v56 = vld [vmem:[%s3116_s9 + $0x10] sm:$0xff] }
 0x136   : > { %v580_v21 = vpop.xlane.xlu0 %579 }
 0x137   : > { %v581_v22 = vmul.f32 0.015625, %v580_v21 }
 0x139   : > { %v582_v23 = vadd.f32 1e-05, %v581_v22 }
 0x13a   : > { %v723_v7 = vpop.xlane.xlu0 %722 }
 0x13b   : > { %2636 = vrsqrt.f32 %v582_v23  ;;  %v727_v8 = vmul.f32 0.03125, %v723_v7 }
 0x13d   : > { %v730_v12 = vsub.f32 %v567_v55, %v727_v8 }
 0x13f   : > { %v733_v18 = vmul.f32 %v730_v12, %v730_v12 }
 0x141   : > { %v740_v22 = vsel %vm720_vm4, %v733_v18, 0.0 }
 0x145   : > { %v2637_v24 = vpop.eup %2636 }
 0x146   : > { %v584_v26 = vmul.f32 %v2637_v24, %v576_v4  ;;  %v566_v4 = vld [vmem:[%s559_s30 + $0x8] sm:$0xff]  ;;  %v773_v24 = vld [vmem:[%s3115_s8] sm:$0xff]  ;;  %s563_s30 = scalar_lea.vmem %s3124_s17, %s2243_s26 }
 0x147   : > { %v717_v6 = vsel %vm713_vm6, %v566_v4, 0.0 }
 0x148   : > { %v585_v28 = vmul.f32 %v584_v26, %v568_v25  ;;  %v774_v25 = vld [vmem:[%s3115_s8 + $0x8] sm:$0xff]  ;;  %v940_v26 = vld [vmem:[%s3117_s10] sm:$0xff] }
 0x14a   : > { %v586_v29 = vadd.f32 %v585_v28, %v569_v27  ;;  %v2540_v27 = vpack.c.bf16 %v774_v25, %v773_v24  ;;  %v941_v28 = vld [vmem:[%s3117_s10 + $0x8] sm:$0xff] }
 0x14c   : > { %v588_v30 = vmul.f32 0.70710677, %v586_v29  ;;  %v587_v52 = vmul.f32 0.5, %v586_v29  ;;  %v775_v29 = vld [vmem:[%s3115_s8 + $0x10] sm:$0xff]  ;;  %2541 = vmatpush3.bf16.msra.mxu1 %v2540_v27 }
 0x14d   : > { %2542 = vmatprep.subr.bf16.mxu1 %v2678_v10 }
 0x14e   : > { %v589_v31 = vand.u32 2147483647, %v588_v30  ;;  %vm609_vm2 = vcmp.ge.f32.partialorder %v588_v30, 0.0  ;;  %v776_v30 = vld [vmem:[%s3115_s8 + $0x18] sm:$0xff] }
 0x150   : > { %v590_v32 = vmul.f32 0.3275911, %v589_v31  ;;  %v603_v34 = vsub.f32 0.0, %v589_v31 }
 0x152   : > { %v591_v33 = vadd.f32 1.0, %v590_v32  ;;  %v604_v36 = vmul.f32 %v603_v34, %v589_v31  ;;  %v2552_v31 = vpack.c.bf16 %v941_v28, %v940_v26  ;;  %v942_v32 = vld [vmem:[%s3117_s10 + $0x10] sm:$0xff]  ;;  %v2543_v34 = vpack.c.bf16 %v776_v30, %v775_v29 }
 0x154   : > { %2638 = vrcp.f32 %v591_v33  ;;  %v605_v39 = vmul.f32 1.442695, %v604_v36  ;;  %v943_v33 = vld [vmem:[%s3117_s10 + $0x18] sm:$0xff]  ;;  %2544 = vmatpush3.bf16.msra.mxu1 %v2543_v34 }
 0x155   : > { %2545 = vmatprep.subr.bf16.mxu1 %v2678_v10 }
 0x156   : > { %2640 = vpow2.f32 %v605_v39 }
 0x15e   : > { %v2639_v35 = vpop.eup %2638 }
 0x15f   : > { %v594_v37 = vmul.f32 1.0614054, %v2639_v35 }
 0x160   : > { %v2641_v47 = vpop.eup %2640 }
 0x161   : > { %v595_v38 = vadd.f32 -1.4531521, %v594_v37 }
 0x163   : > { %v596_v40 = vmul.f32 %v2639_v35, %v595_v38 }
 0x165   : > { %v597_v41 = vadd.f32 1.4214138, %v596_v40 }
 0x167   : > { %v598_v42 = vmul.f32 %v2639_v35, %v597_v41 }
 0x169   : > { %v599_v43 = vadd.f32 -0.28449672, %v598_v42 }
 0x16b   : > { %v600_v44 = vmul.f32 %v2639_v35, %v599_v43 }
 0x16d   : > { %v601_v45 = vadd.f32 0.2548296, %v600_v44 }
 0x16f   : > { %v602_v46 = vmul.f32 %v2639_v35, %v601_v45  ;;  %v2555_v35 = vpack.c.bf16 %v943_v33, %v942_v32 }
 0x171   : > { %v607_v48 = vmul.f32 %v2641_v47, %v602_v46  ;;  %v2247_v46 = vld [vmem:[%s3113_s6] ss:$0 sm:$0xff] }
 0x173   : > { %v608_v49 = vsub.f32 1.0, %v607_v48  ;;  %v850_v48 = vld [vmem:[%s3116_s9] sm:$0xff] }
 0x175   : > { %v610_v50 = vsub.f32 0.0, %v608_v49 }
 0x177   : > { %v611_v51 = vsel %vm609_vm2, %v608_v49, %v610_v50  ;;  %v851_v49 = vld [vmem:[%s3116_s9 + $0x8] sm:$0xff]  ;;  %v2248_v50 = vld [vmem:[%s3114_s7] ss:$0 sm:$0xff] }
 0x178   : > { %v612_v53 = vadd.f32 1.0, %v611_v51 }
 0x17a   : > { %v613_v54 = vmul.f32 %v612_v53, %v587_v52  ;;  %v2546_v53 = vpack.c.bf16 %v851_v49, %v850_v48 }
 0x17c   : > { %2377 = vmatmul.mubr.msk.f32.vlgmr.msra.gmra.mrb[0].mxu0 %vm623_vm3, %v613_v54 }
 0x17d   : > { %2415 = vmatprep.mubr.msk.f32.mxu0 %vm2679_vm1, %v2680_v13  ;;  %2553 = vmatpush3.bf16.msra.mxu0 %v2552_v31 }
 0x17e   : > { %2554 = vmatprep.subr.bf16.mxu0 %v2678_v10 }
 0x181   : > { %2556 = vmatpush3.bf16.msra.mxu0 %v2555_v35 }
 0x182   : > { %2564 = vmatprep.subr.bf16.mxu0 %v2678_v10 }
 0x24f   : > { %v693_v61 = vpop.f32.mrb[0].mxu0 }
 0x250   : > { %v694_v62 = vadd.f32 %v693_v61, %v622_v59  ;;  %v2378_v63 = vpop.f32.mrb[1].mxu0 }
 0x252   : > { %v707_v2 = vrot.slane %v694_v62, %v706_v60  ;;  %v2549_v62 = vpack.c.bf16 %v853_v57, %v852_v56  ;;  %v1024_v57 = vld [vmem:[%s3118_s11] sm:$0xff] }
 0x254   : > { %v2852_v3 = vsel %vm701_vm5, %v707_v2, %v565_v1 }
 0x255   : > { %v714_v5 = vsel %vm713_vm6, %v2852_v3, 0.0 }
 0x256   : > { %715 = vadd.xlane.f32.xlu1 %v714_v5 }
 0x25a   : > { %718 = vadd.xlane.f32.xlu1 %v717_v6 }
 0x2e3   : > { %v716_v9 = vpop.xlane.xlu1 %715 }
 0x2e4   : > { %v725_v11 = vmul.f32 0.03125, %v716_v9 }
 0x2e6   : > { %v728_v14 = vsub.f32 %v2852_v3, %v725_v11 }
 0x2e7   : > { %v719_v15 = vpop.xlane.xlu1 %718 }
 0x2e8   : > { %v726_v16 = vmul.f32 0.03125, %v719_v15  ;;  %v731_v17 = vmul.f32 %v728_v14, %v728_v14 }
 0x2ea   : > { %v729_v19 = vsub.f32 %v566_v4, %v726_v16  ;;  %v734_v20 = vsel %vm713_vm6, %v731_v17, 0.0 }
 0x2eb   : > { %735 = vadd.xlane.f32.xlu1 %v734_v20 }
 0x2ec   : > { %v732_v21 = vmul.f32 %v729_v19, %v729_v19 }
 0x2ee   : > { %v737_v23 = vsel %vm713_vm6, %v732_v21, 0.0 }
 0x2ef   : > { %738 = vadd.xlane.f32.xlu0 %v737_v23  ;;  %741 = vadd.xlane.f32.xlu1 %v740_v22 }
 0x378   : > { %v736_v36 = vpop.xlane.xlu1 %735 }
 0x379   : > { %v743_v37 = vmul.f32 0.03125, %v736_v36 }
 0x37b   : > { %v746_v38 = vadd.f32 1e-05, %v743_v37 }
 0x37c   : > { %v742_v39 = vpop.xlane.xlu1 %741  ;;  %v739_v40 = vpop.xlane.xlu0 %738 }
 0x37d   : > { %2642 = vrsqrt.f32 %v746_v38  ;;  %v745_v41 = vmul.f32 0.03125, %v742_v39  ;;  %v744_v42 = vmul.f32 0.03125, %v739_v40 }
 0x37f   : > { %v748_v43 = vadd.f32 1e-05, %v745_v41  ;;  %v747_v44 = vadd.f32 1e-05, %v744_v42 }
 0x381   : > { %2644 = vrsqrt.f32 %v748_v43 }
 0x382   : > { %2646 = vrsqrt.f32 %v747_v44 }
 0x387   : > { %v2643_v45 = vpop.eup %2642 }
 0x388   : > { %v752_v47 = vmul.f32 %v2643_v45, %v728_v14 }
 0x38a   : > { %v761_v51 = vmul.f32 %v2247_v46, %v752_v47 }
 0x38b   : > { %v2645_v52 = vpop.eup %2644 }
 0x38c   : > { %v2647_v54 = vpop.eup %2646  ;;  %v770_v55 = vadd.f32 %v2248_v50, %v761_v51  ;;  %v754_v61 = vmul.f32 %v2645_v52, %v730_v12 }
 0x38d   : > { %v753_v59 = vmul.f32 %v2647_v54, %v729_v19 }
 0x38e   : > { %2388 = vmatmul.mubr.msk.f32.vlgmr.msra.gmra.mrb[0].mxu1 %vm713_vm6, %v770_v55  ;;  %2416 = vmatmul.mubr.msk.f32.vlgmr.msra.gmra.mrb[2].mxu0 %vm713_vm6, %v770_v55  ;;  %v763_v2 = vmul.f32 %v2247_v46, %v754_v61 }
 0x38f   : > { %2547 = vmatpush3.bf16.msra.mxu1 %v2546_v53  ;;  %2418 = vmatprep.mubr.msk.f32.mxu0 %vm2679_vm1, %v2680_v13  ;;  %v762_v63 = vmul.f32 %v2247_v46, %v753_v59 }
 0x390   : > { %2548 = vmatprep.subr.bf16.mxu1 %v2678_v10  ;;  %2398 = vmatprep.mubr.msk.f32.mxu1 %vm2679_vm1, %v2680_v13  ;;  %v772_v4 = vadd.f32 %v2248_v50, %v763_v2 }
 0x391   : > { %v771_v1 = vadd.f32 %v2248_v50, %v762_v63 }
 0x393   : > { %2550 = vmatpush3.bf16.msra.mxu1 %v2549_v62  ;;  %2419 = vmatmul.mubr.msk.f32.gmra.mrb[4].mxu0 %vm713_vm6, %v771_v1 }
 0x394   : > { %2421 = vmatprep.mubr.msk.f32.mxu0 %vm2679_vm1, %v2680_v13  ;;  %2557 = vmatprep.subr.bf16.mxu1 %v2678_v10 }
 0x396   : > { %2399 = vmatmul.mubr.msk.f32.vlgmr.msra.gmra.mrb[2].mxu1 %vm713_vm6, %v770_v55 }
 0x397   : > { %2422 = vmatmul.mubr.msk.f32.gmra.mrb[6].mxu0 %vm713_vm6, %v772_v4  ;;  %2401 = vmatprep.mubr.msk.f32.mxu1 %vm2679_vm1, %v2680_v13 }
 0x398   : > { %2448 = vmatprep.mubr.msk.f32.mxu0 %vm2679_vm1, %v2680_v13 }
 0x39a   : > { %2402 = vmatmul.mubr.msk.f32.gmra.mrb[4].mxu1 %vm713_vm6, %v771_v1  ;;  %v1025_v1 = vld [vmem:[%s3118_s11 + $0x8] sm:$0xff] }
 0x39b   : > { %2404 = vmatprep.mubr.msk.f32.mxu1 %vm2679_vm1, %v2680_v13 }
 0x39e   : > { %2405 = vmatmul.mubr.msk.f32.gmra.mrb[6].mxu1 %vm713_vm6, %v772_v4 }
 0x39f   : > { %2430 = vmatprep.mubr.msk.f32.mxu1 %vm2679_vm1, %v2680_v13 }
 0x461   : > { %v2930_v5 = vpop.f32.mrb[0].mxu1  ;;  %v1010_v6 = vpop.f32.mrb[2].mxu0 }
 0x462   : > { %v2389_v7 = vpop.f32.mrb[1].mxu1  ;;  %v2417_v8 = vpop.f32.mrb[3].mxu0 }
 0x466   : > { %v1015_v9 = vpop.f32.mrb[4].mxu0 }
 0x467   : > { %v2562_v11 = vpack.c.bf16 %v1015_v9, %v1010_v6  ;;  %v2420_v12 = vpop.f32.mrb[5].mxu0  ;;  %v2932_v14 = vpack.i.bf16 %v1015_v9, %v1010_v6 }
 0x469   : > { %v926_v15 = vpop.f32.mrb[2].mxu1 }
 0x46a   : > { %v2400_v16 = vpop.f32.mrb[3].mxu1  ;;  %v2934_v17 = vpop.f32.mrb[6].mxu0 }
 0x46b   : > { %v2423_v18 = vpop.f32.mrb[7].mxu0 }
 0x46d   : > { %v931_v19 = vpop.f32.mrb[4].mxu1 }
 0x46e   : > { %v2558_v21 = vpack.c.bf16 %v931_v19, %v926_v15  ;;  %v2403_v22 = vpop.f32.mrb[5].mxu1  ;;  %v2942_v23 = vpack.i.bf16 %v931_v19, %v926_v15 }
 0x470   : > { %2607 = vrot.lane.b32.xlu0 %v2942_v23, %s2681_s23  ;;  %2560 = vmatpush3.bf16.xpose.msk.msra.mxu1 %vm2938_vm8, %v2558_v21 }
 0x471   : > { %v936_v24 = vpop.f32.mrb[6].mxu1  ;;  %2428 = vmatprep.subr.mxu1 %v2680_v13 }
 0x472   : > { %1208 = vrot.lane.b32.xlu1 %v936_v24, %s2681_s23  ;;  %v2406_v25 = vpop.f32.mrb[7].mxu1 }
 0x476   : > { %1202 = vrot.lane.b32.xlu1 %v2930_v5, %s2681_s23 }
 0x478   : > { %2429 = vmatpush3.xpose.msk.msra.mxu1 %vm1028_vm7, %v936_v24 }
 0x479   : > { %2561 = vmatprep.subr.bf16.mxu1 %v2678_v10 }
 0x47b   : > { %2431 = vmatmul.mubr.msk.f32.vlgmr.msra.gmra.mrb[8].mxu1 %vm1028_vm7, %v2930_v5 }
 0x47c   : > { %2563 = vmatpush3.bf16.msra.mxu1 %v2562_v11  ;;  %2439 = vmatprep.mubr.msk.f32.mxu1 %vm2679_vm1, %v2680_v13 }
 0x47d   : > { %2437 = vmatprep.subr.mxu1 %v2680_v13 }
 0x480   : > { %2438 = vmatpush3.msk.msra.mxu1 %vm1128_vm9, %v2934_v17 }
 0x481   : > { %2568 = vmatprep.subr.bf16.mxu1 %v2678_v10 }
 0x4e2   : > { %v2608_v26 = vpop.permute.xlu0 %2607 }
 0x4e3   : > { %v2610_v27 = vunpack.i.h.bf16 %v2608_v26  ;;  %v2609_v28 = vunpack.i.l.bf16 %v2608_v26 }
 0x4e4   : > { %v1209_v30 = vpop.permute.xlu1 %1208 }
 0x4e5   : > { %v2565_v29 = vpack.c.bf16 %v2610_v27, %v2609_v28 }
 0x4e7   : > { %2567 = vmatpush3.bf16.xpose.msk.msra.mxu0 %vm2938_vm8, %v2565_v29 }
 0x4e8   : > { %2446 = vmatprep.subr.mxu0 %v2680_v13  ;;  %v1203_v31 = vpop.permute.xlu1 %1202 }
 0x4ef   : > { %2447 = vmatpush3.xpose.msk.msra.mxu0 %vm1028_vm7, %v1209_v30 }
 0x4f0   : > { %2465 = vmatprep.subr.mxu0 %v2680_v13 }
 0x4f2   : > { %2449 = vmatmul.mubr.msk.f32.vlgmr.msra.gmra.mrb[8].mxu0 %vm1028_vm7, %v1203_v31 }
 0x4f3   : > { %2467 = vmatprep.mubr.msk.f32.mxu0 %vm2679_vm1, %v2680_v13  ;;  %2466 = vmatpush3.msra.mxu0 %v1024_v57 }
 0x4f4   : > { %2575 = vmatprep.subr.bf16.mxu0 %v2678_v10 }
 0x54e   : > { %v1107_v32 = vpop.f32.mrb[8].mxu1 }
 0x54f   : > { %v1111_v33 = vmul.f32 0.35355338, %v1107_v32  ;;  %v2432_v34 = vpop.f32.mrb[9].mxu1 }
 0x551   : > { %v1113_v35 = vsel %vm1112_vm10, %v1111_v33, -inf }
 0x552   : > { %1114 = vmax.xlane.f32.xlu1 %v1113_v35 }
 0x563   : > { %2612 = vrot.lane.b32.xlu1 %v2932_v14, %s2681_s23 }
 0x567   : > { %2617 = vrot.lane.b32.xlu1 %v2942_v23, %s2682_s27 }
 0x56b   : > { %1537 = vrot.lane.b32.xlu1 %v936_v24, %s2682_s27 }
 0x56f   : > { %1531 = vrot.lane.b32.xlu1 %v2930_v5, %s2682_s27 }
 0x573   : > { %1792 = vrot.lane.b32.xlu1 %v936_v24, %s2683_s28 }
 0x5c5   : > { %v1284_v36 = vpop.f32.mrb[8].mxu0 }
 0x5c6   : > { %v1288_v37 = vmul.f32 0.35355338, %v1284_v36  ;;  %v2450_v38 = vpop.f32.mrb[9].mxu0 }
 0x5c8   : > { %v1289_v39 = vsel %vm1112_vm10, %v1288_v37, -inf }
 0x5c9   : > { %1290 = vmax.xlane.f32.xlu0 %v1289_v39 }
 0x5df   : > { %v1115_v40 = vpop.xlane.xlu1 %1114 }
 0x5e0   : > { %v1116_v41 = vsub.f32 %v1111_v33, %v1115_v40 }
 0x5e2   : > { %v1117_v42 = vmul.f32 1.442695, %v1116_v41 }
 0x5e3   : > { %v2613_v51 = vpop.permute.xlu1 %2612 }
 0x5e4   : > { %2648 = vpow2.f32 %v1117_v42  ;;  %v2615_v52 = vunpack.i.h.bf16 %v2613_v51  ;;  %v2614_v53 = vunpack.i.l.bf16 %v2613_v51 }
 0x5e6   : > { %v2569_v56 = vpack.c.bf16 %v2615_v52, %v2614_v53  ;;  %v1026_v53 = vld [vmem:[%s3118_s11 + $0x10] sm:$0xff] }
 0x5ee   : > { %v2649_v43 = vpop.eup %2648 }
 0x5ef   : > { %v1119_v44 = vsel %vm1112_vm10, %v2649_v43, 0.0 }
 0x5f0   : > { %1120 = vadd.xlane.f32.xlu0 %v1119_v44 }
 0x656   : > { %v1291_v45 = vpop.xlane.xlu0 %1290 }
 0x657   : > { %v1292_v46 = vsub.f32 %v1288_v37, %v1291_v45 }
 0x659   : > { %v1293_v47 = vmul.f32 1.442695, %v1292_v46 }
 0x65b   : > { %2650 = vpow2.f32 %v1293_v47 }
 0x665   : > { %v2651_v48 = vpop.eup %2650 }
 0x666   : > { %v1295_v49 = vsel %vm1112_vm10, %v2651_v48, 0.0 }
 0x667   : > { %1296 = vadd.xlane.f32.xlu0 %v1295_v49 }
 0x67d   : > { %1306 = vrot.lane.b32.xlu0 %v2934_v17, %s2681_s23  ;;  %v1121_v50 = vpop.xlane.xlu0 %1120 }
 0x67e   : > { %2652 = vrcp.f32 %v1121_v50 }
 0x681   : > { %2622 = vrot.lane.b32.xlu0 %v2942_v23, %s2683_s28 }
 0x685   : > { %1786 = vrot.lane.b32.xlu0 %v2930_v5, %s2683_s28  ;;  %v2618_v5 = vpop.permute.xlu1 %2617 }
 0x686   : > { %v2620_v6 = vunpack.i.h.bf16 %v2618_v5  ;;  %v2619_v7 = vunpack.i.l.bf16 %v2618_v5 }
 0x688   : > { %v2653_v54 = vpop.eup %2652  ;;  %v2572_v8 = vpack.c.bf16 %v2620_v6, %v2619_v7 }
 0x689   : > { %v1123_v55 = vmul.f32 %v2653_v54, %v2649_v43  ;;  %v1538_v15 = vpop.permute.xlu1 %1537 }
 0x68b   : > { %2440 = vmatmul.mubr.msk.f32.vlgmr.msra.gmra.mrb[10].mxu1 %vm1124_vm11, %v1123_v55 }
 0x68c   : > { %2570 = vmatpush3.bf16.msra.mxu1 %v2569_v56  ;;  %2457 = vmatprep.mubr.msk.f32.mxu1 %vm2679_vm1, %v2680_v13 }
 0x68d   : > { %2455 = vmatprep.subr.mxu1 %v2680_v13  ;;  %v1532_v19 = vpop.permute.xlu1 %1531 }
 0x691   : > { %v1793_v22 = vpop.permute.xlu1 %1792 }
 0x6f4   : > { %v1297_v59 = vpop.xlane.xlu0 %1296 }
 0x6f5   : > { %2654 = vrcp.f32 %v1297_v59 }
 0x6f8   : > { %v1307_v61 = vpop.permute.xlu0 %1306 }
 0x6f9   : > { %2456 = vmatpush3.msk.msra.mxu1 %vm1128_vm9, %v1307_v61 }
 0x6fa   : > { %2460 = vmatprep.subr.mxu1 %v2680_v13 }
 0x6fc   : > { %v2623_v12 = vpop.permute.xlu0 %2622 }
 0x6fd   : > { %v2625_v16 = vunpack.i.h.bf16 %v2623_v12  ;;  %v2624_v18 = vunpack.i.l.bf16 %v2623_v12 }
 0x6ff   : > { %v2655_v62 = vpop.eup %2654  ;;  %v2579_v21 = vpack.c.bf16 %v2625_v16, %v2624_v18 }
 0x700   : > { %v1299_v63 = vmul.f32 %v2655_v62, %v2651_v48  ;;  %v1787_v23 = vpop.permute.xlu0 %1786 }
 0x702   : > { %2458 = vmatmul.mubr.msk.f32.vlgmr.msra.gmra.mrb[12].mxu1 %vm1124_vm11, %v1299_v63 }
 0x703   : > { %2461 = vmatpush3.msra.mxu1 %v1025_v1  ;;  %2462 = vmatprep.mubr.msk.f32.mxu1 %vm2679_vm1, %v2680_v13 }
 0x704   : > { %2571 = vmatprep.subr.bf16.mxu1 %v2678_v10 }
 0x75e   : > { %v1198_v2 = vpop.f32.mrb[10].mxu1 }
 0x75f   : > { %v2441_v4 = vpop.f32.mrb[11].mxu1  ;;  %2468 = vmatmul.mubr.msk.f32.vlgmr.msra.gmra.mrb[10].mxu0 %vm1028_vm7, %v1198_v2  ;;  %v1027_v2 = vld [vmem:[%s3118_s11 + $0x18] sm:$0xff] }
 0x760   : > { %2485 = vmatprep.mubr.msk.f32.mxu0 %vm2679_vm1, %v2680_v13 }
 0x7d5   : > { %v1381_v9 = vpop.f32.mrb[12].mxu1 }
 0x7d6   : > { %v2459_v11 = vpop.f32.mrb[13].mxu1  ;;  %2463 = vmatmul.mubr.msk.f32.vlgmr.msra.gmra.mrb[14].mxu1 %vm1028_vm7, %v1381_v9 }
 0x7d7   : > { %2574 = vmatpush3.bf16.xpose.msk.msra.mxu1 %vm2938_vm8, %v2572_v8  ;;  %2476 = vmatprep.mubr.msk.f32.mxu1 %vm2679_vm1, %v2680_v13 }
 0x7d8   : > { %2474 = vmatprep.subr.mxu1 %v2680_v13 }
 0x7df   : > { %2475 = vmatpush3.xpose.msk.msra.mxu1 %vm1028_vm7, %v1538_v15  ;;  %v2042_v15 = vld [vmem:[%s3119_s12] sm:$0x1] }
 0x7e0   : > { %2578 = vmatprep.subr.bf16.mxu1 %v2678_v10 }
 0x7e2   : > { %2477 = vmatmul.mubr.msk.f32.vlgmr.msra.gmra.mrb[16].mxu1 %vm1028_vm7, %v1532_v19 }
 0x7e3   : > { %2581 = vmatpush3.bf16.xpose.msk.msra.mxu1 %vm2938_vm8, %v2579_v21  ;;  %2499 = vmatprep.mubr.msk.f32.mxu1 %vm2679_vm1, %v2680_v13 }
 0x7e4   : > { %2497 = vmatprep.subr.mxu1 %v2680_v13 }
 0x7eb   : > { %2498 = vmatpush3.xpose.msk.msra.mxu1 %vm1028_vm7, %v1793_v22 }
 0x7ee   : > { %2500 = vmatmul.mubr.msk.f32.vlgmr.msra.gmra.mrb[18].mxu1 %vm1028_vm7, %v1787_v23 }
 0x832   : > { %v1527_v24 = vpop.f32.mrb[10].mxu0 }
 0x833   : > { %v2469_v25 = vpop.f32.mrb[11].mxu0 }
 0x8a9   : > { %v1454_v26 = vpop.f32.mrb[14].mxu1 }
 0x8aa   : > { %v3024_v27 = vadd.f32 %v1527_v24, %v1454_v26  ;;  %v2464_v28 = vpop.f32.mrb[15].mxu1  ;;  %v2089_v26 = vld [vmem:[%s3122_s15 + $0x8] sm:$0xff] }
 0x8ab   : > { %v2091_v28 = vld [vmem:[%s3122_s15 + $0x18] sm:$0xff] }
 0x8b5   : > { %v1613_v29 = vpop.f32.mrb[16].mxu1 }
 0x8b6   : > { %v1617_v20 = vmul.f32 0.35355338, %v1613_v29  ;;  %v2478_v30 = vpop.f32.mrb[17].mxu1 }
 0x8b8   : > { %v1618_v31 = vsel %vm1112_vm10, %v1617_v20, -inf }
 0x8b9   : > { %1619 = vmax.xlane.f32.xlu1 %v1618_v31 }
 0x8c1   : > { %v1868_v32 = vpop.f32.mrb[18].mxu1 }
 0x8c2   : > { %v2501_v33 = vpop.f32.mrb[19].mxu1  ;;  %v1872_v34 = vmul.f32 0.35355338, %v1868_v32 }
 0x8c3   : > { %v2044_v33 = vld [vmem:[%s3120_s13] sm:$0x1] }
 0x8c4   : > { %v1873_v35 = vsel %vm1112_vm10, %v1872_v34, -inf }
 0x8ca   : > { %1633 = vrot.lane.b32.xlu1 %v2934_v17, %s2682_s27 }
 0x8ee   : > { %1874 = vmax.xlane.f32.xlu1 %v1873_v35  ;;  %v2045_v35 = vld [vmem:[%s3121_s14] sm:$0x1] }
 0x8ff   : > { %1888 = vrot.lane.b32.xlu1 %v2934_v17, %s2683_s28 }
 0x946   : > { %v1620_v36 = vpop.xlane.xlu1 %1619 }
 0x947   : > { %v1621_v37 = vsub.f32 %v1617_v20, %v1620_v36 }
 0x949   : > { %v1622_v38 = vmul.f32 1.442695, %v1621_v37 }
 0x94a   : > { %v1634_v41 = vpop.permute.xlu1 %1633 }
 0x94b   : > { %2656 = vpow2.f32 %v1622_v38 }
 0x955   : > { %v2657_v39 = vpop.eup %2656 }
 0x956   : > { %v1624_v40 = vsel %vm1112_vm10, %v2657_v39, 0.0 }
 0x957   : > { %1625 = vadd.xlane.f32.xlu0 %v1624_v40 }
 0x96d   : > { %2627 = vrot.lane.b32.xlu0 %v2932_v14, %s2682_s27 }
 0x97b   : > { %v1875_v42 = vpop.xlane.xlu1 %1874 }
 0x97c   : > { %v1876_v43 = vsub.f32 %v1872_v34, %v1875_v42 }
 0x97e   : > { %v1877_v44 = vmul.f32 1.442695, %v1876_v43 }
 0x97f   : > { %v1889_v63 = vpop.permute.xlu1 %1888 }
 0x980   : > { %2658 = vpow2.f32 %v1877_v44 }
 0x98a   : > { %v2659_v45 = vpop.eup %2658 }
 0x98b   : > { %v1879_v46 = vsel %vm1112_vm10, %v2659_v45, 0.0 }
 0x98c   : > { %1880 = vadd.xlane.f32.xlu0 %v1879_v46 }
 0x9a2   : > { %2632 = vrot.lane.b32.xlu0 %v2932_v14, %s2683_s28 }
 0x9e4   : > { %v1626_v17 = vpop.xlane.xlu0 %1625 }
 0x9e5   : > { %2660 = vrcp.f32 %v1626_v17 }
 0x9e8   : > { %v2628_v47 = vpop.permute.xlu0 %2627 }
 0x9e9   : > { %v2630_v48 = vunpack.i.h.bf16 %v2628_v47  ;;  %v2629_v49 = vunpack.i.l.bf16 %v2628_v47 }
 0x9eb   : > { %v2576_v50 = vpack.c.bf16 %v2630_v48, %v2629_v49 }
 0x9ed   : > { %2577 = vmatpush3.bf16.msra.mxu0 %v2576_v50 }
 0x9ee   : > { %2483 = vmatprep.subr.mxu0 %v2680_v13 }
 0x9ef   : > { %v2661_v51 = vpop.eup %2660 }
 0x9f0   : > { %v1628_v52 = vmul.f32 %v2661_v51, %v2657_v39 }
 0x9f1   : > { %2484 = vmatpush3.msk.msra.mxu0 %vm1128_vm9, %v1634_v41 }
 0x9f2   : > { %2486 = vmatmul.mubr.msk.f32.vlgmr.msra.gmra.mrb[12].mxu0 %vm1124_vm11, %v1628_v52  ;;  %2488 = vmatprep.subr.mxu0 %v2680_v13 }
 0x9f3   : > { %2489 = vmatpush3.msra.mxu0 %v1026_v53  ;;  %2490 = vmatprep.mubr.msk.f32.mxu0 %vm2679_vm1, %v2680_v13 }
 0x9f4   : > { %2582 = vmatprep.subr.bf16.mxu0 %v2678_v10 }
 0xa19   : > { %v1881_v14 = vpop.xlane.xlu0 %1880 }
 0xa1a   : > { %2662 = vrcp.f32 %v1881_v14 }
 0xa1d   : > { %v2633_v54 = vpop.permute.xlu0 %2632 }
 0xa1e   : > { %v2635_v55 = vunpack.i.h.bf16 %v2633_v54  ;;  %v2634_v56 = vunpack.i.l.bf16 %v2633_v54 }
 0xa20   : > { %v2583_v57 = vpack.c.bf16 %v2635_v55, %v2634_v56 }
 0xa24   : > { %v2663_v62 = vpop.eup %2662 }
 0xa25   : > { %v1883_v1 = vmul.f32 %v2663_v62, %v2659_v45  ;;  %v2092_v62 = vld [vmem:[%s3123_s16] sm:$0x1] }
 0xac5   : > { %v1708_v59 = vpop.f32.mrb[12].mxu0 }
 0xac6   : > { %v2487_v61 = vpop.f32.mrb[13].mxu0  ;;  %2491 = vmatmul.mubr.msk.f32.vlgmr.msra.gmra.mrb[14].mxu0 %vm1028_vm7, %v1708_v59 }
 0xac7   : > { %2584 = vmatpush3.bf16.msra.mxu0 %v2583_v57  ;;  %2508 = vmatprep.mubr.msk.f32.mxu0 %vm2679_vm1, %v2680_v13 }
 0xac8   : > { %2506 = vmatprep.subr.mxu0 %v2680_v13 }
 0xacb   : > { %2507 = vmatpush3.msk.msra.mxu0 %vm1128_vm9, %v1889_v63 }
 0xacc   : > { %2509 = vmatmul.mubr.msk.f32.vlgmr.msra.gmra.mrb[16].mxu0 %vm1124_vm11, %v1883_v1  ;;  %2511 = vmatprep.subr.mxu0 %v2680_v13 }
 0xacd   : > { %2513 = vmatprep.mubr.msk.f32.mxu0 %vm2679_vm1, %v2680_v13  ;;  %2512 = vmatpush3.msra.mxu0 %v1027_v2 }
 0xace   : > { %2585 = vmatprep.subr.bf16.mxu0 %v2678_v10 }
 0xb99   : > { %v1781_v4 = vpop.f32.mrb[14].mxu0 }
 0xb9a   : > { %v1785_v5 = vadd.f32 %v1781_v4, %v3024_v27  ;;  %v2492_v6 = vpop.f32.mrb[15].mxu0 }
 0xb9f   : > { %v1963_v7 = vpop.f32.mrb[16].mxu0 }
 0xba0   : > { %v2510_v8 = vpop.f32.mrb[17].mxu0  ;;  %2514 = vmatmul.mubr.msk.f32.vlgmr.msra.gmra.mrb[18].mxu0 %vm1028_vm7, %v1963_v7 }
 0xba1   : > { %2524 = vmatprep.mubr.msk.f32.mxu0 %vm2679_vm1, %v2680_v13  ;;  %v2088_v13 = vld [vmem:[%s3122_s15] sm:$0xff] }
 0xba2   : > { %v2586_v27 = vpack.c.bf16 %v2089_v26, %v2088_v13 }
 0xba4   : > { %2587 = vmatpush3.bf16.msra.mxu0 %v2586_v27 }
 0xba5   : > { %2588 = vmatprep.subr.bf16.mxu0 %v2678_v10 }
 0xc73   : > { %v2036_v9 = vpop.f32.mrb[18].mxu0 }
 0xc74   : > { %v2040_v11 = vadd.f32 %v2036_v9, %v1785_v5  ;;  %v2515_v12 = vpop.f32.mrb[19].mxu0 }
 0xc76   : > { %v2041_v16 = vadd.f32 %v2040_v11, %v2852_v3  ;;  %v2090_v3 = vld [vmem:[%s3122_s15 + $0x10] sm:$0xff] }
 0xc77   : > { %v2589_v29 = vpack.c.bf16 %v2091_v28, %v2090_v3 }
 0xc78   : > { %v2043_v18 = vadd.f32 %v2042_v15, %v2041_v16 }
 0xc79   : > { %2590 = vmatpush3.bf16.msra.mxu0 %v2589_v29 }
 0xc7a   : > { %v2046_v19 = vsel %vm720_vm4, %v2043_v18, 0.0 }
 0xc7b   : > { %2047 = vadd.xlane.f32.xlu1 %v2046_v19 }
 0xd08   : > { %v2048_v21 = vpop.xlane.xlu1 %2047 }
 0xd09   : > { %v2049_v22 = vmul.f32 0.03125, %v2048_v21 }
 0xd0b   : > { %v2050_v23 = vsub.f32 %v2043_v18, %v2049_v22 }
 0xd0d   : > { %v2051_v24 = vmul.f32 %v2050_v23, %v2050_v23 }
 0xd0f   : > { %v2052_v25 = vsel %vm720_vm4, %v2051_v24, 0.0 }
 0xd10   : > { %2053 = vadd.xlane.f32.xlu0 %v2052_v25 }
 0xd9d   : > { %v2054_v20 = vpop.xlane.xlu0 %2053 }
 0xd9e   : > { %v2055_v30 = vmul.f32 0.03125, %v2054_v20 }
 0xda0   : > { %v2056_v31 = vadd.f32 1e-05, %v2055_v30 }
 0xda2   : > { %2664 = vrsqrt.f32 %v2056_v31 }
 0xdac   : > { %v2665_v32 = vpop.eup %2664 }
 0xdad   : > { %v2058_v34 = vmul.f32 %v2665_v32, %v2050_v23 }
 0xdaf   : > { %v2059_v36 = vmul.f32 %v2058_v34, %v2044_v33 }
 0xdb1   : > { %v2060_v37 = vadd.f32 %v2059_v36, %v2045_v35 }
 0xdb3   : > { %v2062_v38 = vmul.f32 0.70710677, %v2060_v37  ;;  %v2061_v57 = vmul.f32 0.5, %v2060_v37 }
 0xdb5   : > { %v2063_v39 = vand.u32 2147483647, %v2062_v38  ;;  %vm2083_vm12 = vcmp.ge.f32.partialorder %v2062_v38, 0.0 }
 0xdb7   : > { %v2064_v10 = vmul.f32 0.3275911, %v2063_v39  ;;  %v2077_v41 = vsub.f32 0.0, %v2063_v39 }
 0xdb9   : > { %v2065_v40 = vadd.f32 1.0, %v2064_v10  ;;  %v2078_v43 = vmul.f32 %v2077_v41, %v2063_v39 }
 0xdbb   : > { %2666 = vrcp.f32 %v2065_v40  ;;  %v2079_v46 = vmul.f32 1.442695, %v2078_v43 }
 0xdbd   : > { %2668 = vpow2.f32 %v2079_v46 }
 0xdc5   : > { %v2667_v42 = vpop.eup %2666 }
 0xdc6   : > { %v2068_v44 = vmul.f32 1.0614054, %v2667_v42 }
 0xdc7   : > { %v2669_v53 = vpop.eup %2668 }
 0xdc8   : > { %v2069_v45 = vadd.f32 -1.4531521, %v2068_v44 }
 0xdca   : > { %v2070_v17 = vmul.f32 %v2667_v42, %v2069_v45 }
 0xdcc   : > { %v2071_v47 = vadd.f32 1.4214138, %v2070_v17 }
 0xdce   : > { %v2072_v48 = vmul.f32 %v2667_v42, %v2071_v47 }
 0xdd0   : > { %v2073_v49 = vadd.f32 -0.28449672, %v2072_v48 }
 0xdd2   : > { %v2074_v50 = vmul.f32 %v2667_v42, %v2073_v49 }
 0xdd4   : > { %v2075_v51 = vadd.f32 0.2548296, %v2074_v50 }
 0xdd6   : > { %v2076_v52 = vmul.f32 %v2667_v42, %v2075_v51 }
 0xdd8   : > { %v2081_v14 = vmul.f32 %v2669_v53, %v2076_v52 }
 0xdda   : > { %v2082_v54 = vsub.f32 1.0, %v2081_v14 }
 0xddc   : > { %v2084_v55 = vsub.f32 0.0, %v2082_v54 }
 0xdde   : > { %v2085_v56 = vsel %vm2083_vm12, %v2082_v54, %v2084_v55 }
 0xddf   : > { %v2086_v59 = vadd.f32 1.0, %v2085_v56 }
 0xde1   : > { %v2087_v61 = vmul.f32 %v2086_v59, %v2061_v57 }
 0xde3   : > { %2525 = vmatmul.mubr.msk.f32.vlgmr.msra.gmra.mrb[20].mxu0 %vm713_vm6, %v2087_v61 }
 0xeb6   : > { %v2162_v63 = vpop.f32.mrb[20].mxu0 }
 0xeb7   : > { %v2163_v1 = vadd.f32 %v2162_v63, %v2092_v62  ;;  %v2526_v2 = vpop.f32.mrb[21].mxu0 }
 0xeb9   : > { %v2169_v4 = vrot.slane %v2163_v1, %v706_v60 }
 0xebb   : > { %v2170_v5 = vsel %vm701_vm5, %v2169_v4, %v2790_v0 }
 0xebc   : > { %2172 = vst.msk [vmem:[%s563_s30] sm:$0x1f] %vm2171_vm13, %v2170_v5 }
 0xebd PF: > { %s27_s24 = sadd.s32 1, %s2676_s24  }
 0xebe   : > { %p24_p4 = scmp.ge.s32.totalorder %s27_s24, 4  }
 0xec0   :  { %26 = sbr.rel (!%p24_p4) target bundleno = 3 (0x3), region = 121 }

// kernel: _lambda_.39
= control target key start
LH: loop header
LB: loop body
LE: loop exit
PB: predicated region body
PF: predicated region fallthrough
CT: control target
= control target key end

     0   :  { %vm23_vm0 = vcmask 517120   ;;  %v196_v12 = vmov 0.0|0.0   ;;  %vm197_vm1 = vmmov 0   ;;  %v198_v13 = vmov 0.0   ;;  %s268_s0 = inlined_call_operand.vmem [shape: f32[2,64], index: 0, kind: input, shape index: {}]   ;;  %s269_s3 = inlined_call_operand.vmem [shape: f32[64,10], index: 3, kind: input, shape index: {}]   ;;  %s270_s1 = inlined_call_operand.vmem [shape: f32[1,64], index: 1, kind: input, shape index: {}]   ;;  %s271_s2 = inlined_call_operand.vmem [shape: f32[1,64], index: 2, kind: input, shape index: {}]   ;;  %s272_s4 = inlined_call_operand.vmem [shape: f32[1,10], index: 4, kind: input, shape index: {}]   ;;  %s273_s5 = inlined_call_operand.vmem [shape: f32[2,10], index: 5, kind: output, shape index: {}]  }
   0x1   :  { %v20_v0 = vld [vmem:[%s268_s0] sm:$0x3]  ;;  %v53_v8 = vld [vmem:[%s269_s3 + $0x8] sm:$0xff]  ;;  %v54_v10 = vld [vmem:[%s269_s3 + $0x10] sm:$0xff]  ;;  %179 = vmatprep.subr.bf16.mxu0 %v196_v12  ;;  %176 = vmatprep.mubr.msk.f32.mxu0 %vm197_vm1, %v198_v13  ;;  %vm67_vm2 = vcmask 523264   ;;  %vm141_vm3 = vcmask 74752  }
   0x2   :  { %v24_v1 = vsel %vm23_vm0, %v20_v0, 0.0  ;;  %v52_v7 = vld [vmem:[%s269_s3] sm:$0xff]  ;;  %v55_v11 = vld [vmem:[%s269_s3 + $0x18] sm:$0xff]  ;;  %v57_v16 = vld [vmem:[%s269_s3 + $0x28] sm:$0xff] }
   0x3   :  { %25 = vadd.xlane.f32.xlu0 %v24_v1  ;;  %v180_v9 = vpack.c.bf16 %v53_v8, %v52_v7  ;;  %v183_v14 = vpack.c.bf16 %v55_v11, %v54_v10  ;;  %v56_v15 = vld [vmem:[%s269_s3 + $0x20] sm:$0xff]  ;;  %v58_v18 = vld [vmem:[%s269_s3 + $0x30] sm:$0xff]  ;;  %v59_v19 = vld [vmem:[%s269_s3 + $0x38] sm:$0xff] }
   0x4   :  { %v186_v17 = vpack.c.bf16 %v57_v16, %v56_v15  ;;  %v189_v20 = vpack.c.bf16 %v59_v19, %v58_v18  ;;  %v147_v25 = vld [vmem:[%s270_s1] ss:$0 sm:$0xff] }
   0x5   :  { %181 = vmatpush3.bf16.msra.mxu0 %v180_v9  ;;  %v148_v27 = vld [vmem:[%s271_s2] ss:$0 sm:$0xff] }
   0x6   :  { %182 = vmatprep.subr.bf16.mxu0 %v196_v12  ;;  %v149_v30 = vld [vmem:[%s272_s4] ss:$0 sm:$0xff] }
   0x9   :  { %184 = vmatpush3.bf16.msra.mxu0 %v183_v14 }
   0xa   :  { %185 = vmatprep.subr.bf16.mxu0 %v196_v12 }
   0xd   :  { %187 = vmatpush3.bf16.msra.mxu0 %v186_v17 }
   0xe   :  { %188 = vmatprep.subr.bf16.mxu0 %v196_v12 }
  0x11   :  { %190 = vmatpush3.bf16.msra.mxu0 %v189_v20 }
  0x90   :  { %v26_v2 = vpop.xlane.xlu0 %25 }
  0x91   :  { %v28_v3 = vmul.f32 0.015625, %v26_v2 }
  0x93   :  { %v29_v4 = vsub.f32 %v20_v0, %v28_v3 }
  0x95   :  { %v30_v5 = vmul.f32 %v29_v4, %v29_v4 }
  0x97   :  { %v31_v6 = vsel %vm23_vm0, %v30_v5, 0.0 }
  0x98   :  { %32 = vadd.xlane.f32.xlu0 %v31_v6 }
 0x125   :  { %v33_v21 = vpop.xlane.xlu0 %32 }
 0x126   :  { %v34_v22 = vmul.f32 0.015625, %v33_v21 }
 0x128   :  { %v35_v23 = vadd.f32 1e-05, %v34_v22 }
 0x12a   :  { %194 = vrsqrt.f32 %v35_v23 }
 0x134   :  { %v195_v24 = vpop.eup %194 }
 0x135   :  { %v37_v26 = vmul.f32 %v195_v24, %v29_v4 }
 0x137   :  { %v44_v28 = vmul.f32 %v147_v25, %v37_v26 }
 0x139   :  { %v51_v29 = vadd.f32 %v148_v27, %v44_v28 }
 0x13b   :  { %177 = vmatmul.mubr.msk.f32.vlgmr.msra.gmra.mrb[0].mxu0 %vm67_vm2, %v51_v29 }
 0x20e   :  { %v137_v31 = vpop.f32.mrb[0].mxu0 }
 0x20f   :  { %v138_v32 = vadd.f32 %v149_v30, %v137_v31  ;;  %v178_v33 = vpop.f32.mrb[1].mxu0 }
 0x211   :  { %142 = vst.msk [vmem:[%s273_s5] sm:$0x3] %vm141_vm3, %v138_v32 }

// kernel: _lambda_.23
= control target key start
LH: loop header
LB: loop body
LE: loop exit
PB: predicated region body
PF: predicated region fallthrough
CT: control target
= control target key end

     0   :  { %s6039_s21 = smov 0   ;;  %s6816_s0 = inlined_call_operand.vmem [shape: f32[2,5,64], index: 0, kind: input, shape index: {}]   ;;  %s6817_s1 = inlined_call_operand.vmem [shape: f32[2,1,64], index: 1, kind: input, shape index: {}, may-alias: {1,6}]   ;;  %s6818_s2 = inlined_call_operand.vmem [shape: f32[2,1,64], index: 2, kind: input, shape index: {}, may-alias: {2,5,7,11}]   ;;  %s6819_s3 = inlined_call_operand.vmem [shape: f32[2,64,192], index: 3, kind: input, shape index: {}]   ;;  %s6820_s4 = inlined_call_operand.vmem [shape: f32[2,64,64], index: 4, kind: input, shape index: {}]   ;;  %s6821_s5 = inlined_call_operand.vmem [shape: f32[2,1,64], index: 5, kind: input, shape index: {}, may-alias: {2,5,7,11}]   ;;  %s6822_s6 = inlined_call_operand.vmem [shape: f32[2,1,64], index: 6, kind: input, shape index: {}, may-alias: {1,6}]   ;;  %s6823_s7 = inlined_call_operand.vmem [shape: f32[2,1,64], index: 7, kind: input, shape index: {}, may-alias: {2,5,7,11}]   ;;  %s6824_s8 = inlined_call_operand.vmem [shape: f32[2,64,128], index: 8, kind: input, shape index: {}]   ;;  %s6825_s9 = inlined_call_operand.vmem [shape: f32[2,1,128], index: 9, kind: input, shape index: {}]   ;;  %s6826_s10 = inlined_call_operand.vmem [shape: f32[2,128,64], index: 10, kind: input, shape index: {}]   ;;  %s6827_s11 = inlined_call_operand.vmem [shape: f32[2,1,64], index: 11, kind: input, shape index: {}, may-alias: {2,5,7,11}]   ;;  %s6828_s12 = inlined_call_operand.vmem [shape: f32[2,5,64], index: 12, kind: output, shape index: {}]  }
   0x1 LB: > { %s5080_s22 = sadd.s32 4294967295, %s5954_s21   ;;  %p5084_p0 = scmp.ge.s32.totalorder %s5954_s21, 1  ;;  %s5954_s21 = sphi %s6039_s21, %s22_s21  }
   0x2   : > { %p361_p1 = scmp.lt.s32.totalorder %s5954_s21, 3 }
   0x4   : > { %p362_p2 = pnand %p5084_p0, %p361_p1 }
   0x5   : > { %p401_p3 = scmp.lt.s32.totalorder (!%p362_p2), %s5080_s22, 1  ;;  %vm412_vm0 = vcmask (!%p362_p2), 520192   ;;  %v442_v7 = vld [vmem:[%s6819_s3 + $0x8] sm:$0xff] (!%p362_p2)  ;;  %v444_v8 = vld [vmem:[%s6819_s3 + $0x18] sm:$0xff] (!%p362_p2)  ;;  %v441_v10 = vld [vmem:[%s6819_s3] sm:$0xff] (!%p362_p2)  ;;  %v5956_v20 = vmov (!%p362_p2), 0.0  }
   0x6   : > { %365 = sbr.rel (%p362_p2) target bundleno = 11615 (0x2d5f), region = 68  ;;  %v5738_v9 = vpack.c.bf16 (!%p362_p2), %v444_v8, %v442_v7  ;;  %v443_v11 = vld [vmem:[%s6819_s3 + $0x10] sm:$0xff] (!%p362_p2)  ;;  %v446_v13 = vld [vmem:[%s6819_s3 + $0x28] sm:$0xff] (!%p362_p2)  ;;  %v448_v14 = vld [vmem:[%s6819_s3 + $0x38] sm:$0xff] (!%p362_p2)  ;;  %525 = vmatprep.mubr.f32.mxu0 (!%p362_p2), %v5956_v20  ;;  %5400 = vmatprep.subr.mxu1 (!%p362_p2), %v5956_v20  ;;  %vm457_vm1 = vcmask (!%p362_p2), 523264   ;;  %vm5957_vm2 = vmmov (!%p362_p2), 0  }
   0x7   : > { %v5740_v12 = vpack.c.bf16 (!%p362_p2), %v443_v11, %v441_v10  ;;  %v445_v15 = vld [vmem:[%s6819_s3 + $0x20] sm:$0xff] (!%p362_p2)  ;;  %v5742_v16 = vpack.c.bf16 (!%p362_p2), %v448_v14, %v446_v13  ;;  %v447_v17 = vld [vmem:[%s6819_s3 + $0x30] sm:$0xff] (!%p362_p2)  ;;  %v450_v18 = vld [vmem:[%s6819_s3 + $0x48] sm:$0xff] (!%p362_p2)  ;;  %5402 = vmatprep.mubr.msk.f32.mxu1 (!%p362_p2), %vm5957_vm2, %v5956_v20  ;;  %s5958_s15 = smov (!%p362_p2), 64   ;;  %s5959_s16 = smov (!%p362_p2), 56   ;;  %vm543_vm3 = vcmask (!%p362_p2), 64512  }
   0x8   : > { %5739 = vmatprep.subr.bf16.mxu0 (!%p362_p2), %v5738_v9  ;;  %v452_v19 = vld [vmem:[%s6819_s3 + $0x58] sm:$0xff] (!%p362_p2)  ;;  %v5744_v21 = vpack.c.bf16 (!%p362_p2), %v447_v17, %v445_v15  ;;  %v449_v23 = vld [vmem:[%s6819_s3 + $0x40] sm:$0xff] (!%p362_p2)  ;;  %v451_v24 = vld [vmem:[%s6819_s3 + $0x50] sm:$0xff] (!%p362_p2)  ;;  %s5960_s17 = smov (!%p362_p2), 120   ;;  %vm635_vm4 = vcmask (!%p362_p2), 1044480   ;;  %vm619_vm5 = vcmask (!%p362_p2), 36864  }
   0x9   : > { %5741 = vmatpush1.bf16.msra.mxu0 (!%p362_p2), %v5740_v12  ;;  %v5746_v22 = vpack.c.bf16 (!%p362_p2), %v452_v19, %v450_v18  ;;  %v454_v25 = vld [vmem:[%s6819_s3 + $0x68] sm:$0xff] (!%p362_p2)  ;;  %v456_v26 = vld [vmem:[%s6819_s3 + $0x78] sm:$0xff] (!%p362_p2)  ;;  %v5748_v27 = vpack.c.bf16 (!%p362_p2), %v451_v24, %v449_v23  ;;  %v453_v29 = vld [vmem:[%s6819_s3 + $0x60] sm:$0xff] (!%p362_p2)  ;;  %s5961_s18 = smov (!%p362_p2), 48   ;;  %s5962_s19 = smov (!%p362_p2), 112   ;;  %vm631_vm6 = vcmask (!%p362_p2), 39936  }
   0xa   : > { %5743 = vmatprep.subr.bf16.mxu0 (!%p362_p2), %v5742_v16  ;;  %v5750_v28 = vpack.c.bf16 (!%p362_p2), %v456_v26, %v454_v25  ;;  %v455_v30 = vld [vmem:[%s6819_s3 + $0x70] sm:$0xff] (!%p362_p2)  ;;  %v5087_v36 = vld [vmem:[%s6817_s1] ss:$0 sm:$0xff] (!%p362_p2)  ;;  %v533_v9 = vld [vmem:[%s6820_s4 + $0x8] sm:$0xff] (!%p362_p2)  ;;  %s6842_s27 = smov (!%p362_p2), 104   ;;  %s5964_s28 = smov (!%p362_p2), 40  }
   0xb   : > { %v5752_v31 = vpack.c.bf16 (!%p362_p2), %v455_v30, %v453_v29  ;;  %v5088_v38 = vld [vmem:[%s6818_s2] ss:$0 sm:$0xff] (!%p362_p2)  ;;  %s6840_s13 = smov (!%p362_p2), 96   ;;  %s6839_s14 = smov (!%p362_p2), 32  }
   0xc   : > { %s6836_s25 = smov (!%p362_p2), 88   ;;  %s6834_s20 = smov (!%p362_p2), 80  }
   0xd   : > { %s6855_s22 = smov (!%p401_p3, %s5080_s22), 1  ;;  %5745 = vmatpush1.bf16.msra.mxu0 %v5744_v21  ;;  %s6833_s24 = smov 16  }
   0xe   : > { %s6829_s23 = sshll.u32 %s6855_s22, 3  ;;  %5747 = vmatprep.subr.bf16.mxu0 %v5746_v22  ;;  %s6831_s29 = smov 72  }
   0xf   : > { %s404_s26 = scalar_lea.vmem %s6816_s0, %s6829_s23  ;;  %s6830_s30 = smov 8  }
  0x10   : > { %v6055_v0 = vld [vmem:[%s404_s26] sm:$0x1f]  ;;  %s6838_s26 = smov 24   ;;  %s6848_s23 = smov 88  }
  0x11   : > { %v413_v1 = vsel %vm412_vm0, %v6055_v0, 0.0  ;;  %5749 = vmatpush1.bf16.msra.mxu0 %v5748_v27 }
  0x12   : > { %414 = vadd.xlane.f32.xlu0 %v413_v1  ;;  %5751 = vmatprep.subr.bf16.mxu0 %v5750_v28 }
  0x15   : > { %5753 = vmatpush1.bf16.msra.mxu0 %v5752_v31 }
  0x16   : > { %5390 = vmatprep.subr.mxu0 %v5956_v20 }
  0x9f   : > { %v415_v2 = vpop.xlane.xlu0 %414 }
  0xa0   : > { %v417_v3 = vmul.f32 0.015625, %v415_v2 }
  0xa2   : > { %v418_v4 = vsub.f32 %v6055_v0, %v417_v3 }
  0xa4   : > { %v419_v5 = vmul.f32 %v418_v4, %v418_v4 }
  0xa6   : > { %v420_v6 = vsel %vm412_vm0, %v419_v5, 0.0  ;;  %v532_v5 = vld [vmem:[%s6820_s4] sm:$0xff] }
  0xa7   : > { %421 = vadd.xlane.f32.xlu0 %v420_v6 }
 0x134   : > { %v422_v32 = vpop.xlane.xlu0 %421 }
 0x135   : > { %v423_v33 = vmul.f32 0.015625, %v422_v32 }
 0x137   : > { %v424_v34 = vadd.f32 1e-05, %v423_v33 }
 0x139   : > { %5868 = vrsqrt.f32 %v424_v34 }
 0x143   : > { %v5869_v35 = vpop.eup %5868 }
 0x144   : > { %v426_v37 = vmul.f32 %v5869_v35, %v418_v4 }
 0x146   : > { %v433_v39 = vmul.f32 %v5087_v36, %v426_v37  ;;  %v534_v37 = vld [vmem:[%s6820_s4 + $0x10] sm:$0xff] }
 0x148   : > { %v440_v40 = vadd.f32 %v5088_v38, %v433_v39 }
 0x14a   : > { %5089 = vmatmul.mubr.msk.f32.vlgmr.msra.gmra.mrb[0].mxu0 %vm457_vm1, %v440_v40 }
 0x14b   : > { %5392 = vmatprep.mubr.msk.f32.mxu0 %vm5957_vm2, %v5956_v20 }
 0x21d   : > { %v6123_v41 = vpop.f32.mrb[0].mxu0 }
 0x21e   : > { %541 = vrot.lane.b32.xlu0 %v6123_v41, %s5958_s15  ;;  %711 = vrot.lane.b32.xlu1 %v6123_v41, %s5959_s16  ;;  %v6129_v42 = vpop.f32.mrb[1].mxu0 }
 0x222   : > { %709 = vrot.lane.b32.xlu1 %v6123_v41, %s5960_s17 }
 0x290   : > { %v542_v43 = vpop.permute.xlu0 %541  ;;  %v712_v44 = vpop.permute.xlu1 %711 }
 0x291   : > { %5391 = vmatpush3.xpose.msk.msra.mxu0 %vm543_vm3, %v542_v43  ;;  %5401 = vmatpush3.xpose.msk.msra.mxu1 %vm543_vm3, %v712_v44 }
 0x292   : > { %5395 = vmatprep.subr.mxu0 %v5956_v20  ;;  %5405 = vmatprep.subr.mxu1 %v5956_v20 }
 0x294   : > { %5393 = vmatmul.mubr.msk.f32.vlgmr.msra.gmra.mrb[2].mxu0 %vm543_vm3, %v6123_v41  ;;  %v710_v45 = vpop.permute.xlu1 %709 }
 0x295   : > { %5396 = vmatpush3.msk.msra.mxu0 %vm635_vm4, %v6129_v42  ;;  %5403 = vmatmul.mubr.msk.f32.vlgmr.msra.gmra.mrb[0].mxu1 %vm543_vm3, %v710_v45 }
 0x296   : > { %5407 = vmatprep.mubr.msk.f32.mxu1 %vm5957_vm2, %v5956_v20  ;;  %5397 = vmatprep.mubr.msk.f32.mxu0 %vm5957_vm2, %v5956_v20 }
 0x297   : > { %5410 = vmatprep.subr.mxu0 %v5956_v20 }
 0x367   : > { %v614_v46 = vpop.f32.mrb[2].mxu0 }
 0x368   : > { %v5394_v47 = vpop.f32.mrb[3].mxu0  ;;  %v783_v48 = vpop.f32.mrb[0].mxu1  ;;  %v618_v57 = vmul.f32 0.35355338, %v614_v46 }
 0x369   : > { %v787_v49 = vmul.f32 0.35355338, %v783_v48  ;;  %v5404_v50 = vpop.f32.mrb[1].mxu1 }
 0x36a   : > { %v620_v59 = vsel %vm619_vm5, %v618_v57, -inf }
 0x36b   : > { %v788_v51 = vsel %vm619_vm5, %v787_v49, -inf }
 0x36c   : > { %789 = vmax.xlane.f32.xlu1 %v788_v51 }
 0x37d   : > { %799 = vrot.lane.b32.xlu1 %v6129_v42, %s5960_s17 }
 0x3f9   : > { %v790_v52 = vpop.xlane.xlu1 %789 }
 0x3fa   : > { %v791_v53 = vsub.f32 %v787_v49, %v790_v52 }
 0x3fc   : > { %v792_v54 = vmul.f32 1.442695, %v791_v53 }
 0x3fd   : > { %v800_v55 = vpop.permute.xlu1 %799 }
 0x3fe   : > { %5870 = vpow2.f32 %v792_v54  ;;  %5406 = vmatpush3.msk.msra.mxu1 %vm635_vm4, %v800_v55 }
 0x3ff   : > { %5415 = vmatprep.subr.mxu1 %v5956_v20 }
 0x408   : > { %v5871_v56 = vpop.eup %5870 }
 0x409   : > { %v794_v58 = vsel %vm619_vm5, %v5871_v56, 0.0 }
 0x40a   : > { %795 = vadd.xlane.f32.xlu0 %v794_v58 }
 0x40e   : > { %621 = vmax.xlane.f32.xlu0 %v620_v59 }
 0x424   : > { %1024 = vrot.lane.b32.xlu0 %v6123_v41, %s5961_s18 }
 0x428   : > { %1022 = vrot.lane.b32.xlu0 %v6123_v41, %s5962_s19 }
 0x497   : > { %v796_v60 = vpop.xlane.xlu0 %795 }
 0x498   : > { %5872 = vrcp.f32 %v796_v60  ;;  %v535_v60 = vld [vmem:[%s6820_s4 + $0x18] sm:$0xff] }
 0x49b   : > { %v622_v61 = vpop.xlane.xlu0 %621 }
 0x49c   : > { %v623_v62 = vsub.f32 %v618_v57, %v622_v61 }
 0x49e   : > { %v624_v63 = vmul.f32 1.442695, %v623_v62 }
 0x49f   : > { %v1025_v10 = vpop.permute.xlu0 %1024 }
 0x4a0   : > { %5874 = vpow2.f32 %v624_v63 }
 0x4a2   : > { %v5873_v1 = vpop.eup %5872 }
 0x4a3   : > { %v798_v2 = vmul.f32 %v5873_v1, %v5871_v56  ;;  %v1023_v13 = vpop.permute.xlu0 %1022 }
 0x4a5   : > { %5408 = vmatmul.mubr.msk.f32.vlgmr.msra.gmra.mrb[2].mxu1 %vm631_vm6, %v798_v2 }
 0x4a6   : > { %5417 = vmatprep.mubr.msk.f32.mxu1 %vm5957_vm2, %v5956_v20  ;;  %5416 = vmatpush3.msra.mxu1 %v532_v5 }
 0x4a7   : > { %5425 = vmatprep.subr.mxu1 %v5956_v20 }
 0x4aa   : > { %v5875_v3 = vpop.eup %5874 }
 0x4ab   : > { %v626_v4 = vsel %vm619_vm5, %v5875_v3, 0.0 }
 0x4ac   : > { %627 = vadd.xlane.f32.xlu1 %v626_v4 }
 0x4bd   : > { %1112 = vrot.lane.b32.xlu1 %v6129_v42, %s5962_s19 }
 0x539   : > { %v628_v6 = vpop.xlane.xlu1 %627 }
 0x53a   : > { %5876 = vrcp.f32 %v628_v6 }
 0x53d   : > { %v1113_v15 = vpop.permute.xlu1 %1112 }
 0x544   : > { %v5877_v7 = vpop.eup %5876 }
 0x545   : > { %v630_v8 = vmul.f32 %v5877_v7, %v5875_v3 }
 0x547   : > { %5398 = vmatmul.mubr.msk.f32.vlgmr.msra.gmra.mrb[4].mxu0 %vm631_vm6, %v630_v8 }
 0x548   : > { %5411 = vmatpush3.msra.mxu0 %v533_v9  ;;  %5412 = vmatprep.mubr.msk.f32.mxu0 %vm5957_vm2, %v5956_v20 }
 0x549   : > { %5420 = vmatprep.subr.mxu0 %v5956_v20 }
 0x578   : > { %v872_v11 = vpop.f32.mrb[2].mxu1 }
 0x579   : > { %v5409_v12 = vpop.f32.mrb[3].mxu1  ;;  %5413 = vmatmul.mubr.msk.f32.vlgmr.msra.gmra.mrb[6].mxu0 %vm543_vm3, %v872_v11 }
 0x57a   : > { %5421 = vmatpush3.xpose.msk.msra.mxu0 %vm543_vm3, %v1025_v10  ;;  %5422 = vmatprep.mubr.msk.f32.mxu0 %vm5957_vm2, %v5956_v20 }
 0x57b   : > { %5430 = vmatprep.subr.mxu0 %v5956_v20 }
 0x57d   : > { %5423 = vmatmul.mubr.msk.f32.vlgmr.msra.gmra.mrb[8].mxu0 %vm543_vm3, %v1023_v13 }
 0x57e   : > { %5432 = vmatprep.mubr.msk.f32.mxu0 %vm5957_vm2, %v5956_v20  ;;  %5431 = vmatpush3.msra.mxu0 %v534_v37 }
 0x57f   : > { %5440 = vmatprep.subr.mxu0 %v5956_v20 }
 0x61a   : > { %v705_v14 = vpop.f32.mrb[4].mxu0 }
 0x61b   : > { %v5399_v16 = vpop.f32.mrb[5].mxu0  ;;  %5418 = vmatmul.mubr.msk.f32.vlgmr.msra.gmra.mrb[4].mxu1 %vm543_vm3, %v705_v14 }
 0x61c   : > { %5426 = vmatpush3.msk.msra.mxu1 %vm635_vm4, %v1113_v15  ;;  %5427 = vmatprep.mubr.msk.f32.mxu1 %vm5957_vm2, %v5956_v20 }
 0x61d   : > { %5435 = vmatprep.subr.mxu1 %v5956_v20 }
 0x64c   : > { %v945_v17 = vpop.f32.mrb[6].mxu0 }
 0x64d   : > { %v5414_v18 = vpop.f32.mrb[7].mxu0 }
 0x64e   : > { %v536_v18 = vld [vmem:[%s6820_s4 + $0x20] sm:$0xff] }
 0x650   : > { %v1096_v19 = vpop.f32.mrb[8].mxu0 }
 0x651   : > { %v1100_v21 = vmul.f32 0.35355338, %v1096_v19  ;;  %v5424_v22 = vpop.f32.mrb[9].mxu0 }
 0x653   : > { %v1101_v23 = vsel %vm619_vm5, %v1100_v21, -inf }
 0x654   : > { %1102 = vmax.xlane.f32.xlu0 %v1101_v23 }
 0x66a   : > { %1263 = vrot.lane.b32.xlu0 %v6123_v41, %s6842_s27 }
 0x6e1   : > { %v1103_v24 = vpop.xlane.xlu0 %1102 }
 0x6e2   : > { %v1104_v25 = vsub.f32 %v1100_v21, %v1103_v24 }
 0x6e4   : > { %v1105_v26 = vmul.f32 1.442695, %v1104_v25 }
 0x6e5   : > { %v1264_v36 = vpop.permute.xlu0 %1263 }
 0x6e6   : > { %5878 = vpow2.f32 %v1105_v26 }
 0x6ee   : > { %v1018_v27 = vpop.f32.mrb[4].mxu1 }
 0x6ef   : > { %v1019_v28 = vadd.f32 %v1018_v27, %v945_v17  ;;  %v5419_v29 = vpop.f32.mrb[5].mxu1 }
 0x6f0   : > { %v5879_v30 = vpop.eup %5878 }
 0x6f1   : > { %v1107_v31 = vsel %vm619_vm5, %v5879_v30, 0.0 }
 0x6f2   : > { %1108 = vadd.xlane.f32.xlu1 %v1107_v31 }
 0x703   : > { %1265 = vrot.lane.b32.xlu1 %v6123_v41, %s5964_s28 }
 0x77f   : > { %v1109_v32 = vpop.xlane.xlu1 %1108 }
 0x780   : > { %5880 = vrcp.f32 %v1109_v32 }
 0x783   : > { %v1266_v35 = vpop.permute.xlu1 %1265 }
 0x78a   : > { %v5881_v33 = vpop.eup %5880 }
 0x78b   : > { %v1111_v34 = vmul.f32 %v5881_v33, %v5879_v30 }
 0x78d   : > { %5428 = vmatmul.mubr.msk.f32.vlgmr.msra.gmra.mrb[6].mxu1 %vm631_vm6, %v1111_v34 }
 0x78e   : > { %5436 = vmatpush3.xpose.msk.msra.mxu1 %vm543_vm3, %v1266_v35  ;;  %5437 = vmatprep.mubr.msk.f32.mxu1 %vm5957_vm2, %v5956_v20 }
 0x78f   : > { %5445 = vmatprep.subr.mxu1 %v5956_v20 }
 0x791   : > { %5438 = vmatmul.mubr.msk.f32.vlgmr.msra.gmra.mrb[8].mxu1 %vm543_vm3, %v1264_v36 }
 0x792   : > { %5447 = vmatprep.mubr.msk.f32.mxu1 %vm5957_vm2, %v5956_v20  ;;  %5446 = vmatpush3.msra.mxu1 %v535_v60 }
 0x793   : > { %5455 = vmatprep.subr.mxu1 %v5956_v20 }
 0x860   : > { %v1185_v38 = vpop.f32.mrb[6].mxu1 }
 0x861   : > { %v5429_v39 = vpop.f32.mrb[7].mxu1  ;;  %5433 = vmatmul.mubr.msk.f32.vlgmr.msra.gmra.mrb[10].mxu0 %vm543_vm3, %v1185_v38 }
 0x862   : > { %5442 = vmatprep.mubr.msk.f32.mxu0 %vm5957_vm2, %v5956_v20 }
 0x864   : > { %v1337_v40 = vpop.f32.mrb[8].mxu1 }
 0x865   : > { %v1341_v43 = vmul.f32 0.35355338, %v1337_v40  ;;  %v5439_v44 = vpop.f32.mrb[9].mxu1  ;;  %v537_v40 = vld [vmem:[%s6820_s4 + $0x28] sm:$0xff] }
 0x867   : > { %v1342_v45 = vsel %vm619_vm5, %v1341_v43, -inf }
 0x868   : > { %1343 = vmax.xlane.f32.xlu1 %v1342_v45 }
 0x879   : > { %1353 = vrot.lane.b32.xlu1 %v6129_v42, %s6842_s27  ;;  %s6846_s27 = smov 32  }
 0x87d   : > { %1504 = vrot.lane.b32.xlu1 %v6123_v41, %s6840_s13 }
 0x8f5   : > { %v1344_v46 = vpop.xlane.xlu1 %1343 }
 0x8f6   : > { %v1345_v47 = vsub.f32 %v1341_v43, %v1344_v46 }
 0x8f8   : > { %v1346_v48 = vmul.f32 1.442695, %v1345_v47 }
 0x8f9   : > { %v1354_v49 = vpop.permute.xlu1 %1353 }
 0x8fa   : > { %5882 = vpow2.f32 %v1346_v48  ;;  %5441 = vmatpush3.msk.msra.mxu0 %vm635_vm4, %v1354_v49 }
 0x8fb   : > { %5450 = vmatprep.subr.mxu0 %v5956_v20 }
 0x8fd   : > { %v1505_v59 = vpop.permute.xlu1 %1504 }
 0x904   : > { %v5883_v50 = vpop.eup %5882 }
 0x905   : > { %v1348_v51 = vsel %vm619_vm5, %v5883_v50, 0.0 }
 0x906   : > { %1349 = vadd.xlane.f32.xlu0 %v1348_v51 }
 0x91c   : > { %1506 = vrot.lane.b32.xlu0 %v6123_v41, %s6839_s14 }
 0x934   : > { %v1258_v52 = vpop.f32.mrb[10].mxu0 }
 0x935   : > { %v1262_v53 = vadd.f32 %v1258_v52, %v1019_v28  ;;  %v5434_v54 = vpop.f32.mrb[11].mxu0 }
 0x993   : > { %v1350_v55 = vpop.xlane.xlu0 %1349 }
 0x994   : > { %5884 = vrcp.f32 %v1350_v55 }
 0x997   : > { %v1507_v58 = vpop.permute.xlu0 %1506 }
 0x99e   : > { %v5885_v56 = vpop.eup %5884 }
 0x99f   : > { %v1352_v57 = vmul.f32 %v5885_v56, %v5883_v50 }
 0x9a1   : > { %5443 = vmatmul.mubr.msk.f32.vlgmr.msra.gmra.mrb[12].mxu0 %vm631_vm6, %v1352_v57 }
 0x9a2   : > { %5451 = vmatpush3.xpose.msk.msra.mxu0 %vm543_vm3, %v1507_v58  ;;  %5452 = vmatprep.mubr.msk.f32.mxu0 %vm5957_vm2, %v5956_v20 }
 0x9a3   : > { %5460 = vmatprep.subr.mxu0 %v5956_v20 }
 0x9a5   : > { %5453 = vmatmul.mubr.msk.f32.vlgmr.msra.gmra.mrb[14].mxu0 %vm543_vm3, %v1505_v59 }
 0x9a6   : > { %5462 = vmatprep.mubr.msk.f32.mxu0 %vm5957_vm2, %v5956_v20  ;;  %5461 = vmatpush3.msra.mxu0 %v536_v18 }
 0x9a7   : > { %5470 = vmatprep.subr.mxu0 %v5956_v20 }
 0xa74   : > { %v1426_v61 = vpop.f32.mrb[12].mxu0 }
 0xa75   : > { %v5444_v62 = vpop.f32.mrb[13].mxu0  ;;  %5448 = vmatmul.mubr.msk.f32.vlgmr.msra.gmra.mrb[10].mxu1 %vm543_vm3, %v1426_v61 }
 0xa76   : > { %5457 = vmatprep.mubr.msk.f32.mxu1 %vm5957_vm2, %v5956_v20 }
 0xa78   : > { %v1578_v63 = vpop.f32.mrb[14].mxu0 }
 0xa79   : > { %v1582_v1 = vmul.f32 0.35355338, %v1578_v63  ;;  %v5454_v2 = vpop.f32.mrb[15].mxu0 }
 0xa7b   : > { %v1583_v3 = vsel %vm619_vm5, %v1582_v1, -inf }
 0xa7c   : > { %1584 = vmax.xlane.f32.xlu1 %v1583_v3 }
 0xa8d   : > { %1594 = vrot.lane.b32.xlu1 %v6129_v42, %s6840_s13 }
 0xa91   : > { %1745 = vrot.lane.b32.xlu1 %v6123_v41, %s6836_s25 }
 0xb09   : > { %v1585_v4 = vpop.xlane.xlu1 %1584 }
 0xb0a   : > { %v1586_v5 = vsub.f32 %v1582_v1, %v1585_v4 }
 0xb0c   : > { %v1587_v6 = vmul.f32 1.442695, %v1586_v5 }
 0xb0d   : > { %v1595_v7 = vpop.permute.xlu1 %1594 }
 0xb0e   : > { %5886 = vpow2.f32 %v1587_v6  ;;  %5456 = vmatpush3.msk.msra.mxu1 %vm635_vm4, %v1595_v7 }
 0xb0f   : > { %5465 = vmatprep.subr.mxu1 %v5956_v20 }
 0xb11   : > { %v1746_v17 = vpop.permute.xlu1 %1745 }
 0xb18   : > { %v5887_v8 = vpop.eup %5886 }
 0xb19   : > { %v1589_v9 = vsel %vm619_vm5, %v5887_v8, 0.0 }
 0xb1a   : > { %1590 = vadd.xlane.f32.xlu0 %v1589_v9 }
 0xb30   : > { %1747 = vrot.lane.b32.xlu0 %v6123_v41, %s6838_s26  ;;  %s6844_s26 = smov 104  }
 0xb48   : > { %v1499_v10 = vpop.f32.mrb[10].mxu1 }
 0xb49   : > { %v1503_v11 = vadd.f32 %v1499_v10, %v1262_v53  ;;  %v5449_v12 = vpop.f32.mrb[11].mxu1 }
 0xb4a   : > { %v539_v12 = vld [vmem:[%s6820_s4 + $0x38] sm:$0xff] }
 0xba7   : > { %v1591_v13 = vpop.xlane.xlu0 %1590 }
 0xba8   : > { %5888 = vrcp.f32 %v1591_v13 }
 0xbab   : > { %v1748_v16 = vpop.permute.xlu0 %1747 }
 0xbb2   : > { %v5889_v14 = vpop.eup %5888 }
 0xbb3   : > { %v1593_v15 = vmul.f32 %v5889_v14, %v5887_v8 }
 0xbb5   : > { %5458 = vmatmul.mubr.msk.f32.vlgmr.msra.gmra.mrb[12].mxu1 %vm631_vm6, %v1593_v15 }
 0xbb6   : > { %5466 = vmatpush3.xpose.msk.msra.mxu1 %vm543_vm3, %v1748_v16  ;;  %5467 = vmatprep.mubr.msk.f32.mxu1 %vm5957_vm2, %v5956_v20 }
 0xbb7   : > { %5475 = vmatprep.subr.mxu1 %v5956_v20 }
 0xbb9   : > { %5468 = vmatmul.mubr.msk.f32.vlgmr.msra.gmra.mrb[14].mxu1 %vm543_vm3, %v1746_v17 }
 0xbba   : > { %5477 = vmatprep.mubr.msk.f32.mxu1 %vm5957_vm2, %v5956_v20  ;;  %5476 = vmatpush3.msra.mxu1 %v537_v40  ;;  %v2511_v40 = vld [vmem:[%s6824_s8 + $0x28] sm:$0xff] }
 0xbbb   : > { %5485 = vmatprep.subr.mxu1 %v5956_v20 }
 0xc88   : > { %v1667_v19 = vpop.f32.mrb[12].mxu1 }
 0xc89   : > { %v5459_v21 = vpop.f32.mrb[13].mxu1  ;;  %5463 = vmatmul.mubr.msk.f32.vlgmr.msra.gmra.mrb[16].mxu0 %vm543_vm3, %v1667_v19 }
 0xc8a   : > { %5472 = vmatprep.mubr.msk.f32.mxu0 %vm5957_vm2, %v5956_v20 }
 0xc8c   : > { %v1819_v22 = vpop.f32.mrb[14].mxu1 }
 0xc8d   : > { %v1823_v23 = vmul.f32 0.35355338, %v1819_v22  ;;  %v5469_v24 = vpop.f32.mrb[15].mxu1 }
 0xc8e   : > { %v5130_v24 = vld [vmem:[%s6821_s5] ss:$0 sm:$0xff] }
 0xc8f   : > { %v1824_v25 = vsel %vm619_vm5, %v1823_v23, -inf }
 0xc90   : > { %1825 = vmax.xlane.f32.xlu1 %v1824_v25 }
 0xca1   : > { %1835 = vrot.lane.b32.xlu1 %v6129_v42, %s6836_s25 }
 0xca5   : > { %1986 = vrot.lane.b32.xlu1 %v6123_v41, %s6834_s20 }
 0xd1d   : > { %v1826_v26 = vpop.xlane.xlu1 %1825 }
 0xd1e   : > { %v1827_v27 = vsub.f32 %v1823_v23, %v1826_v26 }
 0xd20   : > { %v1828_v28 = vmul.f32 1.442695, %v1827_v27 }
 0xd21   : > { %v1836_v29 = vpop.permute.xlu1 %1835 }
 0xd22   : > { %5890 = vpow2.f32 %v1828_v28  ;;  %5471 = vmatpush3.msk.msra.mxu0 %vm635_vm4, %v1836_v29 }
 0xd23   : > { %5480 = vmatprep.subr.mxu0 %v5956_v20 }
 0xd25   : > { %v1987_v39 = vpop.permute.xlu1 %1986 }
 0xd2c   : > { %v5891_v30 = vpop.eup %5890 }
 0xd2d   : > { %v1830_v31 = vsel %vm619_vm5, %v5891_v30, 0.0 }
 0xd2e   : > { %1831 = vadd.xlane.f32.xlu0 %v1830_v31 }
 0xd44   : > { %1988 = vrot.lane.b32.xlu0 %v6123_v41, %s6833_s24  ;;  %s6845_s24 = smov 96  }
 0xd5c   : > { %v1740_v32 = vpop.f32.mrb[16].mxu0 }
 0xd5d   : > { %v1744_v33 = vadd.f32 %v1740_v32, %v1503_v11  ;;  %v5464_v34 = vpop.f32.mrb[17].mxu0 }
 0xdbb   : > { %v1832_v35 = vpop.xlane.xlu0 %1831 }
 0xdbc   : > { %5892 = vrcp.f32 %v1832_v35  ;;  %v5973_v35 = vmov 0.0|0.0  }
 0xdbf   : > { %v1989_v38 = vpop.permute.xlu0 %1988 }
 0xdc6   : > { %v5893_v36 = vpop.eup %5892 }
 0xdc7   : > { %v1834_v37 = vmul.f32 %v5893_v36, %v5891_v30  ;;  %v2508_v36 = vld [vmem:[%s6824_s8 + $0x10] sm:$0xff] }
 0xdc9   : > { %5473 = vmatmul.mubr.msk.f32.vlgmr.msra.gmra.mrb[18].mxu0 %vm631_vm6, %v1834_v37  ;;  %v2509_v37 = vld [vmem:[%s6824_s8 + $0x18] sm:$0xff] }
 0xdca   : > { %5481 = vmatpush3.xpose.msk.msra.mxu0 %vm543_vm3, %v1989_v38  ;;  %5482 = vmatprep.mubr.msk.f32.mxu0 %vm5957_vm2, %v5956_v20  ;;  %v5758_v38 = vpack.c.bf16 %v2509_v37, %v2508_v36 }
 0xdcb   : > { %5490 = vmatprep.subr.mxu0 %v5956_v20 }
 0xdcd   : > { %5483 = vmatmul.mubr.msk.f32.vlgmr.msra.gmra.mrb[20].mxu0 %vm543_vm3, %v1987_v39  ;;  %v2510_v39 = vld [vmem:[%s6824_s8 + $0x20] sm:$0xff] }
 0xdce   : > { %5492 = vmatprep.mubr.msk.f32.mxu0 %vm5957_vm2, %v5956_v20 }
 0xe9c   : > { %v1908_v43 = vpop.f32.mrb[18].mxu0 }
 0xe9d   : > { %v5474_v44 = vpop.f32.mrb[19].mxu0  ;;  %5478 = vmatmul.mubr.msk.f32.vlgmr.msra.gmra.mrb[16].mxu1 %vm543_vm3, %v1908_v43  ;;  %v5761_v43 = vpack.c.bf16 %v2511_v40, %v2510_v39 }
 0xe9e   : > { %5487 = vmatprep.mubr.msk.f32.mxu1 %vm5957_vm2, %v5956_v20  ;;  %v2512_v44 = vld [vmem:[%s6824_s8 + $0x30] sm:$0xff] }
 0xea0   : > { %v2060_v45 = vpop.f32.mrb[20].mxu0 }
 0xea1   : > { %v2064_v46 = vmul.f32 0.35355338, %v2060_v45  ;;  %v5484_v47 = vpop.f32.mrb[21].mxu0  ;;  %v2513_v45 = vld [vmem:[%s6824_s8 + $0x38] sm:$0xff] }
 0xea3   : > { %v2065_v48 = vsel %vm619_vm5, %v2064_v46, -inf }
 0xea4   : > { %2066 = vmax.xlane.f32.xlu1 %v2065_v48 }
 0xeb5   : > { %2076 = vrot.lane.b32.xlu1 %v6129_v42, %s6834_s20  ;;  %s6849_s20 = smov 80  }
 0xeb9   : > { %2227 = vrot.lane.b32.xlu1 %v6123_v41, %s6831_s29 }
 0xf31   : > { %v2067_v49 = vpop.xlane.xlu1 %2066 }
 0xf32   : > { %v2068_v50 = vsub.f32 %v2064_v46, %v2067_v49  ;;  %v5764_v46 = vpack.c.bf16 %v2513_v45, %v2512_v44 }
 0xf34   : > { %v2069_v51 = vmul.f32 1.442695, %v2068_v50 }
 0xf35   : > { %v2077_v52 = vpop.permute.xlu1 %2076 }
 0xf36   : > { %5894 = vpow2.f32 %v2069_v51  ;;  %5486 = vmatpush3.msk.msra.mxu1 %vm635_vm4, %v2077_v52  ;;  %v5131_v51 = vld [vmem:[%s6822_s6] ss:$0 sm:$0xff] }
 0xf37   : > { %5495 = vmatprep.subr.mxu1 %v5956_v20 }
 0xf39   : > { %v2228_v62 = vpop.permute.xlu1 %2227 }
 0xf40   : > { %v5895_v53 = vpop.eup %5894 }
 0xf41   : > { %v2071_v54 = vsel %vm619_vm5, %v5895_v53, 0.0 }
 0xf42   : > { %2072 = vadd.xlane.f32.xlu0 %v2071_v54 }
 0xf58   : > { %2229 = vrot.lane.b32.xlu0 %v6123_v41, %s6830_s30  ;;  %v538_v41 = vld [vmem:[%s6820_s4 + $0x30] sm:$0xff] }
 0xf59   : > { %5491 = vmatpush3.msra.mxu0 %v538_v41  ;;  %v2626_v41 = vld [vmem:[%s6826_s10 + $0x28] sm:$0xff] }
 0xf5a   : > { %5500 = vmatprep.subr.mxu0 %v5956_v20 }
 0xf70   : > { %v1981_v55 = vpop.f32.mrb[16].mxu1 }
 0xf71   : > { %v1985_v56 = vadd.f32 %v1981_v55, %v1744_v33  ;;  %v5479_v57 = vpop.f32.mrb[17].mxu1  ;;  %v2506_v33 = vld [vmem:[%s6824_s8] sm:$0xff] }
 0xf72   : > { %v2622_v57 = vld [vmem:[%s6826_s10 + $0x8] sm:$0xff] }
 0xfcf   : > { %v2073_v58 = vpop.xlane.xlu0 %2072 }
 0xfd0   : > { %5896 = vrcp.f32 %v2073_v58 }
 0xfd3   : > { %v2230_v61 = vpop.permute.xlu0 %2229 }
 0xfda   : > { %v5897_v59 = vpop.eup %5896 }
 0xfdb   : > { %v2075_v60 = vmul.f32 %v5897_v59, %v5895_v53  ;;  %v5132_v53 = vld [vmem:[%s6823_s7] ss:$0 sm:$0xff]  ;;  %v2623_v59 = vld [vmem:[%s6826_s10 + $0x10] sm:$0xff] }
 0xfdd   : > { %5488 = vmatmul.mubr.msk.f32.vlgmr.msra.gmra.mrb[18].mxu1 %vm631_vm6, %v2075_v60  ;;  %v2624_v60 = vld [vmem:[%s6826_s10 + $0x18] sm:$0xff] }
 0xfde   : > { %5496 = vmatpush3.xpose.msk.msra.mxu1 %vm543_vm3, %v2230_v61  ;;  %5497 = vmatprep.mubr.msk.f32.mxu1 %vm5957_vm2, %v5956_v20  ;;  %v5770_v61 = vpack.c.bf16 %v2624_v60, %v2623_v59  ;;  %v5141_v59 = vld [vmem:[%s6819_s3 + $0x88] sm:$0xff] }
 0xfdf   : > { %5505 = vmatprep.subr.mxu1 %v5956_v20 }
 0xfe1   : > { %5498 = vmatmul.mubr.msk.f32.vlgmr.msra.gmra.mrb[20].mxu1 %vm543_vm3, %v2228_v62  ;;  %v2625_v62 = vld [vmem:[%s6826_s10 + $0x20] sm:$0xff] }
 0xfe2   : > { %5507 = vmatprep.mubr.msk.f32.mxu1 %vm5957_vm2, %v5956_v20  ;;  %5506 = vmatpush3.msra.mxu1 %v539_v12 }
 0xfe3   : > { %5766 = vmatprep.subr.bf16.mxu1 %v5973_v35 }
0x10b0   : > { %v2149_v63 = vpop.f32.mrb[18].mxu1 }
0x10b1   : > { %v5489_v1 = vpop.f32.mrb[19].mxu1  ;;  %5493 = vmatmul.mubr.msk.f32.vlgmr.msra.gmra.mrb[22].mxu0 %vm543_vm3, %v2149_v63  ;;  %v5773_v63 = vpack.c.bf16 %v2626_v41, %v2625_v62  ;;  %v5142_v62 = vld [vmem:[%s6819_s3 + $0x90] sm:$0xff] }
0x10b2   : > { %5502 = vmatprep.mubr.msk.f32.mxu0 %vm5957_vm2, %v5956_v20  ;;  %v2627_v1 = vld [vmem:[%s6826_s10 + $0x30] sm:$0xff] }
0x10b4   : > { %v2301_v2 = vpop.f32.mrb[20].mxu1 }
0x10b5   : > { %v2305_v3 = vmul.f32 0.35355338, %v2301_v2  ;;  %v5499_v4 = vpop.f32.mrb[21].mxu1  ;;  %v2628_v2 = vld [vmem:[%s6826_s10 + $0x38] sm:$0xff] }
0x10b6   : > { %v2629_v4 = vld [vmem:[%s6826_s10 + $0x40] sm:$0xff] }
0x10b7   : > { %v2306_v5 = vsel %vm619_vm5, %v2305_v3, -inf }
0x10b8   : > { %2307 = vmax.xlane.f32.xlu1 %v2306_v5  ;;  %v2630_v5 = vld [vmem:[%s6826_s10 + $0x48] sm:$0xff] }
0x10c9   : > { %2317 = vrot.lane.b32.xlu1 %v6129_v42, %s6831_s29  ;;  %s6847_s29 = smov 24  }
0x1145   : > { %v2308_v6 = vpop.xlane.xlu1 %2307 }
0x1146   : > { %v2309_v7 = vsub.f32 %v2305_v3, %v2308_v6  ;;  %v5776_v3 = vpack.c.bf16 %v2628_v2, %v2627_v1  ;;  %v5779_v6 = vpack.c.bf16 %v2630_v5, %v2629_v4  ;;  %v5147_v1 = vld [vmem:[%s6819_s3 + $0xb8] sm:$0xff]  ;;  %v5146_v4 = vld [vmem:[%s6819_s3 + $0xb0] sm:$0xff] }
0x1148   : > { %v2310_v8 = vmul.f32 1.442695, %v2309_v7  ;;  %v2631_v7 = vld [vmem:[%s6826_s10 + $0x50] sm:$0xff] }
0x1149   : > { %v2318_v9 = vpop.permute.xlu1 %2317 }
0x114a   : > { %5898 = vpow2.f32 %v2310_v8  ;;  %5501 = vmatpush3.msk.msra.mxu0 %vm635_vm4, %v2318_v9  ;;  %v2632_v8 = vld [vmem:[%s6826_s10 + $0x58] sm:$0xff] }
0x114b   : > { %5754 = vmatprep.subr.bf16.mxu0 %v5973_v35  ;;  %v5782_v9 = vpack.c.bf16 %v2632_v8, %v2631_v7  ;;  %v5151_v7 = vld [vmem:[%s6819_s3 + $0xd8] sm:$0xff] }
0x1154   : > { %v5899_v10 = vpop.eup %5898 }
0x1155   : > { %v2312_v11 = vsel %vm619_vm5, %v5899_v10, 0.0 }
0x1156   : > { %2313 = vadd.xlane.f32.xlu0 %v2312_v11  ;;  %v2634_v11 = vld [vmem:[%s6826_s10 + $0x68] sm:$0xff] }
0x1184   : > { %v2222_v13 = vpop.f32.mrb[22].mxu0 }
0x1185   : > { %v2226_v14 = vadd.f32 %v2222_v13, %v1985_v56  ;;  %v5494_v15 = vpop.f32.mrb[23].mxu0  ;;  %v2621_v56 = vld [vmem:[%s6826_s10] sm:$0xff]  ;;  %v2635_v13 = vld [vmem:[%s6826_s10 + $0x70] sm:$0xff] }
0x1186   : > { %v5767_v58 = vpack.c.bf16 %v2622_v57, %v2621_v56 }
0x11e3   : > { %v2314_v42 = vpop.xlane.xlu0 %2313 }
0x11e4   : > { %5900 = vrcp.f32 %v2314_v42  ;;  %v5133_v42 = vld [vmem:[%s6825_s9] ss:$0 sm:$0xff] }
0x11ee   : > { %v5901_v16 = vpop.eup %5900 }
0x11ef   : > { %v2316_v17 = vmul.f32 %v5901_v16, %v5899_v10  ;;  %v2633_v10 = vld [vmem:[%s6826_s10 + $0x60] sm:$0xff] }
0x11f0   : > { %v5785_v12 = vpack.c.bf16 %v2634_v11, %v2633_v10  ;;  %v5150_v10 = vld [vmem:[%s6819_s3 + $0xd0] sm:$0xff] }
0x11f1   : > { %5503 = vmatmul.mubr.msk.f32.vlgmr.msra.gmra.mrb[24].mxu0 %vm631_vm6, %v2316_v17 }
0x11f2   : > { %5526 = vmatprep.mubr.msk.f32.mxu0 %vm5957_vm2, %v5956_v20 }
0x12c4   : > { %v2390_v18 = vpop.f32.mrb[24].mxu0 }
0x12c5   : > { %v5504_v19 = vpop.f32.mrb[25].mxu0  ;;  %5508 = vmatmul.mubr.msk.f32.vlgmr.msra.gmra.mrb[22].mxu1 %vm543_vm3, %v2390_v18 }
0x12c6   : > { %5561 = vmatprep.mubr.msk.f32.mxu1 %vm5957_vm2, %v5956_v20  ;;  %5768 = vmatpush3.bf16.msra.mxu1 %v5767_v58 }
0x12c7   : > { %5769 = vmatprep.subr.bf16.mxu1 %v5973_v35 }
0x12ca   : > { %5771 = vmatpush3.bf16.msra.mxu1 %v5770_v61  ;;  %v5140_v61 = vld [vmem:[%s6819_s3 + $0x80] sm:$0xff] }
0x12cb   : > { %5772 = vmatprep.subr.bf16.mxu1 %v5973_v35  ;;  %v5792_v41 = vpack.c.bf16 %v5142_v62, %v5140_v61  ;;  %v5157_v61 = vld [vmem:[%s6820_s4 + $0x40] sm:$0xff] }
0x12ce   : > { %5774 = vmatpush3.bf16.msra.mxu1 %v5773_v63  ;;  %v5145_v63 = vld [vmem:[%s6819_s3 + $0xa8] sm:$0xff] }
0x12cf   : > { %5775 = vmatprep.subr.bf16.mxu1 %v5973_v35  ;;  %v5794_v2 = vpack.c.bf16 %v5147_v1, %v5145_v63 }
0x12d2   : > { %5777 = vmatpush3.bf16.msra.mxu1 %v5776_v3  ;;  %v5144_v3 = vld [vmem:[%s6819_s3 + $0xa0] sm:$0xff] }
0x12d3   : > { %5778 = vmatprep.subr.bf16.mxu1 %v5973_v35  ;;  %v5796_v5 = vpack.c.bf16 %v5146_v4, %v5144_v3 }
0x12d6   : > { %5780 = vmatpush3.bf16.msra.mxu1 %v5779_v6  ;;  %v5149_v6 = vld [vmem:[%s6819_s3 + $0xc8] sm:$0xff] }
0x12d7   : > { %5781 = vmatprep.subr.bf16.mxu1 %v5973_v35  ;;  %v5798_v8 = vpack.c.bf16 %v5151_v7, %v5149_v6 }
0x12da   : > { %5783 = vmatpush3.bf16.msra.mxu1 %v5782_v9  ;;  %v5148_v9 = vld [vmem:[%s6819_s3 + $0xc0] sm:$0xff] }
0x12db   : > { %5784 = vmatprep.subr.bf16.mxu1 %v5973_v35  ;;  %v5800_v11 = vpack.c.bf16 %v5150_v10, %v5148_v9 }
0x12de   : > { %5786 = vmatpush3.bf16.msra.mxu1 %v5785_v12  ;;  %v5153_v12 = vld [vmem:[%s6819_s3 + $0xe8] sm:$0xff] }
0x12df   : > { %5787 = vmatprep.subr.bf16.mxu1 %v5973_v35 }
0x1398   : > { %v2463_v21 = vpop.f32.mrb[22].mxu1 }
0x1399   : > { %v2467_v22 = vadd.f32 %v2463_v21, %v2226_v14  ;;  %v5509_v23 = vpop.f32.mrb[23].mxu1  ;;  %v2636_v14 = vld [vmem:[%s6826_s10 + $0x78] sm:$0xff] }
0x139a   : > { %v5788_v15 = vpack.c.bf16 %v2636_v14, %v2635_v13  ;;  %v5155_v13 = vld [vmem:[%s6819_s3 + $0xf8] sm:$0xff]  ;;  %v5152_v14 = vld [vmem:[%s6819_s3 + $0xe0] sm:$0xff] }
0x139b   : > { %v2468_v25 = vadd.f32 %v2467_v22, %v6055_v0  ;;  %v2507_v0 = vld [vmem:[%s6824_s8 + $0x8] sm:$0xff] }
0x139c   : > { %v5755_v34 = vpack.c.bf16 %v2507_v0, %v2506_v33  ;;  %5789 = vmatpush3.bf16.msra.mxu1 %v5788_v15  ;;  %v5802_v15 = vpack.c.bf16 %v5155_v13, %v5153_v12 }
0x139d   : > { %v6327_v26 = vadd.f32 %v5130_v24, %v2468_v25  ;;  %5569 = vmatprep.subr.mxu1 %v5956_v20 }
0x139e   : > { %5756 = vmatpush3.bf16.msra.mxu0 %v5755_v34 }
0x139f   : > { %v2479_v27 = vsel %vm412_vm0, %v6327_v26, 0.0  ;;  %5757 = vmatprep.subr.bf16.mxu0 %v5973_v35 }
0x13a0   : > { %2480 = vadd.xlane.f32.xlu0 %v2479_v27 }
0x13a2   : > { %5759 = vmatpush3.bf16.msra.mxu0 %v5758_v38 }
0x13a3   : > { %5760 = vmatprep.subr.bf16.mxu0 %v5973_v35 }
0x13a6   : > { %5762 = vmatpush3.bf16.msra.mxu0 %v5761_v43 }
0x13a7   : > { %5763 = vmatprep.subr.bf16.mxu0 %v5973_v35 }
0x13aa   : > { %5765 = vmatpush3.bf16.msra.mxu0 %v5764_v46 }
0x142d   : > { %v2481_v28 = vpop.xlane.xlu0 %2480 }
0x142e   : > { %v2482_v29 = vmul.f32 0.015625, %v2481_v28 }
0x1430   : > { %v2483_v30 = vsub.f32 %v6327_v26, %v2482_v29 }
0x1432   : > { %v2484_v31 = vmul.f32 %v2483_v30, %v2483_v30 }
0x1434   : > { %v2485_v32 = vsel %vm412_vm0, %v2484_v31, 0.0 }
0x1435   : > { %2486 = vadd.xlane.f32.xlu0 %v2485_v32 }
0x14c2   : > { %v2487_v47 = vpop.xlane.xlu0 %2486 }
0x14c3   : > { %v2488_v48 = vmul.f32 0.015625, %v2487_v47 }
0x14c5   : > { %v2489_v49 = vadd.f32 1e-05, %v2488_v48 }
0x14c7   : > { %5902 = vrsqrt.f32 %v2489_v49  ;;  %v5135_v49 = vld [vmem:[%s6827_s11] ss:$0 sm:$0xff] }
0x14d1   : > { %v5903_v50 = vpop.eup %5902 }
0x14d2   : > { %v2491_v52 = vmul.f32 %v5903_v50, %v2483_v30 }
0x14d4   : > { %v2498_v54 = vmul.f32 %v5131_v51, %v2491_v52 }
0x14d6   : > { %v2505_v55 = vadd.f32 %v5132_v53, %v2498_v54 }
0x14d8   : > { %5527 = vmatmul.mubr.msk.f32.vlgmr.msra.gmra.mrb[26].mxu0 %vm457_vm1, %v2505_v55 }
0x14d9   : > { %2831 = vmatprep.mubr.f32.mxu0 %v5956_v20 }
0x15ab   : > { %v2590_v16 = vpop.f32.mrb[26].mxu0 }
0x15ac   : > { %v2591_v17 = vadd.f32 %v5133_v42, %v2590_v16  ;;  %v5528_v18 = vpop.f32.mrb[27].mxu0  ;;  %v5154_v42 = vld [vmem:[%s6819_s3 + $0xf0] sm:$0xff] }
0x15ad   : > { %v5804_v16 = vpack.c.bf16 %v5154_v42, %v5152_v14 }
0x15ae   : > { %v2595_v19 = vmul.f32 0.70710677, %v2591_v17  ;;  %v2594_v45 = vmul.f32 0.5, %v2591_v17 }
0x15b0   : > { %v2596_v21 = vand.u32 2147483647, %v2595_v19  ;;  %vm2616_vm7 = vcmp.ge.f32.partialorder %v2595_v19, 0.0 }
0x15b2   : > { %v2597_v22 = vmul.f32 0.3275911, %v2596_v21  ;;  %v2610_v24 = vsub.f32 0.0, %v2596_v21 }
0x15b4   : > { %v2598_v23 = vadd.f32 1.0, %v2597_v22  ;;  %v2611_v27 = vmul.f32 %v2610_v24, %v2596_v21  ;;  %v5138_v22 = vld [vmem:[%s6817_s1 + $0x1] ss:$0 sm:$0xff] }
0x15b5   : > { %v5139_v24 = vld [vmem:[%s6818_s2 + $0x1] ss:$0 sm:$0xff] }
0x15b6   : > { %5904 = vrcp.f32 %v2598_v23  ;;  %v2612_v30 = vmul.f32 1.442695, %v2611_v27 }
0x15b8   : > { %5906 = vpow2.f32 %v2612_v30 }
0x15c0   : > { %v5905_v25 = vpop.eup %5904 }
0x15c1   : > { %v2601_v28 = vmul.f32 1.0614054, %v5905_v25 }
0x15c2   : > { %v5907_v38 = vpop.eup %5906 }
0x15c3   : > { %v2602_v29 = vadd.f32 -1.4531521, %v2601_v28 }
0x15c5   : > { %v2603_v31 = vmul.f32 %v5905_v25, %v2602_v29 }
0x15c7   : > { %v2604_v32 = vadd.f32 1.4214138, %v2603_v31 }
0x15c9   : > { %v2605_v33 = vmul.f32 %v5905_v25, %v2604_v32 }
0x15cb   : > { %v2606_v0 = vadd.f32 -0.28449672, %v2605_v33 }
0x15cd   : > { %v2607_v34 = vmul.f32 %v5905_v25, %v2606_v0 }
0x15cf   : > { %v2608_v36 = vadd.f32 0.2548296, %v2607_v34 }
0x15d1   : > { %v2609_v37 = vmul.f32 %v5905_v25, %v2608_v36 }
0x15d3   : > { %v2614_v39 = vmul.f32 %v5907_v38, %v2609_v37 }
0x15d5   : > { %v2615_v40 = vsub.f32 1.0, %v2614_v39 }
0x15d7   : > { %v2617_v43 = vsub.f32 0.0, %v2615_v40 }
0x15d9   : > { %v2618_v44 = vsel %vm2616_vm7, %v2615_v40, %v2617_v43 }
0x15da   : > { %v2619_v46 = vadd.f32 1.0, %v2618_v44 }
0x15dc   : > { %v2620_v47 = vmul.f32 %v2619_v46, %v2594_v45 }
0x15de   : > { %5562 = vmatmul.mubr.f32.vlgmr.msra.gmra.mrb[24].mxu1 %v2620_v47 }
0x15df   : > { %5571 = vmatprep.mubr.msk.f32.mxu1 %vm5957_vm2, %v5956_v20 }
0x16b1   : > { %v2703_v48 = vpop.f32.mrb[24].mxu1 }
0x16b2   : > { %v2707_v50 = vadd.f32 %v2703_v48, %v6327_v26  ;;  %v5563_v51 = vpop.f32.mrb[25].mxu1  ;;  %v5143_v26 = vld [vmem:[%s6819_s3 + $0x98] sm:$0xff] }
0x16b3   : > { %v5790_v60 = vpack.c.bf16 %v5143_v26, %v5141_v59 }
0x16b4   : > { %v6435_v52 = vadd.f32 %v5135_v49, %v2707_v50 }
0x16b5   : > { %5791 = vmatprep.subr.bf16.mxu0 %v5790_v60 }
0x16b6   : > { %v2720_v53 = vsel %vm412_vm0, %v6435_v52, 0.0  ;;  %5793 = vmatpush1.bf16.msra.mxu0 %v5792_v41 }
0x16b7   : > { %2721 = vadd.xlane.f32.xlu0 %v2720_v53  ;;  %5795 = vmatprep.subr.bf16.mxu0 %v5794_v2 }
0x16ba   : > { %5797 = vmatpush1.bf16.msra.mxu0 %v5796_v5 }
0x16bb   : > { %5799 = vmatprep.subr.bf16.mxu0 %v5798_v8 }
0x16be   : > { %5801 = vmatpush1.bf16.msra.mxu0 %v5800_v11 }
0x16bf   : > { %5803 = vmatprep.subr.bf16.mxu0 %v5802_v15 }
0x16c2   : > { %5805 = vmatpush1.bf16.msra.mxu0 %v5804_v16 }
0x16c3   : > { %5564 = vmatprep.subr.mxu0 %v5956_v20 }
0x1744   : > { %v2722_v54 = vpop.xlane.xlu0 %2721 }
0x1745   : > { %v2723_v55 = vmul.f32 0.015625, %v2722_v54  ;;  %v5158_v54 = vld [vmem:[%s6820_s4 + $0x48] sm:$0xff] }
0x1747   : > { %v2724_v56 = vsub.f32 %v6435_v52, %v2723_v55 }
0x1749   : > { %v2725_v57 = vmul.f32 %v2724_v56, %v2724_v56 }
0x174b   : > { %v2726_v58 = vsel %vm412_vm0, %v2725_v57, 0.0 }
0x174c   : > { %2727 = vadd.xlane.f32.xlu0 %v2726_v58 }
0x17d9   : > { %v2728_v17 = vpop.xlane.xlu0 %2727 }
0x17da   : > { %v2729_v18 = vmul.f32 0.015625, %v2728_v17 }
0x17dc   : > { %v2730_v19 = vadd.f32 1e-05, %v2729_v18 }
0x17de   : > { %5908 = vrsqrt.f32 %v2730_v19 }
0x17e8   : > { %v5909_v21 = vpop.eup %5908 }
0x17e9   : > { %v2732_v23 = vmul.f32 %v5909_v21, %v2724_v56 }
0x17eb   : > { %v2739_v25 = vmul.f32 %v5138_v22, %v2732_v23 }
0x17ed   : > { %v2746_v27 = vadd.f32 %v5139_v24, %v2739_v25  ;;  %v5159_v24 = vld [vmem:[%s6820_s4 + $0x50] sm:$0xff] }
0x17ef   : > { %5156 = vmatmul.mubr.msk.f32.vlgmr.msra.gmra.mrb[28].mxu0 %vm457_vm1, %v2746_v27 }
0x17f0   : > { %5566 = vmatprep.mubr.msk.f32.mxu0 %vm5957_vm2, %v5956_v20 }
0x18c2   : > { %v6499_v28 = vpop.f32.mrb[28].mxu0 }
0x18c3   : > { %3014 = vrot.lane.b32.xlu1 %v6499_v28, %s5959_s16  ;;  %2848 = vrot.lane.b32.xlu0 %v6499_v28, %s5958_s15  ;;  %v6505_v29 = vpop.f32.mrb[29].mxu0  ;;  %s6850_s15 = smov 16  }
0x18c4   : > { %5570 = vmatpush3.msk.msra.mxu1 %vm635_vm4, %v6505_v29 }
0x18c5   : > { %5579 = vmatprep.subr.mxu1 %v5956_v20 }
0x18c7   : > { %3012 = vrot.lane.b32.xlu1 %v6499_v28, %s5960_s17 }
0x1935   : > { %v2849_v30 = vpop.permute.xlu0 %2848  ;;  %v3015_v31 = vpop.permute.xlu1 %3014 }
0x1936   : > { %5565 = vmatpush3.xpose.msk.msra.mxu0 %vm543_vm3, %v2849_v30 }
0x1937   : > { %5574 = vmatprep.subr.mxu0 %v5956_v20 }
0x1939   : > { %5567 = vmatmul.mubr.msk.f32.vlgmr.msra.gmra.mrb[30].mxu0 %vm543_vm3, %v6499_v28  ;;  %v3013_v32 = vpop.permute.xlu1 %3012 }
0x193a   : > { %5575 = vmatpush3.xpose.msk.msra.mxu0 %vm543_vm3, %v3015_v31  ;;  %5576 = vmatprep.mubr.msk.f32.mxu0 %vm5957_vm2, %v5956_v20 }
0x193b   : > { %5584 = vmatprep.subr.mxu0 %v5956_v20 }
0x193d   : > { %5577 = vmatmul.mubr.msk.f32.vlgmr.msra.gmra.mrb[32].mxu0 %vm543_vm3, %v3013_v32 }
0x193e   : > { %5586 = vmatprep.mubr.msk.f32.mxu0 %vm5957_vm2, %v5956_v20  ;;  %5585 = vmatpush3.msra.mxu0 %v5158_v54 }
0x193f   : > { %5594 = vmatprep.subr.mxu0 %v5956_v20 }
0x1a0c   : > { %v2920_v33 = vpop.f32.mrb[30].mxu0 }
0x1a0d   : > { %v2924_v0 = vmul.f32 0.35355338, %v2920_v33  ;;  %v5568_v34 = vpop.f32.mrb[31].mxu0 }
0x1a0f   : > { %v2925_v36 = vsel %vm619_vm5, %v2924_v0, -inf }
0x1a10   : > { %2926 = vmax.xlane.f32.xlu1 %v2925_v36  ;;  %v3086_v37 = vpop.f32.mrb[32].mxu0 }
0x1a11   : > { %v3090_v38 = vmul.f32 0.35355338, %v3086_v37  ;;  %v5578_v39 = vpop.f32.mrb[33].mxu0 }
0x1a13   : > { %v3091_v40 = vsel %vm619_vm5, %v3090_v38, -inf }
0x1a14   : > { %3092 = vmax.xlane.f32.xlu0 %v3091_v40 }
0x1a2a   : > { %3327 = vrot.lane.b32.xlu0 %v6499_v28, %s5961_s18  ;;  %s6851_s18 = smov 8  }
0x1a9d   : > { %v2927_v43 = vpop.xlane.xlu1 %2926 }
0x1a9e   : > { %v2928_v44 = vsub.f32 %v2924_v0, %v2927_v43 }
0x1aa0   : > { %v2929_v45 = vmul.f32 1.442695, %v2928_v44 }
0x1aa1   : > { %v3093_v46 = vpop.xlane.xlu0 %3092 }
0x1aa2   : > { %5910 = vpow2.f32 %v2929_v45  ;;  %v3094_v47 = vsub.f32 %v3090_v38, %v3093_v46 }
0x1aa4   : > { %v3095_v48 = vmul.f32 1.442695, %v3094_v47 }
0x1aa5   : > { %v3328_v1 = vpop.permute.xlu0 %3327 }
0x1aa6   : > { %5912 = vpow2.f32 %v3095_v48 }
0x1aac   : > { %v5911_v49 = vpop.eup %5910 }
0x1aad   : > { %v2931_v50 = vsel %vm619_vm5, %v5911_v49, 0.0 }
0x1aae   : > { %2932 = vadd.xlane.f32.xlu1 %v2931_v50  ;;  %v5160_v50 = vld [vmem:[%s6820_s4 + $0x58] sm:$0xff] }
0x1ab0   : > { %v5913_v51 = vpop.eup %5912 }
0x1ab1   : > { %v3097_v53 = vsel %vm619_vm5, %v5913_v51, 0.0 }
0x1ab2   : > { %3098 = vadd.xlane.f32.xlu1 %v3097_v53 }
0x1ac3   : > { %3102 = vrot.lane.b32.xlu1 %v6505_v29, %s5960_s17 }
0x1ac7   : > { %3325 = vrot.lane.b32.xlu1 %v6499_v28, %s5962_s19 }
0x1b3b   : > { %v2933_v55 = vpop.xlane.xlu1 %2932 }
0x1b3c   : > { %5914 = vrcp.f32 %v2933_v55 }
0x1b3f   : > { %v3099_v56 = vpop.xlane.xlu1 %3098 }
0x1b40   : > { %5916 = vrcp.f32 %v3099_v56 }
0x1b43   : > { %v3103_v59 = vpop.permute.xlu1 %3102 }
0x1b46   : > { %v5915_v57 = vpop.eup %5914 }
0x1b47   : > { %v2935_v58 = vmul.f32 %v5915_v57, %v5911_v49  ;;  %v3326_v3 = vpop.permute.xlu1 %3325 }
0x1b49   : > { %5572 = vmatmul.mubr.msk.f32.vlgmr.msra.gmra.mrb[26].mxu1 %vm631_vm6, %v2935_v58 }
0x1b4a   : > { %v5917_v26 = vpop.eup %5916  ;;  %5580 = vmatpush3.msk.msra.mxu1 %vm635_vm4, %v3103_v59  ;;  %5581 = vmatprep.mubr.msk.f32.mxu1 %vm5957_vm2, %v5956_v20 }
0x1b4b   : > { %v3101_v60 = vmul.f32 %v5917_v26, %v5913_v51  ;;  %5589 = vmatprep.subr.mxu1 %v5956_v20 }
0x1b4d   : > { %5582 = vmatmul.mubr.msk.f32.vlgmr.msra.gmra.mrb[28].mxu1 %vm631_vm6, %v3101_v60 }
0x1b4e   : > { %5591 = vmatprep.mubr.msk.f32.mxu1 %vm5957_vm2, %v5956_v20  ;;  %5590 = vmatpush3.msra.mxu1 %v5157_v61 }
0x1b4f   : > { %5599 = vmatprep.subr.mxu1 %v5956_v20 }
0x1c1c   : > { %v3008_v62 = vpop.f32.mrb[26].mxu1 }
0x1c1d   : > { %v5573_v41 = vpop.f32.mrb[27].mxu1  ;;  %5592 = vmatmul.mubr.msk.f32.vlgmr.msra.gmra.mrb[30].mxu1 %vm543_vm3, %v3008_v62 }
0x1c1e   : > { %5601 = vmatprep.mubr.msk.f32.mxu1 %vm5957_vm2, %v5956_v20 }
0x1c20   : > { %v3175_v63 = vpop.f32.mrb[28].mxu1 }
0x1c21   : > { %v5583_v2 = vpop.f32.mrb[29].mxu1  ;;  %5587 = vmatmul.mubr.msk.f32.vlgmr.msra.gmra.mrb[34].mxu0 %vm543_vm3, %v3175_v63 }
0x1c22   : > { %5595 = vmatpush3.xpose.msk.msra.mxu0 %vm543_vm3, %v3328_v1  ;;  %5596 = vmatprep.mubr.msk.f32.mxu0 %vm5957_vm2, %v5956_v20 }
0x1c23   : > { %5604 = vmatprep.subr.mxu0 %v5956_v20 }
0x1c25   : > { %5597 = vmatmul.mubr.msk.f32.vlgmr.msra.gmra.mrb[36].mxu0 %vm543_vm3, %v3326_v3 }
0x1c26   : > { %5606 = vmatprep.mubr.msk.f32.mxu0 %vm5957_vm2, %v5956_v20  ;;  %5605 = vmatpush3.msra.mxu0 %v5159_v24 }
0x1c27   : > { %5614 = vmatprep.subr.mxu0 %v5956_v20 }
0x1cf0   : > { %v3321_v4 = vpop.f32.mrb[30].mxu1 }
0x1cf1   : > { %v5593_v5 = vpop.f32.mrb[31].mxu1 }
0x1cf4   : > { %v3248_v6 = vpop.f32.mrb[34].mxu0 }
0x1cf5   : > { %v3322_v7 = vadd.f32 %v3321_v4, %v3248_v6  ;;  %v5588_v8 = vpop.f32.mrb[35].mxu0 }
0x1cf8   : > { %v3399_v9 = vpop.f32.mrb[36].mxu0 }
0x1cf9   : > { %v3403_v10 = vmul.f32 0.35355338, %v3399_v9  ;;  %v5598_v11 = vpop.f32.mrb[37].mxu0 }
0x1cfb   : > { %v3404_v12 = vsel %vm619_vm5, %v3403_v10, -inf }
0x1cfc   : > { %3405 = vmax.xlane.f32.xlu1 %v3404_v12 }
0x1d0d   : > { %3568 = vrot.lane.b32.xlu1 %v6499_v28, %s5964_s28 }
0x1d11   : > { %3566 = vrot.lane.b32.xlu1 %v6499_v28, %s6844_s26 }
0x1d89   : > { %v3406_v13 = vpop.xlane.xlu1 %3405 }
0x1d8a   : > { %v3407_v14 = vsub.f32 %v3403_v10, %v3406_v13 }
0x1d8c   : > { %v3408_v15 = vmul.f32 1.442695, %v3407_v14 }
0x1d8d   : > { %v3569_v21 = vpop.permute.xlu1 %3568 }
0x1d8e   : > { %5918 = vpow2.f32 %v3408_v15 }
0x1d91   : > { %v3567_v23 = vpop.permute.xlu1 %3566 }
0x1d98   : > { %v5919_v42 = vpop.eup %5918 }
0x1d99   : > { %v3410_v16 = vsel %vm619_vm5, %v5919_v42, 0.0 }
0x1d9a   : > { %3411 = vadd.xlane.f32.xlu0 %v3410_v16 }
0x1db0   : > { %3415 = vrot.lane.b32.xlu0 %v6505_v29, %s5962_s19 }
0x1e27   : > { %v3412_v17 = vpop.xlane.xlu0 %3411 }
0x1e28   : > { %5920 = vrcp.f32 %v3412_v17 }
0x1e2b   : > { %v3416_v18 = vpop.permute.xlu0 %3415 }
0x1e2c   : > { %5600 = vmatpush3.msk.msra.mxu1 %vm635_vm4, %v3416_v18 }
0x1e2d   : > { %5609 = vmatprep.subr.mxu1 %v5956_v20 }
0x1e32   : > { %v5921_v19 = vpop.eup %5920 }
0x1e33   : > { %v3414_v22 = vmul.f32 %v5921_v19, %v5919_v42 }
0x1e35   : > { %5602 = vmatmul.mubr.msk.f32.vlgmr.msra.gmra.mrb[32].mxu1 %vm631_vm6, %v3414_v22 }
0x1e36   : > { %5610 = vmatpush3.xpose.msk.msra.mxu1 %vm543_vm3, %v3569_v21  ;;  %5611 = vmatprep.mubr.msk.f32.mxu1 %vm5957_vm2, %v5956_v20 }
0x1e37   : > { %5619 = vmatprep.subr.mxu1 %v5956_v20 }
0x1e39   : > { %5612 = vmatmul.mubr.msk.f32.vlgmr.msra.gmra.mrb[34].mxu1 %vm543_vm3, %v3567_v23 }
0x1e3a   : > { %5621 = vmatprep.mubr.msk.f32.mxu1 %vm5957_vm2, %v5956_v20  ;;  %5620 = vmatpush3.msra.mxu1 %v5160_v50 }
0x1e3b   : > { %5629 = vmatprep.subr.mxu1 %v5956_v20 }
0x1f08   : > { %v3488_v25 = vpop.f32.mrb[32].mxu1 }
0x1f09   : > { %v5603_v27 = vpop.f32.mrb[33].mxu1  ;;  %5607 = vmatmul.mubr.msk.f32.vlgmr.msra.gmra.mrb[38].mxu0 %vm543_vm3, %v3488_v25 }
0x1f0a   : > { %5616 = vmatprep.mubr.msk.f32.mxu0 %vm5957_vm2, %v5956_v20 }
0x1f0c   : > { %v3640_v30 = vpop.f32.mrb[34].mxu1 }
0x1f0d   : > { %v3644_v31 = vmul.f32 0.35355338, %v3640_v30  ;;  %v5613_v32 = vpop.f32.mrb[35].mxu1 }
0x1f0f   : > { %v3645_v33 = vsel %vm619_vm5, %v3644_v31, -inf }
0x1f10   : > { %3646 = vmax.xlane.f32.xlu0 %v3645_v33 }
0x1f26   : > { %3656 = vrot.lane.b32.xlu0 %v6505_v29, %s6844_s26  ;;  %s6852_s26 = smov 72  }
0x1f2a   : > { %3807 = vrot.lane.b32.xlu0 %v6499_v28, %s6845_s24 }
0x1f9d   : > { %v3647_v0 = vpop.xlane.xlu0 %3646 }
0x1f9e   : > { %v3648_v34 = vsub.f32 %v3644_v31, %v3647_v0  ;;  %v5162_v31 = vld [vmem:[%s6820_s4 + $0x68] sm:$0xff] }
0x1fa0   : > { %v3649_v36 = vmul.f32 1.442695, %v3648_v34 }
0x1fa1   : > { %v3657_v37 = vpop.permute.xlu0 %3656 }
0x1fa2   : > { %5922 = vpow2.f32 %v3649_v36  ;;  %5615 = vmatpush3.msk.msra.mxu0 %vm635_vm4, %v3657_v37 }
0x1fa3   : > { %5624 = vmatprep.subr.mxu0 %v5956_v20 }
0x1fa5   : > { %v3808_v49 = vpop.permute.xlu0 %3807 }
0x1fac   : > { %v5923_v38 = vpop.eup %5922 }
0x1fad   : > { %v3651_v39 = vsel %vm619_vm5, %v5923_v38, 0.0 }
0x1fae   : > { %3652 = vadd.xlane.f32.xlu1 %v3651_v39 }
0x1fbf   : > { %3809 = vrot.lane.b32.xlu1 %v6499_v28, %s6846_s27 }
0x1fdc   : > { %v3561_v40 = vpop.f32.mrb[38].mxu0 }
0x1fdd   : > { %v3565_v43 = vadd.f32 %v3561_v40, %v3322_v7  ;;  %v5608_v44 = vpop.f32.mrb[39].mxu0  ;;  %v5161_v7 = vld [vmem:[%s6820_s4 + $0x60] sm:$0xff] }
0x203b   : > { %v3653_v45 = vpop.xlane.xlu1 %3652 }
0x203c   : > { %5924 = vrcp.f32 %v3653_v45 }
0x203f   : > { %v3810_v48 = vpop.permute.xlu1 %3809 }
0x2046   : > { %v5925_v46 = vpop.eup %5924 }
0x2047   : > { %v3655_v47 = vmul.f32 %v5925_v46, %v5923_v38 }
0x2049   : > { %5617 = vmatmul.mubr.msk.f32.vlgmr.msra.gmra.mrb[40].mxu0 %vm631_vm6, %v3655_v47 }
0x204a   : > { %5625 = vmatpush3.xpose.msk.msra.mxu0 %vm543_vm3, %v3810_v48  ;;  %5626 = vmatprep.mubr.msk.f32.mxu0 %vm5957_vm2, %v5956_v20 }
0x204b   : > { %5634 = vmatprep.subr.mxu0 %v5956_v20 }
0x204d   : > { %5627 = vmatmul.mubr.msk.f32.vlgmr.msra.gmra.mrb[42].mxu0 %vm543_vm3, %v3808_v49 }
0x204e   : > { %5636 = vmatprep.mubr.msk.f32.mxu0 %vm5957_vm2, %v5956_v20  ;;  %5635 = vmatpush3.msra.mxu0 %v5161_v7 }
0x204f   : > { %5644 = vmatprep.subr.mxu0 %v5956_v20 }
0x211c   : > { %v3729_v51 = vpop.f32.mrb[40].mxu0 }
0x211d   : > { %v5618_v53 = vpop.f32.mrb[41].mxu0  ;;  %5622 = vmatmul.mubr.msk.f32.vlgmr.msra.gmra.mrb[36].mxu1 %vm543_vm3, %v3729_v51 }
0x211e   : > { %5631 = vmatprep.mubr.msk.f32.mxu1 %vm5957_vm2, %v5956_v20 }
0x2120   : > { %v3881_v54 = vpop.f32.mrb[42].mxu0 }
0x2121   : > { %v3885_v55 = vmul.f32 0.35355338, %v3881_v54  ;;  %v5628_v56 = vpop.f32.mrb[43].mxu0  ;;  %v5163_v54 = vld [vmem:[%s6820_s4 + $0x70] sm:$0xff] }
0x2123   : > { %v3886_v57 = vsel %vm619_vm5, %v3885_v55, -inf }
0x2124   : > { %3887 = vmax.xlane.f32.xlu1 %v3886_v57 }
0x2135   : > { %4050 = vrot.lane.b32.xlu1 %v6499_v28, %s6847_s29 }
0x2139   : > { %4048 = vrot.lane.b32.xlu1 %v6499_v28, %s6848_s23 }
0x21b1   : > { %v3888_v58 = vpop.xlane.xlu1 %3887 }
0x21b2   : > { %v3889_v59 = vsub.f32 %v3885_v55, %v3888_v58 }
0x21b4   : > { %v3890_v26 = vmul.f32 1.442695, %v3889_v59 }
0x21b5   : > { %v4051_v4 = vpop.permute.xlu1 %4050 }
0x21b6   : > { %5926 = vpow2.f32 %v3890_v26 }
0x21b9   : > { %v4049_v6 = vpop.permute.xlu1 %4048 }
0x21c0   : > { %v5927_v60 = vpop.eup %5926 }
0x21c1   : > { %v3892_v61 = vsel %vm619_vm5, %v5927_v60, 0.0 }
0x21c2   : > { %3893 = vadd.xlane.f32.xlu0 %v3892_v61 }
0x21d8   : > { %3897 = vrot.lane.b32.xlu0 %v6505_v29, %s6845_s24 }
0x21f0   : > { %v3802_v62 = vpop.f32.mrb[36].mxu1 }
0x21f1   : > { %v3806_v41 = vadd.f32 %v3802_v62, %v3565_v43  ;;  %v5623_v63 = vpop.f32.mrb[37].mxu1 }
0x224f   : > { %v3894_v1 = vpop.xlane.xlu0 %3893 }
0x2250   : > { %5928 = vrcp.f32 %v3894_v1 }
0x2253   : > { %v3898_v2 = vpop.permute.xlu0 %3897 }
0x2254   : > { %5630 = vmatpush3.msk.msra.mxu1 %vm635_vm4, %v3898_v2  ;;  %v5164_v2 = vld [vmem:[%s6820_s4 + $0x78] sm:$0xff] }
0x2255   : > { %5639 = vmatprep.subr.mxu1 %v5956_v20 }
0x225a   : > { %v5929_v3 = vpop.eup %5928 }
0x225b   : > { %v3896_v5 = vmul.f32 %v5929_v3, %v5927_v60 }
0x225d   : > { %5632 = vmatmul.mubr.msk.f32.vlgmr.msra.gmra.mrb[38].mxu1 %vm631_vm6, %v3896_v5 }
0x225e   : > { %5640 = vmatpush3.xpose.msk.msra.mxu1 %vm543_vm3, %v4051_v4  ;;  %5641 = vmatprep.mubr.msk.f32.mxu1 %vm5957_vm2, %v5956_v20 }
0x225f   : > { %5649 = vmatprep.subr.mxu1 %v5956_v20 }
0x2261   : > { %5642 = vmatmul.mubr.msk.f32.vlgmr.msra.gmra.mrb[40].mxu1 %vm543_vm3, %v4049_v6 }
0x2262   : > { %5651 = vmatprep.mubr.msk.f32.mxu1 %vm5957_vm2, %v5956_v20  ;;  %5650 = vmatpush3.msra.mxu1 %v5162_v31 }
0x2263   : > { %5659 = vmatprep.subr.mxu1 %v5956_v20 }
0x2330   : > { %v3970_v8 = vpop.f32.mrb[38].mxu1 }
0x2331   : > { %v5633_v9 = vpop.f32.mrb[39].mxu1  ;;  %5637 = vmatmul.mubr.msk.f32.vlgmr.msra.gmra.mrb[44].mxu0 %vm543_vm3, %v3970_v8 }
0x2332   : > { %5646 = vmatprep.mubr.msk.f32.mxu0 %vm5957_vm2, %v5956_v20 }
0x2334   : > { %v4122_v10 = vpop.f32.mrb[40].mxu1 }
0x2335   : > { %v4126_v11 = vmul.f32 0.35355338, %v4122_v10  ;;  %v5643_v12 = vpop.f32.mrb[41].mxu1 }
0x2337   : > { %v4127_v13 = vsel %vm619_vm5, %v4126_v11, -inf }
0x2338   : > { %4128 = vmax.xlane.f32.xlu0 %v4127_v13  ;;  %v5206_v13 = vld [vmem:[%s6821_s5 + $0x1] ss:$0 sm:$0xff] }
0x234e   : > { %4138 = vrot.lane.b32.xlu0 %v6505_v29, %s6848_s23 }
0x2352   : > { %4289 = vrot.lane.b32.xlu0 %v6499_v28, %s6849_s20 }
0x23c5   : > { %v4129_v14 = vpop.xlane.xlu0 %4128 }
0x23c6   : > { %v4130_v15 = vsub.f32 %v4126_v11, %v4129_v14 }
0x23c8   : > { %v4131_v42 = vmul.f32 1.442695, %v4130_v15 }
0x23c9   : > { %v4139_v16 = vpop.permute.xlu0 %4138 }
0x23ca   : > { %5930 = vpow2.f32 %v4131_v42  ;;  %5645 = vmatpush3.msk.msra.mxu0 %vm635_vm4, %v4139_v16 }
0x23cb   : > { %5654 = vmatprep.subr.mxu0 %v5956_v20 }
0x23cd   : > { %v4290_v30 = vpop.permute.xlu0 %4289 }
0x23d4   : > { %v5931_v17 = vpop.eup %5930 }
0x23d5   : > { %v4133_v18 = vsel %vm619_vm5, %v5931_v17, 0.0 }
0x23d6   : > { %4134 = vadd.xlane.f32.xlu1 %v4133_v18 }
0x23e7   : > { %4291 = vrot.lane.b32.xlu1 %v6499_v28, %s6850_s15 }
0x2404   : > { %v4043_v19 = vpop.f32.mrb[44].mxu0 }
0x2405   : > { %v4047_v21 = vadd.f32 %v4043_v19, %v3806_v41  ;;  %v5638_v22 = vpop.f32.mrb[45].mxu0 }
0x2463   : > { %v4135_v23 = vpop.xlane.xlu1 %4134 }
0x2464   : > { %5932 = vrcp.f32 %v4135_v23  ;;  %v5213_v23 = vld [vmem:[%s6824_s8 + $0x50] sm:$0xff] }
0x2467   : > { %v4292_v27 = vpop.permute.xlu1 %4291 }
0x246e   : > { %v5933_v24 = vpop.eup %5932 }
0x246f   : > { %v4137_v25 = vmul.f32 %v5933_v24, %v5931_v17  ;;  %v5214_v24 = vld [vmem:[%s6824_s8 + $0x58] sm:$0xff] }
0x2471   : > { %5647 = vmatmul.mubr.msk.f32.vlgmr.msra.gmra.mrb[46].mxu0 %vm631_vm6, %v4137_v25  ;;  %v5810_v25 = vpack.c.bf16 %v5214_v24, %v5213_v23 }
0x2472   : > { %5655 = vmatpush3.xpose.msk.msra.mxu0 %vm543_vm3, %v4292_v27  ;;  %5656 = vmatprep.mubr.msk.f32.mxu0 %vm5957_vm2, %v5956_v20  ;;  %v5215_v27 = vld [vmem:[%s6824_s8 + $0x60] sm:$0xff] }
0x2473   : > { %5664 = vmatprep.subr.mxu0 %v5956_v20 }
0x2475   : > { %5657 = vmatmul.mubr.msk.f32.vlgmr.msra.gmra.mrb[48].mxu0 %vm543_vm3, %v4290_v30  ;;  %v5216_v30 = vld [vmem:[%s6824_s8 + $0x68] sm:$0xff] }
0x2476   : > { %5666 = vmatprep.mubr.msk.f32.mxu0 %vm5957_vm2, %v5956_v20  ;;  %5665 = vmatpush3.msra.mxu0 %v5163_v54  ;;  %v5813_v31 = vpack.c.bf16 %v5216_v30, %v5215_v27 }
0x2477   : > { %5674 = vmatprep.subr.mxu0 %v5956_v20 }
0x2544   : > { %v4211_v32 = vpop.f32.mrb[46].mxu0 }
0x2545   : > { %v5648_v33 = vpop.f32.mrb[47].mxu0  ;;  %5652 = vmatmul.mubr.msk.f32.vlgmr.msra.gmra.mrb[42].mxu1 %vm543_vm3, %v4211_v32  ;;  %v5217_v32 = vld [vmem:[%s6824_s8 + $0x70] sm:$0xff] }
0x2546   : > { %5661 = vmatprep.mubr.msk.f32.mxu1 %vm5957_vm2, %v5956_v20  ;;  %v5218_v33 = vld [vmem:[%s6824_s8 + $0x78] sm:$0xff] }
0x2548   : > { %v4363_v0 = vpop.f32.mrb[48].mxu0 }
0x2549   : > { %v4367_v34 = vmul.f32 0.35355338, %v4363_v0  ;;  %v5658_v36 = vpop.f32.mrb[49].mxu0  ;;  %v5816_v0 = vpack.c.bf16 %v5218_v33, %v5217_v32 }
0x254b   : > { %v4368_v37 = vsel %vm619_vm5, %v4367_v34, -inf }
0x254c   : > { %4369 = vmax.xlane.f32.xlu1 %v4368_v37 }
0x255d   : > { %4532 = vrot.lane.b32.xlu1 %v6499_v28, %s6851_s18  ;;  %s6853_s18 = sshll.u32 %s6855_s22, 3 }
0x255e   : > { %s408_s28 = scalar_lea.vmem %s6828_s12, %s6853_s18 }
0x2561   : > { %4530 = vrot.lane.b32.xlu1 %v6499_v28, %s6852_s26 }
0x25d9   : > { %v4370_v38 = vpop.xlane.xlu1 %4369 }
0x25da   : > { %v4371_v39 = vsub.f32 %v4367_v34, %v4370_v38 }
0x25dc   : > { %v4372_v40 = vmul.f32 1.442695, %v4371_v39  ;;  %v5209_v39 = vld [vmem:[%s6822_s6 + $0x1] ss:$0 sm:$0xff] }
0x25dd   : > { %v4533_v50 = vpop.permute.xlu1 %4532 }
0x25de   : > { %5934 = vpow2.f32 %v4372_v40 }
0x25e1   : > { %v4531_v53 = vpop.permute.xlu1 %4530 }
0x25e8   : > { %v5935_v43 = vpop.eup %5934 }
0x25e9   : > { %v4374_v44 = vsel %vm619_vm5, %v5935_v43, 0.0 }
0x25ea   : > { %4375 = vadd.xlane.f32.xlu0 %v4374_v44 }
0x2600   : > { %4379 = vrot.lane.b32.xlu0 %v6505_v29, %s6849_s20 }
0x2618   : > { %v4284_v45 = vpop.f32.mrb[42].mxu1 }
0x2619   : > { %v4288_v46 = vadd.f32 %v4284_v45, %v4047_v21  ;;  %v5653_v47 = vpop.f32.mrb[43].mxu1  ;;  %v5211_v21 = vld [vmem:[%s6824_s8 + $0x40] sm:$0xff] }
0x261a   : > { %v5223_v47 = vld [vmem:[%s6826_s10 + $0x88] sm:$0xff] }
0x2677   : > { %v4376_v48 = vpop.xlane.xlu0 %4375 }
0x2678   : > { %5936 = vrcp.f32 %v4376_v48 }
0x267b   : > { %v4380_v49 = vpop.permute.xlu0 %4379 }
0x267c   : > { %5660 = vmatpush3.msk.msra.mxu1 %vm635_vm4, %v4380_v49  ;;  %v5224_v49 = vld [vmem:[%s6826_s10 + $0x90] sm:$0xff] }
0x267d   : > { %5669 = vmatprep.subr.mxu1 %v5956_v20 }
0x2682   : > { %v5937_v28 = vpop.eup %5936 }
0x2683   : > { %v4378_v51 = vmul.f32 %v5937_v28, %v5935_v43  ;;  %v5210_v43 = vld [vmem:[%s6823_s7 + $0x1] ss:$0 sm:$0xff]  ;;  %v5225_v28 = vld [vmem:[%s6826_s10 + $0x98] sm:$0xff] }
0x2685   : > { %5662 = vmatmul.mubr.msk.f32.vlgmr.msra.gmra.mrb[44].mxu1 %vm631_vm6, %v4378_v51  ;;  %v5226_v51 = vld [vmem:[%s6826_s10 + $0xa0] sm:$0xff] }
0x2686   : > { %5670 = vmatpush3.xpose.msk.msra.mxu1 %vm543_vm3, %v4533_v50  ;;  %5671 = vmatprep.mubr.msk.f32.mxu1 %vm5957_vm2, %v5956_v20  ;;  %v5822_v50 = vpack.c.bf16 %v5225_v28, %v5224_v49 }
0x2687   : > { %5679 = vmatprep.subr.mxu1 %v5956_v20 }
0x2689   : > { %5672 = vmatmul.mubr.msk.f32.vlgmr.msra.gmra.mrb[46].mxu1 %vm543_vm3, %v4531_v53  ;;  %v5227_v53 = vld [vmem:[%s6826_s10 + $0xa8] sm:$0xff] }
0x268a   : > { %5681 = vmatprep.mubr.msk.f32.mxu1 %vm5957_vm2, %v5956_v20  ;;  %5680 = vmatpush3.msra.mxu1 %v5164_v2  ;;  %v5825_v54 = vpack.c.bf16 %v5227_v53, %v5226_v51  ;;  %v5236_v2 = vld [vmem:[%s6826_s10 + $0xf0] sm:$0xff] }
0x268b   : > { %5818 = vmatprep.subr.bf16.mxu1 %v5973_v35 }
0x2758   : > { %v4452_v55 = vpop.f32.mrb[44].mxu1 }
0x2759   : > { %v5663_v56 = vpop.f32.mrb[45].mxu1  ;;  %5667 = vmatmul.mubr.msk.f32.vlgmr.msra.gmra.mrb[50].mxu0 %vm543_vm3, %v4452_v55  ;;  %v5228_v55 = vld [vmem:[%s6826_s10 + $0xb0] sm:$0xff] }
0x275a   : > { %5676 = vmatprep.mubr.msk.f32.mxu0 %vm5957_vm2, %v5956_v20  ;;  %v5229_v56 = vld [vmem:[%s6826_s10 + $0xb8] sm:$0xff] }
0x275c   : > { %v4604_v57 = vpop.f32.mrb[46].mxu1 }
0x275d   : > { %v4608_v58 = vmul.f32 0.35355338, %v4604_v57  ;;  %v5673_v59 = vpop.f32.mrb[47].mxu1  ;;  %v5828_v57 = vpack.c.bf16 %v5229_v56, %v5228_v55 }
0x275e   : > { %v5231_v59 = vld [vmem:[%s6826_s10 + $0xc8] sm:$0xff] }
0x275f   : > { %v4609_v26 = vsel %vm619_vm5, %v4608_v58, -inf }
0x2760   : > { %4610 = vmax.xlane.f32.xlu0 %v4609_v26 }
0x2776   : > { %4620 = vrot.lane.b32.xlu0 %v6505_v29, %s6852_s26 }
0x27ed   : > { %v4611_v60 = vpop.xlane.xlu0 %4610 }
0x27ee   : > { %v4612_v61 = vsub.f32 %v4608_v58, %v4611_v60  ;;  %v5230_v58 = vld [vmem:[%s6826_s10 + $0xc0] sm:$0xff]  ;;  %v5232_v60 = vld [vmem:[%s6826_s10 + $0xd0] sm:$0xff] }
0x27ef   : > { %v5831_v26 = vpack.c.bf16 %v5231_v59, %v5230_v58 }
0x27f0   : > { %v4613_v62 = vmul.f32 1.442695, %v4612_v61  ;;  %v5233_v61 = vld [vmem:[%s6826_s10 + $0xd8] sm:$0xff] }
0x27f1   : > { %v4621_v41 = vpop.permute.xlu0 %4620 }
0x27f2   : > { %5938 = vpow2.f32 %v4613_v62  ;;  %5675 = vmatpush3.msk.msra.mxu0 %vm635_vm4, %v4621_v41  ;;  %v5834_v62 = vpack.c.bf16 %v5233_v61, %v5232_v60  ;;  %v5234_v41 = vld [vmem:[%s6826_s10 + $0xe0] sm:$0xff] }
0x27f3   : > { %5806 = vmatprep.subr.bf16.mxu0 %v5973_v35 }
0x27fc   : > { %v5939_v63 = vpop.eup %5938 }
0x27fd   : > { %v4615_v1 = vsel %vm619_vm5, %v5939_v63, 0.0 }
0x27fe   : > { %4616 = vadd.xlane.f32.xlu1 %v4615_v1 }
0x282c   : > { %v4525_v29 = vpop.f32.mrb[50].mxu0 }
0x282d   : > { %v4529_v3 = vadd.f32 %v4525_v29, %v4288_v46  ;;  %v5668_v4 = vpop.f32.mrb[51].mxu0  ;;  %v5222_v46 = vld [vmem:[%s6826_s10 + $0x80] sm:$0xff]  ;;  %v5237_v29 = vld [vmem:[%s6826_s10 + $0xf8] sm:$0xff] }
0x282e   : > { %v5819_v48 = vpack.c.bf16 %v5223_v47, %v5222_v46  ;;  %v5220_v4 = vld [vmem:[%s6825_s9 + $0x1] ss:$0 sm:$0xff] }
0x288b   : > { %v4617_v5 = vpop.xlane.xlu1 %4616 }
0x288c   : > { %5940 = vrcp.f32 %v4617_v5 }
0x2896   : > { %v5941_v6 = vpop.eup %5940 }
0x2897   : > { %v4619_v7 = vmul.f32 %v5941_v6, %v5939_v63  ;;  %v5235_v63 = vld [vmem:[%s6826_s10 + $0xe8] sm:$0xff] }
0x2898   : > { %v5837_v1 = vpack.c.bf16 %v5235_v63, %v5234_v41 }
0x2899   : > { %5677 = vmatmul.mubr.msk.f32.vlgmr.msra.gmra.mrb[52].mxu0 %vm631_vm6, %v4619_v7 }
0x289a   : > { %5700 = vmatprep.mubr.msk.f32.mxu0 %vm5957_vm2, %v5956_v20 }
0x296c   : > { %v4693_v8 = vpop.f32.mrb[52].mxu0 }
0x296d   : > { %v5678_v9 = vpop.f32.mrb[53].mxu0  ;;  %5682 = vmatmul.mubr.msk.f32.vlgmr.msra.gmra.mrb[48].mxu1 %vm543_vm3, %v4693_v8 }
0x296e   : > { %5735 = vmatprep.mubr.msk.f32.mxu1 %vm5957_vm2, %v5956_v20  ;;  %5820 = vmatpush3.bf16.msra.mxu1 %v5819_v48 }
0x296f   : > { %5821 = vmatprep.subr.bf16.mxu1 %v5973_v35 }
0x2972   : > { %5823 = vmatpush3.bf16.msra.mxu1 %v5822_v50 }
0x2973   : > { %5824 = vmatprep.subr.bf16.mxu1 %v5973_v35 }
0x2976   : > { %5826 = vmatpush3.bf16.msra.mxu1 %v5825_v54 }
0x2977   : > { %5827 = vmatprep.subr.bf16.mxu1 %v5973_v35 }
0x297a   : > { %5829 = vmatpush3.bf16.msra.mxu1 %v5828_v57 }
0x297b   : > { %5830 = vmatprep.subr.bf16.mxu1 %v5973_v35 }
0x297e   : > { %5832 = vmatpush3.bf16.msra.mxu1 %v5831_v26 }
0x297f   : > { %5833 = vmatprep.subr.bf16.mxu1 %v5973_v35 }
0x2982   : > { %5835 = vmatpush3.bf16.msra.mxu1 %v5834_v62 }
0x2983   : > { %5836 = vmatprep.subr.bf16.mxu1 %v5973_v35 }
0x2986   : > { %5838 = vmatpush3.bf16.msra.mxu1 %v5837_v1 }
0x2987   : > { %5839 = vmatprep.subr.bf16.mxu1 %v5973_v35 }
0x2a40   : > { %v4766_v10 = vpop.f32.mrb[48].mxu1 }
0x2a41   : > { %v4770_v11 = vadd.f32 %v4766_v10, %v4529_v3  ;;  %v5683_v12 = vpop.f32.mrb[49].mxu1  ;;  %v5840_v3 = vpack.c.bf16 %v5237_v29, %v5236_v2 }
0x2a43   : > { %v4771_v14 = vadd.f32 %v4770_v11, %v6435_v52  ;;  %v5212_v52 = vld [vmem:[%s6824_s8 + $0x48] sm:$0xff]  ;;  %5841 = vmatpush3.bf16.msra.mxu1 %v5840_v3 }
0x2a44   : > { %v5807_v22 = vpack.c.bf16 %v5212_v52, %v5211_v21 }
0x2a45   : > { %v6705_v15 = vadd.f32 %v5206_v13, %v4771_v14 }
0x2a46   : > { %5808 = vmatpush3.bf16.msra.mxu0 %v5807_v22 }
0x2a47   : > { %v4785_v42 = vsel %vm412_vm0, %v6705_v15, 0.0  ;;  %5809 = vmatprep.subr.bf16.mxu0 %v5973_v35 }
0x2a48   : > { %4786 = vadd.xlane.f32.xlu1 %v4785_v42 }
0x2a4a   : > { %5811 = vmatpush3.bf16.msra.mxu0 %v5810_v25 }
0x2a4b   : > { %5812 = vmatprep.subr.bf16.mxu0 %v5973_v35 }
0x2a4e   : > { %5814 = vmatpush3.bf16.msra.mxu0 %v5813_v31 }
0x2a4f   : > { %5815 = vmatprep.subr.bf16.mxu0 %v5973_v35 }
0x2a52   : > { %5817 = vmatpush3.bf16.msra.mxu0 %v5816_v0 }
0x2ad5   : > { %v4787_v16 = vpop.xlane.xlu1 %4786 }
0x2ad6   : > { %v4788_v17 = vmul.f32 0.015625, %v4787_v16 }
0x2ad8   : > { %v4789_v18 = vsub.f32 %v6705_v15, %v4788_v17 }
0x2ada   : > { %v4790_v20 = vmul.f32 %v4789_v18, %v4789_v18 }
0x2adc   : > { %v4791_v19 = vsel %vm412_vm0, %v4790_v20, 0.0 }
0x2add   : > { %4792 = vadd.xlane.f32.xlu1 %v4791_v19 }
0x2b6a   : > { %v4793_v34 = vpop.xlane.xlu1 %4792 }
0x2b6b   : > { %v4794_v36 = vmul.f32 0.015625, %v4793_v34  ;;  %v5239_v34 = vld [vmem:[%s6827_s11 + $0x1] ss:$0 sm:$0xff] }
0x2b6d   : > { %v4795_v37 = vadd.f32 1e-05, %v4794_v36 }
0x2b6f   : > { %5942 = vrsqrt.f32 %v4795_v37 }
0x2b79   : > { %v5943_v38 = vpop.eup %5942 }
0x2b7a   : > { %v4797_v40 = vmul.f32 %v5943_v38, %v4789_v18 }
0x2b7c   : > { %v4804_v44 = vmul.f32 %v5209_v39, %v4797_v40 }
0x2b7e   : > { %v4811_v45 = vadd.f32 %v5210_v43, %v4804_v44 }
0x2b80   : > { %5701 = vmatmul.mubr.msk.f32.vlgmr.msra.gmra.mrb[54].mxu0 %vm457_vm1, %v4811_v45 }
0x2c53   : > { %v4898_v5 = vpop.f32.mrb[54].mxu0 }
0x2c54   : > { %v4899_v6 = vadd.f32 %v5220_v4, %v4898_v5  ;;  %v5702_v7 = vpop.f32.mrb[55].mxu0 }
0x2c56   : > { %v4903_v8 = vmul.f32 0.70710677, %v4899_v6  ;;  %v4902_v31 = vmul.f32 0.5, %v4899_v6 }
0x2c58   : > { %v4904_v9 = vand.u32 2147483647, %v4903_v8  ;;  %vm4924_vm8 = vcmp.ge.f32.partialorder %v4903_v8, 0.0 }
0x2c5a   : > { %v4905_v35 = vmul.f32 0.3275911, %v4904_v9  ;;  %v4918_v11 = vsub.f32 0.0, %v4904_v9 }
0x2c5c   : > { %v4906_v10 = vadd.f32 1.0, %v4905_v35  ;;  %v4919_v13 = vmul.f32 %v4918_v11, %v4904_v9 }
0x2c5e   : > { %5944 = vrcp.f32 %v4906_v10  ;;  %v4920_v16 = vmul.f32 1.442695, %v4919_v13 }
0x2c60   : > { %5946 = vpow2.f32 %v4920_v16 }
0x2c68   : > { %v5945_v12 = vpop.eup %5944 }
0x2c69   : > { %v4909_v14 = vmul.f32 1.0614054, %v5945_v12 }
0x2c6a   : > { %v5947_v23 = vpop.eup %5946 }
0x2c6b   : > { %v4910_v42 = vadd.f32 -1.4531521, %v4909_v14 }
0x2c6d   : > { %v4911_v17 = vmul.f32 %v5945_v12, %v4910_v42 }
0x2c6f   : > { %v4912_v18 = vadd.f32 1.4214138, %v4911_v17 }
0x2c71   : > { %v4913_v20 = vmul.f32 %v5945_v12, %v4912_v18 }
0x2c73   : > { %v4914_v19 = vadd.f32 -0.28449672, %v4913_v20 }
0x2c75   : > { %v4915_v21 = vmul.f32 %v5945_v12, %v4914_v19 }
0x2c77   : > { %v4916_v52 = vadd.f32 0.2548296, %v4915_v21 }
0x2c79   : > { %v4917_v22 = vmul.f32 %v5945_v12, %v4916_v52 }
0x2c7b   : > { %v4922_v24 = vmul.f32 %v5947_v23, %v4917_v22 }
0x2c7d   : > { %v4923_v25 = vsub.f32 1.0, %v4922_v24 }
0x2c7f   : > { %v4925_v27 = vsub.f32 0.0, %v4923_v25 }
0x2c81   : > { %v4926_v30 = vsel %vm4924_vm8, %v4923_v25, %v4925_v27 }
0x2c82   : > { %v4927_v32 = vadd.f32 1.0, %v4926_v30 }
0x2c84   : > { %v4928_v33 = vmul.f32 %v4927_v32, %v4902_v31 }
0x2c86   : > { %5736 = vmatmul.mubr.f32.vlgmr.msra.gmra.mrb[50].mxu1 %v4928_v33 }
0x2d59   : > { %v5012_v0 = vpop.f32.mrb[50].mxu1 }
0x2d5a   : > { %v5016_v36 = vadd.f32 %v5012_v0, %v6705_v15  ;;  %v5737_v37 = vpop.f32.mrb[51].mxu1 }
0x2d5c   : > { %v5025_v38 = vadd.f32 %v5239_v34, %v5016_v36 }
0x2d5e   : > { %5026 = vst.msk [vmem:[%s408_s28] sm:$0x1f] %vm412_vm0, %v5025_v38 }
0x2d5f PF: > { %s22_s21 = sadd.s32 1, %s5954_s21  }
0x2d60   : > { %p19_p4 = scmp.ge.s32.totalorder %s22_s21, 4  }
0x2d62   :  { %21 = sbr.rel (!%p19_p4) target bundleno = 1 (0x1), region = 109 }

</bundles_post_ra>
